<compile_context>
chip_gen: v6e
topology: v6e:2x2x1
jax: 0.10.0
libtpu: 0.0.40
codegen_flags: <defaults>
</compile_context>

<pallas_src>
import jax
import jax.numpy as jnp
from jax.experimental import pallas as pl
from jax.experimental.pallas import tpu as pltpu

BN_EPS = 1e-5
LANE = 128

_VMEM_LIMIT_CACHE = None


# ----------------------------------------------------------------------------
# small helpers
# ----------------------------------------------------------------------------
def _round_up(n, m):
    return (n + m - 1) // m * m


def _pad_axis(x, axis, new_size):
    pad = new_size - x.shape[axis]
    if pad == 0:
        return x
    widths = [(0, 0)] * x.ndim
    widths[axis] = (0, pad)
    return jnp.pad(x, widths)


def _divisor_leq(n, target):
    """Largest divisor of n that is <= target (>= 1)."""
    target = max(1, min(int(target), n))
    for d in range(target, 0, -1):
        if n % d == 0:
            return d
    return n


def _vmem_limit_bytes():
    """Generation-aware scoped-VMEM limit (cap for v7x's 64 MiB per-core VMEM)."""
    global _VMEM_LIMIT_CACHE
    if _VMEM_LIMIT_CACHE is None:
        cap = 64 * 1024 * 1024
        try:
            info = pltpu.get_tpu_info()
            cap = int(getattr(info, "vmem_capacity_bytes", cap))
        except Exception:
            cap = 64 * 1024 * 1024
        _VMEM_LIMIT_CACHE = int(min(cap * 3 // 4, 100 * 1024 * 1024))
    return _VMEM_LIMIT_CACHE


def _pixel_budget():
    # rows*width per conv tile; bigger tiles on 128 MiB-VMEM chips (v5e/v6e).
    return 4096 if _vmem_limit_bytes() >= 60 * 1024 * 1024 else 2048


def _cparams(*semantics):
    return pltpu.CompilerParams(
        dimension_semantics=semantics,
        vmem_limit_bytes=_vmem_limit_bytes(),
    )


# ----------------------------------------------------------------------------
# Kernel 1: ConvTranspose2d(kernel=2, stride=2).
# out[n, co, 2h+dh, 2w+dw] = b[co] + sum_ci x[n,ci,h,w] * Wt[ci,co,dh,dw]
# One matmul per dh; output written as (N*H, 2, W, 2*Co_p) -> the reshape to
# (N, 2H, 2W, Co_p) in the wrapper is order-preserving (free).
# ----------------------------------------------------------------------------
def _make_ct_kernel(THc, W, cin_p, co_p):
    def kernel(x_ref, w_ref, b_ref, o_ref):
        x2d = x_ref[...].reshape(THc * W, cin_p)
        for dh in range(2):
            y = jnp.dot(x2d, w_ref[dh], preferred_element_type=jnp.float32)
            y = y + b_ref[...]
            o_ref[:, dh:dh + 1, :, :] = (
                y.reshape(THc, 1, W, 2 * co_p).astype(o_ref.dtype))
    return kernel


def conv_transpose_2x2_s2(x_nhwc, w, b, co_p, *, row_tile=None):
    """x_nhwc: (N,H,W,Cin) f32; w: PyTorch (Cin,Cout,2,2); b: (Cout,).
    Returns (N, 2H, 2W, Co_p) bf16 (channel-padded to 128 lanes)."""
    N, H, W, cin = x_nhwc.shape
    cin_p = _round_up(cin, LANE)

    # (Cin, Cout, 2, 2) -> (dh, Cin_p, dw*Co_p + c)
    wt = jnp.transpose(w, (2, 0, 3, 1))                       # (dh, Cin, dw, Cout)
    wt = _pad_axis(_pad_axis(wt, 1, cin_p), 3, co_p)
    w_fold = wt.reshape(2, cin_p, 2 * co_p).astype(jnp.bfloat16)
    b_fold = jnp.tile(_pad_axis(b, 0, co_p), 2).reshape(1, 2 * co_p).astype(jnp.float32)

    x_p = _pad_axis(x_nhwc, 3, cin_p).astype(jnp.bfloat16)

    if row_tile is None:
        row_tile = max(1, _pixel_budget() // max(W, 1))
    THc = _divisor_leq(H, row_tile)
    Tc = H // THc

    out = pl.pallas_call(
        _make_ct_kernel(THc, W, cin_p, co_p),
        out_shape=jax.ShapeDtypeStruct((N * H, 2, W, 2 * co_p), jnp.bfloat16),
        grid=(N, Tc),
        in_specs=[pl.BlockSpec((None, THc, W, cin_p), lambda n, t: (n, t, 0, 0)),
                  pl.BlockSpec((2, cin_p, 2 * co_p), lambda n, t: (0, 0, 0)),
                  pl.BlockSpec((1, 2 * co_p), lambda n, t: (0, 0))],
        out_specs=pl.BlockSpec((THc, 2, W, 2 * co_p),
                               lambda n, t: (n * Tc + t, 0, 0, 0)),
        compiler_params=_cparams("parallel", "parallel"),
    )(x_p, w_fold, b_fold)

    # order-preserving free reshape: (N*H, 2, W, 2*Co_p) == (N, 2H, 2W, Co_p)
    return out.reshape(N, 2 * H, 2 * W, co_p)


# ----------------------------------------------------------------------------
# Kernel 2: conv3x3(pad=1) + bias over one or two channel-padded sources
# (fused concat), with the kw taps + sources folded into the matmul K dim.
# Optionally applies an input-side BN+tanh (scale/shift per input channel) so
# the previous layer's BN+tanh never touches HBM.  Emits the pre-BN activation
# (bf16) and per-tile BN partial statistics (sum, sum of squares) from the f32
# accumulator -- pass 1 of the two-pass BatchNorm.
# ----------------------------------------------------------------------------
def _make_conv_kernel(n_src, cps, TH, W2, co_p, in_act):
    ctot = sum(cps)
    K = 3 * ctot

    def kernel(*refs):
        i = 0
        srcs = []
        for _ in range(n_src):
            srcs.append((refs[i], refs[i + 1], refs[i + 2]))   # main, top, bottom
            i += 3
        w_ref = refs[i]
        b_ref = refs[i + 1]
        i += 2
        if in_act:
            sc_ref = refs[i]
            sh_ref = refs[i + 1]
            i += 2

            def act(v):
                a = jnp.tanh(v.astype(jnp.float32) * sc_ref[...] + sh_ref[...])
                return a.astype(v.dtype)
        else:
            def act(v):
                return v
        z_ref = refs[i]
        stats_ref = refs[i + 1]
        xpad = refs[i + 2]       # (TH+2, W2+2, Ctot) assembled padded window
        xfold = refs[i + 3]      # (TH+2, W2, 3*Ctot)  kw-folded window

        t = pl.program_id(1)
        first = t == 0
        last = t == pl.num_programs(1) - 1

        # left / right zero-padding columns (conv padding=1)
        zcol = jnp.zeros((TH + 2, 1, ctot), jnp.bfloat16)
        xpad[:, 0:1, :] = zcol
        xpad[:, W2 + 1:W2 + 2, :] = zcol

        # assemble the (TH+2)-row window; channel-concat of sources (fused cat);
        # boundary rows are zeroed (padding is applied AFTER the fused input act).
        off = 0
        for (main, top, bot), cp in zip(srcs, cps):
            xpad[1:TH + 1, 1:W2 + 1, off:off + cp] = act(main[...])
            tr = act(top[...])
            br = act(bot[...])
            zr = jnp.zeros_like(tr)
            xpad[0:1, 1:W2 + 1, off:off + cp] = jnp.where(first, zr, tr)
            xpad[TH + 1:TH + 2, 1:W2 + 1, off:off + cp] = jnp.where(last, zr, br)
            off += cp

        # kw-fold: xfold[r, w, kw*Ctot + c] = xpad[r, w + kw, c]
        for kw in range(3):
            xfold[:, :, kw * ctot:(kw + 1) * ctot] = xpad[:, kw:kw + W2, :]

        # 3 MXU matmuls over kh (K = 3*Ctot); SSA f32 accumulation, no per-tap
        # VMEM accumulator read-modify-writes.
        acc = None
        for kh in range(3):
            lhs = xfold[pl.ds(kh, TH), :, :].reshape(TH * W2, K)
            part = jnp.dot(lhs, w_ref[kh], preferred_element_type=jnp.float32)
            acc = part if acc is None else acc + part

        z = acc + b_ref[...]                                   # (TH*W2, Co_p) f32
        # per-tile BN partials from the f32 accumulator (reduced in the wrapper)
        stats_ref[0:1, :] = jnp.sum(z, axis=0, keepdims=True)
        stats_ref[1:2, :] = jnp.sum(z * z, axis=0, keepdims=True)
        z_ref[...] = z.reshape(TH, W2, co_p).astype(z_ref.dtype)

    return kernel


def conv3x3_bn_stats(sources, w_fold, bias, *, in_scale=None, in_shift=None,
                     row_tile=None):
    """sources: list of (N, H2, W2, Cp_s) bf16 channel-padded activations.
    w_fold: (3, 3*Ctot, Co_p) bf16 folded weights.  bias: (Co_p,).
    in_scale/in_shift: optional (Cp_src0,) BN scale/shift fused into the input.
    Returns z (N, H2, W2, Co_p) bf16 and stats (N, T, 2, Co_p) f32."""
    N, H2, W2, _ = sources[0].shape
    cps = [int(s.shape[-1]) for s in sources]
    ctot = sum(cps)
    co_p = int(w_fold.shape[-1])
    n_src = len(sources)
    in_act = in_scale is not None

    if row_tile is None:
        row_tile = max(1, _pixel_budget() // max(W2, 1))
    TH = _divisor_leq(H2, row_tile)
    T = H2 // TH

    kernel = _make_conv_kernel(n_src, cps, TH, W2, co_p, in_act)

    main_map = lambda n, t: (n, t, 0, 0)
    top_map = lambda n, t: (n, jnp.maximum(t * TH - 1, 0), 0, 0)
    bot_map = lambda n, t: (n, jnp.minimum((t + 1) * TH, H2 - 1), 0, 0)

    in_specs, args = [], []
    for s_arr in sources:
        cp = int(s_arr.shape[-1])
        in_specs.append(pl.BlockSpec((None, TH, W2, cp), main_map))
        in_specs.append(pl.BlockSpec((None, 1, W2, cp), top_map))
        in_specs.append(pl.BlockSpec((None, 1, W2, cp), bot_map))
        args.extend([s_arr, s_arr, s_arr])
    in_specs.append(pl.BlockSpec(tuple(w_fold.shape), lambda n, t: (0, 0, 0)))
    args.append(w_fold)
    in_specs.append(pl.BlockSpec((1, co_p), lambda n, t: (0, 0)))
    args.append(bias.reshape(1, co_p).astype(jnp.float32))
    if in_act:
        in_specs.append(pl.BlockSpec((1, cps[0]), lambda n, t: (0, 0)))
        args.append(in_scale.reshape(1, cps[0]).astype(jnp.float32))
        in_specs.append(pl.BlockSpec((1, cps[0]), lambda n, t: (0, 0)))
        args.append(in_shift.reshape(1, cps[0]).astype(jnp.float32))

    out_shapes = (jax.ShapeDtypeStruct((N, H2, W2, co_p), jnp.bfloat16),
                  jax.ShapeDtypeStruct((N, T, 2, co_p), jnp.float32))
    out_specs = (pl.BlockSpec((None, TH, W2, co_p), main_map),
                 pl.BlockSpec((None, None, 2, co_p), lambda n, t: (n, t, 0, 0)))

    scratch = [pltpu.VMEM((TH + 2, W2 + 2, ctot), jnp.bfloat16),
               pltpu.VMEM((TH + 2, W2, 3 * ctot), jnp.bfloat16)]

    z, stats = pl.pallas_call(
        kernel,
        out_shape=out_shapes,
        grid=(N, T),
        in_specs=in_specs,
        out_specs=out_specs,
        scratch_shapes=scratch,
        compiler_params=_cparams("parallel", "parallel"),
    )(*args)
    return z, stats


# ----------------------------------------------------------------------------
# Kernel 3: final BatchNorm (training-mode batch stats) + tanh, tiled
# elementwise.  Math in f32 (v5e VPU/EUP have no bf16).
# ----------------------------------------------------------------------------
def _bn_tanh_kernel(z_ref, sc_ref, sh_ref, o_ref):
    z = z_ref[...].astype(jnp.float32)
    o_ref[...] = jnp.tanh(z * sc_ref[...] + sh_ref[...]).astype(o_ref.dtype)


def bn_tanh(z, scale, shift, *, out_dtype=jnp.float32, row_tile=None):
    N, H2, W2, co_p = z.shape
    R = N * H2
    z3 = z.reshape(R, W2, co_p)
    if row_tile is None:
        row_tile = max(1, 2 * _pixel_budget() // max(W2, 1))
    TR = _divisor_leq(R, row_tile)

    out = pl.pallas_call(
        _bn_tanh_kernel,
        out_shape=jax.ShapeDtypeStruct((R, W2, co_p), out_dtype),
        grid=(R // TR,),
        in_specs=[pl.BlockSpec((TR, W2, co_p), lambda i: (i, 0, 0)),
                  pl.BlockSpec((1, 1, co_p), lambda i: (0, 0, 0)),
                  pl.BlockSpec((1, 1, co_p), lambda i: (0, 0, 0))],
        out_specs=pl.BlockSpec((TR, W2, co_p), lambda i: (i, 0, 0)),
        compiler_params=_cparams("parallel"),
    )(z3, scale.reshape(1, 1, co_p), shift.reshape(1, 1, co_p))
    return out.reshape(N, H2, W2, co_p)


# ----------------------------------------------------------------------------
# BN pass 2 folding (tiny wrapper-side reduction of the per-tile partials)
# ----------------------------------------------------------------------------
def _bn_scale_shift(stats, gamma_p, beta_p, count):
    s = jnp.sum(stats, axis=(0, 1))                       # (2, Co_p)
    mean = s[0] / count
    var = jnp.maximum(s[1] / count - mean * mean, 0.0)    # biased variance
    inv = jax.lax.rsqrt(var + BN_EPS)
    scale = gamma_p * inv
    shift = beta_p - gamma_p * mean * inv
    return scale.astype(jnp.float32), shift.astype(jnp.float32)


# ----------------------------------------------------------------------------
# weight re-arrangement (PyTorch layouts -> folded kernel layouts)
# ----------------------------------------------------------------------------
def _fold_conv3_weight(w, cin_splits, cps, co_p):
    """PyTorch Conv2d weight (Cout, Cin, 3, 3) -> (3, 3*Ctot, Co_p) bf16, where
    row block = kh and K index = kw*Ctot + concat-padded input channel."""
    parts, start = [], 0
    for cin_s, cp in zip(cin_splits, cps):
        ws = w[:, start:start + cin_s]                   # (Cout, cin_s, 3, 3)
        start += cin_s
        wt = jnp.transpose(ws, (2, 3, 1, 0))             # (kh, kw, cin_s, Cout)
        wt = _pad_axis(_pad_axis(wt, 2, cp), 3, co_p)
        parts.append(wt)
    wt_all = jnp.concatenate(parts, axis=2)              # (3, 3, Ctot, Co_p)
    ctot = wt_all.shape[2]
    return wt_all.reshape(3, 3 * ctot, co_p).astype(jnp.bfloat16)


# ----------------------------------------------------------------------------
# DecoderBlock forward
# ----------------------------------------------------------------------------
def init_decoder_params(key, input_filters, output_filters):
    ks = jax.random.split(key, 6)
    cat_ch = 2 * output_filters
    return {
        # ConvTranspose2d(in, out, 2, stride=2): weight (Cin, Cout, 2, 2)
        "ct_w": 0.1 * jax.random.normal(ks[0], (input_filters, output_filters, 2, 2), jnp.float32),
        "ct_b": 0.1 * jax.random.normal(ks[1], (output_filters,), jnp.float32),
        # conv1: Conv2d(2*out, out, 3, padding=1): weight (Cout, Cin, 3, 3)
        "c1_w": 0.1 * jax.random.normal(ks[2], (output_filters, cat_ch, 3, 3), jnp.float32),
        "c1_b": 0.1 * jax.random.normal(ks[3], (output_filters,), jnp.float32),
        "bn1_g": jnp.ones((output_filters,), jnp.float32),
        "bn1_b": jnp.zeros((output_filters,), jnp.float32),
        # conv2: Conv2d(out, out, 3, padding=1)
        "c2_w": 0.1 * jax.random.normal(ks[4], (output_filters, output_filters, 3, 3), jnp.float32),
        "c2_b": 0.1 * jax.random.normal(ks[5], (output_filters,), jnp.float32),
        "bn2_g": jnp.ones((output_filters,), jnp.float32),
        "bn2_b": jnp.zeros((output_filters,), jnp.float32),
    }


def decoder_block(x_nchw, skip_nchw, params, *, ct_rows=None, conv_rows=None,
                  bn_rows=None):
    N, _, H, W = x_nchw.shape
    cout = params["ct_b"].shape[0]
    co_p = _round_up(cout, LANE)

    # NCHW (PyTorch convention) -> NHWC (channels on the lane axis).
    x = jnp.transpose(x_nchw, (0, 2, 3, 1))
    skip = jnp.transpose(skip_nchw, (0, 2, 3, 1))
    skip_p = _pad_axis(skip, 3, co_p).astype(jnp.bfloat16)

    # 1) ConvTranspose2d(k=2, s=2) -> (N, 2H, 2W, Co_p) bf16 (free layout reshape)
    y = conv_transpose_2x2_s2(x, params["ct_w"], params["ct_b"], co_p,
                              row_tile=ct_rows)

    H2, W2 = 2 * H, 2 * W
    count = N * H2 * W2

    # 2) conv1 over concat([y, skip]): concat + taps folded into the matmul K
    #    dim; per-tile BN partials emitted from the f32 accumulator.
    w1 = _fold_conv3_weight(params["c1_w"], [cout, cout], [co_p, co_p], co_p)
    z1, st1 = conv3x3_bn_stats([y, skip_p], w1, _pad_axis(params["c1_b"], 0, co_p),
                               row_tile=conv_rows)
    sc1, sh1 = _bn_scale_shift(st1, _pad_axis(params["bn1_g"], 0, co_p),
                               _pad_axis(params["bn1_b"], 0, co_p), count)

    # 3) conv2 with BN1 + tanh fused into its input path (no standalone a1 pass)
    w2 = _fold_conv3_weight(params["c2_w"], [cout], [co_p], co_p)
    z2, st2 = conv3x3_bn_stats([z1], w2, _pad_axis(params["c2_b"], 0, co_p),
                               in_scale=sc1, in_shift=sh1, row_tile=conv_rows)
    sc2, sh2 = _bn_scale_shift(st2, _pad_axis(params["bn2_g"], 0, co_p),
                               _pad_axis(params["bn2_b"], 0, co_p), count)

    # 4) final BN2 + tanh
    a2 = bn_tanh(z2, sc2, sh2, out_dtype=jnp.float32, row_tile=bn_rows)

    # drop channel padding, back to NCHW
    return jnp.transpose(a2[..., :cout], (0, 3, 1, 2))


# ----------------------------------------------------------------------------
# pure-JAX f32 reference (PyTorch semantics) for a loose correctness check
# ----------------------------------------------------------------------------
def _reference_decoder_block(x, skip, params):
    P = jax.lax.Precision.HIGHEST
    w = params["ct_w"]
    N, _, H, W = x.shape
    cout = w.shape[1]
    y = jnp.einsum("nchw,cokl->nohkwl", x, w, precision=P)
    y = y.reshape(N, cout, 2 * H, 2 * W) + params["ct_b"][None, :, None, None]
    cat = jnp.concatenate([y, skip], axis=1)

    def conv3(xin, wgt, bias):
        out = jax.lax.conv_general_dilated(
            xin, wgt, window_strides=(1, 1), padding=((1, 1), (1, 1)),
            dimension_numbers=("NCHW", "OIHW", "NCHW"), precision=P)
        return out + bias[None, :, None, None]

    def bn(xin, g, b):
        mean = jnp.mean(xin, axis=(0, 2, 3), keepdims=True)
        var = jnp.mean((xin - mean) ** 2, axis=(0, 2, 3), keepdims=True)
        return ((xin - mean) * jax.lax.rsqrt(var + BN_EPS)
                * g[None, :, None, None] + b[None, :, None, None])

    z1 = conv3(cat, params["c1_w"], params["c1_b"])
    a1 = jnp.tanh(bn(z1, params["bn1_g"], params["bn1_b"]))
    z2 = conv3(a1, params["c2_w"], params["c2_b"])
    return jnp.tanh(bn(z2, params["bn2_g"], params["bn2_b"]))


if __name__ == "__main__":
    key = jax.random.PRNGKey(0)
    k_x, k_skip, k_par = jax.random.split(key, 3)

    N = 2
    input_filters = 8
    output_filters = 4
    H = W = 16  # decoder input spatial; skip features are 2H x 2W = 32 x 32

    x = jax.random.normal(k_x, (N, input_filters, H, W), jnp.float32)          # NCHW
    skip = jax.random.normal(k_skip, (N, output_filters, 2 * H, 2 * W), jnp.float32)

    params = init_decoder_params(k_par, input_filters, output_filters)

    # small tiles so the toy shapes exercise the multi-tile / halo / stats paths
    fwd = jax.jit(lambda a, b: decoder_block(a, b, params,
                                             ct_rows=4, conv_rows=8, bn_rows=16))
    out = jax.block_until_ready(fwd(x, skip))

    assert out.shape == (N, output_filters, 2 * H, 2 * W), out.shape
    assert bool(jnp.all(jnp.isfinite(out)))

    # loose tolerance: kernels run activations/weights in bf16 (f32 accumulate),
    # reference is full f32 -- tanh outputs agree to ~1e-2 typically.
    ref = jax.jit(lambda a, b: _reference_decoder_block(a, b, params))(x, skip)
    max_err = float(jnp.max(jnp.abs(out - ref)))
    assert max_err < 0.25, max_err

    print("KERNEL_OK")
</pallas_src>

<mosaic_0001>
module attributes {stable_mosaic.version = 11 : i64} {
  func.func @kernel(%arg0: i32, %arg1: i32, %arg2: memref<1x4x16x128xbf16, #tpu.memory_space<vmem>>, %arg3: memref<2x128x256xbf16, #tpu.memory_space<vmem>>, %arg4: memref<1x256xf32, #tpu.memory_space<vmem>>, %arg5: memref<4x2x16x256xbf16, #tpu.memory_space<vmem>>) attributes {dimension_semantics = [#tpu.dimension_semantics<parallel>, #tpu.dimension_semantics<parallel>], iteration_bounds = array<i64: 2, 4>, scalar_prefetch = 0 : i64, scratch_operands = 0 : i64, tpu.core_type = #tpu.core_type<tc>, window_params = [{transform_indices = @transform_0, window_bounds = array<i64: 1, 4, 16, 128>}, {pipeline_mode = #tpu.pipeline_mode<synchronous>, transform_indices = @transform_1, window_bounds = array<i64: 2, 128, 256>}, {pipeline_mode = #tpu.pipeline_mode<synchronous>, transform_indices = @transform_2, window_bounds = array<i64: 1, 256>}, {transform_indices = @transform_3, window_bounds = array<i64: 4, 2, 16, 256>}]} {
    %c0 = arith.constant 0 : index
    %c0_0 = arith.constant 0 : index
    %c0_1 = arith.constant 0 : index
    %c0_2 = arith.constant 0 : index
    %0 = vector.load %arg2[%c0, %c0_0, %c0_1, %c0_2] : memref<1x4x16x128xbf16, #tpu.memory_space<vmem>>, vector<1x4x16x128xbf16>
    %1 = vector.shape_cast %0 : vector<1x4x16x128xbf16> to vector<4x16x128xbf16>
    %2 = vector.shape_cast %1 : vector<4x16x128xbf16> to vector<64x128xbf16>
    %c0_3 = arith.constant 0 : index
    %c0_4 = arith.constant 0 : index
    %c0_5 = arith.constant 0 : index
    %3 = vector.load %arg3[%c0_3, %c0_4, %c0_5] : memref<2x128x256xbf16, #tpu.memory_space<vmem>>, vector<1x128x256xbf16>
    %4 = vector.shape_cast %3 : vector<1x128x256xbf16> to vector<128x256xbf16>
    %cst = arith.constant dense<0.000000e+00> : vector<64x256xf32>
    %5 = tpu.matmul %2, %4, %cst {dimension_numbers = #tpu.dot_dimension_numbers<[1], [0], [0], [1], [0, 0, 1, 1], [], []>} : vector<64x128xbf16>, vector<128x256xbf16>, vector<64x256xf32> -> vector<64x256xf32>
    %c0_6 = arith.constant 0 : index
    %c0_7 = arith.constant 0 : index
    %6 = vector.load %arg4[%c0_6, %c0_7] : memref<1x256xf32, #tpu.memory_space<vmem>>, vector<1x256xf32>
    %7 = vector.broadcast %6 : vector<1x256xf32> to vector<64x256xf32>
    %8 = arith.addf %5, %7 : vector<64x256xf32>
    %9 = vector.shape_cast %8 : vector<64x256xf32> to vector<4x1x16x256xf32>
    %10 = arith.truncf %9 : vector<4x1x16x256xf32> to vector<4x1x16x256xbf16>
    %c0_8 = arith.constant 0 : index
    %c0_9 = arith.constant 0 : index
    %c0_10 = arith.constant 0 : index
    %c0_11 = arith.constant 0 : index
    %11 = vector.load %arg5[%c0_8, %c0_9, %c0_10, %c0_11] : memref<4x2x16x256xbf16, #tpu.memory_space<vmem>>, vector<4x1x16x256xbf16>
    tpu.vector_store %arg5[%c0_8, %c0_9, %c0_10, %c0_11], %10 {strides = array<i32>} : memref<4x2x16x256xbf16, #tpu.memory_space<vmem>>, vector<4x1x16x256xbf16>,
    %c1 = arith.constant 1 : index
    %c0_12 = arith.constant 0 : index
    %c0_13 = arith.constant 0 : index
    %12 = vector.load %arg3[%c1, %c0_12, %c0_13] : memref<2x128x256xbf16, #tpu.memory_space<vmem>>, vector<1x128x256xbf16>
    %13 = vector.shape_cast %12 : vector<1x128x256xbf16> to vector<128x256xbf16>
    %cst_14 = arith.constant dense<0.000000e+00> : vector<64x256xf32>
    %14 = tpu.matmul %2, %13, %cst_14 {dimension_numbers = #tpu.dot_dimension_numbers<[1], [0], [0], [1], [0, 0, 1, 1], [], []>} : vector<64x128xbf16>, vector<128x256xbf16>, vector<64x256xf32> -> vector<64x256xf32>
    %c0_15 = arith.constant 0 : index
    %c0_16 = arith.constant 0 : index
    %15 = vector.load %arg4[%c0_15, %c0_16] : memref<1x256xf32, #tpu.memory_space<vmem>>, vector<1x256xf32>
    %16 = vector.broadcast %15 : vector<1x256xf32> to vector<64x256xf32>
    %17 = arith.addf %14, %16 : vector<64x256xf32>
    %18 = vector.shape_cast %17 : vector<64x256xf32> to vector<4x1x16x256xf32>
    %19 = arith.truncf %18 : vector<4x1x16x256xf32> to vector<4x1x16x256xbf16>
    %c0_17 = arith.constant 0 : index
    %c1_18 = arith.constant 1 : index
    %c0_19 = arith.constant 0 : index
    %c0_20 = arith.constant 0 : index
    %20 = vector.load %arg5[%c0_17, %c1_18, %c0_19, %c0_20] : memref<4x2x16x256xbf16, #tpu.memory_space<vmem>>, vector<4x1x16x256xbf16>
    tpu.vector_store %arg5[%c0_17, %c1_18, %c0_19, %c0_20], %19 {strides = array<i32>} : memref<4x2x16x256xbf16, #tpu.memory_space<vmem>>, vector<4x1x16x256xbf16>,
    return
  }
  func.func @transform_0(%arg0: i32, %arg1: i32) -> (i32, i32, i32, i32) {
    %c0_i32 = arith.constant 0 : i32
    %c0_i32_0 = arith.constant 0 : i32
    %c0_i32_1 = arith.constant 0 : i32
    return %arg0, %arg1, %c0_i32, %c0_i32_0 : i32, i32, i32, i32
  }
  func.func @transform_1(%arg0: i32, %arg1: i32) -> (i32, i32, i32) {
    %c0_i32 = arith.constant 0 : i32
    %c0_i32_0 = arith.constant 0 : i32
    %c0_i32_1 = arith.constant 0 : i32
    %c0_i32_2 = arith.constant 0 : i32
    return %c0_i32, %c0_i32_0, %c0_i32_1 : i32, i32, i32
  }
  func.func @transform_2(%arg0: i32, %arg1: i32) -> (i32, i32) {
    %c0_i32 = arith.constant 0 : i32
    %c0_i32_0 = arith.constant 0 : i32
    %c0_i32_1 = arith.constant 0 : i32
    return %c0_i32, %c0_i32_0 : i32, i32
  }
  func.func @transform_3(%arg0: i32, %arg1: i32) -> (i32, i32, i32, i32) {
    %c4_i32 = arith.constant 4 : i32
    %0 = arith.muli %arg0, %c4_i32 : i32
    %1 = arith.addi %0, %arg1 : i32
    %c0_i32 = arith.constant 0 : i32
    %c0_i32_0 = arith.constant 0 : i32
    %c0_i32_1 = arith.constant 0 : i32
    %c0_i32_2 = arith.constant 0 : i32
    return %1, %c0_i32, %c0_i32_0, %c0_i32_1 : i32, i32, i32, i32
  }
}

module attributes {stable_mosaic.version = 11 : i64} {
  func.func @kernel(%arg0: i32, %arg1: i32, %arg2: memref<1x8x32x128xbf16, #tpu.memory_space<vmem>>, %arg3: memref<1x1x32x128xbf16, #tpu.memory_space<vmem>>, %arg4: memref<1x1x32x128xbf16, #tpu.memory_space<vmem>>, %arg5: memref<1x8x32x128xbf16, #tpu.memory_space<vmem>>, %arg6: memref<1x1x32x128xbf16, #tpu.memory_space<vmem>>, %arg7: memref<1x1x32x128xbf16, #tpu.memory_space<vmem>>, %arg8: memref<3x768x128xbf16, #tpu.memory_space<vmem>>, %arg9: memref<1x128xf32, #tpu.memory_space<vmem>>, %arg10: memref<1x8x32x128xbf16, #tpu.memory_space<vmem>>, %arg11: memref<1x1x2x128xf32, #tpu.memory_space<vmem>>, %arg12: memref<10x34x256xbf16, #tpu.memory_space<vmem>>, %arg13: memref<10x32x768xbf16, #tpu.memory_space<vmem>>) attributes {dimension_semantics = [#tpu.dimension_semantics<parallel>, #tpu.dimension_semantics<parallel>], iteration_bounds = array<i64: 2, 4>, scalar_prefetch = 0 : i64, scratch_operands = 2 : i64, tpu.core_type = #tpu.core_type<tc>, window_params = [{transform_indices = @transform_0, window_bounds = array<i64: 1, 8, 32, 128>}, {transform_indices = @transform_1, window_bounds = array<i64: 1, 1, 32, 128>}, {transform_indices = @transform_2, window_bounds = array<i64: 1, 1, 32, 128>}, {transform_indices = @transform_3, window_bounds = array<i64: 1, 8, 32, 128>}, {transform_indices = @transform_4, window_bounds = array<i64: 1, 1, 32, 128>}, {transform_indices = @transform_5, window_bounds = array<i64: 1, 1, 32, 128>}, {pipeline_mode = #tpu.pipeline_mode<synchronous>, transform_indices = @transform_6, window_bounds = array<i64: 3, 768, 128>}, {pipeline_mode = #tpu.pipeline_mode<synchronous>, transform_indices = @transform_7, window_bounds = array<i64: 1, 128>}, {transform_indices = @transform_8, window_bounds = array<i64: 1, 8, 32, 128>}, {transform_indices = @transform_9, window_bounds = array<i64: 1, 1, 2, 128>}]} {
    %c0_i32 = arith.constant 0 : i32
    %0 = arith.cmpi eq, %arg1, %c0_i32 : i32
    %c3_i32 = arith.constant 3 : i32
    %1 = arith.cmpi eq, %arg1, %c3_i32 : i32
    %cst = arith.constant 0.000000e+00 : bf16
    %2 = vector.broadcast %cst : bf16 to vector<10x1x256xbf16>
    %c0 = arith.constant 0 : index
    %c0_0 = arith.constant 0 : index
    %c0_1 = arith.constant 0 : index
    %3 = vector.load %arg12[%c0, %c0_0, %c0_1] : memref<10x34x256xbf16, #tpu.memory_space<vmem>>, vector<10x1x256xbf16>
    tpu.vector_store %arg12[%c0, %c0_0, %c0_1], %2 {strides = array<i32>} : memref<10x34x256xbf16, #tpu.memory_space<vmem>>, vector<10x1x256xbf16>,
    %c0_2 = arith.constant 0 : index
    %c33 = arith.constant 33 : index
    %c0_3 = arith.constant 0 : index
    %4 = vector.load %arg12[%c0_2, %c33, %c0_3] : memref<10x34x256xbf16, #tpu.memory_space<vmem>>, vector<10x1x256xbf16>
    tpu.vector_store %arg12[%c0_2, %c33, %c0_3], %2 {strides = array<i32>} : memref<10x34x256xbf16, #tpu.memory_space<vmem>>, vector<10x1x256xbf16>,
    %c0_4 = arith.constant 0 : index
    %c0_5 = arith.constant 0 : index
    %c0_6 = arith.constant 0 : index
    %c0_7 = arith.constant 0 : index
    %5 = vector.load %arg2[%c0_4, %c0_5, %c0_6, %c0_7] : memref<1x8x32x128xbf16, #tpu.memory_space<vmem>>, vector<1x8x32x128xbf16>
    %6 = vector.shape_cast %5 : vector<1x8x32x128xbf16> to vector<8x32x128xbf16>
    %c1 = arith.constant 1 : index
    %c1_8 = arith.constant 1 : index
    %c0_9 = arith.constant 0 : index
    %7 = vector.load %arg12[%c1, %c1_8, %c0_9] : memref<10x34x256xbf16, #tpu.memory_space<vmem>>, vector<8x32x128xbf16>
    tpu.vector_store %arg12[%c1, %c1_8, %c0_9], %6 {strides = array<i32>} : memref<10x34x256xbf16, #tpu.memory_space<vmem>>, vector<8x32x128xbf16>,
    %c0_10 = arith.constant 0 : index
    %c0_11 = arith.constant 0 : index
    %c0_12 = arith.constant 0 : index
    %c0_13 = arith.constant 0 : index
    %8 = vector.load %arg3[%c0_10, %c0_11, %c0_12, %c0_13] : memref<1x1x32x128xbf16, #tpu.memory_space<vmem>>, vector<1x1x32x128xbf16>
    %9 = vector.shape_cast %8 : vector<1x1x32x128xbf16> to vector<1x32x128xbf16>
    %c0_14 = arith.constant 0 : index
    %c0_15 = arith.constant 0 : index
    %c0_16 = arith.constant 0 : index
    %c0_17 = arith.constant 0 : index
    %10 = vector.load %arg4[%c0_14, %c0_15, %c0_16, %c0_17] : memref<1x1x32x128xbf16, #tpu.memory_space<vmem>>, vector<1x1x32x128xbf16>
    %11 = vector.shape_cast %10 : vector<1x1x32x128xbf16> to vector<1x32x128xbf16>
    %cst_18 = arith.constant 0.000000e+00 : bf16
    %12 = vector.broadcast %cst_18 : bf16 to vector<1x32x128xbf16>
    %13 = arith.select %0, %12, %9 : vector<1x32x128xbf16>
    %c0_19 = arith.constant 0 : index
    %c1_20 = arith.constant 1 : index
    %c0_21 = arith.constant 0 : index
    %14 = vector.load %arg12[%c0_19, %c1_20, %c0_21] : memref<10x34x256xbf16, #tpu.memory_space<vmem>>, vector<1x32x128xbf16>
    tpu.vector_store %arg12[%c0_19, %c1_20, %c0_21], %13 {strides = array<i32>} : memref<10x34x256xbf16, #tpu.memory_space<vmem>>, vector<1x32x128xbf16>,
    %15 = arith.select %1, %12, %11 : vector<1x32x128xbf16>
    %c9 = arith.constant 9 : index
    %c1_22 = arith.constant 1 : index
    %c0_23 = arith.constant 0 : index
    %16 = vector.load %arg12[%c9, %c1_22, %c0_23] : memref<10x34x256xbf16, #tpu.memory_space<vmem>>, vector<1x32x128xbf16>
    tpu.vector_store %arg12[%c9, %c1_22, %c0_23], %15 {strides = array<i32>} : memref<10x34x256xbf16, #tpu.memory_space<vmem>>, vector<1x32x128xbf16>,
    %c0_24 = arith.constant 0 : index
    %c0_25 = arith.constant 0 : index
    %c0_26 = arith.constant 0 : index
    %c0_27 = arith.constant 0 : index
    %17 = vector.load %arg5[%c0_24, %c0_25, %c0_26, %c0_27] : memref<1x8x32x128xbf16, #tpu.memory_space<vmem>>, vector<1x8x32x128xbf16>
    %18 = vector.shape_cast %17 : vector<1x8x32x128xbf16> to vector<8x32x128xbf16>
    %c1_28 = arith.constant 1 : index
    %c1_29 = arith.constant 1 : index
    %c128 = arith.constant 128 : index
    %19 = vector.load %arg12[%c1_28, %c1_29, %c128] : memref<10x34x256xbf16, #tpu.memory_space<vmem>>, vector<8x32x128xbf16>
    tpu.vector_store %arg12[%c1_28, %c1_29, %c128], %18 {strides = array<i32>} : memref<10x34x256xbf16, #tpu.memory_space<vmem>>, vector<8x32x128xbf16>,
    %c0_30 = arith.constant 0 : index
    %c0_31 = arith.constant 0 : index
    %c0_32 = arith.constant 0 : index
    %c0_33 = arith.constant 0 : index
    %20 = vector.load %arg6[%c0_30, %c0_31, %c0_32, %c0_33] : memref<1x1x32x128xbf16, #tpu.memory_space<vmem>>, vector<1x1x32x128xbf16>
    %21 = vector.shape_cast %20 : vector<1x1x32x128xbf16> to vector<1x32x128xbf16>
    %c0_34 = arith.constant 0 : index
    %c0_35 = arith.constant 0 : index
    %c0_36 = arith.constant 0 : index
    %c0_37 = arith.constant 0 : index
    %22 = vector.load %arg7[%c0_34, %c0_35, %c0_36, %c0_37] : memref<1x1x32x128xbf16, #tpu.memory_space<vmem>>, vector<1x1x32x128xbf16>
    %23 = vector.shape_cast %22 : vector<1x1x32x128xbf16> to vector<1x32x128xbf16>
    %cst_38 = arith.constant 0.000000e+00 : bf16
    %24 = vector.broadcast %cst_38 : bf16 to vector<1x32x128xbf16>
    %25 = arith.select %0, %24, %21 : vector<1x32x128xbf16>
    %c0_39 = arith.constant 0 : index
    %c1_40 = arith.constant 1 : index
    %c128_41 = arith.constant 128 : index
    %26 = vector.load %arg12[%c0_39, %c1_40, %c128_41] : memref<10x34x256xbf16, #tpu.memory_space<vmem>>, vector<1x32x128xbf16>
    tpu.vector_store %arg12[%c0_39, %c1_40, %c128_41], %25 {strides = array<i32>} : memref<10x34x256xbf16, #tpu.memory_space<vmem>>, vector<1x32x128xbf16>,
    %27 = arith.select %1, %24, %23 : vector<1x32x128xbf16>
    %c9_42 = arith.constant 9 : index
    %c1_43 = arith.constant 1 : index
    %c128_44 = arith.constant 128 : index
    %28 = vector.load %arg12[%c9_42, %c1_43, %c128_44] : memref<10x34x256xbf16, #tpu.memory_space<vmem>>, vector<1x32x128xbf16>
    tpu.vector_store %arg12[%c9_42, %c1_43, %c128_44], %27 {strides = array<i32>} : memref<10x34x256xbf16, #tpu.memory_space<vmem>>, vector<1x32x128xbf16>,
    %c0_45 = arith.constant 0 : index
    %c0_46 = arith.constant 0 : index
    %c0_47 = arith.constant 0 : index
    %29 = vector.load %arg12[%c0_45, %c0_46, %c0_47] : memref<10x34x256xbf16, #tpu.memory_space<vmem>>, vector<10x32x256xbf16>
    %c0_48 = arith.constant 0 : index
    %c0_49 = arith.constant 0 : index
    %c0_50 = arith.constant 0 : index
    %30 = vector.load %arg13[%c0_48, %c0_49, %c0_50] : memref<10x32x768xbf16, #tpu.memory_space<vmem>>, vector<10x32x256xbf16>
    tpu.vector_store %arg13[%c0_48, %c0_49, %c0_50], %29 {strides = array<i32>} : memref<10x32x768xbf16, #tpu.memory_space<vmem>>, vector<10x32x256xbf16>,
    %c0_51 = arith.constant 0 : index
    %c1_52 = arith.constant 1 : index
    %c0_53 = arith.constant 0 : index
    %31 = vector.load %arg12[%c0_51, %c1_52, %c0_53] : memref<10x34x256xbf16, #tpu.memory_space<vmem>>, vector<10x32x256xbf16>
    %c0_54 = arith.constant 0 : index
    %c0_55 = arith.constant 0 : index
    %c256 = arith.constant 256 : index
    %32 = vector.load %arg13[%c0_54, %c0_55, %c256] : memref<10x32x768xbf16, #tpu.memory_space<vmem>>, vector<10x32x256xbf16>
    tpu.vector_store %arg13[%c0_54, %c0_55, %c256], %31 {strides = array<i32>} : memref<10x32x768xbf16, #tpu.memory_space<vmem>>, vector<10x32x256xbf16>,
    %c0_56 = arith.constant 0 : index
    %c2 = arith.constant 2 : index
    %c0_57 = arith.constant 0 : index
    %33 = vector.load %arg12[%c0_56, %c2, %c0_57] : memref<10x34x256xbf16, #tpu.memory_space<vmem>>, vector<10x32x256xbf16>
    %c0_58 = arith.constant 0 : index
    %c0_59 = arith.constant 0 : index
    %c512 = arith.constant 512 : index
    %34 = vector.load %arg13[%c0_58, %c0_59, %c512] : memref<10x32x768xbf16, #tpu.memory_space<vmem>>, vector<10x32x256xbf16>
    tpu.vector_store %arg13[%c0_58, %c0_59, %c512], %33 {strides = array<i32>} : memref<10x32x768xbf16, #tpu.memory_space<vmem>>, vector<10x32x256xbf16>,
    %c0_60 = arith.constant 0 : index
    %c0_61 = arith.constant 0 : index
    %c0_62 = arith.constant 0 : index
    %35 = vector.load %arg13[%c0_60, %c0_61, %c0_62] : memref<10x32x768xbf16, #tpu.memory_space<vmem>>, vector<8x32x768xbf16>
    %36 = vector.shape_cast %35 : vector<8x32x768xbf16> to vector<256x768xbf16>
    %c0_63 = arith.constant 0 : index
    %c0_64 = arith.constant 0 : index
    %c0_65 = arith.constant 0 : index
    %37 = vector.load %arg8[%c0_63, %c0_64, %c0_65] : memref<3x768x128xbf16, #tpu.memory_space<vmem>>, vector<1x768x128xbf16>
    %38 = vector.shape_cast %37 : vector<1x768x128xbf16> to vector<768x128xbf16>
    %cst_66 = arith.constant dense<0.000000e+00> : vector<256x128xf32>
    %39 = tpu.matmul %36, %38, %cst_66 {dimension_numbers = #tpu.dot_dimension_numbers<[1], [0], [0], [1], [0, 0, 1, 1], [], []>} : vector<256x768xbf16>, vector<768x128xbf16>, vector<256x128xf32> -> vector<256x128xf32>
    %c1_67 = arith.constant 1 : index
    %c0_68 = arith.constant 0 : index
    %c0_69 = arith.constant 0 : index
    %40 = vector.load %arg13[%c1_67, %c0_68, %c0_69] : memref<10x32x768xbf16, #tpu.memory_space<vmem>>, vector<8x32x768xbf16>
    %41 = vector.shape_cast %40 : vector<8x32x768xbf16> to vector<256x768xbf16>
    %c1_70 = arith.constant 1 : index
    %c0_71 = arith.constant 0 : index
    %c0_72 = arith.constant 0 : index
    %42 = vector.load %arg8[%c1_70, %c0_71, %c0_72] : memref<3x768x128xbf16, #tpu.memory_space<vmem>>, vector<1x768x128xbf16>
    %43 = vector.shape_cast %42 : vector<1x768x128xbf16> to vector<768x128xbf16>
    %cst_73 = arith.constant dense<0.000000e+00> : vector<256x128xf32>
    %44 = tpu.matmul %41, %43, %cst_73 {dimension_numbers = #tpu.dot_dimension_numbers<[1], [0], [0], [1], [0, 0, 1, 1], [], []>} : vector<256x768xbf16>, vector<768x128xbf16>, vector<256x128xf32> -> vector<256x128xf32>
    %45 = arith.addf %39, %44 : vector<256x128xf32>
    %c2_74 = arith.constant 2 : index
    %c0_75 = arith.constant 0 : index
    %c0_76 = arith.constant 0 : index
    %46 = vector.load %arg13[%c2_74, %c0_75, %c0_76] : memref<10x32x768xbf16, #tpu.memory_space<vmem>>, vector<8x32x768xbf16>
    %47 = vector.shape_cast %46 : vector<8x32x768xbf16> to vector<256x768xbf16>
    %c2_77 = arith.constant 2 : index
    %c0_78 = arith.constant 0 : index
    %c0_79 = arith.constant 0 : index
    %48 = vector.load %arg8[%c2_77, %c0_78, %c0_79] : memref<3x768x128xbf16, #tpu.memory_space<vmem>>, vector<1x768x128xbf16>
    %49 = vector.shape_cast %48 : vector<1x768x128xbf16> to vector<768x128xbf16>
    %cst_80 = arith.constant dense<0.000000e+00> : vector<256x128xf32>
    %50 = tpu.matmul %47, %49, %cst_80 {dimension_numbers = #tpu.dot_dimension_numbers<[1], [0], [0], [1], [0, 0, 1, 1], [], []>} : vector<256x768xbf16>, vector<768x128xbf16>, vector<256x128xf32> -> vector<256x128xf32>
    %51 = arith.addf %45, %50 : vector<256x128xf32>
    %c0_81 = arith.constant 0 : index
    %c0_82 = arith.constant 0 : index
    %52 = vector.load %arg9[%c0_81, %c0_82] : memref<1x128xf32, #tpu.memory_space<vmem>>, vector<1x128xf32>
    %53 = vector.broadcast %52 : vector<1x128xf32> to vector<256x128xf32>
    %54 = arith.addf %51, %53 : vector<256x128xf32>
    %cst_83 = arith.constant dense<0.000000e+00> : vector<128xf32>
    %55 = vector.multi_reduction <add>, %54, %cst_83 [0] : vector<256x128xf32> to vector<128xf32>
    %56 = vector.shape_cast %55 : vector<128xf32> to vector<1x128xf32>
    %c0_84 = arith.constant 0 : index
    %c0_85 = arith.constant 0 : index
    %c0_86 = arith.constant 0 : index
    %c0_87 = arith.constant 0 : index
    %57 = vector.load %arg11[%c0_84, %c0_85, %c0_86, %c0_87] : memref<1x1x2x128xf32, #tpu.memory_space<vmem>>, vector<1x1x1x128xf32>
    %58 = vector.shape_cast %57 : vector<1x1x1x128xf32> to vector<1x128xf32>
    %59 = vector.shape_cast %56 : vector<1x128xf32> to vector<1x1x1x128xf32>
    tpu.vector_store %arg11[%c0_84, %c0_85, %c0_86, %c0_87], %59 {strides = array<i32>} : memref<1x1x2x128xf32, #tpu.memory_space<vmem>>, vector<1x1x1x128xf32>,
    %60 = arith.mulf %54, %54 : vector<256x128xf32>
    %cst_88 = arith.constant dense<0.000000e+00> : vector<128xf32>
    %61 = vector.multi_reduction <add>, %60, %cst_88 [0] : vector<256x128xf32> to vector<128xf32>
    %62 = vector.shape_cast %61 : vector<128xf32> to vector<1x128xf32>
    %c0_89 = arith.constant 0 : index
    %c0_90 = arith.constant 0 : index
    %c1_91 = arith.constant 1 : index
    %c0_92 = arith.constant 0 : index
    %63 = vector.load %arg11[%c0_89, %c0_90, %c1_91, %c0_92] : memref<1x1x2x128xf32, #tpu.memory_space<vmem>>, vector<1x1x1x128xf32>
    %64 = vector.shape_cast %63 : vector<1x1x1x128xf32> to vector<1x128xf32>
    %65 = vector.shape_cast %62 : vector<1x128xf32> to vector<1x1x1x128xf32>
    tpu.vector_store %arg11[%c0_89, %c0_90, %c1_91, %c0_92], %65 {strides = array<i32>} : memref<1x1x2x128xf32, #tpu.memory_space<vmem>>, vector<1x1x1x128xf32>,
    %66 = vector.shape_cast %54 : vector<256x128xf32> to vector<8x32x128xf32>
    %67 = arith.truncf %66 : vector<8x32x128xf32> to vector<8x32x128xbf16>
    %c0_93 = arith.constant 0 : index
    %c0_94 = arith.constant 0 : index
    %c0_95 = arith.constant 0 : index
    %c0_96 = arith.constant 0 : index
    %68 = vector.load %arg10[%c0_93, %c0_94, %c0_95, %c0_96] : memref<1x8x32x128xbf16, #tpu.memory_space<vmem>>, vector<1x8x32x128xbf16>
    %69 = vector.shape_cast %68 : vector<1x8x32x128xbf16> to vector<8x32x128xbf16>
    %70 = vector.shape_cast %67 : vector<8x32x128xbf16> to vector<1x8x32x128xbf16>
    tpu.vector_store %arg10[%c0_93, %c0_94, %c0_95, %c0_96], %70 {strides = array<i32>} : memref<1x8x32x128xbf16, #tpu.memory_space<vmem>>, vector<1x8x32x128xbf16>,
    return
  }
  func.func @transform_0(%arg0: i32, %arg1: i32) -> (i32, i32, i32, i32) {
    %c0_i32 = arith.constant 0 : i32
    %c0_i32_0 = arith.constant 0 : i32
    %c0_i32_1 = arith.constant 0 : i32
    return %arg0, %arg1, %c0_i32, %c0_i32_0 : i32, i32, i32, i32
  }
  func.func @transform_1(%arg0: i32, %arg1: i32) -> (i32, i32, i32, i32) {
    %c8_i32 = arith.constant 8 : i32
    %0 = arith.muli %arg1, %c8_i32 : i32
    %c1_i32 = arith.constant 1 : i32
    %1 = arith.subi %0, %c1_i32 : i32
    %c0_i32 = arith.constant 0 : i32
    %2 = arith.maxsi %1, %c0_i32 : i32
    %c0_i32_0 = arith.constant 0 : i32
    %c0_i32_1 = arith.constant 0 : i32
    %c0_i32_2 = arith.constant 0 : i32
    return %arg0, %2, %c0_i32_0, %c0_i32_1 : i32, i32, i32, i32
  }
  func.func @transform_2(%arg0: i32, %arg1: i32) -> (i32, i32, i32, i32) {
    %c1_i32 = arith.constant 1 : i32
    %0 = arith.addi %arg1, %c1_i32 : i32
    %c8_i32 = arith.constant 8 : i32
    %1 = arith.muli %0, %c8_i32 : i32
    %c31_i32 = arith.constant 31 : i32
    %2 = arith.minsi %1, %c31_i32 : i32
    %c0_i32 = arith.constant 0 : i32
    %c0_i32_0 = arith.constant 0 : i32
    %c0_i32_1 = arith.constant 0 : i32
    return %arg0, %2, %c0_i32, %c0_i32_0 : i32, i32, i32, i32
  }
  func.func @transform_3(%arg0: i32, %arg1: i32) -> (i32, i32, i32, i32) {
    %c0_i32 = arith.constant 0 : i32
    %c0_i32_0 = arith.constant 0 : i32
    %c0_i32_1 = arith.constant 0 : i32
    return %arg0, %arg1, %c0_i32, %c0_i32_0 : i32, i32, i32, i32
  }
  func.func @transform_4(%arg0: i32, %arg1: i32) -> (i32, i32, i32, i32) {
    %c8_i32 = arith.constant 8 : i32
    %0 = arith.muli %arg1, %c8_i32 : i32
    %c1_i32 = arith.constant 1 : i32
    %1 = arith.subi %0, %c1_i32 : i32
    %c0_i32 = arith.constant 0 : i32
    %2 = arith.maxsi %1, %c0_i32 : i32
    %c0_i32_0 = arith.constant 0 : i32
    %c0_i32_1 = arith.constant 0 : i32
    %c0_i32_2 = arith.constant 0 : i32
    return %arg0, %2, %c0_i32_0, %c0_i32_1 : i32, i32, i32, i32
  }
  func.func @transform_5(%arg0: i32, %arg1: i32) -> (i32, i32, i32, i32) {
    %c1_i32 = arith.constant 1 : i32
    %0 = arith.addi %arg1, %c1_i32 : i32
    %c8_i32 = arith.constant 8 : i32
    %1 = arith.muli %0, %c8_i32 : i32
    %c31_i32 = arith.constant 31 : i32
    %2 = arith.minsi %1, %c31_i32 : i32
    %c0_i32 = arith.constant 0 : i32
    %c0_i32_0 = arith.constant 0 : i32
    %c0_i32_1 = arith.constant 0 : i32
    return %arg0, %2, %c0_i32, %c0_i32_0 : i32, i32, i32, i32
  }
  func.func @transform_6(%arg0: i32, %arg1: i32) -> (i32, i32, i32) {
    %c0_i32 = arith.constant 0 : i32
    %c0_i32_0 = arith.constant 0 : i32
    %c0_i32_1 = arith.constant 0 : i32
    %c0_i32_2 = arith.constant 0 : i32
    return %c0_i32, %c0_i32_0, %c0_i32_1 : i32, i32, i32
  }
  func.func @transform_7(%arg0: i32, %arg1: i32) -> (i32, i32) {
    %c0_i32 = arith.constant 0 : i32
    %c0_i32_0 = arith.constant 0 : i32
    %c0_i32_1 = arith.constant 0 : i32
    return %c0_i32, %c0_i32_0 : i32, i32
  }
  func.func @transform_8(%arg0: i32, %arg1: i32) -> (i32, i32, i32, i32) {
    %c0_i32 = arith.constant 0 : i32
    %c0_i32_0 = arith.constant 0 : i32
    %c0_i32_1 = arith.constant 0 : i32
    return %arg0, %arg1, %c0_i32, %c0_i32_0 : i32, i32, i32, i32
  }
  func.func @transform_9(%arg0: i32, %arg1: i32) -> (i32, i32, i32, i32) {
    %c0_i32 = arith.constant 0 : i32
    %c0_i32_0 = arith.constant 0 : i32
    %c0_i32_1 = arith.constant 0 : i32
    return %arg0, %arg1, %c0_i32, %c0_i32_0 : i32, i32, i32, i32
  }
}

module attributes {stable_mosaic.version = 11 : i64} {
  func.func @kernel(%arg0: i32, %arg1: i32, %arg2: memref<1x8x32x128xbf16, #tpu.memory_space<vmem>>, %arg3: memref<1x1x32x128xbf16, #tpu.memory_space<vmem>>, %arg4: memref<1x1x32x128xbf16, #tpu.memory_space<vmem>>, %arg5: memref<3x384x128xbf16, #tpu.memory_space<vmem>>, %arg6: memref<1x128xf32, #tpu.memory_space<vmem>>, %arg7: memref<1x128xf32, #tpu.memory_space<vmem>>, %arg8: memref<1x128xf32, #tpu.memory_space<vmem>>, %arg9: memref<1x8x32x128xbf16, #tpu.memory_space<vmem>>, %arg10: memref<1x1x2x128xf32, #tpu.memory_space<vmem>>, %arg11: memref<10x34x128xbf16, #tpu.memory_space<vmem>>, %arg12: memref<10x32x384xbf16, #tpu.memory_space<vmem>>) attributes {dimension_semantics = [#tpu.dimension_semantics<parallel>, #tpu.dimension_semantics<parallel>], iteration_bounds = array<i64: 2, 4>, scalar_prefetch = 0 : i64, scratch_operands = 2 : i64, tpu.core_type = #tpu.core_type<tc>, window_params = [{transform_indices = @transform_0, window_bounds = array<i64: 1, 8, 32, 128>}, {transform_indices = @transform_1, window_bounds = array<i64: 1, 1, 32, 128>}, {transform_indices = @transform_2, window_bounds = array<i64: 1, 1, 32, 128>}, {pipeline_mode = #tpu.pipeline_mode<synchronous>, transform_indices = @transform_3, window_bounds = array<i64: 3, 384, 128>}, {pipeline_mode = #tpu.pipeline_mode<synchronous>, transform_indices = @transform_4, window_bounds = array<i64: 1, 128>}, {pipeline_mode = #tpu.pipeline_mode<synchronous>, transform_indices = @transform_5, window_bounds = array<i64: 1, 128>}, {pipeline_mode = #tpu.pipeline_mode<synchronous>, transform_indices = @transform_6, window_bounds = array<i64: 1, 128>}, {transform_indices = @transform_7, window_bounds = array<i64: 1, 8, 32, 128>}, {transform_indices = @transform_8, window_bounds = array<i64: 1, 1, 2, 128>}]} {
    %c0_i32 = arith.constant 0 : i32
    %0 = arith.cmpi eq, %arg1, %c0_i32 : i32
    %c3_i32 = arith.constant 3 : i32
    %1 = arith.cmpi eq, %arg1, %c3_i32 : i32
    %cst = arith.constant 0.000000e+00 : bf16
    %2 = vector.broadcast %cst : bf16 to vector<10x1x128xbf16>
    %c0 = arith.constant 0 : index
    %c0_0 = arith.constant 0 : index
    %c0_1 = arith.constant 0 : index
    %3 = vector.load %arg11[%c0, %c0_0, %c0_1] : memref<10x34x128xbf16, #tpu.memory_space<vmem>>, vector<10x1x128xbf16>
    tpu.vector_store %arg11[%c0, %c0_0, %c0_1], %2 {strides = array<i32>} : memref<10x34x128xbf16, #tpu.memory_space<vmem>>, vector<10x1x128xbf16>,
    %c0_2 = arith.constant 0 : index
    %c33 = arith.constant 33 : index
    %c0_3 = arith.constant 0 : index
    %4 = vector.load %arg11[%c0_2, %c33, %c0_3] : memref<10x34x128xbf16, #tpu.memory_space<vmem>>, vector<10x1x128xbf16>
    tpu.vector_store %arg11[%c0_2, %c33, %c0_3], %2 {strides = array<i32>} : memref<10x34x128xbf16, #tpu.memory_space<vmem>>, vector<10x1x128xbf16>,
    %c0_4 = arith.constant 0 : index
    %c0_5 = arith.constant 0 : index
    %c0_6 = arith.constant 0 : index
    %c0_7 = arith.constant 0 : index
    %5 = vector.load %arg2[%c0_4, %c0_5, %c0_6, %c0_7] : memref<1x8x32x128xbf16, #tpu.memory_space<vmem>>, vector<1x8x32x128xbf16>
    %6 = vector.shape_cast %5 : vector<1x8x32x128xbf16> to vector<8x32x128xbf16>
    %7 = arith.extf %6 : vector<8x32x128xbf16> to vector<8x32x128xf32>
    %c0_8 = arith.constant 0 : index
    %c0_9 = arith.constant 0 : index
    %8 = vector.load %arg7[%c0_8, %c0_9] : memref<1x128xf32, #tpu.memory_space<vmem>>, vector<1x128xf32>
    %9 = vector.shape_cast %8 : vector<1x128xf32> to vector<1x1x128xf32>
    %10 = vector.broadcast %9 : vector<1x1x128xf32> to vector<8x32x128xf32>
    %11 = arith.mulf %7, %10 : vector<8x32x128xf32>
    %c0_10 = arith.constant 0 : index
    %c0_11 = arith.constant 0 : index
    %12 = vector.load %arg8[%c0_10, %c0_11] : memref<1x128xf32, #tpu.memory_space<vmem>>, vector<1x128xf32>
    %13 = vector.shape_cast %12 : vector<1x128xf32> to vector<1x1x128xf32>
    %14 = vector.broadcast %13 : vector<1x1x128xf32> to vector<8x32x128xf32>
    %15 = arith.addf %11, %14 : vector<8x32x128xf32>
    %16 = math.tanh %15 : vector<8x32x128xf32>
    %17 = arith.truncf %16 : vector<8x32x128xf32> to vector<8x32x128xbf16>
    %c1 = arith.constant 1 : index
    %c1_12 = arith.constant 1 : index
    %c0_13 = arith.constant 0 : index
    %18 = vector.load %arg11[%c1, %c1_12, %c0_13] : memref<10x34x128xbf16, #tpu.memory_space<vmem>>, vector<8x32x128xbf16>
    tpu.vector_store %arg11[%c1, %c1_12, %c0_13], %17 {strides = array<i32>} : memref<10x34x128xbf16, #tpu.memory_space<vmem>>, vector<8x32x128xbf16>,
    %c0_14 = arith.constant 0 : index
    %c0_15 = arith.constant 0 : index
    %c0_16 = arith.constant 0 : index
    %c0_17 = arith.constant 0 : index
    %19 = vector.load %arg3[%c0_14, %c0_15, %c0_16, %c0_17] : memref<1x1x32x128xbf16, #tpu.memory_space<vmem>>, vector<1x1x32x128xbf16>
    %20 = vector.shape_cast %19 : vector<1x1x32x128xbf16> to vector<1x32x128xbf16>
    %21 = arith.extf %20 : vector<1x32x128xbf16> to vector<1x32x128xf32>
    %c0_18 = arith.constant 0 : index
    %c0_19 = arith.constant 0 : index
    %22 = vector.load %arg7[%c0_18, %c0_19] : memref<1x128xf32, #tpu.memory_space<vmem>>, vector<1x128xf32>
    %23 = vector.shape_cast %22 : vector<1x128xf32> to vector<1x1x128xf32>
    %24 = vector.broadcast %23 : vector<1x1x128xf32> to vector<1x32x128xf32>
    %25 = arith.mulf %21, %24 : vector<1x32x128xf32>
    %c0_20 = arith.constant 0 : index
    %c0_21 = arith.constant 0 : index
    %26 = vector.load %arg8[%c0_20, %c0_21] : memref<1x128xf32, #tpu.memory_space<vmem>>, vector<1x128xf32>
    %27 = vector.shape_cast %26 : vector<1x128xf32> to vector<1x1x128xf32>
    %28 = vector.broadcast %27 : vector<1x1x128xf32> to vector<1x32x128xf32>
    %29 = arith.addf %25, %28 : vector<1x32x128xf32>
    %30 = math.tanh %29 : vector<1x32x128xf32>
    %31 = arith.truncf %30 : vector<1x32x128xf32> to vector<1x32x128xbf16>
    %c0_22 = arith.constant 0 : index
    %c0_23 = arith.constant 0 : index
    %c0_24 = arith.constant 0 : index
    %c0_25 = arith.constant 0 : index
    %32 = vector.load %arg4[%c0_22, %c0_23, %c0_24, %c0_25] : memref<1x1x32x128xbf16, #tpu.memory_space<vmem>>, vector<1x1x32x128xbf16>
    %33 = vector.shape_cast %32 : vector<1x1x32x128xbf16> to vector<1x32x128xbf16>
    %34 = arith.extf %33 : vector<1x32x128xbf16> to vector<1x32x128xf32>
    %c0_26 = arith.constant 0 : index
    %c0_27 = arith.constant 0 : index
    %35 = vector.load %arg7[%c0_26, %c0_27] : memref<1x128xf32, #tpu.memory_space<vmem>>, vector<1x128xf32>
    %36 = vector.shape_cast %35 : vector<1x128xf32> to vector<1x1x128xf32>
    %37 = vector.broadcast %36 : vector<1x1x128xf32> to vector<1x32x128xf32>
    %38 = arith.mulf %34, %37 : vector<1x32x128xf32>
    %c0_28 = arith.constant 0 : index
    %c0_29 = arith.constant 0 : index
    %39 = vector.load %arg8[%c0_28, %c0_29] : memref<1x128xf32, #tpu.memory_space<vmem>>, vector<1x128xf32>
    %40 = vector.shape_cast %39 : vector<1x128xf32> to vector<1x1x128xf32>
    %41 = vector.broadcast %40 : vector<1x1x128xf32> to vector<1x32x128xf32>
    %42 = arith.addf %38, %41 : vector<1x32x128xf32>
    %43 = math.tanh %42 : vector<1x32x128xf32>
    %44 = arith.truncf %43 : vector<1x32x128xf32> to vector<1x32x128xbf16>
    %cst_30 = arith.constant 0.000000e+00 : bf16
    %45 = vector.broadcast %cst_30 : bf16 to vector<1x32x128xbf16>
    %46 = arith.select %0, %45, %31 : vector<1x32x128xbf16>
    %c0_31 = arith.constant 0 : index
    %c1_32 = arith.constant 1 : index
    %c0_33 = arith.constant 0 : index
    %47 = vector.load %arg11[%c0_31, %c1_32, %c0_33] : memref<10x34x128xbf16, #tpu.memory_space<vmem>>, vector<1x32x128xbf16>
    tpu.vector_store %arg11[%c0_31, %c1_32, %c0_33], %46 {strides = array<i32>} : memref<10x34x128xbf16, #tpu.memory_space<vmem>>, vector<1x32x128xbf16>,
    %48 = arith.select %1, %45, %44 : vector<1x32x128xbf16>
    %c9 = arith.constant 9 : index
    %c1_34 = arith.constant 1 : index
    %c0_35 = arith.constant 0 : index
    %49 = vector.load %arg11[%c9, %c1_34, %c0_35] : memref<10x34x128xbf16, #tpu.memory_space<vmem>>, vector<1x32x128xbf16>
    tpu.vector_store %arg11[%c9, %c1_34, %c0_35], %48 {strides = array<i32>} : memref<10x34x128xbf16, #tpu.memory_space<vmem>>, vector<1x32x128xbf16>,
    %c0_36 = arith.constant 0 : index
    %c0_37 = arith.constant 0 : index
    %c0_38 = arith.constant 0 : index
    %50 = vector.load %arg11[%c0_36, %c0_37, %c0_38] : memref<10x34x128xbf16, #tpu.memory_space<vmem>>, vector<10x32x128xbf16>
    %c0_39 = arith.constant 0 : index
    %c0_40 = arith.constant 0 : index
    %c0_41 = arith.constant 0 : index
    %51 = vector.load %arg12[%c0_39, %c0_40, %c0_41] : memref<10x32x384xbf16, #tpu.memory_space<vmem>>, vector<10x32x128xbf16>
    tpu.vector_store %arg12[%c0_39, %c0_40, %c0_41], %50 {strides = array<i32>} : memref<10x32x384xbf16, #tpu.memory_space<vmem>>, vector<10x32x128xbf16>,
    %c0_42 = arith.constant 0 : index
    %c1_43 = arith.constant 1 : index
    %c0_44 = arith.constant 0 : index
    %52 = vector.load %arg11[%c0_42, %c1_43, %c0_44] : memref<10x34x128xbf16, #tpu.memory_space<vmem>>, vector<10x32x128xbf16>
    %c0_45 = arith.constant 0 : index
    %c0_46 = arith.constant 0 : index
    %c128 = arith.constant 128 : index
    %53 = vector.load %arg12[%c0_45, %c0_46, %c128] : memref<10x32x384xbf16, #tpu.memory_space<vmem>>, vector<10x32x128xbf16>
    tpu.vector_store %arg12[%c0_45, %c0_46, %c128], %52 {strides = array<i32>} : memref<10x32x384xbf16, #tpu.memory_space<vmem>>, vector<10x32x128xbf16>,
    %c0_47 = arith.constant 0 : index
    %c2 = arith.constant 2 : index
    %c0_48 = arith.constant 0 : index
    %54 = vector.load %arg11[%c0_47, %c2, %c0_48] : memref<10x34x128xbf16, #tpu.memory_space<vmem>>, vector<10x32x128xbf16>
    %c0_49 = arith.constant 0 : index
    %c0_50 = arith.constant 0 : index
    %c256 = arith.constant 256 : index
    %55 = vector.load %arg12[%c0_49, %c0_50, %c256] : memref<10x32x384xbf16, #tpu.memory_space<vmem>>, vector<10x32x128xbf16>
    tpu.vector_store %arg12[%c0_49, %c0_50, %c256], %54 {strides = array<i32>} : memref<10x32x384xbf16, #tpu.memory_space<vmem>>, vector<10x32x128xbf16>,
    %c0_51 = arith.constant 0 : index
    %c0_52 = arith.constant 0 : index
    %c0_53 = arith.constant 0 : index
    %56 = vector.load %arg12[%c0_51, %c0_52, %c0_53] : memref<10x32x384xbf16, #tpu.memory_space<vmem>>, vector<8x32x384xbf16>
    %57 = vector.shape_cast %56 : vector<8x32x384xbf16> to vector<256x384xbf16>
    %c0_54 = arith.constant 0 : index
    %c0_55 = arith.constant 0 : index
    %c0_56 = arith.constant 0 : index
    %58 = vector.load %arg5[%c0_54, %c0_55, %c0_56] : memref<3x384x128xbf16, #tpu.memory_space<vmem>>, vector<1x384x128xbf16>
    %59 = vector.shape_cast %58 : vector<1x384x128xbf16> to vector<384x128xbf16>
    %cst_57 = arith.constant dense<0.000000e+00> : vector<256x128xf32>
    %60 = tpu.matmul %57, %59, %cst_57 {dimension_numbers = #tpu.dot_dimension_numbers<[1], [0], [0], [1], [0, 0, 1, 1], [], []>} : vector<256x384xbf16>, vector<384x128xbf16>, vector<256x128xf32> -> vector<256x128xf32>
    %c1_58 = arith.constant 1 : index
    %c0_59 = arith.constant 0 : index
    %c0_60 = arith.constant 0 : index
    %61 = vector.load %arg12[%c1_58, %c0_59, %c0_60] : memref<10x32x384xbf16, #tpu.memory_space<vmem>>, vector<8x32x384xbf16>
    %62 = vector.shape_cast %61 : vector<8x32x384xbf16> to vector<256x384xbf16>
    %c1_61 = arith.constant 1 : index
    %c0_62 = arith.constant 0 : index
    %c0_63 = arith.constant 0 : index
    %63 = vector.load %arg5[%c1_61, %c0_62, %c0_63] : memref<3x384x128xbf16, #tpu.memory_space<vmem>>, vector<1x384x128xbf16>
    %64 = vector.shape_cast %63 : vector<1x384x128xbf16> to vector<384x128xbf16>
    %cst_64 = arith.constant dense<0.000000e+00> : vector<256x128xf32>
    %65 = tpu.matmul %62, %64, %cst_64 {dimension_numbers = #tpu.dot_dimension_numbers<[1], [0], [0], [1], [0, 0, 1, 1], [], []>} : vector<256x384xbf16>, vector<384x128xbf16>, vector<256x128xf32> -> vector<256x128xf32>
    %66 = arith.addf %60, %65 : vector<256x128xf32>
    %c2_65 = arith.constant 2 : index
    %c0_66 = arith.constant 0 : index
    %c0_67 = arith.constant 0 : index
    %67 = vector.load %arg12[%c2_65, %c0_66, %c0_67] : memref<10x32x384xbf16, #tpu.memory_space<vmem>>, vector<8x32x384xbf16>
    %68 = vector.shape_cast %67 : vector<8x32x384xbf16> to vector<256x384xbf16>
    %c2_68 = arith.constant 2 : index
    %c0_69 = arith.constant 0 : index
    %c0_70 = arith.constant 0 : index
    %69 = vector.load %arg5[%c2_68, %c0_69, %c0_70] : memref<3x384x128xbf16, #tpu.memory_space<vmem>>, vector<1x384x128xbf16>
    %70 = vector.shape_cast %69 : vector<1x384x128xbf16> to vector<384x128xbf16>
    %cst_71 = arith.constant dense<0.000000e+00> : vector<256x128xf32>
    %71 = tpu.matmul %68, %70, %cst_71 {dimension_numbers = #tpu.dot_dimension_numbers<[1], [0], [0], [1], [0, 0, 1, 1], [], []>} : vector<256x384xbf16>, vector<384x128xbf16>, vector<256x128xf32> -> vector<256x128xf32>
    %72 = arith.addf %66, %71 : vector<256x128xf32>
    %c0_72 = arith.constant 0 : index
    %c0_73 = arith.constant 0 : index
    %73 = vector.load %arg6[%c0_72, %c0_73] : memref<1x128xf32, #tpu.memory_space<vmem>>, vector<1x128xf32>
    %74 = vector.broadcast %73 : vector<1x128xf32> to vector<256x128xf32>
    %75 = arith.addf %72, %74 : vector<256x128xf32>
    %cst_74 = arith.constant dense<0.000000e+00> : vector<128xf32>
    %76 = vector.multi_reduction <add>, %75, %cst_74 [0] : vector<256x128xf32> to vector<128xf32>
    %77 = vector.shape_cast %76 : vector<128xf32> to vector<1x128xf32>
    %c0_75 = arith.constant 0 : index
    %c0_76 = arith.constant 0 : index
    %c0_77 = arith.constant 0 : index
    %c0_78 = arith.constant 0 : index
    %78 = vector.load %arg10[%c0_75, %c0_76, %c0_77, %c0_78] : memref<1x1x2x128xf32, #tpu.memory_space<vmem>>, vector<1x1x1x128xf32>
    %79 = vector.shape_cast %78 : vector<1x1x1x128xf32> to vector<1x128xf32>
    %80 = vector.shape_cast %77 : vector<1x128xf32> to vector<1x1x1x128xf32>
    tpu.vector_store %arg10[%c0_75, %c0_76, %c0_77, %c0_78], %80 {strides = array<i32>} : memref<1x1x2x128xf32, #tpu.memory_space<vmem>>, vector<1x1x1x128xf32>,
    %81 = arith.mulf %75, %75 : vector<256x128xf32>
    %cst_79 = arith.constant dense<0.000000e+00> : vector<128xf32>
    %82 = vector.multi_reduction <add>, %81, %cst_79 [0] : vector<256x128xf32> to vector<128xf32>
    %83 = vector.shape_cast %82 : vector<128xf32> to vector<1x128xf32>
    %c0_80 = arith.constant 0 : index
    %c0_81 = arith.constant 0 : index
    %c1_82 = arith.constant 1 : index
    %c0_83 = arith.constant 0 : index
    %84 = vector.load %arg10[%c0_80, %c0_81, %c1_82, %c0_83] : memref<1x1x2x128xf32, #tpu.memory_space<vmem>>, vector<1x1x1x128xf32>
    %85 = vector.shape_cast %84 : vector<1x1x1x128xf32> to vector<1x128xf32>
    %86 = vector.shape_cast %83 : vector<1x128xf32> to vector<1x1x1x128xf32>
    tpu.vector_store %arg10[%c0_80, %c0_81, %c1_82, %c0_83], %86 {strides = array<i32>} : memref<1x1x2x128xf32, #tpu.memory_space<vmem>>, vector<1x1x1x128xf32>,
    %87 = vector.shape_cast %75 : vector<256x128xf32> to vector<8x32x128xf32>
    %88 = arith.truncf %87 : vector<8x32x128xf32> to vector<8x32x128xbf16>
    %c0_84 = arith.constant 0 : index
    %c0_85 = arith.constant 0 : index
    %c0_86 = arith.constant 0 : index
    %c0_87 = arith.constant 0 : index
    %89 = vector.load %arg9[%c0_84, %c0_85, %c0_86, %c0_87] : memref<1x8x32x128xbf16, #tpu.memory_space<vmem>>, vector<1x8x32x128xbf16>
    %90 = vector.shape_cast %89 : vector<1x8x32x128xbf16> to vector<8x32x128xbf16>
    %91 = vector.shape_cast %88 : vector<8x32x128xbf16> to vector<1x8x32x128xbf16>
    tpu.vector_store %arg9[%c0_84, %c0_85, %c0_86, %c0_87], %91 {strides = array<i32>} : memref<1x8x32x128xbf16, #tpu.memory_space<vmem>>, vector<1x8x32x128xbf16>,
    return
  }
  func.func @transform_0(%arg0: i32, %arg1: i32) -> (i32, i32, i32, i32) {
    %c0_i32 = arith.constant 0 : i32
    %c0_i32_0 = arith.constant 0 : i32
    %c0_i32_1 = arith.constant 0 : i32
    return %arg0, %arg1, %c0_i32, %c0_i32_0 : i32, i32, i32, i32
  }
  func.func @transform_1(%arg0: i32, %arg1: i32) -> (i32, i32, i32, i32) {
    %c8_i32 = arith.constant 8 : i32
    %0 = arith.muli %arg1, %c8_i32 : i32
    %c1_i32 = arith.constant 1 : i32
    %1 = arith.subi %0, %c1_i32 : i32
    %c0_i32 = arith.constant 0 : i32
    %2 = arith.maxsi %1, %c0_i32 : i32
    %c0_i32_0 = arith.constant 0 : i32
    %c0_i32_1 = arith.constant 0 : i32
    %c0_i32_2 = arith.constant 0 : i32
    return %arg0, %2, %c0_i32_0, %c0_i32_1 : i32, i32, i32, i32
  }
  func.func @transform_2(%arg0: i32, %arg1: i32) -> (i32, i32, i32, i32) {
    %c1_i32 = arith.constant 1 : i32
    %0 = arith.addi %arg1, %c1_i32 : i32
    %c8_i32 = arith.constant 8 : i32
    %1 = arith.muli %0, %c8_i32 : i32
    %c31_i32 = arith.constant 31 : i32
    %2 = arith.minsi %1, %c31_i32 : i32
    %c0_i32 = arith.constant 0 : i32
    %c0_i32_0 = arith.constant 0 : i32
    %c0_i32_1 = arith.constant 0 : i32
    return %arg0, %2, %c0_i32, %c0_i32_0 : i32, i32, i32, i32
  }
  func.func @transform_3(%arg0: i32, %arg1: i32) -> (i32, i32, i32) {
    %c0_i32 = arith.constant 0 : i32
    %c0_i32_0 = arith.constant 0 : i32
    %c0_i32_1 = arith.constant 0 : i32
    %c0_i32_2 = arith.constant 0 : i32
    return %c0_i32, %c0_i32_0, %c0_i32_1 : i32, i32, i32
  }
  func.func @transform_4(%arg0: i32, %arg1: i32) -> (i32, i32) {
    %c0_i32 = arith.constant 0 : i32
    %c0_i32_0 = arith.constant 0 : i32
    %c0_i32_1 = arith.constant 0 : i32
    return %c0_i32, %c0_i32_0 : i32, i32
  }
  func.func @transform_5(%arg0: i32, %arg1: i32) -> (i32, i32) {
    %c0_i32 = arith.constant 0 : i32
    %c0_i32_0 = arith.constant 0 : i32
    %c0_i32_1 = arith.constant 0 : i32
    return %c0_i32, %c0_i32_0 : i32, i32
  }
  func.func @transform_6(%arg0: i32, %arg1: i32) -> (i32, i32) {
    %c0_i32 = arith.constant 0 : i32
    %c0_i32_0 = arith.constant 0 : i32
    %c0_i32_1 = arith.constant 0 : i32
    return %c0_i32, %c0_i32_0 : i32, i32
  }
  func.func @transform_7(%arg0: i32, %arg1: i32) -> (i32, i32, i32, i32) {
    %c0_i32 = arith.constant 0 : i32
    %c0_i32_0 = arith.constant 0 : i32
    %c0_i32_1 = arith.constant 0 : i32
    return %arg0, %arg1, %c0_i32, %c0_i32_0 : i32, i32, i32, i32
  }
  func.func @transform_8(%arg0: i32, %arg1: i32) -> (i32, i32, i32, i32) {
    %c0_i32 = arith.constant 0 : i32
    %c0_i32_0 = arith.constant 0 : i32
    %c0_i32_1 = arith.constant 0 : i32
    return %arg0, %arg1, %c0_i32, %c0_i32_0 : i32, i32, i32, i32
  }
}

module attributes {stable_mosaic.version = 11 : i64} {
  func.func @_bn_tanh_kernel(%arg0: i32, %arg1: memref<16x32x128xbf16, #tpu.memory_space<vmem>>, %arg2: memref<1x1x128xf32, #tpu.memory_space<vmem>>, %arg3: memref<1x1x128xf32, #tpu.memory_space<vmem>>, %arg4: memref<16x32x128xf32, #tpu.memory_space<vmem>>) attributes {dimension_semantics = [#tpu.dimension_semantics<parallel>], iteration_bounds = array<i64: 4>, scalar_prefetch = 0 : i64, scratch_operands = 0 : i64, tpu.core_type = #tpu.core_type<tc>, window_params = [{transform_indices = @transform_0, window_bounds = array<i64: 16, 32, 128>}, {pipeline_mode = #tpu.pipeline_mode<synchronous>, transform_indices = @transform_1, window_bounds = array<i64: 1, 1, 128>}, {pipeline_mode = #tpu.pipeline_mode<synchronous>, transform_indices = @transform_2, window_bounds = array<i64: 1, 1, 128>}, {transform_indices = @transform_3, window_bounds = array<i64: 16, 32, 128>}]} {
    %c0 = arith.constant 0 : index
    %c0_0 = arith.constant 0 : index
    %c0_1 = arith.constant 0 : index
    %0 = vector.load %arg1[%c0, %c0_0, %c0_1] : memref<16x32x128xbf16, #tpu.memory_space<vmem>>, vector<16x32x128xbf16>
    %1 = arith.extf %0 : vector<16x32x128xbf16> to vector<16x32x128xf32>
    %c0_2 = arith.constant 0 : index
    %c0_3 = arith.constant 0 : index
    %c0_4 = arith.constant 0 : index
    %2 = vector.load %arg2[%c0_2, %c0_3, %c0_4] : memref<1x1x128xf32, #tpu.memory_space<vmem>>, vector<1x1x128xf32>
    %3 = vector.broadcast %2 : vector<1x1x128xf32> to vector<16x32x128xf32>
    %4 = arith.mulf %1, %3 : vector<16x32x128xf32>
    %c0_5 = arith.constant 0 : index
    %c0_6 = arith.constant 0 : index
    %c0_7 = arith.constant 0 : index
    %5 = vector.load %arg3[%c0_5, %c0_6, %c0_7] : memref<1x1x128xf32, #tpu.memory_space<vmem>>, vector<1x1x128xf32>
    %6 = vector.broadcast %5 : vector<1x1x128xf32> to vector<16x32x128xf32>
    %7 = arith.addf %4, %6 : vector<16x32x128xf32>
    %8 = math.tanh %7 : vector<16x32x128xf32>
    %c0_8 = arith.constant 0 : index
    %c0_9 = arith.constant 0 : index
    %c0_10 = arith.constant 0 : index
    %9 = vector.load %arg4[%c0_8, %c0_9, %c0_10] : memref<16x32x128xf32, #tpu.memory_space<vmem>>, vector<16x32x128xf32>
    tpu.vector_store %arg4[%c0_8, %c0_9, %c0_10], %8 {strides = array<i32>} : memref<16x32x128xf32, #tpu.memory_space<vmem>>, vector<16x32x128xf32>,
    return
  }
  func.func @transform_0(%arg0: i32) -> (i32, i32, i32) {
    %c0_i32 = arith.constant 0 : i32
    %c0_i32_0 = arith.constant 0 : i32
    %c0_i32_1 = arith.constant 0 : i32
    return %arg0, %c0_i32, %c0_i32_0 : i32, i32, i32
  }
  func.func @transform_1(%arg0: i32) -> (i32, i32, i32) {
    %c0_i32 = arith.constant 0 : i32
    %c0_i32_0 = arith.constant 0 : i32
    %c0_i32_1 = arith.constant 0 : i32
    %c0_i32_2 = arith.constant 0 : i32
    return %c0_i32, %c0_i32_0, %c0_i32_1 : i32, i32, i32
  }
  func.func @transform_2(%arg0: i32) -> (i32, i32, i32) {
    %c0_i32 = arith.constant 0 : i32
    %c0_i32_0 = arith.constant 0 : i32
    %c0_i32_1 = arith.constant 0 : i32
    %c0_i32_2 = arith.constant 0 : i32
    return %c0_i32, %c0_i32_0, %c0_i32_1 : i32, i32, i32
  }
  func.func @transform_3(%arg0: i32) -> (i32, i32, i32) {
    %c0_i32 = arith.constant 0 : i32
    %c0_i32_0 = arith.constant 0 : i32
    %c0_i32_1 = arith.constant 0 : i32
    return %arg0, %c0_i32, %c0_i32_0 : i32, i32, i32
  }
}

</mosaic_0001>

<bundles_post_ra>
// kernel: tile.8
= control target key start
LH: loop header
LB: loop body
LE: loop exit
PB: predicated region body
PF: predicated region fallthrough
CT: control target
= control target key end

     0   :  { %s22_s0 = inlined_call_operand.vmem [shape: f32[128], index: 0, kind: input, shape index: {}]   ;;  %s23_s1 = inlined_call_operand.vmem [shape: f32[2,128], index: 1, kind: output, shape index: {}]  }
   0x1   :  { %v4_v0 = vld [vmem:[%s22_s0] ss:$0 sm:$0xff] }
   0x2   :  { %5 = vst [vmem:[%s23_s1] sm:$0x3] %v4_v0 }

// kernel: _lambda_.4
= control target key start
LH: loop header
LB: loop body
LE: loop exit
PB: predicated region body
PF: predicated region fallthrough
CT: control target
= control target key end

     0   :  { %s1073_s12 = smov 0   ;;  %s1075_s13 = smov 0   ;;  %s1307_s0 = inlined_call_operand.vmem [shape: bf16[2,16,16,128], index: 0, kind: input, shape index: {}]   ;;  %s1308_s1 = inlined_call_operand.vmem [shape: bf16[2,128,256], index: 1, kind: input, shape index: {}]   ;;  %s1309_s2 = inlined_call_operand.vmem [shape: f32[1,256], index: 2, kind: input, shape index: {}]   ;;  %s1310_s3 = inlined_call_operand.vmem [shape: bf16[32,2,16,256], index: 3, kind: output, shape index: {}]  }
   0x1   :  { %s1077_s14 = smov 0   ;;  %s1079_s15 = smov 0  }
   0x2   :  { %s1081_s16 = smov 0  }
   0x3 LB: > { %s22_s17 = sadd.s32 1, %s1042_s14  ;;  %s25_s18 = sadd.s32 1, %s1046_s15  ;;  %s1050_s16 = sphi %s1081_s16, %s13_s16   ;;  %s1046_s15 = sphi %s1079_s15, %s1314_s15   ;;  %s1042_s14 = sphi %s1077_s14, %s1313_s14   ;;  %s1038_s13 = sphi %s1075_s13, %s1312_s13   ;;  %s1034_s12 = sphi %s1073_s12, %s1311_s12  }
   0x4   : > { %p23_p0 = scmp.ge.s32.totalorder %s22_s17, 4  ;;  %p815_p1 = scmp.ge.s32.totalorder %s1050_s16, 1 }
   0x5   : > { %p161_p2 = scmp.lt.s32.totalorder %s1050_s16, 9 }
   0x6   : > { %s1316_s17 = smov (%p23_p0, %s22_s17), 0  ;;  %s1318_s18 = smov (!%p23_p0, %s25_s18), %s1046_s15 }
   0x7   : > { %p162_p3 = pnand %p815_p1, %p161_p2  ;;  %p27_p4 = scmp.ge.s32.totalorder %s1318_s18, 2 }
   0x8   : > { %s816_s21 = sshll.u32 (!%p162_p3), %s1034_s12, 2  ;;  %p194_p5 = scmp.lt.s32.totalorder (!%p162_p3), %s1038_s13, 1 }
   0x9   : > { %s1320_s18 = smov (%p27_p4, %s1318_s18), 0  ;;  %165 = sbr.rel (%p162_p3) target bundleno = 276 (0x114), region = 32 }
   0xa   : > { %p196_p6 = scmp.lt.s32.totalorder (!%p162_p3), %s816_s21, 15 }
   0xe   : > { %v960_v0 = vld [vmem:[%s1308_s1 + $0x74] ss:$8 sps:$4 sm:$0xff]   ;;  %v1052_v2 = vmov 0   ;;  %v964_v3 = vld [vmem:[%s1308_s1 + $0x70] ss:$8 sps:$4 sm:$0xff]   ;;  %s195_s9 = scalar_select %p194_p5, %s1038_s13, 1  ;;  %v242_v37 = vlaneseq }
   0xf   : > { %v962_v1 = vld [vmem:[%s1308_s1 + $0xf4] ss:$8 sps:$4 sm:$0xff]   ;;  %388 = vmatprep.mubr.bf16.mxu0 %v1052_v2  ;;  %626 = vmatprep.mubr.bf16.mxu1 %v1052_v2  ;;  %v965_v4 = vld [vmem:[%s1308_s1 + $0xf0] ss:$8 sps:$4 sm:$0xff]   ;;  %v966_v5 = vld [vmem:[%s1308_s1 + $0x64] ss:$8 sps:$4 sm:$0xff]  }
  0x10   : > { %356 = vmatprep.subr.bf16.mxu0 %v960_v0  ;;  %594 = vmatprep.subr.bf16.mxu1 %v962_v1  ;;  %v968_v6 = vld [vmem:[%s1308_s1 + $0xe4] ss:$8 sps:$4 sm:$0xff]   ;;  %v970_v7 = vld [vmem:[%s1308_s1 + $0x60] ss:$8 sps:$4 sm:$0xff]   ;;  %v972_v9 = vld [vmem:[%s1308_s1 + $0x54] ss:$8 sps:$4 sm:$0xff]  }
  0x11   : > { %357 = vmatpush1.bf16.msra.mxu0 %v964_v3  ;;  %595 = vmatpush1.bf16.msra.mxu1 %v965_v4  ;;  %v971_v8 = vld [vmem:[%s1308_s1 + $0xe0] ss:$8 sps:$4 sm:$0xff]   ;;  %s1322_s21 = smov (!%p196_p6, %s816_s21), 15  ;;  %v974_v10 = vld [vmem:[%s1308_s1 + $0xd4] ss:$8 sps:$4 sm:$0xff]   ;;  %s818_s6 = sshll.u32 %s195_s9, 5 }
  0x12   : > { %358 = vmatprep.subr.bf16.mxu0 %v966_v5  ;;  %596 = vmatprep.subr.bf16.mxu1 %v968_v6  ;;  %v976_v11 = vld [vmem:[%s1308_s1 + $0x50] ss:$8 sps:$4 sm:$0xff]   ;;  %v978_v13 = vld [vmem:[%s1308_s1 + $0x44] ss:$8 sps:$4 sm:$0xff]   ;;  %v982_v15 = vld [vmem:[%s1308_s1 + $0x40] ss:$8 sps:$4 sm:$0xff]  }
  0x13   : > { %v977_v12 = vld [vmem:[%s1308_s1 + $0xd0] ss:$8 sps:$4 sm:$0xff]   ;;  %v980_v14 = vld [vmem:[%s1308_s1 + $0xc4] ss:$8 sps:$4 sm:$0xff]   ;;  %s817_s5 = sshll.u32 %s1322_s21, 1  ;;  %v243_v38 = vshrl.u32 %v242_v37, 7 }
  0x14   : > { %v983_v16 = vld [vmem:[%s1308_s1 + $0xc0] ss:$8 sps:$4 sm:$0xff]   ;;  %v984_v17 = vld [vmem:[%s1308_s1 + $0x34] ss:$8 sps:$4 sm:$0xff]   ;;  %s200_s22 = sadd.s32 %s818_s6, %s817_s5  ;;  %v988_v19 = vld [vmem:[%s1308_s1 + $0x30] ss:$8 sps:$4 sm:$0xff]  }
  0x15   : > { %359 = vmatpush1.bf16.msra.mxu0 %v970_v7  ;;  %597 = vmatpush1.bf16.msra.mxu1 %v971_v8  ;;  %v986_v18 = vld [vmem:[%s1308_s1 + $0xb4] ss:$8 sps:$4 sm:$0xff]   ;;  %v989_v20 = vld [vmem:[%s1308_s1 + $0xb0] ss:$8 sps:$4 sm:$0xff]   ;;  %v990_v21 = vld [vmem:[%s1308_s1 + $0x24] ss:$8 sps:$4 sm:$0xff]  }
  0x16   : > { %360 = vmatprep.subr.bf16.mxu0 %v972_v9  ;;  %598 = vmatprep.subr.bf16.mxu1 %v974_v10  ;;  %v992_v22 = vld [vmem:[%s1308_s1 + $0xa4] ss:$8 sps:$4 sm:$0xff]   ;;  %s819_s29 = sshll.u32 %s200_s22, 2  ;;  %v994_v23 = vld [vmem:[%s1308_s1 + $0x20] ss:$8 sps:$4 sm:$0xff]   ;;  %s820_s6 = sshll.u32 %s1038_s13, 2 }
  0x17   : > { %v995_v24 = vld [vmem:[%s1308_s1 + $0xa0] ss:$8 sps:$4 sm:$0xff]   ;;  %v996_v25 = vld [vmem:[%s1308_s1 + $0x14] ss:$8 sps:$4 sm:$0xff]   ;;  %s1190_s19 = scalar_lea.vmem %s1307_s0, %s819_s29  ;;  %v1000_v27 = vld [vmem:[%s1308_s1 + $0x10] ss:$8 sps:$4 sm:$0xff]   ;;  %s205_s7 = sadd.s32 %s1034_s12, %s820_s6 }
  0x18   : > { %v998_v26 = vld [vmem:[%s1308_s1 + $0x94] ss:$8 sps:$4 sm:$0xff]   ;;  %v1001_v28 = vld [vmem:[%s1308_s1 + $0x90] ss:$8 sps:$4 sm:$0xff]   ;;  %v1002_v29 = vld [vmem:[%s1308_s1 + $0x4] ss:$8 sps:$4 sm:$0xff]  }
  0x19   : > { %361 = vmatpush1.bf16.msra.mxu0 %v976_v11  ;;  %599 = vmatpush1.bf16.msra.mxu1 %v977_v12  ;;  %v1004_v30 = vld [vmem:[%s1308_s1 + $0x84] ss:$8 sps:$4 sm:$0xff]   ;;  %v1006_v31 = vld [vmem:[%s1308_s1] ss:$8 sps:$4 sm:$0xff]   ;;  %v1010_v35 = vld [vmem:[%s1190_s19 + $0x10] sm:$0xff]   ;;  %s821_s8 = sshll.u32 %s205_s7, 2 }
  0x1a   : > { %362 = vmatprep.subr.bf16.mxu0 %v978_v13  ;;  %600 = vmatprep.subr.bf16.mxu1 %v980_v14  ;;  %v1007_v32 = vld [vmem:[%s1308_s1 + $0x80] ss:$8 sps:$4 sm:$0xff]   ;;  %v1011_v36 = vld [vmem:[%s1190_s19 + $0x18] sm:$0xff]   ;;  %p207_p7 = scmp.lt.s32.totalorder %s821_s8, 31  ;;  %v244_v39 = vsub.s32 0, %v243_v38  ;;  %v248_v40 = vsub.s32 1, %v243_v38 }
  0x1b   : > { %v1008_v33 = vld [vmem:[%s1190_s19] sm:$0xff]   ;;  %v1009_v34 = vld [vmem:[%s1190_s19 + $0x8] sm:$0xff]  }
  0x1c   : > { %v240_v41 = vld [vmem:[%s1309_s2] sm:$0x3]  ;;  %s1324_s8 = smov (!%p207_p7, %s821_s8), 31 }
  0x1d   : > { %363 = vmatpush1.bf16.msra.mxu0 %v982_v15  ;;  %601 = vmatpush1.bf16.msra.mxu1 %v983_v16  ;;  %v502_v42 = vld [vmem:[%s1309_s2] sm:$0x3]  ;;  %v1231_v43 = vrot.slane %v240_v41, %v244_v39  ;;  %v1235_v45 = vrot.slane %v240_v41, %v248_v40  ;;  %s902_s12 = sshll.u32 %s1324_s8, 5 }
  0x1e   : > { %364 = vmatprep.subr.bf16.mxu0 %v984_v17  ;;  %602 = vmatprep.subr.bf16.mxu1 %v986_v18  ;;  %v1233_v44 = vrot.slane %v502_v42, %v244_v39  ;;  %v1237_v46 = vrot.slane %v502_v42, %v248_v40  ;;  %s1246_s23 = scalar_lea.vmem %s1310_s3, %s902_s12 }
  0x21   : > { %365 = vmatpush1.bf16.msra.mxu0 %v988_v19  ;;  %603 = vmatpush1.bf16.msra.mxu1 %v989_v20 }
  0x22   : > { %366 = vmatprep.subr.bf16.mxu0 %v990_v21  ;;  %604 = vmatprep.subr.bf16.mxu1 %v992_v22 }
  0x25   : > { %367 = vmatpush1.bf16.msra.mxu0 %v994_v23  ;;  %605 = vmatpush1.bf16.msra.mxu1 %v995_v24 }
  0x26   : > { %368 = vmatprep.subr.bf16.mxu0 %v996_v25  ;;  %606 = vmatprep.subr.bf16.mxu1 %v998_v26 }
  0x29   : > { %369 = vmatpush1.bf16.msra.mxu0 %v1000_v27  ;;  %607 = vmatpush1.bf16.msra.mxu1 %v1001_v28 }
  0x2a   : > { %370 = vmatprep.subr.bf16.mxu0 %v1002_v29  ;;  %608 = vmatprep.subr.bf16.mxu1 %v1004_v30 }
  0x2d   : > { %371 = vmatpush1.bf16.msra.mxu0 %v1006_v31  ;;  %609 = vmatpush1.bf16.msra.mxu1 %v1007_v32 }
  0x30   : > { %389 = vmatmul.mubr.bf16.vlgmr.msra.gmra.mxu0 %v1008_v33  ;;  %627 = vmatmul.mubr.bf16.vlgmr.msra.gmra.mxu1 %v1008_v33 }
  0x31   : > { %398 = vmatprep.mubr.bf16.mxu0 %v1052_v2  ;;  %636 = vmatprep.mubr.bf16.mxu1 %v1052_v2 }
  0x38   : > { %399 = vmatmul.mubr.bf16.gmra.mxu0 %v1009_v34  ;;  %637 = vmatmul.mubr.bf16.gmra.mxu1 %v1009_v34 }
  0x39   : > { %408 = vmatprep.mubr.bf16.mxu0 %v1052_v2  ;;  %646 = vmatprep.mubr.bf16.mxu1 %v1052_v2 }
  0x40   : > { %409 = vmatmul.mubr.bf16.gmra.mxu0 %v1010_v35  ;;  %647 = vmatmul.mubr.bf16.gmra.mxu1 %v1010_v35 }
  0x41   : > { %418 = vmatprep.mubr.bf16.mxu0 %v1052_v2  ;;  %656 = vmatprep.mubr.bf16.mxu1 %v1052_v2 }
  0x48   : > { %419 = vmatmul.mubr.bf16.gmra.mxu0 %v1011_v36  ;;  %657 = vmatmul.mubr.bf16.gmra.mxu1 %v1011_v36 }
  0xf0   : > { %v390_v47 = vpop.f32.mrf.mxu0  ;;  %v628_v48 = vpop.f32.mrf.mxu1 }
  0xf1   : > { %v391_v51 = vadd.f32 %v390_v47, %v1231_v43  ;;  %v629_v52 = vadd.f32 %v628_v48, %v1233_v44 }
  0xf2   : > { %v392_v49 = vpop.f32.mrf.mxu0  ;;  %v630_v50 = vpop.f32.mrf.mxu1 }
  0xf3   : > { %v393_v53 = vadd.f32 %v392_v49, %v1235_v45  ;;  %v631_v54 = vadd.f32 %v630_v50, %v1237_v46 }
  0xf4   : > { %v394_v55 = vpop.f32.mrf.mxu0  ;;  %v632_v56 = vpop.f32.mrf.mxu1 }
  0xf5   : > { %v903_v57 = vpack.c.bf16 %v393_v53, %v391_v51  ;;  %v911_v58 = vpack.c.bf16 %v631_v54, %v629_v52  ;;  %v395_v61 = vadd.f32 %v394_v55, %v1231_v43  ;;  %v633_v62 = vadd.f32 %v632_v56, %v1233_v44 }
  0xf6   : > { %v396_v59 = vpop.f32.mrf.mxu0  ;;  %v634_v60 = vpop.f32.mrf.mxu1 }
  0xf7   : > { %477 = vst [vmem:[%s1246_s23] sm:$0xff] %v903_v57  ;;  %892 = vst [vmem:[%s1246_s23 + $0x10] sm:$0xff] %v911_v58  ;;  %v397_v63 = vadd.f32 %v396_v59, %v1235_v45  ;;  %v635_v0 = vadd.f32 %v634_v60, %v1237_v46 }
  0xf8   : > { %v400_v1 = vpop.f32.mrf.mxu0  ;;  %v638_v2 = vpop.f32.mrf.mxu1 }
  0xf9   : > { %v904_v3 = vpack.c.bf16 %v397_v63, %v395_v61  ;;  %v912_v4 = vpack.c.bf16 %v635_v0, %v633_v62  ;;  %v401_v7 = vadd.f32 %v400_v1, %v1231_v43  ;;  %v639_v8 = vadd.f32 %v638_v2, %v1233_v44 }
  0xfa   : > { %v402_v5 = vpop.f32.mrf.mxu0  ;;  %v640_v6 = vpop.f32.mrf.mxu1 }
  0xfb   : > { %478 = vst [vmem:[%s1246_s23 + $0x8] sm:$0xff] %v904_v3  ;;  %893 = vst [vmem:[%s1246_s23 + $0x18] sm:$0xff] %v912_v4  ;;  %v403_v9 = vadd.f32 %v402_v5, %v1235_v45  ;;  %v641_v10 = vadd.f32 %v640_v6, %v1237_v46 }
  0xfc   : > { %v404_v11 = vpop.f32.mrf.mxu0  ;;  %v642_v12 = vpop.f32.mrf.mxu1 }
  0xfd   : > { %v905_v13 = vpack.c.bf16 %v403_v9, %v401_v7  ;;  %v913_v14 = vpack.c.bf16 %v641_v10, %v639_v8  ;;  %v405_v17 = vadd.f32 %v404_v11, %v1231_v43  ;;  %v643_v18 = vadd.f32 %v642_v12, %v1233_v44 }
  0xfe   : > { %v406_v15 = vpop.f32.mrf.mxu0  ;;  %v644_v16 = vpop.f32.mrf.mxu1 }
  0xff   : > { %479 = vst [vmem:[%s1246_s23 + $0x20] sm:$0xff] %v905_v13  ;;  %894 = vst [vmem:[%s1246_s23 + $0x30] sm:$0xff] %v913_v14  ;;  %v407_v19 = vadd.f32 %v406_v15, %v1235_v45  ;;  %v645_v20 = vadd.f32 %v644_v16, %v1237_v46 }
 0x100   : > { %v410_v21 = vpop.f32.mrf.mxu0  ;;  %v648_v22 = vpop.f32.mrf.mxu1 }
 0x101   : > { %v906_v23 = vpack.c.bf16 %v407_v19, %v405_v17  ;;  %v914_v24 = vpack.c.bf16 %v645_v20, %v643_v18  ;;  %v411_v27 = vadd.f32 %v410_v21, %v1231_v43  ;;  %v649_v28 = vadd.f32 %v648_v22, %v1233_v44 }
 0x102   : > { %v412_v25 = vpop.f32.mrf.mxu0  ;;  %v650_v26 = vpop.f32.mrf.mxu1 }
 0x103   : > { %480 = vst [vmem:[%s1246_s23 + $0x28] sm:$0xff] %v906_v23  ;;  %895 = vst [vmem:[%s1246_s23 + $0x38] sm:$0xff] %v914_v24  ;;  %v413_v29 = vadd.f32 %v412_v25, %v1235_v45  ;;  %v651_v30 = vadd.f32 %v650_v26, %v1237_v46 }
 0x104   : > { %v414_v31 = vpop.f32.mrf.mxu0  ;;  %v652_v32 = vpop.f32.mrf.mxu1 }
 0x105   : > { %v907_v33 = vpack.c.bf16 %v413_v29, %v411_v27  ;;  %v915_v34 = vpack.c.bf16 %v651_v30, %v649_v28  ;;  %v415_v37 = vadd.f32 %v414_v31, %v1231_v43  ;;  %v653_v38 = vadd.f32 %v652_v32, %v1233_v44 }
 0x106   : > { %v416_v35 = vpop.f32.mrf.mxu0  ;;  %v654_v36 = vpop.f32.mrf.mxu1 }
 0x107   : > { %481 = vst [vmem:[%s1246_s23 + $0x40] sm:$0xff] %v907_v33  ;;  %896 = vst [vmem:[%s1246_s23 + $0x50] sm:$0xff] %v915_v34  ;;  %v417_v39 = vadd.f32 %v416_v35, %v1235_v45  ;;  %v655_v40 = vadd.f32 %v654_v36, %v1237_v46 }
 0x108   : > { %v420_v41 = vpop.f32.mrf.mxu0  ;;  %v658_v42 = vpop.f32.mrf.mxu1 }
 0x109   : > { %v908_v47 = vpack.c.bf16 %v417_v39, %v415_v37  ;;  %v916_v48 = vpack.c.bf16 %v655_v40, %v653_v38  ;;  %v421_v51 = vadd.f32 %v420_v41, %v1231_v43  ;;  %v659_v52 = vadd.f32 %v658_v42, %v1233_v44 }
 0x10a   : > { %v422_v49 = vpop.f32.mrf.mxu0  ;;  %v660_v50 = vpop.f32.mrf.mxu1 }
 0x10b   : > { %482 = vst [vmem:[%s1246_s23 + $0x48] sm:$0xff] %v908_v47  ;;  %897 = vst [vmem:[%s1246_s23 + $0x58] sm:$0xff] %v916_v48  ;;  %v423_v53 = vadd.f32 %v422_v49, %v1235_v45  ;;  %v661_v54 = vadd.f32 %v660_v50, %v1237_v46 }
 0x10c   : > { %v424_v55 = vpop.f32.mrf.mxu0  ;;  %v662_v56 = vpop.f32.mrf.mxu1 }
 0x10d   : > { %v909_v57 = vpack.c.bf16 %v423_v53, %v421_v51  ;;  %v917_v58 = vpack.c.bf16 %v661_v54, %v659_v52  ;;  %v425_v61 = vadd.f32 %v424_v55, %v1231_v43  ;;  %v663_v62 = vadd.f32 %v662_v56, %v1233_v44 }
 0x10e   : > { %v426_v59 = vpop.f32.mrf.mxu0  ;;  %v664_v60 = vpop.f32.mrf.mxu1 }
 0x10f   : > { %483 = vst [vmem:[%s1246_s23 + $0x60] sm:$0xff] %v909_v57  ;;  %898 = vst [vmem:[%s1246_s23 + $0x70] sm:$0xff] %v917_v58  ;;  %v427_v63 = vadd.f32 %v426_v59, %v1235_v45  ;;  %v665_v0 = vadd.f32 %v664_v60, %v1237_v46 }
 0x111   : > { %v910_v1 = vpack.c.bf16 %v427_v63, %v425_v61  ;;  %v918_v2 = vpack.c.bf16 %v665_v0, %v663_v62 }
 0x113   : > { %484 = vst [vmem:[%s1246_s23 + $0x68] sm:$0xff] %v910_v1  ;;  %899 = vst [vmem:[%s1246_s23 + $0x78] sm:$0xff] %v918_v2 }
 0x114 PF: > { %s13_s16 = sadd.s32 1, %s1050_s16   ;;  %s1311_s12 = smov %s1042_s14 }
 0x115   : > { %p10_p8 = scmp.ge.s32.totalorder %s13_s16, 10   ;;  %s1312_s13 = smov %s1046_s15 }
 0x116   : > { %s1313_s14 = smov %s1316_s17  ;;  %s1314_s15 = smov %s1320_s18 }
 0x117   :  { %12 = sbr.rel (!%p10_p8) target bundleno = 3 (0x3), region = 64 }

// kernel: _lambda_.7
= control target key start
LH: loop header
LB: loop body
LE: loop exit
PB: predicated region body
PF: predicated region fallthrough
CT: control target
= control target key end

     0   :  { %s975_s12 = smov 0   ;;  %s1234_s0 = inlined_call_operand.vmem [shape: bf16[64,32,128], index: 0, kind: input, shape index: {}]   ;;  %s1235_s1 = inlined_call_operand.vmem [shape: f32[1,1,128], index: 1, kind: input, shape index: {}]   ;;  %s1236_s2 = inlined_call_operand.vmem [shape: f32[1,1,128], index: 2, kind: input, shape index: {}]   ;;  %s1237_s3 = inlined_call_operand.vmem [shape: f32[64,32,128], index: 3, kind: output, shape index: {}]  }
   0x1 LB: > { %s635_s13 = sadd.s32 4294967295, %s953_s12   ;;  %p639_p0 = scmp.ge.s32.totalorder %s953_s12, 1  ;;  %s953_s12 = sphi %s975_s12, %s13_s12  }
   0x2   : > { %p139_p1 = scmp.lt.s32.totalorder %s953_s12, 5 }
   0x4   : > { %p140_p2 = pnand %p639_p0, %p139_p1 }
   0x5   : > { %s640_s14 = sshll.u32 (!%p140_p2), %s635_s13, 4 }
   0x6   : > { %143 = sbr.rel (%p140_p2) target bundleno = 99 (0x63), region = 32  ;;  %p166_p3 = scmp.lt.s32.totalorder (!%p140_p2), %s640_s14, 63 }
   0xb   : > { %s1239_s14 = smov (!%p166_p3, %s640_s14), 63  ;;  %v994_v0 = vld [vmem:[%s1235_s1] ss:$0 sm:$0xff] }
   0xc   : > { %s650_s15 = sshll.u32 %s1239_s14, 4  ;;  %v1003_v9 = vld [vmem:[%s1236_s2] ss:$0 sm:$0xff]  ;;  %s651_s23 = sshll.u32 %s1239_s14, 5 }
   0xd   : > { %s989_s18 = scalar_lea.vmem %s1234_s0, %s650_s15  ;;  %s1054_s26 = scalar_lea.vmem %s1237_s3, %s651_s23 }
   0xe   : > { %v653_v1 = vld [vmem:[%s989_s18] sm:$0xff]   ;;  %v780_v2 = vld [vmem:[%s989_s18 + $0x8] sm:$0xff]   ;;  %v781_v3 = vld [vmem:[%s989_s18 + $0x10] sm:$0xff]  }
   0xf   : > { %v654_v4 = vunpack.c.l.bf16 %v653_v1  ;;  %v655_v5 = vunpack.c.h.bf16 %v653_v1  ;;  %v658_v6 = vunpack.c.l.bf16 %v780_v2  ;;  %v659_v7 = vunpack.c.h.bf16 %v780_v2  ;;  %v782_v8 = vld [vmem:[%s989_s18 + $0x18] sm:$0xff]   ;;  %v783_v21 = vld [vmem:[%s989_s18 + $0x20] sm:$0xff]   ;;  %v784_v22 = vld [vmem:[%s989_s18 + $0x28] sm:$0xff]  }
  0x10   : > { %v662_v10 = vunpack.c.l.bf16 %v781_v3  ;;  %v663_v11 = vunpack.c.h.bf16 %v781_v3  ;;  %v666_v12 = vunpack.c.l.bf16 %v782_v8  ;;  %v667_v13 = vunpack.c.h.bf16 %v782_v8  ;;  %v785_v27 = vld [vmem:[%s989_s18 + $0x30] sm:$0xff]   ;;  %v786_v44 = vld [vmem:[%s989_s18 + $0x38] sm:$0xff]   ;;  %v787_v45 = vld [vmem:[%s989_s18 + $0x40] sm:$0xff]  }
  0x11   : > { %v314_v14 = vmul.f32 %v654_v4, %v994_v0  ;;  %v315_v15 = vmul.f32 %v655_v5, %v994_v0  ;;  %v316_v16 = vmul.f32 %v658_v6, %v994_v0  ;;  %v317_v17 = vmul.f32 %v659_v7, %v994_v0  ;;  %v788_v49 = vld [vmem:[%s989_s18 + $0x48] sm:$0xff]   ;;  %v789_v2 = vld [vmem:[%s989_s18 + $0x50] sm:$0xff]   ;;  %v790_v3 = vld [vmem:[%s989_s18 + $0x58] sm:$0xff]  }
  0x12   : > { %v318_v18 = vmul.f32 %v662_v10, %v994_v0  ;;  %v319_v19 = vmul.f32 %v663_v11, %v994_v0  ;;  %v320_v20 = vmul.f32 %v666_v12, %v994_v0  ;;  %v321_v26 = vmul.f32 %v667_v13, %v994_v0  ;;  %v791_v7 = vld [vmem:[%s989_s18 + $0x60] sm:$0xff]  }
  0x13   : > { %v385_v23 = vadd.f32 %v1003_v9, %v314_v14  ;;  %v386_v24 = vadd.f32 %v1003_v9, %v315_v15  ;;  %v387_v25 = vadd.f32 %v1003_v9, %v316_v16  ;;  %v388_v28 = vadd.f32 %v1003_v9, %v317_v17 }
  0x14   : > { %v389_v29 = vadd.f32 %v1003_v9, %v318_v18  ;;  %v390_v30 = vadd.f32 %v1003_v9, %v319_v19  ;;  %v391_v31 = vadd.f32 %v1003_v9, %v320_v20  ;;  %v670_v32 = vunpack.c.l.bf16 %v783_v21 }
  0x15   : > { %819 = vtanh.f32 %v385_v23  ;;  %v671_v33 = vunpack.c.h.bf16 %v783_v21  ;;  %v674_v34 = vunpack.c.l.bf16 %v784_v22  ;;  %v675_v35 = vunpack.c.h.bf16 %v784_v22 }
  0x16   : > { %821 = vtanh.f32 %v386_v24  ;;  %v678_v36 = vunpack.c.l.bf16 %v785_v27  ;;  %v679_v37 = vunpack.c.h.bf16 %v785_v27  ;;  %v322_v38 = vmul.f32 %v670_v32, %v994_v0  ;;  %v792_v27 = vld [vmem:[%s989_s18 + $0x68] sm:$0xff]  }
  0x17   : > { %823 = vtanh.f32 %v387_v25  ;;  %v323_v39 = vmul.f32 %v671_v33, %v994_v0  ;;  %v324_v40 = vmul.f32 %v674_v34, %v994_v0  ;;  %v392_v41 = vadd.f32 %v1003_v9, %v321_v26  ;;  %v794_v33 = vld [vmem:[%s989_s18 + $0x78] sm:$0xff]  }
  0x18   : > { %825 = vtanh.f32 %v388_v28  ;;  %v325_v42 = vmul.f32 %v675_v35, %v994_v0  ;;  %v326_v43 = vmul.f32 %v678_v36, %v994_v0  ;;  %v393_v46 = vadd.f32 %v1003_v9, %v322_v38  ;;  %v793_v28 = vld [vmem:[%s989_s18 + $0x70] sm:$0xff]  }
  0x19   : > { %827 = vtanh.f32 %v389_v29  ;;  %v394_v47 = vadd.f32 %v1003_v9, %v323_v39  ;;  %v327_v48 = vmul.f32 %v679_v37, %v994_v0  ;;  %v395_v50 = vadd.f32 %v1003_v9, %v324_v40 }
  0x1a   : > { %829 = vtanh.f32 %v390_v30  ;;  %v396_v51 = vadd.f32 %v1003_v9, %v325_v42  ;;  %v397_v52 = vadd.f32 %v1003_v9, %v326_v43  ;;  %v682_v53 = vunpack.c.l.bf16 %v786_v44 }
  0x1b   : > { %831 = vtanh.f32 %v391_v31  ;;  %v683_v54 = vunpack.c.h.bf16 %v786_v44  ;;  %v686_v55 = vunpack.c.l.bf16 %v787_v45  ;;  %v687_v56 = vunpack.c.h.bf16 %v787_v45 }
  0x1c   : > { %833 = vtanh.f32 %v392_v41  ;;  %v690_v57 = vunpack.c.l.bf16 %v788_v49  ;;  %v691_v58 = vunpack.c.h.bf16 %v788_v49  ;;  %v328_v59 = vmul.f32 %v682_v53, %v994_v0 }
  0x1d   : > { %835 = vtanh.f32 %v393_v46  ;;  %v329_v60 = vmul.f32 %v683_v54, %v994_v0  ;;  %v330_v61 = vmul.f32 %v686_v55, %v994_v0  ;;  %v398_v62 = vadd.f32 %v1003_v9, %v327_v48  ;;  %v795_v54 = vld [vmem:[%s989_s18 + $0x80] sm:$0xff]   ;;  %v796_v55 = vld [vmem:[%s989_s18 + $0x88] sm:$0xff]  }
  0x1e   : > { %837 = vtanh.f32 %v394_v47  ;;  %v331_v63 = vmul.f32 %v687_v56, %v994_v0  ;;  %v332_v1 = vmul.f32 %v690_v57, %v994_v0  ;;  %v399_v4 = vadd.f32 %v1003_v9, %v328_v59 }
  0x1f   : > { %839 = vtanh.f32 %v395_v50  ;;  %v400_v5 = vadd.f32 %v1003_v9, %v329_v60  ;;  %v333_v6 = vmul.f32 %v691_v58, %v994_v0  ;;  %v401_v8 = vadd.f32 %v1003_v9, %v330_v61  ;;  %v797_v60 = vld [vmem:[%s989_s18 + $0x90] sm:$0xff]  }
  0x20   : > { %841 = vtanh.f32 %v396_v51  ;;  %v402_v10 = vadd.f32 %v1003_v9, %v331_v63  ;;  %v403_v11 = vadd.f32 %v1003_v9, %v332_v1  ;;  %v694_v12 = vunpack.c.l.bf16 %v789_v2 }
  0x21   : > { %843 = vtanh.f32 %v397_v52  ;;  %v695_v13 = vunpack.c.h.bf16 %v789_v2  ;;  %v698_v14 = vunpack.c.l.bf16 %v790_v3  ;;  %v699_v16 = vunpack.c.h.bf16 %v790_v3 }
  0x22   : > { %v820_v15 = vpop.eup %819  ;;  %845 = vtanh.f32 %v398_v62  ;;  %v702_v17 = vunpack.c.l.bf16 %v791_v7  ;;  %v703_v18 = vunpack.c.h.bf16 %v791_v7  ;;  %v334_v20 = vmul.f32 %v694_v12, %v994_v0 }
  0x23   : > { %v822_v19 = vpop.eup %821  ;;  %513 = vst [vmem:[%s1054_s26] sm:$0xff] %v820_v15  ;;  %847 = vtanh.f32 %v399_v4  ;;  %v335_v21 = vmul.f32 %v695_v13, %v994_v0  ;;  %v336_v22 = vmul.f32 %v698_v14, %v994_v0  ;;  %v404_v24 = vadd.f32 %v1003_v9, %v333_v6 }
  0x24   : > { %v824_v23 = vpop.eup %823  ;;  %514 = vst [vmem:[%s1054_s26 + $0x8] sm:$0xff] %v822_v19  ;;  %849 = vtanh.f32 %v400_v5  ;;  %v337_v25 = vmul.f32 %v699_v16, %v994_v0  ;;  %v338_v26 = vmul.f32 %v702_v17, %v994_v0  ;;  %v405_v30 = vadd.f32 %v1003_v9, %v334_v20  ;;  %v798_v19 = vld [vmem:[%s989_s18 + $0x98] sm:$0xff]   ;;  %v799_v20 = vld [vmem:[%s989_s18 + $0xa0] sm:$0xff]  }
  0x25   : > { %v826_v29 = vpop.eup %825  ;;  %515 = vst [vmem:[%s1054_s26 + $0x10] sm:$0xff] %v824_v23  ;;  %851 = vtanh.f32 %v401_v8  ;;  %v406_v31 = vadd.f32 %v1003_v9, %v335_v21  ;;  %v339_v32 = vmul.f32 %v703_v18, %v994_v0  ;;  %v407_v35 = vadd.f32 %v1003_v9, %v336_v22 }
  0x26   : > { %v828_v34 = vpop.eup %827  ;;  %516 = vst [vmem:[%s1054_s26 + $0x18] sm:$0xff] %v826_v29  ;;  %853 = vtanh.f32 %v402_v10  ;;  %v408_v36 = vadd.f32 %v1003_v9, %v337_v25  ;;  %v409_v37 = vadd.f32 %v1003_v9, %v338_v26  ;;  %v706_v39 = vunpack.c.l.bf16 %v792_v27  ;;  %v800_v25 = vld [vmem:[%s989_s18 + $0xa8] sm:$0xff]  }
  0x27   : > { %v830_v38 = vpop.eup %829  ;;  %517 = vst [vmem:[%s1054_s26 + $0x20] sm:$0xff] %v828_v34  ;;  %855 = vtanh.f32 %v403_v11  ;;  %v707_v40 = vunpack.c.h.bf16 %v792_v27  ;;  %v710_v41 = vunpack.c.l.bf16 %v793_v28  ;;  %v711_v43 = vunpack.c.h.bf16 %v793_v28 }
  0x28   : > { %v832_v42 = vpop.eup %831  ;;  %518 = vst [vmem:[%s1054_s26 + $0x28] sm:$0xff] %v830_v38  ;;  %857 = vtanh.f32 %v404_v24  ;;  %v714_v44 = vunpack.c.l.bf16 %v794_v33  ;;  %v715_v45 = vunpack.c.h.bf16 %v794_v33  ;;  %v340_v47 = vmul.f32 %v706_v39, %v994_v0 }
  0x29   : > { %v834_v46 = vpop.eup %833  ;;  %519 = vst [vmem:[%s1054_s26 + $0x30] sm:$0xff] %v832_v42  ;;  %859 = vtanh.f32 %v405_v30  ;;  %v341_v48 = vmul.f32 %v707_v40, %v994_v0  ;;  %v342_v49 = vmul.f32 %v710_v41, %v994_v0  ;;  %v410_v51 = vadd.f32 %v1003_v9, %v339_v32 }
  0x2a   : > { %v836_v50 = vpop.eup %835  ;;  %520 = vst [vmem:[%s1054_s26 + $0x38] sm:$0xff] %v834_v46  ;;  %861 = vtanh.f32 %v406_v31  ;;  %v343_v52 = vmul.f32 %v711_v43, %v994_v0  ;;  %v344_v53 = vmul.f32 %v714_v44, %v994_v0  ;;  %v411_v57 = vadd.f32 %v1003_v9, %v340_v47  ;;  %v801_v46 = vld [vmem:[%s989_s18 + $0xb0] sm:$0xff]   ;;  %v802_v47 = vld [vmem:[%s989_s18 + $0xb8] sm:$0xff]  }
  0x2b   : > { %v838_v56 = vpop.eup %837  ;;  %521 = vst [vmem:[%s1054_s26 + $0x40] sm:$0xff] %v836_v50  ;;  %863 = vtanh.f32 %v407_v35  ;;  %v412_v58 = vadd.f32 %v1003_v9, %v341_v48  ;;  %v345_v59 = vmul.f32 %v715_v45, %v994_v0  ;;  %v413_v62 = vadd.f32 %v1003_v9, %v342_v49 }
  0x2c   : > { %v840_v61 = vpop.eup %839  ;;  %522 = vst [vmem:[%s1054_s26 + $0x48] sm:$0xff] %v838_v56  ;;  %865 = vtanh.f32 %v408_v36  ;;  %v414_v63 = vadd.f32 %v1003_v9, %v343_v52  ;;  %v415_v1 = vadd.f32 %v1003_v9, %v344_v53  ;;  %v718_v3 = vunpack.c.l.bf16 %v795_v54  ;;  %v803_v52 = vld [vmem:[%s989_s18 + $0xc0] sm:$0xff]  }
  0x2d   : > { %v842_v2 = vpop.eup %841  ;;  %523 = vst [vmem:[%s1054_s26 + $0x50] sm:$0xff] %v840_v61  ;;  %867 = vtanh.f32 %v409_v37  ;;  %v719_v4 = vunpack.c.h.bf16 %v795_v54  ;;  %v722_v5 = vunpack.c.l.bf16 %v796_v55  ;;  %v723_v7 = vunpack.c.h.bf16 %v796_v55 }
  0x2e   : > { %v844_v6 = vpop.eup %843  ;;  %524 = vst [vmem:[%s1054_s26 + $0x58] sm:$0xff] %v842_v2  ;;  %869 = vtanh.f32 %v410_v51  ;;  %v726_v8 = vunpack.c.l.bf16 %v797_v60  ;;  %v727_v10 = vunpack.c.h.bf16 %v797_v60  ;;  %v346_v12 = vmul.f32 %v718_v3, %v994_v0 }
  0x2f   : > { %v846_v11 = vpop.eup %845  ;;  %525 = vst [vmem:[%s1054_s26 + $0x60] sm:$0xff] %v844_v6  ;;  %871 = vtanh.f32 %v411_v57  ;;  %v347_v13 = vmul.f32 %v719_v4, %v994_v0  ;;  %v348_v14 = vmul.f32 %v722_v5, %v994_v0  ;;  %v416_v16 = vadd.f32 %v1003_v9, %v345_v59 }
  0x30   : > { %v848_v15 = vpop.eup %847  ;;  %526 = vst [vmem:[%s1054_s26 + $0x68] sm:$0xff] %v846_v11  ;;  %873 = vtanh.f32 %v412_v58  ;;  %v349_v17 = vmul.f32 %v723_v7, %v994_v0  ;;  %v350_v18 = vmul.f32 %v726_v8, %v994_v0  ;;  %v417_v22 = vadd.f32 %v1003_v9, %v346_v12  ;;  %v804_v11 = vld [vmem:[%s989_s18 + $0xc8] sm:$0xff]   ;;  %v805_v12 = vld [vmem:[%s989_s18 + $0xd0] sm:$0xff]  }
  0x31   : > { %v850_v21 = vpop.eup %849  ;;  %527 = vst [vmem:[%s1054_s26 + $0x70] sm:$0xff] %v848_v15  ;;  %875 = vtanh.f32 %v413_v62  ;;  %v418_v23 = vadd.f32 %v1003_v9, %v347_v13  ;;  %v351_v24 = vmul.f32 %v727_v10, %v994_v0  ;;  %v419_v27 = vadd.f32 %v1003_v9, %v348_v14 }
  0x32   : > { %v852_v26 = vpop.eup %851  ;;  %528 = vst [vmem:[%s1054_s26 + $0x78] sm:$0xff] %v850_v21  ;;  %877 = vtanh.f32 %v414_v63  ;;  %v420_v28 = vadd.f32 %v1003_v9, %v349_v17  ;;  %v421_v29 = vadd.f32 %v1003_v9, %v350_v18  ;;  %v730_v31 = vunpack.c.l.bf16 %v798_v19  ;;  %v806_v17 = vld [vmem:[%s989_s18 + $0xd8] sm:$0xff]  }
  0x33   : > { %v854_v30 = vpop.eup %853  ;;  %529 = vst [vmem:[%s1054_s26 + $0x80] sm:$0xff] %v852_v26  ;;  %879 = vtanh.f32 %v415_v1  ;;  %v731_v32 = vunpack.c.h.bf16 %v798_v19  ;;  %v734_v33 = vunpack.c.l.bf16 %v799_v20  ;;  %v735_v35 = vunpack.c.h.bf16 %v799_v20 }
  0x34   : > { %v856_v34 = vpop.eup %855  ;;  %530 = vst [vmem:[%s1054_s26 + $0x88] sm:$0xff] %v854_v30  ;;  %881 = vtanh.f32 %v416_v16  ;;  %v738_v36 = vunpack.c.l.bf16 %v800_v25  ;;  %v739_v37 = vunpack.c.h.bf16 %v800_v25  ;;  %v352_v39 = vmul.f32 %v730_v31, %v994_v0 }
  0x35   : > { %v858_v38 = vpop.eup %857  ;;  %531 = vst [vmem:[%s1054_s26 + $0x90] sm:$0xff] %v856_v34  ;;  %883 = vtanh.f32 %v417_v22  ;;  %v353_v40 = vmul.f32 %v731_v32, %v994_v0  ;;  %v354_v41 = vmul.f32 %v734_v33, %v994_v0  ;;  %v422_v43 = vadd.f32 %v1003_v9, %v351_v24 }
  0x36   : > { %v860_v42 = vpop.eup %859  ;;  %532 = vst [vmem:[%s1054_s26 + $0x98] sm:$0xff] %v858_v38  ;;  %885 = vtanh.f32 %v418_v23  ;;  %v355_v44 = vmul.f32 %v735_v35, %v994_v0  ;;  %v356_v45 = vmul.f32 %v738_v36, %v994_v0  ;;  %v423_v49 = vadd.f32 %v1003_v9, %v352_v39  ;;  %v807_v38 = vld [vmem:[%s989_s18 + $0xe0] sm:$0xff]   ;;  %v808_v39 = vld [vmem:[%s989_s18 + $0xe8] sm:$0xff]  }
  0x37   : > { %v862_v48 = vpop.eup %861  ;;  %533 = vst [vmem:[%s1054_s26 + $0xa0] sm:$0xff] %v860_v42  ;;  %887 = vtanh.f32 %v419_v27  ;;  %v424_v50 = vadd.f32 %v1003_v9, %v353_v40  ;;  %v357_v51 = vmul.f32 %v739_v37, %v994_v0  ;;  %v425_v54 = vadd.f32 %v1003_v9, %v354_v41 }
  0x38   : > { %v864_v53 = vpop.eup %863  ;;  %534 = vst [vmem:[%s1054_s26 + $0xa8] sm:$0xff] %v862_v48  ;;  %889 = vtanh.f32 %v420_v28  ;;  %v426_v55 = vadd.f32 %v1003_v9, %v355_v44  ;;  %v427_v56 = vadd.f32 %v1003_v9, %v356_v45  ;;  %v742_v58 = vunpack.c.l.bf16 %v801_v46  ;;  %v809_v44 = vld [vmem:[%s989_s18 + $0xf0] sm:$0xff]  }
  0x39   : > { %v866_v57 = vpop.eup %865  ;;  %535 = vst [vmem:[%s1054_s26 + $0xb0] sm:$0xff] %v864_v53  ;;  %891 = vtanh.f32 %v421_v29  ;;  %v743_v59 = vunpack.c.h.bf16 %v801_v46  ;;  %v746_v60 = vunpack.c.l.bf16 %v802_v47  ;;  %v747_v62 = vunpack.c.h.bf16 %v802_v47 }
  0x3a   : > { %v868_v61 = vpop.eup %867  ;;  %536 = vst [vmem:[%s1054_s26 + $0xb8] sm:$0xff] %v866_v57  ;;  %893 = vtanh.f32 %v422_v43  ;;  %v750_v63 = vunpack.c.l.bf16 %v803_v52  ;;  %v751_v1 = vunpack.c.h.bf16 %v803_v52  ;;  %v358_v3 = vmul.f32 %v742_v58, %v994_v0 }
  0x3b   : > { %v870_v2 = vpop.eup %869  ;;  %537 = vst [vmem:[%s1054_s26 + $0xc0] sm:$0xff] %v868_v61  ;;  %895 = vtanh.f32 %v423_v49  ;;  %v359_v4 = vmul.f32 %v743_v59, %v994_v0  ;;  %v360_v5 = vmul.f32 %v746_v60, %v994_v0  ;;  %v428_v7 = vadd.f32 %v1003_v9, %v357_v51 }
  0x3c   : > { %v872_v6 = vpop.eup %871  ;;  %538 = vst [vmem:[%s1054_s26 + $0xc8] sm:$0xff] %v870_v2  ;;  %897 = vtanh.f32 %v424_v50  ;;  %v361_v8 = vmul.f32 %v747_v62, %v994_v0  ;;  %v362_v10 = vmul.f32 %v750_v63, %v994_v0  ;;  %v429_v14 = vadd.f32 %v1003_v9, %v358_v3 }
  0x3d   : > { %v874_v13 = vpop.eup %873  ;;  %539 = vst [vmem:[%s1054_s26 + $0xd0] sm:$0xff] %v872_v6  ;;  %899 = vtanh.f32 %v425_v54  ;;  %v430_v15 = vadd.f32 %v1003_v9, %v359_v4  ;;  %v363_v16 = vmul.f32 %v751_v1, %v994_v0  ;;  %v431_v19 = vadd.f32 %v1003_v9, %v360_v5  ;;  %v810_v1 = vld [vmem:[%s989_s18 + $0xf8] sm:$0xff]  }
  0x3e   : > { %v876_v18 = vpop.eup %875  ;;  %540 = vst [vmem:[%s1054_s26 + $0xd8] sm:$0xff] %v874_v13  ;;  %901 = vtanh.f32 %v426_v55  ;;  %v432_v20 = vadd.f32 %v1003_v9, %v361_v8  ;;  %v433_v21 = vadd.f32 %v1003_v9, %v362_v10  ;;  %v754_v23 = vunpack.c.l.bf16 %v804_v11 }
  0x3f   : > { %v878_v22 = vpop.eup %877  ;;  %541 = vst [vmem:[%s1054_s26 + $0xe0] sm:$0xff] %v876_v18  ;;  %903 = vtanh.f32 %v427_v56  ;;  %v755_v24 = vunpack.c.h.bf16 %v804_v11  ;;  %v758_v25 = vunpack.c.l.bf16 %v805_v12  ;;  %v759_v27 = vunpack.c.h.bf16 %v805_v12 }
  0x40   : > { %v880_v26 = vpop.eup %879  ;;  %542 = vst [vmem:[%s1054_s26 + $0xe8] sm:$0xff] %v878_v22  ;;  %905 = vtanh.f32 %v428_v7  ;;  %v762_v28 = vunpack.c.l.bf16 %v806_v17  ;;  %v763_v29 = vunpack.c.h.bf16 %v806_v17  ;;  %v364_v31 = vmul.f32 %v754_v23, %v994_v0 }
  0x41   : > { %v882_v30 = vpop.eup %881  ;;  %543 = vst [vmem:[%s1054_s26 + $0xf0] sm:$0xff] %v880_v26  ;;  %907 = vtanh.f32 %v429_v14  ;;  %v365_v32 = vmul.f32 %v755_v24, %v994_v0  ;;  %v366_v33 = vmul.f32 %v758_v25, %v994_v0  ;;  %v434_v35 = vadd.f32 %v1003_v9, %v363_v16 }
  0x42   : > { %v884_v34 = vpop.eup %883  ;;  %544 = vst [vmem:[%s1054_s26 + $0xf8] sm:$0xff] %v882_v30  ;;  %909 = vtanh.f32 %v430_v15  ;;  %v367_v36 = vmul.f32 %v759_v27, %v994_v0  ;;  %v368_v37 = vmul.f32 %v762_v28, %v994_v0  ;;  %v435_v41 = vadd.f32 %v1003_v9, %v364_v31 }
  0x43   : > { %v886_v40 = vpop.eup %885  ;;  %545 = vst [vmem:[%s1054_s26 + $0x100] sm:$0xff] %v884_v34  ;;  %911 = vtanh.f32 %v431_v19  ;;  %v436_v42 = vadd.f32 %v1003_v9, %v365_v32  ;;  %v369_v43 = vmul.f32 %v763_v29, %v994_v0  ;;  %v437_v46 = vadd.f32 %v1003_v9, %v366_v33 }
  0x44   : > { %v888_v45 = vpop.eup %887  ;;  %546 = vst [vmem:[%s1054_s26 + $0x108] sm:$0xff] %v886_v40  ;;  %913 = vtanh.f32 %v432_v20  ;;  %v438_v47 = vadd.f32 %v1003_v9, %v367_v36  ;;  %v439_v48 = vadd.f32 %v1003_v9, %v368_v37  ;;  %v766_v50 = vunpack.c.l.bf16 %v807_v38 }
  0x45   : > { %v890_v49 = vpop.eup %889  ;;  %547 = vst [vmem:[%s1054_s26 + $0x110] sm:$0xff] %v888_v45  ;;  %915 = vtanh.f32 %v433_v21  ;;  %v767_v51 = vunpack.c.h.bf16 %v807_v38  ;;  %v770_v52 = vunpack.c.l.bf16 %v808_v39  ;;  %v771_v54 = vunpack.c.h.bf16 %v808_v39 }
  0x46   : > { %v892_v53 = vpop.eup %891  ;;  %548 = vst [vmem:[%s1054_s26 + $0x118] sm:$0xff] %v890_v49  ;;  %917 = vtanh.f32 %v434_v35  ;;  %v774_v55 = vunpack.c.l.bf16 %v809_v44  ;;  %v775_v56 = vunpack.c.h.bf16 %v809_v44  ;;  %v370_v58 = vmul.f32 %v766_v50, %v994_v0 }
  0x47   : > { %v894_v57 = vpop.eup %893  ;;  %549 = vst [vmem:[%s1054_s26 + $0x120] sm:$0xff] %v892_v53  ;;  %919 = vtanh.f32 %v435_v41  ;;  %v371_v59 = vmul.f32 %v767_v51, %v994_v0  ;;  %v372_v60 = vmul.f32 %v770_v52, %v994_v0  ;;  %v440_v62 = vadd.f32 %v1003_v9, %v369_v43 }
  0x48   : > { %v896_v61 = vpop.eup %895  ;;  %550 = vst [vmem:[%s1054_s26 + $0x128] sm:$0xff] %v894_v57  ;;  %921 = vtanh.f32 %v436_v42  ;;  %v373_v63 = vmul.f32 %v771_v54, %v994_v0  ;;  %v441_v3 = vadd.f32 %v1003_v9, %v370_v58  ;;  %v374_v4 = vmul.f32 %v774_v55, %v994_v0 }
  0x49   : > { %v898_v2 = vpop.eup %897  ;;  %551 = vst [vmem:[%s1054_s26 + $0x130] sm:$0xff] %v896_v61  ;;  %923 = vtanh.f32 %v437_v46  ;;  %v442_v6 = vadd.f32 %v1003_v9, %v371_v59  ;;  %v375_v7 = vmul.f32 %v775_v56, %v994_v0  ;;  %v443_v10 = vadd.f32 %v1003_v9, %v372_v60 }
  0x4a   : > { %v900_v5 = vpop.eup %899  ;;  %552 = vst [vmem:[%s1054_s26 + $0x138] sm:$0xff] %v898_v2  ;;  %925 = vtanh.f32 %v438_v47  ;;  %v778_v11 = vunpack.c.l.bf16 %v810_v1  ;;  %v779_v12 = vunpack.c.h.bf16 %v810_v1  ;;  %v444_v14 = vadd.f32 %v1003_v9, %v373_v63 }
  0x4b   : > { %v902_v8 = vpop.eup %901  ;;  %553 = vst [vmem:[%s1054_s26 + $0x140] sm:$0xff] %v900_v5  ;;  %927 = vtanh.f32 %v439_v48  ;;  %v445_v16 = vadd.f32 %v1003_v9, %v374_v4  ;;  %v446_v20 = vadd.f32 %v1003_v9, %v375_v7 }
  0x4c   : > { %v904_v13 = vpop.eup %903  ;;  %554 = vst [vmem:[%s1054_s26 + $0x148] sm:$0xff] %v902_v8  ;;  %929 = vtanh.f32 %v440_v62  ;;  %v376_v17 = vmul.f32 %v778_v11, %v994_v0  ;;  %v377_v18 = vmul.f32 %v779_v12, %v994_v0 }
  0x4d   : > { %v906_v15 = vpop.eup %905  ;;  %555 = vst [vmem:[%s1054_s26 + $0x150] sm:$0xff] %v904_v13  ;;  %931 = vtanh.f32 %v441_v3 }
  0x4e   : > { %v908_v19 = vpop.eup %907  ;;  %556 = vst [vmem:[%s1054_s26 + $0x158] sm:$0xff] %v906_v15  ;;  %933 = vtanh.f32 %v442_v6  ;;  %v447_v22 = vadd.f32 %v1003_v9, %v376_v17  ;;  %v448_v24 = vadd.f32 %v1003_v9, %v377_v18 }
  0x4f   : > { %v910_v21 = vpop.eup %909  ;;  %557 = vst [vmem:[%s1054_s26 + $0x160] sm:$0xff] %v908_v19  ;;  %935 = vtanh.f32 %v443_v10 }
  0x50   : > { %v912_v23 = vpop.eup %911  ;;  %558 = vst [vmem:[%s1054_s26 + $0x168] sm:$0xff] %v910_v21  ;;  %937 = vtanh.f32 %v444_v14 }
  0x51   : > { %v914_v0 = vpop.eup %913  ;;  %559 = vst [vmem:[%s1054_s26 + $0x170] sm:$0xff] %v912_v23  ;;  %939 = vtanh.f32 %v445_v16 }
  0x52   : > { %v916_v25 = vpop.eup %915  ;;  %560 = vst [vmem:[%s1054_s26 + $0x178] sm:$0xff] %v914_v0  ;;  %941 = vtanh.f32 %v446_v20 }
  0x53   : > { %v918_v26 = vpop.eup %917  ;;  %561 = vst [vmem:[%s1054_s26 + $0x180] sm:$0xff] %v916_v25  ;;  %943 = vtanh.f32 %v447_v22 }
  0x54   : > { %v920_v27 = vpop.eup %919  ;;  %562 = vst [vmem:[%s1054_s26 + $0x188] sm:$0xff] %v918_v26  ;;  %945 = vtanh.f32 %v448_v24 }
  0x55   : > { %v922_v9 = vpop.eup %921  ;;  %563 = vst [vmem:[%s1054_s26 + $0x190] sm:$0xff] %v920_v27 }
  0x56   : > { %v924_v28 = vpop.eup %923  ;;  %564 = vst [vmem:[%s1054_s26 + $0x198] sm:$0xff] %v922_v9 }
  0x57   : > { %v926_v29 = vpop.eup %925  ;;  %565 = vst [vmem:[%s1054_s26 + $0x1a0] sm:$0xff] %v924_v28 }
  0x58   : > { %v928_v30 = vpop.eup %927  ;;  %566 = vst [vmem:[%s1054_s26 + $0x1a8] sm:$0xff] %v926_v29 }
  0x59   : > { %v930_v31 = vpop.eup %929  ;;  %567 = vst [vmem:[%s1054_s26 + $0x1b0] sm:$0xff] %v928_v30 }
  0x5a   : > { %v932_v32 = vpop.eup %931  ;;  %568 = vst [vmem:[%s1054_s26 + $0x1b8] sm:$0xff] %v930_v31 }
  0x5b   : > { %v934_v33 = vpop.eup %933  ;;  %569 = vst [vmem:[%s1054_s26 + $0x1c0] sm:$0xff] %v932_v32 }
  0x5c   : > { %v936_v34 = vpop.eup %935  ;;  %570 = vst [vmem:[%s1054_s26 + $0x1c8] sm:$0xff] %v934_v33 }
  0x5d   : > { %v938_v35 = vpop.eup %937  ;;  %571 = vst [vmem:[%s1054_s26 + $0x1d0] sm:$0xff] %v936_v34 }
  0x5e   : > { %v940_v36 = vpop.eup %939  ;;  %572 = vst [vmem:[%s1054_s26 + $0x1d8] sm:$0xff] %v938_v35 }
  0x5f   : > { %v942_v37 = vpop.eup %941  ;;  %573 = vst [vmem:[%s1054_s26 + $0x1e0] sm:$0xff] %v940_v36 }
  0x60   : > { %v944_v38 = vpop.eup %943  ;;  %574 = vst [vmem:[%s1054_s26 + $0x1e8] sm:$0xff] %v942_v37 }
  0x61   : > { %v946_v39 = vpop.eup %945  ;;  %575 = vst [vmem:[%s1054_s26 + $0x1f0] sm:$0xff] %v944_v38 }
  0x62   : > { %576 = vst [vmem:[%s1054_s26 + $0x1f8] sm:$0xff] %v946_v39 }
  0x63 PF: > { %s13_s12 = sadd.s32 1, %s953_s12  }
  0x64   : > { %p10_p4 = scmp.ge.s32.totalorder %s13_s12, 6  }
  0x66   :  { %12 = sbr.rel (!%p10_p4) target bundleno = 1 (0x1), region = 62 }

// kernel: _lambda_.6
= control target key start
LH: loop header
LB: loop body
LE: loop exit
PB: predicated region body
PF: predicated region fallthrough
CT: control target
= control target key end

     0   :  { %s7126_s27 = smov 0   ;;  %s7128_s28 = smov 0   ;;  %s8848_s0 = inlined_call_operand.vmem [shape: bf16[2,32,32,128], index: 0, kind: input, shape index: {}, may-alias: {0,1,2}]   ;;  %s8849_s1 = inlined_call_operand.vmem [shape: bf16[2,32,32,128], index: 1, kind: input, shape index: {}, may-alias: {0,1,2}]   ;;  %s8850_s2 = inlined_call_operand.vmem [shape: bf16[2,32,32,128], index: 2, kind: input, shape index: {}, may-alias: {0,1,2}]   ;;  %s8851_s3 = inlined_call_operand.vmem [shape: bf16[3,384,128], index: 3, kind: input, shape index: {}]   ;;  %s8852_s4 = inlined_call_operand.vmem [shape: f32[1,128], index: 4, kind: input, shape index: {}]   ;;  %s8853_s5 = inlined_call_operand.vmem [shape: f32[1,128], index: 5, kind: input, shape index: {}]   ;;  %s8854_s6 = inlined_call_operand.vmem [shape: f32[1,128], index: 6, kind: input, shape index: {}]   ;;  %s8855_s7 = inlined_call_operand.vmem [shape: bf16[2,32,32,128], index: 7, kind: output, shape index: {0}]   ;;  %s8856_s8 = inlined_call_operand.vmem [shape: f32[2,4,2,128], index: 8, kind: output, shape index: {1}]  }
   0x1   :  { %s7130_s29 = smov 0   ;;  %s7132_s30 = smov 0  }
   0x2   :  { %s7134_s9 = smov 0  }
   0x3 LB: > { %s28_s10 = sadd.s32 1, %s7071_s29  ;;  %s31_s11 = sadd.s32 1, %s7075_s30  ;;  %s7079_s9 = sphi %s7134_s9, %s19_s9   ;;  %s7075_s30 = sphi %s7132_s30, %s8905_s30   ;;  %s7071_s29 = sphi %s7130_s29, %s8904_s29   ;;  %s7067_s28 = sphi %s7128_s28, %s8903_s28   ;;  %s7063_s27 = sphi %s7126_s27, %s8902_s27  }
   0x4   : > { %p29_p0 = scmp.ge.s32.totalorder %s28_s10, 4  ;;  %p5426_p1 = scmp.ge.s32.totalorder %s7079_s9, 1 }
   0x5   : > { %p353_p2 = scmp.lt.s32.totalorder %s7079_s9, 9 }
   0x6   : > { %s8907_s10 = smov (%p29_p0, %s28_s10), 0  ;;  %s8909_s11 = smov (!%p29_p0, %s31_s11), %s7075_s30 }
   0x7   : > { %p354_p3 = pnand %p5426_p1, %p353_p2  ;;  %p33_p4 = scmp.ge.s32.totalorder %s8909_s11, 2 }
   0x9   : > { %s8911_s11 = smov (%p33_p4, %s8909_s11), 0  ;;  %357 = sbr.rel (%p354_p3) target bundleno = 680 (0x2a8), region = 48 }
   0xe   : > { %v6727_v0 = vld [vmem:[%s8851_s3 + $0x138] sm:$0xff]   ;;  %s7162_s14 = sshll.u32 %s7063_s27, 3  ;;  %p432_p5 = scmp.lt.s32.totalorder %s7067_s28, 1  ;;  %v6729_v2 = vld [vmem:[%s8851_s3 + $0x130] sm:$0xff]   ;;  %v6731_v4 = vld [vmem:[%s8851_s3 + $0x128] sm:$0xff]   ;;  %vm498_vm0 = vcmask 1040384  }
   0xf   : > { %v6728_v1 = vld [vmem:[%s8851_s3 + $0xf8] sm:$0xff]   ;;  %6671 = vmatprep.subr.bf16.mxu1 %v6727_v0  ;;  %6119 = vmatprep.subr.bf16.mxu0 %v6727_v0  ;;  %p434_p6 = scmp.lt.s32.totalorder %s7162_s14, 31  ;;  %v6730_v3 = vld [vmem:[%s8851_s3 + $0xf0] sm:$0xff]   ;;  %v6732_v5 = vld [vmem:[%s8851_s3 + $0xe8] sm:$0xff]   ;;  %vm499_vm1 = vsmask.f32 256 }
  0x10   : > { %6679 = vmatpush3.bf16.msra.mxu1 %v6728_v1  ;;  %6120 = vmatpush3.bf16.msra.mxu0 %v6728_v1  ;;  %s8913_s28 = smov (!%p432_p5, %s7067_s28), 1  ;;  %v6733_v6 = vld [vmem:[%s8851_s3 + $0x120] sm:$0xff]   ;;  %v6735_v8 = vld [vmem:[%s8851_s3 + $0x118] sm:$0xff]   ;;  %v6737_v10 = vld [vmem:[%s8851_s3 + $0x110] sm:$0xff]   ;;  %vm531_vm3 = vsmask.f32 7938 }
  0x11   : > { %6672 = vmatprep.subr.bf16.mxu1 %v6729_v2  ;;  %6121 = vmatprep.subr.bf16.mxu0 %v6729_v2  ;;  %s435_s23 = scalar_select %p434_p6, %s7162_s14, 31  ;;  %v6734_v7 = vld [vmem:[%s8851_s3 + $0xe0] sm:$0xff]   ;;  %v6736_v9 = vld [vmem:[%s8851_s3 + $0xd8] sm:$0xff]   ;;  %v504_v11 = vld [vmem:[#allocation2 + $0x14] sm:$0x1]  ;;  %vm1156_vm5 = vcmask 1043456  }
  0x12   : > { %s7181_s24 = sshll.u32 %s8913_s28, 7  ;;  %vm7214_vm2 = vmand %vm498_vm0, %vm499_vm1  ;;  %v6738_v15 = vld [vmem:[%s8851_s3 + $0xd0] sm:$0xff]   ;;  %v7228_v20 = vld [vmem:[%s8853_s5] ss:$0 sm:$0xff]  ;;  %vm833_vm6 = vsmask.f32 4368 }
  0x13   : > { %s5428_s25 = sshll.u32 %s435_s23, 2  ;;  %v505_v16 = vsel %vm7214_vm2, 0, %v504_v11  ;;  %v7233_v21 = vld [vmem:[%s8854_s6] ss:$0 sm:$0xff]  ;;  %v522_v22 = vld [vmem:[#allocation2 + $0x8c] sm:$0x1]  ;;  %vm7257_vm4 = vmand %vm498_vm0, %vm531_vm3 }
  0x14   : > { %6680 = vmatpush3.bf16.msra.mxu1 %v6730_v3  ;;  %6122 = vmatpush3.bf16.msra.mxu0 %v6730_v3  ;;  %s7190_s16 = sadd.s32 %s7181_s24, %s5428_s25  ;;  %506 = vst [vmem:[#allocation2 + $0x14] sm:$0x1] %v505_v16  ;;  %v6739_v25 = vld [vmem:[%s8851_s3 + $0x108] sm:$0xff]   ;;  %v523_v29 = vsel %vm7214_vm2, 0, %v522_v22  ;;  %v6741_v36 = vld [vmem:[%s8851_s3 + $0x100] sm:$0xff]   ;;  %v7280_v56 = vld [vmem:[%s8851_s3 + $0x178] sm:$0xff]  }
  0x15   : > { %6673 = vmatprep.subr.bf16.mxu1 %v6731_v4  ;;  %6123 = vmatprep.subr.bf16.mxu0 %v6731_v4  ;;  %s5430_s19 = sshll.u32 %s7190_s16, 2  ;;  %v6740_v31 = vld [vmem:[%s8851_s3 + $0xc8] sm:$0xff]   ;;  %524 = vst [vmem:[#allocation2 + $0x8c] sm:$0x1] %v523_v29  ;;  %v536_v45 = vld [vmem:[#allocation2 + $0x24] sm:$0x1]  ;;  %vm7329_vm7 = vmand %vm1156_vm5, %vm531_vm3 }
  0x16   : > { %s7204_s25 = scalar_lea.vmem %s8848_s0, %s5430_s19  ;;  %v554_v46 = vld [vmem:[#allocation2 + $0x9c] sm:$0x1]  ;;  %v537_v51 = vsel %vm7257_vm4, 0, %v536_v45  ;;  %v6742_v54 = vld [vmem:[%s8851_s3 + $0xc0] sm:$0xff]   ;;  %v507_v58 = vld [vmem:[#allocation2 + $0x28] sm:$0x1] }
  0x17   : > { %v5928_v13 = vld [vmem:[%s7204_s25] sm:$0xff]   ;;  %v6087_v14 = vld [vmem:[%s7204_s25 + $0x8] sm:$0xff]   ;;  %v555_v53 = vsel %vm7257_vm4, 0, %v554_v46  ;;  %538 = vst [vmem:[#allocation2 + $0x24] sm:$0x1] %v537_v51  ;;  %v7285_v57 = vld [vmem:[%s8851_s3 + $0xb8] sm:$0xff]  }
  0x18   : > { %6681 = vmatpush3.bf16.msra.mxu1 %v6732_v5  ;;  %6124 = vmatpush3.bf16.msra.mxu0 %v6732_v5  ;;  %v5929_v17 = vunpack.c.l.bf16 %v5928_v13  ;;  %v5930_v18 = vunpack.c.h.bf16 %v5928_v13  ;;  %v5933_v19 = vunpack.c.l.bf16 %v6087_v14  ;;  %v6098_v23 = vld [vmem:[%s7204_s25 + $0x60] sm:$0xff]   ;;  %v5934_v24 = vunpack.c.h.bf16 %v6087_v14  ;;  %v6099_v30 = vld [vmem:[%s7204_s25 + $0x68] sm:$0xff]   ;;  %556 = vst [vmem:[#allocation2 + $0x9c] sm:$0x1] %v555_v53  ;;  %v6088_v60 = vld [vmem:[%s7204_s25 + $0x10] sm:$0xff]   ;;  %s7656_s20 = sadd.s32 4294967295, %s7162_s14 }
  0x19   : > { %6674 = vmatprep.subr.bf16.mxu1 %v6733_v6  ;;  %6125 = vmatprep.subr.bf16.mxu0 %v6733_v6  ;;  %v5977_v32 = vunpack.c.l.bf16 %v6098_v23  ;;  %v5978_v33 = vunpack.c.h.bf16 %v6098_v23  ;;  %v5981_v34 = vunpack.c.l.bf16 %v6099_v30  ;;  %v5982_v40 = vunpack.c.h.bf16 %v6099_v30  ;;  %v6089_v61 = vld [vmem:[%s7204_s25 + $0x18] sm:$0xff]   ;;  %v525_v62 = vld [vmem:[#allocation2 + $0xa0] sm:$0x1]  ;;  %v6100_v2 = vld [vmem:[%s7204_s25 + $0x70] sm:$0xff]   ;;  %p444_p7 = scmp.gt.s32.totalorder %s7656_s20, 0  ;;  %p5433_p8 = scmp.lt.s32.totalorder %s7656_s20, 31 }
  0x1a   : > { %v634_v26 = vmul.f32 %v5929_v17, %v7228_v20  ;;  %v635_v27 = vmul.f32 %v5930_v18, %v7228_v20  ;;  %v636_v28 = vmul.f32 %v5933_v19, %v7228_v20  ;;  %v637_v35 = vmul.f32 %v5934_v24, %v7228_v20  ;;  %v6101_v3 = vld [vmem:[%s7204_s25 + $0x78] sm:$0xff]   ;;  %v557_v17 = vld [vmem:[#allocation2 + $0xb0] sm:$0x1]  ;;  %vm7335_vm8 = vmor %vm499_vm1, %vm833_vm6  ;;  %p496_p9 = scmp.eq.s32.totalorder %s7063_s27, 0  ;;  %p497_p11 = scmp.eq.s32.totalorder %s7063_s27, 3 }
  0x1b   : > { %v658_v42 = vmul.f32 %v5977_v32, %v7228_v20  ;;  %v659_v43 = vmul.f32 %v5978_v33, %v7228_v20  ;;  %v660_v44 = vmul.f32 %v5981_v34, %v7228_v20  ;;  %v661_v47 = vmul.f32 %v5982_v40, %v7228_v20  ;;  %v539_v11 = vld [vmem:[#allocation2 + $0x38] sm:$0x1]  ;;  %v510_v32 = vld [vmem:[#allocation2 + $0x3c] sm:$0x1]  ;;  %v7318_v33 = vld [vmem:[%s7204_s25 + $0x20] sm:$0xff]   ;;  %s7685_s21 = scalar_select %p444_p7, %s7656_s20, 0 }
  0x1c   : > { %6682 = vmatpush3.bf16.msra.mxu1 %v6734_v7  ;;  %6126 = vmatpush3.bf16.msra.mxu0 %v6734_v7  ;;  %v673_v37 = vadd.f32 %v7233_v21, %v634_v26  ;;  %v674_v38 = vadd.f32 %v7233_v21, %v635_v27  ;;  %v675_v39 = vadd.f32 %v7233_v21, %v636_v28  ;;  %v508_v59 = vsel %vm7214_vm2, 0, %v507_v58  ;;  %s1352_s26 = scalar_select %p497_p11, 1, 0 }
  0x1d   : > { %6675 = vmatprep.subr.bf16.mxu1 %v6735_v8  ;;  %6127 = vmatprep.subr.bf16.mxu0 %v6735_v8  ;;  %v697_v48 = vadd.f32 %v7233_v21, %v658_v42  ;;  %v698_v49 = vadd.f32 %v7233_v21, %v659_v43  ;;  %v699_v50 = vadd.f32 %v7233_v21, %v660_v44  ;;  %v5937_v63 = vunpack.c.l.bf16 %v6088_v60  ;;  %s8915_s21 = smov (!%p5433_p8, %s7685_s21), 31  ;;  %p489_p12 = scmp.lt.s32.totalorder %s7063_s27, 3 }
  0x1e   : > { %6954 = vtanh.f32 %v673_v37  ;;  %v676_v52 = vadd.f32 %v7233_v21, %v637_v35  ;;  %v700_v55 = vadd.f32 %v7233_v21, %v661_v47  ;;  %509 = vst [vmem:[#allocation2 + $0x28] sm:$0x1] %v508_v59  ;;  %v5938_v0 = vunpack.c.h.bf16 %v6088_v60  ;;  %s5438_s22 = sshll.u32 %s8915_s21, 2  ;;  %s5452_s16 = sshll.u32 %s8913_s28, 2 }
  0x1f   : > { %6956 = vtanh.f32 %v674_v38  ;;  %v5941_v1 = vunpack.c.l.bf16 %v6089_v61  ;;  %v526_v4 = vsel %vm7214_vm2, 0, %v525_v62  ;;  %v5985_v5 = vunpack.c.l.bf16 %v6100_v2  ;;  %s7758_s13 = sadd.s32 %s5438_s22, %s7181_s24  ;;  %s8921_s27 = smov (!%p489_p12, %s7063_s27), 3 }
  0x20   : > { %6683 = vmatpush3.bf16.msra.mxu1 %v6736_v9  ;;  %6128 = vmatpush3.bf16.msra.mxu0 %v6736_v9  ;;  %6958 = vtanh.f32 %v675_v39  ;;  %v5986_v6 = vunpack.c.h.bf16 %v6100_v2  ;;  %v638_v7 = vmul.f32 %v5937_v63, %v7228_v20  ;;  %v639_v8 = vmul.f32 %v5938_v0, %v7228_v20  ;;  %527 = vst [vmem:[#allocation2 + $0xa0] sm:$0x1] %v526_v4  ;;  %s5440_s21 = sshll.u32 %s7758_s13, 2 }
  0x21   : > { %6676 = vmatprep.subr.bf16.mxu1 %v6737_v10  ;;  %6129 = vmatprep.subr.bf16.mxu0 %v6737_v10  ;;  %6960 = vtanh.f32 %v697_v48  ;;  %v640_v9 = vmul.f32 %v5941_v1, %v7228_v20  ;;  %v5989_v10 = vunpack.c.l.bf16 %v6101_v3  ;;  %v662_v13 = vmul.f32 %v5985_v5, %v7228_v20  ;;  %s7795_s17 = scalar_lea.vmem %s8849_s1, %s5440_s21 }
  0x22   : > { %6962 = vtanh.f32 %v698_v49  ;;  %v663_v14 = vmul.f32 %v5986_v6, %v7228_v20  ;;  %v5942_v16 = vunpack.c.h.bf16 %v6089_v61  ;;  %v677_v18 = vadd.f32 %v7233_v21, %v638_v7  ;;  %v1158_v61 = vld [vmem:[#allocation2 + $0x14] sm:$0xf]  ;;  %s8014_s22 = scalar_select %p496_p9, 1, 0 }
  0x23   : > { %6964 = vtanh.f32 %v699_v50  ;;  %v678_v19 = vadd.f32 %v7233_v21, %v639_v8  ;;  %v679_v22 = vadd.f32 %v7233_v21, %v640_v9  ;;  %v664_v23 = vmul.f32 %v5989_v10, %v7228_v20 }
  0x24   : > { %6684 = vmatpush3.bf16.msra.mxu1 %v6738_v15  ;;  %6130 = vmatpush3.bf16.msra.mxu0 %v6738_v15  ;;  %6966 = vtanh.f32 %v676_v52  ;;  %v540_v15 = vsel %vm7257_vm4, 0, %v539_v11  ;;  %v701_v24 = vadd.f32 %v7233_v21, %v662_v13  ;;  %v558_v26 = vsel %vm7257_vm4, 0, %v557_v17 }
  0x25   : > { %6677 = vmatprep.subr.bf16.mxu1 %v6739_v25  ;;  %6131 = vmatprep.subr.bf16.mxu0 %v6739_v25  ;;  %6968 = vtanh.f32 %v700_v55  ;;  %541 = vst [vmem:[#allocation2 + $0x38] sm:$0x1] %v540_v15  ;;  %v641_v25 = vmul.f32 %v5942_v16, %v7228_v20  ;;  %v702_v27 = vadd.f32 %v7233_v21, %v663_v14  ;;  %559 = vst [vmem:[#allocation2 + $0xb0] sm:$0x1] %v558_v26  ;;  %v1212_v16 = vld [vmem:[#allocation2 + $0x8c] sm:$0xf] }
  0x26   : > { %6970 = vtanh.f32 %v677_v18  ;;  %v5990_v28 = vunpack.c.h.bf16 %v6101_v3  ;;  %v703_v30 = vadd.f32 %v7233_v21, %v664_v23  ;;  %v511_v37 = vsel %vm7214_vm2, 0, %v510_v32 }
  0x27   : > { %6972 = vtanh.f32 %v678_v19  ;;  %512 = vst [vmem:[#allocation2 + $0x3c] sm:$0x1] %v511_v37  ;;  %v5945_v40 = vunpack.c.l.bf16 %v7318_v33  ;;  %v5946_v42 = vunpack.c.h.bf16 %v7318_v33  ;;  %vm1547_vm9 = vsmask.f32 3328 }
  0x28   : > { %6685 = vmatpush3.bf16.msra.mxu1 %v6740_v31  ;;  %6132 = vmatpush3.bf16.msra.mxu0 %v6740_v31  ;;  %v7315_v31 = vadd.f32 %v7233_v21, %v641_v25  ;;  %6974 = vtanh.f32 %v679_v22  ;;  %vm1548_vm10 = vsmask.f32 7440  ;;  %vm2170_vm12 = vcmask 1042432  }
  0x29   : > { %6678 = vmatprep.subr.bf16.mxu1 %v6741_v36  ;;  %6133 = vmatprep.subr.bf16.mxu0 %v6741_v36  ;;  %v7321_v36 = vmul.f32 %v5990_v28, %v7228_v20  ;;  %6976 = vtanh.f32 %v701_v24  ;;  %vm7387_vm11 = vmor %vm1547_vm9, %vm1548_vm10  ;;  %vm2171_vm13 = vcmask 1046532  }
  0x2a   : > { %6978 = vtanh.f32 %v702_v27  ;;  %vm7558_vm14 = vmor %vm2170_vm12, %vm2171_vm13 }
  0x2b   : > { %v6955_v29 = vpop.eup %6954  ;;  %6980 = vtanh.f32 %v703_v30 }
  0x2c   : > { %6686 = vmatpush3.bf16.msra.mxu1 %v6742_v54  ;;  %6134 = vmatpush3.bf16.msra.mxu0 %v6742_v54  ;;  %v6957_v34 = vpop.eup %6956  ;;  %v5863_v35 = vpack.c.bf16 %v6955_v29, %v6955_v29  ;;  %6982 = vtanh.f32 %v7315_v31 }
  0x2d   : > { %6527 = vmatprep.subr.bf16.mxu1 %v7280_v56  ;;  %6575 = vmatprep.subr.bf16.mxu0 %v7285_v57  ;;  %v6959_v38 = vpop.eup %6958  ;;  %v5864_v39 = vpack.c.bf16 %v6957_v34, %v6957_v34 }
  0x2e   : > { %v6961_v43 = vpop.eup %6960  ;;  %v5865_v44 = vpack.c.bf16 %v6959_v38, %v6959_v38  ;;  %v836_v45 = vshrl.u32 %v5863_v35, 16  ;;  %v839_v46 = vshll.u32 %v5863_v35, 16 }
  0x2f   : > { %v6963_v47 = vpop.eup %6962  ;;  %v844_v48 = vshrl.u32 %v5864_v39, 16  ;;  %v847_v49 = vshll.u32 %v5864_v39, 16  ;;  %v5887_v50 = vpack.c.bf16 %v6961_v43, %v6961_v43 }
  0x30   : > { %v6965_v51 = vpop.eup %6964  ;;  %v838_v52 = vrot.slane %v836_v45, 7  ;;  %v853_v53 = vshrl.u32 %v5865_v44, 16  ;;  %v856_v54 = vshll.u32 %v5865_v44, 16  ;;  %v5888_v55 = vpack.c.bf16 %v6963_v47, %v6963_v47 }
  0x31   : > { %v6967_v58 = vpop.eup %6966  ;;  %v846_v59 = vrot.slane %v844_v48, 7  ;;  %v5889_v62 = vpack.c.bf16 %v6965_v51, %v6965_v51  ;;  %v1046_v63 = vshrl.u32 %v5887_v50, 16  ;;  %v1049_v0 = vshll.u32 %v5887_v50, 16 }
  0x32   : > { %v6969_v1 = vpop.eup %6968  ;;  %v841_v3 = vor.u32 %v839_v46, %v838_v52  ;;  %v842_v4 = vrot.slane %v838_v52, 4  ;;  %v7339_v5 = vrot.slane %v853_v53, 7  ;;  %v1054_v6 = vshrl.u32 %v5888_v55, 16 }
  0x33   : > { %v849_v7 = vor.u32 %v847_v49, %v846_v59  ;;  %v851_v8 = vrot.slane %v846_v59, 4  ;;  %v1048_v9 = vrot.slane %v1046_v63, 7  ;;  %v1057_v10 = vshll.u32 %v5888_v55, 16  ;;  %v6971_v27 = vpop.eup %6970  ;;  %v1164_v55 = vld [vmem:[#allocation2 + $0x24] sm:$0x1] }
  0x34   : > { %v858_v11 = vor.u32 %v856_v54, %v7339_v5  ;;  %v1159_v13 = vsel %vm7329_vm7, %v841_v3, %v1158_v61  ;;  %v1056_v14 = vrot.slane %v1054_v6, 7  ;;  %v1063_v15 = vshrl.u32 %v5889_v62, 16  ;;  %v6973_v34 = vpop.eup %6972 }
  0x35   : > { %v850_v17 = vsel %vm7335_vm8, %v842_v4, %v849_v7  ;;  %1160 = vst [vmem:[#allocation2 + $0x14] sm:$0xf] %v1159_v13  ;;  %v1051_v18 = vor.u32 %v1049_v0, %v1048_v9  ;;  %v1052_v19 = vrot.slane %v1048_v9, 4  ;;  %v1066_v22 = vshll.u32 %v5889_v62, 16  ;;  %v6975_v43 = vpop.eup %6974 }
  0x36   : > { %v859_v23 = vsel %vm7335_vm8, %v851_v8, %v858_v11  ;;  %1161 = vst [vmem:[#allocation2 + $0x18] sm:$0xf] %v850_v17  ;;  %v1059_v24 = vor.u32 %v1057_v10, %v1056_v14  ;;  %v1061_v25 = vrot.slane %v1056_v14, 4  ;;  %v7348_v26 = vrot.slane %v1063_v15, 7  ;;  %v6977_v48 = vpop.eup %6976 }
  0x37   : > { %1162 = vst [vmem:[#allocation2 + $0x1c] sm:$0xf] %v859_v23  ;;  %v1213_v28 = vsel %vm7329_vm7, %v1051_v18, %v1212_v16  ;;  %v5866_v29 = vpack.c.bf16 %v6967_v58, %v6967_v58  ;;  %v860_v30 = vrot.slane %v7339_v5, 4  ;;  %v5890_v32 = vpack.c.bf16 %v6969_v1, %v6969_v1  ;;  %v6979_v53 = vpop.eup %6978 }
  0x38   : > { %v1060_v35 = vsel %vm7335_vm8, %v1052_v19, %v1059_v24  ;;  %v1068_v37 = vor.u32 %v1066_v22, %v7348_v26  ;;  %1214 = vst [vmem:[#allocation2 + $0x8c] sm:$0xf] %v1213_v28  ;;  %v1070_v38 = vrot.slane %v7348_v26, 4  ;;  %v7357_v39 = vpack.c.bf16 %v6971_v27, %v6971_v27  ;;  %v7371_v62 = vpop.eup %6980 }
  0x39   : > { %1215 = vst [vmem:[#allocation2 + $0x90] sm:$0xf] %v1060_v35  ;;  %v862_v44 = vshrl.u32 %v5866_v29, 16  ;;  %v865_v45 = vshll.u32 %v5866_v29, 16  ;;  %v1072_v46 = vshrl.u32 %v5890_v32, 16  ;;  %v1075_v47 = vshll.u32 %v5890_v32, 16 }
  0x3a   : > { %v1069_v49 = vsel %vm7335_vm8, %v1061_v25, %v1068_v37  ;;  %v7361_v50 = vpack.c.bf16 %v6973_v34, %v6973_v34  ;;  %v7363_v51 = vpack.c.bf16 %v6975_v43, %v6975_v43  ;;  %v871_v52 = vshrl.u32 %v7357_v39, 16 }
  0x3b   : > { %1216 = vst [vmem:[#allocation2 + $0x94] sm:$0xf] %v1069_v49  ;;  %v864_v54 = vrot.slane %v862_v44, 7  ;;  %v7366_v58 = vrot.slane %v1072_v46, 7  ;;  %v874_v59 = vshll.u32 %v7357_v39, 16  ;;  %v7369_v61 = vpack.c.bf16 %v6977_v48, %v6977_v48 }
  0x3c   : > { %v1421_v63 = vld [vmem:[#allocation2 + $0x14] sm:$0xf]  ;;  %v7373_v1 = vrot.slane %v871_v52, 7  ;;  %v879_v3 = vshrl.u32 %v7361_v50, 16  ;;  %v7376_v4 = vpack.c.bf16 %v6979_v53, %v6979_v53  ;;  %v1218_v49 = vld [vmem:[#allocation2 + $0x9c] sm:$0x1]  ;;  %v7407_v26 = vpack.c.bf16 %v7371_v62, %v7371_v62 }
  0x3d   : > { %v1502_v0 = vld [vmem:[#allocation2 + $0x14] sm:$0xf]  ;;  %v1422_v5 = vld [vmem:[#allocation2 + $0x18] sm:$0xf]  ;;  %1461 = vst [vmem:[#allocation3 + $0x30] sm:$0xf] %v1421_v63  ;;  %v867_v9 = vor.u32 %v865_v45, %v864_v54  ;;  %v1077_v10 = vor.u32 %v1075_v47, %v7366_v58 }
  0x3e   : > { %v1503_v6 = vld [vmem:[#allocation2 + $0x18] sm:$0xf]  ;;  %v1595_v7 = vshrl.u32 %v1502_v0, 16  ;;  %v1598_v8 = vshll.u32 %v1502_v0, 16  ;;  %1462 = vst [vmem:[#allocation3 + $0x3c] sm:$0xf] %v1422_v5 }
  0x3f   : > { %v1504_v11 = vld [vmem:[#allocation2 + $0x1c] sm:$0xf]  ;;  %v1604_v13 = vshll.u32 %v1503_v6, 16  ;;  %v1608_v14 = vshrl.u32 %v1503_v6, 16  ;;  %v869_v15 = vrot.slane %v864_v54, 4  ;;  %v1079_v16 = vrot.slane %v7366_v58, 4 }
  0x40   : > { %v1597_v17 = vrot.slane %v1595_v7, 4  ;;  %v1600_v18 = vrot.slane %v1598_v8, 5  ;;  %v1614_v19 = vshll.u32 %v1504_v11, 16  ;;  %v1618_v22 = vshrl.u32 %v1504_v11, 16  ;;  %v1445_v31 = vld [vmem:[#allocation2 + $0x8c] sm:$0xf] }
  0x41   : > { %v1606_v23 = vrot.slane %v1604_v13, 5  ;;  %v1610_v24 = vrot.slane %v1608_v14, 4  ;;  %v1446_v25 = vld [vmem:[#allocation2 + $0x90] sm:$0xf]  ;;  %1485 = vst [vmem:[#allocation3 + $0x150] sm:$0xf] %v1445_v31  ;;  %v868_v28 = vsel %vm7335_vm8, %v860_v30, %v867_v9  ;;  %v1165_v29 = vsel %vm7214_vm2, %v869_v15, %v1164_v55 }
  0x42   : > { %v1532_v27 = vld [vmem:[#allocation2 + $0x8c] sm:$0xf]  ;;  %v1601_v32 = vor.u32 %v1600_v18, %v1597_v17  ;;  %v1616_v34 = vrot.slane %v1614_v19, 5  ;;  %v1620_v35 = vrot.slane %v1618_v22, 4  ;;  %1486 = vst [vmem:[#allocation3 + $0x15c] sm:$0xf] %v1446_v25  ;;  %v1078_v18 = vsel %vm7335_vm8, %v1070_v38, %v1077_v10  ;;  %v6983_v10 = vpop.eup %6982 }
  0x43   : > { %v1533_v37 = vld [vmem:[#allocation2 + $0x90] sm:$0xf]  ;;  %v1859_v43 = vshrl.u32 %v1532_v27, 16  ;;  %1163 = vst [vmem:[#allocation2 + $0x20] sm:$0xf] %v868_v28  ;;  %v1611_v45 = vor.u32 %v1610_v24, %v1606_v23  ;;  %v1862_v30 = vshll.u32 %v1532_v27, 16  ;;  %v1219_v22 = vsel %vm7214_vm2, %v1079_v16, %v1218_v49 }
  0x44   : > { %1166 = vst [vmem:[#allocation2 + $0x24] sm:$0x1] %v1165_v29  ;;  %v1534_v46 = vld [vmem:[#allocation2 + $0x94] sm:$0xf]  ;;  %v1868_v47 = vshll.u32 %v1533_v37, 16  ;;  %v1872_v48 = vshrl.u32 %v1533_v37, 16  ;;  %v1621_v53 = vor.u32 %v1620_v35, %v1616_v34  ;;  %v876_v31 = vor.u32 %v874_v59, %v7373_v1 }
  0x45   : > { %v1602_v52 = vrot.slane %v1601_v32, 4  ;;  %v1861_v54 = vrot.slane %v1859_v43, 4  ;;  %v1878_v55 = vshll.u32 %v1534_v46, 16  ;;  %v1423_v58 = vld [vmem:[#allocation2 + $0x1c] sm:$0xf]  ;;  %v1612_v63 = vrot.slane %v1611_v45, 4 }
  0x46   : > { %v1864_v0 = vrot.slane %v1862_v30, 5  ;;  %v1870_v5 = vrot.slane %v1868_v47, 5  ;;  %v1874_v6 = vrot.slane %v1872_v48, 4  ;;  %1463 = vst [vmem:[#allocation3 + $0x48] sm:$0xf] %v1423_v58  ;;  %v1622_v9 = vrot.slane %v1621_v53, 4 }
  0x47   : > { %v1447_v7 = vld [vmem:[#allocation2 + $0x94] sm:$0xf]  ;;  %v1607_v8 = vsel %vm7387_vm11, %v1602_v52, %v1606_v23  ;;  %v1880_v11 = vrot.slane %v1878_v55, 5  ;;  %v1882_v13 = vshrl.u32 %v1534_v46, 16  ;;  %v1617_v14 = vsel %vm7387_vm11, %v1612_v63, %v1616_v34  ;;  %1217 = vst [vmem:[#allocation2 + $0x98] sm:$0xf] %v1078_v18 }
  0x48   : > { %1487 = vst [vmem:[#allocation3 + $0x168] sm:$0xf] %v1447_v7  ;;  %2034 = vst [vmem:[#allocation3 + $0x34] sm:$0xf] %v1607_v8  ;;  %v1865_v15 = vor.u32 %v1864_v0, %v1861_v54  ;;  %v1875_v17 = vor.u32 %v1874_v6, %v1870_v5  ;;  %v877_v23 = vrot.slane %v7373_v1, 4  ;;  %v704_v38 = vadd.f32 %v7233_v21, %v7321_v36  ;;  %v7423_v49 = vld [vmem:[%s7204_s25 + $0x28] sm:$0xff]  }
  0x49   : > { %2035 = vst [vmem:[#allocation3 + $0x40] sm:$0xf] %v1617_v14  ;;  %v1884_v19 = vrot.slane %v1882_v13, 4  ;;  %1220 = vst [vmem:[#allocation2 + $0x9c] sm:$0x1] %v1219_v22  ;;  %v881_v1 = vrot.slane %v879_v3, 7  ;;  %v642_v13 = vmul.f32 %v5945_v40, %v7228_v20 }
  0x4a   : > { %v1866_v24 = vrot.slane %v1865_v15, 4  ;;  %v1876_v25 = vrot.slane %v1875_v17, 4  ;;  %v1424_v27 = vld [vmem:[#allocation2 + $0x20] sm:$0xf]  ;;  %v882_v35 = vshll.u32 %v7361_v50, 16  ;;  %v888_v47 = vshrl.u32 %v7363_v51, 16 }
  0x4b   : > { %v1505_v28 = vld [vmem:[#allocation2 + $0x20] sm:$0xf]  ;;  %v1885_v16 = vor.u32 %v1884_v19, %v1880_v11  ;;  %1464 = vst [vmem:[#allocation3 + $0x54] sm:$0xf] %v1424_v27  ;;  %v1506_v29 = vld [vmem:[#allocation2 + $0x24] sm:$0x1]  ;;  %6984 = vtanh.f32 %v704_v38 }
  0x4c   : > { %v1624_v39 = vshll.u32 %v1505_v28, 16  ;;  %v1628_v59 = vshrl.u32 %v1505_v28, 16  ;;  %v1871_v32 = vsel %vm7387_vm11, %v1866_v24, %v1870_v5  ;;  %v1881_v62 = vsel %vm7387_vm11, %v1876_v25, %v1880_v11  ;;  %v1167_v36 = vld [vmem:[#allocation2 + $0x28] sm:$0xf]  ;;  %v6760_v53 = vld [vmem:[%s8851_s3 + $0xb0] sm:$0xff]  }
  0x4d   : > { %v1634_v34 = vshll.u32 %v1506_v29, 16  ;;  %v7418_v37 = vrot.slane %v1885_v16, 4  ;;  %2058 = vst [vmem:[#allocation3 + $0x154] sm:$0xf] %v1871_v32  ;;  %2059 = vst [vmem:[#allocation3 + $0x160] sm:$0xf] %v1881_v62  ;;  %v884_v3 = vor.u32 %v882_v35, %v881_v1  ;;  %v1168_v54 = vsel %vm7329_vm7, %v876_v31, %v1167_v36 }
  0x4e   : > { %v1626_v43 = vrot.slane %v1624_v39, 5  ;;  %v1630_v45 = vrot.slane %v1628_v59, 4  ;;  %v886_v46 = vrot.slane %v881_v1, 4  ;;  %v891_v48 = vshll.u32 %v7363_v51, 16  ;;  %v6743_v58 = vld [vmem:[#allocation3 + $0x30] ss:$12 sps:$4 sm:$0xff]  }
  0x4f   : > { %v1636_v30 = vrot.slane %v1634_v34, 5  ;;  %v1081_v55 = vshrl.u32 %v7369_v61, 16  ;;  %v885_v51 = vsel %vm7335_vm8, %v877_v23, %v884_v3  ;;  %v7435_v0 = vrot.slane %v888_v47, 7  ;;  %1169 = vst [vmem:[#allocation2 + $0x28] sm:$0xf] %v1168_v54  ;;  %v7451_v40 = vld [vmem:[%s8851_s3 + $0xa8] sm:$0xff]  }
  0x50   : > { %v1627_v52 = vsel %vm7387_vm11, %v1622_v9, %v1626_v43  ;;  %v1631_v50 = vor.u32 %v1630_v45, %v1626_v43  ;;  %v6745_v63 = vld [vmem:[#allocation3 + $0x34] ss:$12 sps:$4 sm:$0xff]   ;;  %v7437_v5 = vpack.c.bf16 %v6983_v10, %v6983_v10  ;;  %v1448_v7 = vld [vmem:[#allocation2 + $0x98] sm:$0xf]  ;;  %1170 = vst [vmem:[#allocation2 + $0x2c] sm:$0xf] %v885_v51  ;;  %v5949_v11 = vunpack.c.l.bf16 %v7423_v49 }
  0x51   : > { %2036 = vst [vmem:[#allocation3 + $0x4c] sm:$0xf] %v1627_v52  ;;  %v1535_v8 = vld [vmem:[#allocation2 + $0x98] sm:$0xf]  ;;  %v1083_v9 = vrot.slane %v1081_v55, 7  ;;  %3041 = vmatprep.mubr.bf16.mxu0 %v6745_v63  ;;  %v893_v18 = vor.u32 %v891_v48, %v7435_v0  ;;  %v1084_v19 = vshll.u32 %v7369_v61, 16  ;;  %v681_v48 = vadd.f32 %v7233_v21, %v642_v13 }
  0x52   : > { %v1632_v6 = vrot.slane %v1631_v50, 4  ;;  %1488 = vst [vmem:[#allocation3 + $0x174] sm:$0xf] %v1448_v7  ;;  %v1536_v14 = vld [vmem:[#allocation2 + $0x9c] sm:$0x1]  ;;  %v1888_v15 = vshll.u32 %v1535_v8, 16  ;;  %3042 = vmatmul.mubr.bf16.vlgmr.msra.gmra.mxu0 %v6743_v58  ;;  %v5950_v52 = vunpack.c.h.bf16 %v7423_v49 }
  0x53   : > { %v1892_v17 = vshrl.u32 %v1535_v8, 16  ;;  %v1898_v31 = vshll.u32 %v1536_v14, 16  ;;  %v1087_v23 = vrot.slane %v1083_v9, 4  ;;  %v1089_v24 = vshrl.u32 %v7376_v4, 16  ;;  %v1221_v25 = vld [vmem:[#allocation2 + $0xa0] sm:$0xf]  ;;  %6576 = vmatpush3.bf16.msra.mxu0 %v7285_v57 }
  0x54   : > { %v1637_v22 = vsel %vm7387_vm11, %v1632_v6, %v1636_v30  ;;  %v6746_v27 = vld [vmem:[#allocation3 + $0x150] ss:$12 sps:$4 sm:$0xff]   ;;  %v1890_v28 = vrot.slane %v1888_v15, 5  ;;  %v894_v38 = vsel %vm7335_vm8, %v886_v46, %v893_v18  ;;  %v1086_v10 = vor.u32 %v1084_v19, %v1083_v9  ;;  %v6748_v16 = vld [vmem:[#allocation3 + $0x154] ss:$12 sps:$4 sm:$0xff]   ;;  %6577 = vmatprep.subr.bf16.mxu0 %v6760_v53  ;;  %v6751_v57 = vld [vmem:[%s8851_s3 + $0x170] sm:$0xff]  }
  0x55   : > { %2037 = vst [vmem:[#allocation3 + $0x58] sm:$0xf] %v1637_v22  ;;  %v1894_v61 = vrot.slane %v1892_v17, 4  ;;  %v1900_v29 = vrot.slane %v1898_v31, 5  ;;  %1171 = vst [vmem:[#allocation2 + $0x30] sm:$0xf] %v894_v38  ;;  %3137 = vmatprep.mubr.bf16.mxu1 %v6748_v16  ;;  %v643_v46 = vmul.f32 %v5946_v42, %v7228_v20  ;;  %6986 = vtanh.f32 %v681_v48 }
  0x56   : > { %v7456_v39 = vrot.slane %v1089_v24, 7  ;;  %v1092_v59 = vshll.u32 %v7376_v4, 16  ;;  %v1098_v1 = vshrl.u32 %v7407_v26, 16  ;;  %v1891_v32 = vsel %vm7387_vm11, %v7418_v37, %v1890_v28  ;;  %v1425_v36 = vld [vmem:[#allocation2 + $0x28] sm:$0xf]  ;;  %3138 = vmatmul.mubr.bf16.vlgmr.msra.gmra.mxu1 %v6746_v27  ;;  %v6785_v63 = vld [vmem:[%s8851_s3 + $0xa0] sm:$0xff]  }
  0x57   : > { %v1895_v62 = vor.u32 %v1894_v61, %v1890_v28  ;;  %v1101_v34 = vshll.u32 %v7407_v26, 16  ;;  %v1222_v35 = vsel %vm7329_vm7, %v1086_v10, %v1221_v25  ;;  %2060 = vst [vmem:[#allocation3 + $0x16c] sm:$0xf] %v1891_v32  ;;  %v1507_v4 = vld [vmem:[#allocation2 + $0x28] sm:$0xf]  ;;  %v644_v37 = vmul.f32 %v5949_v11, %v7228_v20  ;;  %6578 = vmatpush3.bf16.msra.mxu0 %v6760_v53  ;;  %v7499_v11 = vld [vmem:[%s8851_s3 + $0x160] sm:$0xff]  }
  0x58   : > { %v1094_v43 = vor.u32 %v1092_v59, %v7456_v39  ;;  %v1096_v45 = vrot.slane %v7456_v39, 4  ;;  %1223 = vst [vmem:[#allocation2 + $0xa0] sm:$0xf] %v1222_v35  ;;  %v1426_v30 = vld [vmem:[#allocation2 + $0x2c] sm:$0xf]  ;;  %v1639_v47 = vshrl.u32 %v1507_v4, 16  ;;  %6528 = vmatpush3.bf16.msra.mxu1 %v7280_v56  ;;  %6579 = vmatprep.subr.bf16.mxu0 %v7451_v40  ;;  %v682_v8 = vadd.f32 %v7233_v21, %v643_v46  ;;  %v6985_v19 = vpop.eup %6984 }
  0x59   : > { %v1896_v26 = vrot.slane %v1895_v62, 4  ;;  %1465 = vst [vmem:[#allocation3 + $0x60] sm:$0xf] %v1425_v36  ;;  %v1508_v3 = vld [vmem:[#allocation2 + $0x2c] sm:$0xf]  ;;  %v1642_v50 = vshll.u32 %v1507_v4, 16  ;;  %6529 = vmatprep.subr.bf16.mxu1 %v6751_v57  ;;  %v7494_v9 = vadd.f32 %v7233_v21, %v644_v37  ;;  %v7510_v10 = vpack.c.bf16 %v6985_v19, %v6985_v19 }
  0x5a   : > { %1466 = vst [vmem:[#allocation3 + $0x6c] sm:$0xf] %v1426_v30  ;;  %v1648_v54 = vshll.u32 %v1508_v3, 16  ;;  %v1652_v33 = vshrl.u32 %v1508_v3, 16  ;;  %v1095_v20 = vsel %vm7335_vm8, %v1087_v23, %v1094_v43  ;;  %v6756_v53 = vld [vmem:[%s8851_s3 + $0x168] sm:$0xff]   ;;  %v1641_v55 = vrot.slane %v1639_v47, 4 }
  0x5b   : > { %v1901_v42 = vsel %vm7387_vm11, %v1896_v26, %v1900_v29  ;;  %v7486_v58 = vrot.slane %v1098_v1, 7  ;;  %1224 = vst [vmem:[#allocation2 + $0xa4] sm:$0xf] %v1095_v20  ;;  %v895_v56 = vrot.slane %v7435_v0, 4  ;;  %v6757_v6 = vld [vmem:[#allocation3 + $0x48] ss:$12 sps:$4 sm:$0xff]   ;;  %6580 = vmatpush3.bf16.msra.mxu0 %v7451_v40  ;;  %6988 = vtanh.f32 %v682_v8 }
  0x5c   : > { %v6752_v51 = vld [vmem:[#allocation3 + $0x4c] ss:$12 sps:$4 sm:$0xff]   ;;  %2061 = vst [vmem:[#allocation3 + $0x178] sm:$0xf] %v1901_v42  ;;  %v1644_v7 = vrot.slane %v1642_v50, 5  ;;  %v1650_v14 = vrot.slane %v1648_v54, 5  ;;  %6530 = vmatpush3.bf16.msra.mxu1 %v6751_v57  ;;  %6581 = vmatprep.subr.bf16.mxu0 %v6785_v63  ;;  %6990 = vtanh.f32 %v7494_v9 }
  0x5d   : > { %v1509_v13 = vld [vmem:[#allocation2 + $0x30] sm:$0xf]  ;;  %v1654_v15 = vrot.slane %v1652_v33, 4  ;;  %v1103_v17 = vor.u32 %v1101_v34, %v7486_v58  ;;  %v897_v18 = vshrl.u32 %v7437_v5, 16  ;;  %3049 = vmatprep.mubr.bf16.mxu0 %v6752_v51  ;;  %v900_v23 = vshll.u32 %v7437_v5, 16  ;;  %v6800_v25 = vld [vmem:[%s8851_s3 + $0x98] sm:$0xff]   ;;  %6531 = vmatprep.subr.bf16.mxu1 %v6756_v53 }
  0x5e   : > { %v1645_v21 = vor.u32 %v1644_v7, %v1641_v55  ;;  %v1658_v22 = vshll.u32 %v1509_v13, 16  ;;  %v1662_v31 = vshrl.u32 %v1509_v13, 16  ;;  %v1427_v24 = vld [vmem:[#allocation2 + $0x30] sm:$0xf]  ;;  %3050 = vmatmul.mubr.bf16.gmra.mxu0 %v6757_v6  ;;  %v1173_v59 = vld [vmem:[#allocation2 + $0x38] sm:$0x1] }
  0x5f   : > { %v1655_v27 = vor.u32 %v1654_v15, %v1650_v14  ;;  %v1104_v28 = vsel %vm7335_vm8, %v1096_v45, %v1103_v17  ;;  %v1449_v40 = vld [vmem:[#allocation2 + $0xa0] sm:$0xf]  ;;  %v899_v38 = vrot.slane %v897_v18, 7  ;;  %1467 = vst [vmem:[#allocation3 + $0x78] sm:$0xf] %v1427_v24  ;;  %6582 = vmatpush3.bf16.msra.mxu0 %v6785_v63  ;;  %v7517_v35 = vld [vmem:[%s8851_s3 + $0x90] sm:$0xff]  }
  0x60   : > { %v1537_v61 = vld [vmem:[#allocation2 + $0xa0] sm:$0xf]  ;;  %v1646_v16 = vrot.slane %v1645_v21, 4  ;;  %v1660_v29 = vrot.slane %v1658_v22, 5  ;;  %1225 = vst [vmem:[#allocation2 + $0xa8] sm:$0xf] %v1104_v28  ;;  %6532 = vmatpush3.bf16.msra.mxu1 %v6756_v53  ;;  %6583 = vmatprep.subr.bf16.mxu0 %v6800_v25 }
  0x61   : > { %1489 = vst [vmem:[#allocation3 + $0x180] sm:$0xf] %v1449_v40  ;;  %v1903_v5 = vshrl.u32 %v1537_v61, 16  ;;  %v1906_v39 = vshll.u32 %v1537_v61, 16  ;;  %v1656_v1 = vrot.slane %v1655_v27, 4  ;;  %v902_v57 = vor.u32 %v900_v23, %v899_v38  ;;  %v7524_v37 = vld [vmem:[%s8851_s3 + $0x158] sm:$0xff]   ;;  %6533 = vmatprep.subr.bf16.mxu1 %v7499_v11 }
  0x62   : > { %v904_v32 = vrot.slane %v899_v38, 4  ;;  %v1664_v62 = vrot.slane %v1662_v31, 4  ;;  %v7512_v34 = vld [vmem:[#allocation2 + $0x14] sm:$0xe]  ;;  %v1651_v36 = vsel %vm7387_vm11, %v1646_v16, %v1650_v14  ;;  %v1450_v4 = vld [vmem:[#allocation2 + $0xa4] sm:$0xf]  ;;  %v6987_v28 = vpop.eup %6986 }
  0x63   : > { %v1538_v43 = vld [vmem:[#allocation2 + $0xa4] sm:$0xf]  ;;  %v1905_v45 = vrot.slane %v1903_v5, 4  ;;  %v1908_v46 = vrot.slane %v1906_v39, 5  ;;  %v2076_v26 = vld [vmem:[#allocation2 + $0x18] sm:$0xf]  ;;  %v1661_v48 = vsel %vm7387_vm11, %v1656_v1, %v1660_v29  ;;  %v903_v54 = vsel %vm7335_vm8, %v895_v56, %v902_v57  ;;  %6584 = vmatpush3.bf16.msra.mxu0 %v6800_v25 }
  0x64   : > { %v7527_v30 = vld [vmem:[%s7204_s25 + $0x30] sm:$0xff]   ;;  %2038 = vst [vmem:[#allocation3 + $0x64] sm:$0xf] %v1651_v36  ;;  %1490 = vst [vmem:[#allocation3 + $0x18c] sm:$0xf] %v1450_v4  ;;  %v1912_v50 = vshll.u32 %v1538_v43, 16  ;;  %v1174_v33 = vsel %vm7214_vm2, %v904_v32, %v1173_v59  ;;  %v1665_v53 = vor.u32 %v1664_v62, %v1660_v29  ;;  %6585 = vmatprep.subr.bf16.mxu0 %v7517_v35  ;;  %6534 = vmatpush3.bf16.msra.mxu1 %v7499_v11 }
  0x65   : > { %v6754_v3 = vld [vmem:[#allocation3 + $0x16c] ss:$12 sps:$4 sm:$0xff]   ;;  %v6758_v47 = vld [vmem:[#allocation3 + $0x168] ss:$12 sps:$4 sm:$0xff]   ;;  %2039 = vst [vmem:[#allocation3 + $0x70] sm:$0xf] %v1661_v48  ;;  %v1909_v20 = vor.u32 %v1908_v46, %v1905_v45  ;;  %v5953_v23 = vunpack.c.l.bf16 %v7527_v30  ;;  %6535 = vmatprep.subr.bf16.mxu1 %v7524_v37  ;;  %v5871_v39 = vpack.c.bf16 %v6987_v28, %v6987_v28 }
  0x66   : > { %v1916_v42 = vshrl.u32 %v1538_v43, 16  ;;  %1172 = vst [vmem:[#allocation2 + $0x34] sm:$0xf] %v903_v54  ;;  %1175 = vst [vmem:[#allocation2 + $0x38] sm:$0x1] %v1174_v33  ;;  %v1105_v55 = vrot.slane %v7486_v58, 4  ;;  %3145 = vmatprep.mubr.bf16.mxu1 %v6754_v3  ;;  %v5954_v3 = vunpack.c.h.bf16 %v7527_v30 }
  0x67   : > { %v1914_v63 = vrot.slane %v1912_v50, 5  ;;  %v1107_v51 = vshrl.u32 %v7510_v10, 16  ;;  %v1110_v0 = vshll.u32 %v7510_v10, 16  ;;  %v7545_v56 = vld [vmem:[%s8851_s3 + $0x88] sm:$0xff]   ;;  %3146 = vmatmul.mubr.bf16.gmra.mxu1 %v6758_v47  ;;  %v1910_v6 = vrot.slane %v1909_v20, 4  ;;  %v7550_v58 = vld [vmem:[%s8851_s3 + $0x150] sm:$0xff]   ;;  %6586 = vmatpush3.bf16.msra.mxu0 %v7517_v35 }
  0x68   : > { %v1918_v7 = vrot.slane %v1916_v42, 4  ;;  %v7552_v8 = vrot.slane %v1665_v53, 4  ;;  %v1227_v13 = vld [vmem:[#allocation2 + $0xb0] sm:$0x1]  ;;  %v7554_v14 = vld [vmem:[#allocation2 + $0x1c] sm:$0xf]  ;;  %6587 = vmatprep.subr.bf16.mxu0 %v7545_v56  ;;  %6536 = vmatpush3.bf16.msra.mxu1 %v7524_v37 }
  0x69   : > { %v5499_v15 = vrot.slane %v7512_v34, 9  ;;  %v1539_v17 = vld [vmem:[#allocation2 + $0xa8] sm:$0xf]  ;;  %v1109_v18 = vrot.slane %v1107_v51, 7  ;;  %v2188_v21 = vrot.slane %v2076_v26, 5  ;;  %v1915_v24 = vsel %vm7387_vm11, %v1910_v6, %v1914_v63  ;;  %6537 = vmatprep.subr.bf16.mxu1 %v7550_v58  ;;  %v7612_v53 = vld [vmem:[%s8851_s3 + $0x140] sm:$0xff]  }
  0x6a   : > { %v1451_v19 = vld [vmem:[#allocation2 + $0xa8] sm:$0xf]  ;;  %v7568_v22 = vld [vmem:[%s8853_s5] ss:$0 sm:$0xff]  ;;  %v1919_v11 = vor.u32 %v1918_v7, %v1914_v63  ;;  %v1922_v25 = vshll.u32 %v1539_v17, 16  ;;  %v1926_v27 = vshrl.u32 %v1539_v17, 16 }
  0x6b   : > { %v645_v31 = vmul.f32 %v7568_v22, %v5950_v52  ;;  %1491 = vst [vmem:[#allocation3 + $0x198] sm:$0xf] %v1451_v19  ;;  %2062 = vst [vmem:[#allocation3 + $0x184] sm:$0xf] %v1915_v24  ;;  %v1112_v40 = vor.u32 %v1110_v0, %v1109_v18  ;;  %v1114_v61 = vrot.slane %v1109_v18, 4  ;;  %v2189_v49 = vsel %vm7558_vm14, %v5499_v15, %v2188_v21  ;;  %v7580_v52 = vld [vmem:[%s7204_s25 + $0x38] sm:$0xff]   ;;  %v6989_v0 = vpop.eup %6988 }
  0x6c   : > { %v2190_v38 = vrot.slane %v2188_v21, 4  ;;  %v1920_v10 = vrot.slane %v1919_v11, 4  ;;  %v1924_v16 = vrot.slane %v1922_v25, 5  ;;  %v1928_v29 = vrot.slane %v1926_v27, 4  ;;  %v7586_v5 = vld [vmem:[%s8851_s3 + $0x148] sm:$0xff]   ;;  %6588 = vmatpush3.bf16.msra.mxu0 %v7545_v56  ;;  %6538 = vmatpush3.bf16.msra.mxu1 %v7550_v58  ;;  %v6830_v11 = vld [vmem:[%s8851_s3 + $0x80] sm:$0xff]   ;;  %v6991_v25 = vpop.eup %6990 }
  0x6d   : > { %2347 = vst [vmem:[#allocation3 + $0x38] sm:$0xf] %v2189_v49  ;;  %v6761_v59 = vld [vmem:[#allocation3 + $0x64] ss:$12 sps:$4 sm:$0xff]   ;;  %v6766_v1 = vld [vmem:[#allocation3 + $0x60] ss:$12 sps:$4 sm:$0xff]   ;;  %v1113_v57 = vsel %vm7335_vm8, %v1105_v55, %v1112_v40  ;;  %v1228_v32 = vsel %vm7214_vm2, %v1114_v61, %v1227_v13  ;;  %v5957_v47 = vunpack.c.l.bf16 %v7580_v52  ;;  %6539 = vmatprep.subr.bf16.mxu1 %v7586_v5  ;;  %v5872_v15 = vpack.c.bf16 %v6989_v0, %v6989_v0 }
  0x6e   : > { %v2191_v62 = vrot.slane %v7554_v14, 5  ;;  %v2078_v34 = vld [vmem:[#allocation2 + $0x20] sm:$0xf]  ;;  %v542_v35 = vld [vmem:[#allocation2 + $0x4c] sm:$0x1]  ;;  %v1925_v43 = vsel %vm7387_vm11, %v1920_v10, %v1924_v16  ;;  %v1929_v26 = vor.u32 %v1928_v29, %v1924_v16  ;;  %3057 = vmatprep.mubr.bf16.mxu0 %v6761_v59  ;;  %v906_v33 = vshrl.u32 %v5871_v39, 16  ;;  %6589 = vmatprep.subr.bf16.mxu0 %v6830_v11 }
  0x6f   : > { %v7598_v36 = vld [vmem:[%s8854_s6] ss:$0 sm:$0xff]  ;;  %v1428_v45 = vld [vmem:[#allocation2 + $0x34] sm:$0xf]  ;;  %v1511_v37 = vld [vmem:[#allocation2 + $0x38] sm:$0x1]  ;;  %3058 = vmatmul.mubr.bf16.gmra.mxu0 %v6766_v1  ;;  %v5873_v16 = vpack.c.bf16 %v6991_v25, %v6991_v25  ;;  %v648_v25 = vmul.f32 %v7568_v22, %v5957_v47 }
  0x70   : > { %v684_v4 = vadd.f32 %v7598_v36, %v645_v31  ;;  %v1510_v46 = vld [vmem:[#allocation2 + $0x34] sm:$0xf]  ;;  %1226 = vst [vmem:[#allocation2 + $0xac] sm:$0xf] %v1113_v57  ;;  %1229 = vst [vmem:[#allocation2 + $0xb0] sm:$0x1] %v1228_v32  ;;  %v2192_v63 = vsel %vm7558_vm14, %v2190_v38, %v2191_v62  ;;  %6540 = vmatpush3.bf16.msra.mxu1 %v7586_v5  ;;  %6590 = vmatpush3.bf16.msra.mxu0 %v6830_v11 }
  0x71   : > { %2063 = vst [vmem:[#allocation3 + $0x190] sm:$0xf] %v1925_v43  ;;  %1468 = vst [vmem:[#allocation3 + $0x84] sm:$0xf] %v1428_v45  ;;  %v1668_v48 = vshll.u32 %v1510_v46, 16  ;;  %v1672_v50 = vshrl.u32 %v1510_v46, 16  ;;  %6541 = vmatprep.subr.bf16.mxu1 %v7612_v53 }
  0x72   : > { %v1678_v54 = vshll.u32 %v1511_v37, 16  ;;  %v2079_v20 = vld [vmem:[#allocation2 + $0x24] sm:$0x1]  ;;  %v7607_v42 = vrot.slane %v1929_v26, 4  ;;  %v909_v55 = vshll.u32 %v5871_v39, 16  ;;  %v2193_v51 = vrot.slane %v2191_v62, 4 }
  0x73   : > { %v1670_v6 = vrot.slane %v1668_v48, 5  ;;  %v1674_v7 = vrot.slane %v1672_v50, 4  ;;  %v7617_v56 = vrot.slane %v906_v33, 7  ;;  %v1176_v14 = vld [vmem:[#allocation2 + $0x3c] sm:$0xf]  ;;  %v2194_v17 = vrot.slane %v2078_v34, 5 }
  0x74   : > { %v1680_v13 = vrot.slane %v1678_v54, 5  ;;  %2348 = vst [vmem:[#allocation3 + $0x44] sm:$0xf] %v2192_v63  ;;  %v2197_v18 = vrot.slane %v2079_v20, 5  ;;  %v543_v19 = vsel %vm7257_vm4, 0, %v542_v35  ;;  %v914_v27 = vshrl.u32 %v5872_v15, 16  ;;  %6542 = vmatpush3.bf16.msra.mxu1 %v7612_v53 }
  0x75   : > { %v1671_v21 = vsel %vm7387_vm11, %v7552_v8, %v1670_v6  ;;  %v1675_v58 = vor.u32 %v1674_v7, %v1670_v6  ;;  %v911_v31 = vor.u32 %v909_v55, %v7617_v56  ;;  %v912_v24 = vrot.slane %v7617_v56, 4  ;;  %544 = vst [vmem:[#allocation2 + $0x4c] sm:$0x1] %v543_v19  ;;  %v2080_v49 = vld [vmem:[#allocation2 + $0x28] sm:$0xe]  ;;  %v6781_v39 = vld [vmem:[%s8851_s3 + $0x78] sm:$0xff]  }
  0x76   : > { %2040 = vst [vmem:[#allocation3 + $0x7c] sm:$0xf] %v1671_v21  ;;  %v917_v28 = vshll.u32 %v5872_v15, 16  ;;  %v2195_v40 = vsel %vm7558_vm14, %v2193_v51, %v2194_v17  ;;  %v2196_v61 = vrot.slane %v2194_v17, 4  ;;  %6992 = vtanh.f32 %v684_v4  ;;  %v2081_v59 = vld [vmem:[#allocation2 + $0x2c] sm:$0xf]  ;;  %6255 = vmatprep.subr.bf16.mxu1 %v6781_v39 }
  0x77   : > { %v1676_v8 = vrot.slane %v1675_v58, 4  ;;  %v1452_v38 = vld [vmem:[#allocation2 + $0xac] sm:$0xf]  ;;  %v1177_v29 = vsel %vm7329_vm7, %v911_v31, %v1176_v14  ;;  %2349 = vst [vmem:[#allocation3 + $0x50] sm:$0xf] %v2195_v40  ;;  %v7646_v34 = vmul.f32 %v7568_v22, %v5953_v23  ;;  %v7651_v35 = vmul.f32 %v7568_v22, %v5954_v3 }
  0x78   : > { %v1540_v10 = vld [vmem:[#allocation2 + $0xac] sm:$0xf]  ;;  %v7638_v1 = vld [vmem:[#allocation2 + $0x30] sm:$0xf]  ;;  %v6767_v32 = vld [vmem:[#allocation3 + $0x180] ss:$12 sps:$4 sm:$0xff]   ;;  %v2198_v5 = vsel %vm7558_vm14, %v2196_v61, %v2197_v18 }
  0x79   : > { %v6763_v57 = vld [vmem:[#allocation3 + $0x184] ss:$12 sps:$4 sm:$0xff]   ;;  %1492 = vst [vmem:[#allocation3 + $0x1a4] sm:$0xf] %v1452_v38  ;;  %v1932_v62 = vshll.u32 %v1540_v10, 16  ;;  %v1681_v4 = vsel %vm7387_vm11, %v1676_v8, %v1680_v13  ;;  %v1936_v45 = vshrl.u32 %v1540_v10, 16 }
  0x7a   : > { %1178 = vst [vmem:[#allocation2 + $0x3c] sm:$0xf] %v1177_v29  ;;  %v1541_v43 = vld [vmem:[#allocation2 + $0xb0] sm:$0x1]  ;;  %v916_v46 = vrot.slane %v914_v27, 7  ;;  %v923_v37 = vshrl.u32 %v5873_v16, 16  ;;  %3153 = vmatprep.mubr.bf16.mxu1 %v6763_v57  ;;  %v686_v29 = vadd.f32 %v7598_v36, %v7651_v35  ;;  %v687_v57 = vadd.f32 %v7598_v36, %v648_v25 }
  0x7b   : > { %2350 = vst [vmem:[#allocation3 + $0x5c] sm:$0xf] %v2198_v5  ;;  %2041 = vst [vmem:[#allocation3 + $0x88] sm:$0xf] %v1681_v4  ;;  %v1934_v23 = vrot.slane %v1932_v62, 5  ;;  %v1942_v26 = vshll.u32 %v1541_v43, 16  ;;  %3154 = vmatmul.mubr.bf16.gmra.mxu1 %v6767_v32 }
  0x7c   : > { %v926_v30 = vshll.u32 %v5873_v16, 16  ;;  %v5500_v48 = vrot.slane %v2080_v49, 9  ;;  %v1938_v3 = vrot.slane %v1936_v45, 4  ;;  %v919_v50 = vor.u32 %v917_v28, %v916_v46  ;;  %v2083_v20 = vld [vmem:[#allocation2 + $0x34] sm:$0xf]  ;;  %v7697_v62 = vld [vmem:[%s7204_s25 + $0x40] sm:$0xff]  }
  0x7d   : > { %v921_v54 = vrot.slane %v916_v46, 4  ;;  %v7658_v33 = vrot.slane %v923_v37, 7  ;;  %v1935_v55 = vsel %vm7387_vm11, %v7607_v42, %v1934_v23  ;;  %v1944_v63 = vrot.slane %v1942_v26, 5  ;;  %v2084_v6 = vld [vmem:[#allocation2 + $0x38] sm:$0x1]  ;;  %v7707_v37 = vld [vmem:[%s7204_s25 + $0x48] sm:$0xff]  }
  0x7e   : > { %v2201_v51 = vrot.slane %v2081_v59, 5  ;;  %v2204_v0 = vrot.slane %v7638_v1, 5  ;;  %v1939_v7 = vor.u32 %v1938_v3, %v1934_v23  ;;  %2064 = vst [vmem:[#allocation3 + $0x19c] sm:$0xf] %v1935_v55  ;;  %v920_v13 = vsel %vm7335_vm8, %v912_v24, %v919_v50  ;;  %v513_v42 = vld [vmem:[#allocation2 + $0x50] sm:$0x1] }
  0x7f   : > { %v928_v56 = vor.u32 %v926_v30, %v7658_v33  ;;  %v930_v14 = vrot.slane %v7658_v33, 4  ;;  %1179 = vst [vmem:[#allocation2 + $0x40] sm:$0xf] %v920_v13  ;;  %v2207_v18 = vrot.slane %v2083_v20, 5  ;;  %v545_v19 = vld [vmem:[#allocation2 + $0x60] sm:$0x1]  ;;  %v685_v16 = vadd.f32 %v7598_v36, %v7646_v34 }
  0x80   : > { %v2202_v53 = vsel %vm7558_vm14, %v5500_v48, %v2201_v51  ;;  %v2203_v15 = vrot.slane %v2201_v51, 4  ;;  %v2206_v17 = vrot.slane %v2204_v0, 4  ;;  %v1940_v21 = vrot.slane %v1939_v7, 4  ;;  %v516_v27 = vld [vmem:[#allocation2 + $0x64] sm:$0x1] }
  0x81   : > { %v929_v58 = vsel %vm7335_vm8, %v921_v54, %v928_v56  ;;  %v1429_v31 = vld [vmem:[#allocation2 + $0x3c] sm:$0xf]  ;;  %2351 = vst [vmem:[#allocation3 + $0x68] sm:$0xf] %v2202_v53  ;;  %v2210_v11 = vrot.slane %v2084_v6, 5  ;;  %v2209_v10 = vrot.slane %v2207_v18, 4  ;;  %6994 = vtanh.f32 %v685_v16 }
  0x82   : > { %v1512_v24 = vld [vmem:[#allocation2 + $0x3c] sm:$0xf]  ;;  %1180 = vst [vmem:[#allocation2 + $0x44] sm:$0xf] %v929_v58  ;;  %1469 = vst [vmem:[#allocation3 + $0x90] sm:$0xf] %v1429_v31  ;;  %v2205_v61 = vsel %vm7558_vm14, %v2203_v15, %v2204_v0  ;;  %v2208_v49 = vsel %vm7558_vm14, %v2206_v17, %v2207_v18  ;;  %v1945_v38 = vsel %vm7387_vm11, %v1940_v21, %v1944_v63  ;;  %6996 = vtanh.f32 %v686_v29 }
  0x83   : > { %v1683_v28 = vshrl.u32 %v1512_v24, 16  ;;  %v1686_v40 = vshll.u32 %v1512_v24, 16  ;;  %v6769_v8 = vld [vmem:[#allocation3 + $0x7c] ss:$12 sps:$4 sm:$0xff]   ;;  %v6774_v47 = vld [vmem:[#allocation3 + $0x78] ss:$12 sps:$4 sm:$0xff]   ;;  %v2211_v5 = vsel %vm7558_vm14, %v2209_v10, %v2210_v11  ;;  %v6993_v4 = vpop.eup %6992  ;;  %v5958_v45 = vunpack.c.h.bf16 %v7580_v52 }
  0x84   : > { %2352 = vst [vmem:[#allocation3 + $0x74] sm:$0xf] %v2205_v61  ;;  %2353 = vst [vmem:[#allocation3 + $0x80] sm:$0xf] %v2208_v49  ;;  %v514_v1 = vsel %vm7214_vm2, 0, %v513_v42  ;;  %3065 = vmatprep.mubr.bf16.mxu0 %v6769_v8  ;;  %v546_v35 = vsel %vm7257_vm4, 0, %v545_v19  ;;  %v5874_v30 = vpack.c.bf16 %v6993_v4, %v6993_v4  ;;  %6998 = vtanh.f32 %v687_v57 }
  0x85   : > { %2065 = vst [vmem:[#allocation3 + $0x1a8] sm:$0xf] %v1945_v38  ;;  %v1685_v39 = vrot.slane %v1683_v28, 4  ;;  %v1688_v59 = vrot.slane %v1686_v40, 5  ;;  %v2085_v32 = vld [vmem:[#allocation2 + $0x3c] sm:$0xe]  ;;  %3066 = vmatmul.mubr.bf16.gmra.mxu0 %v6774_v47  ;;  %v5961_v3 = vunpack.c.l.bf16 %v7697_v62  ;;  %v5962_v50 = vunpack.c.h.bf16 %v7697_v62 }
  0x86   : > { %515 = vst [vmem:[#allocation2 + $0x50] sm:$0x1] %v514_v1  ;;  %v5501_v34 = vrot.slane %v2085_v32, 9  ;;  %2354 = vst [vmem:[#allocation3 + $0x8c] sm:$0xf] %v2211_v5  ;;  %v517_v46 = vsel %vm7214_vm2, 0, %v516_v27  ;;  %v649_v13 = vmul.f32 %v7568_v22, %v5958_v45  ;;  %v5965_v56 = vunpack.c.l.bf16 %v7707_v37 }
  0x87   : > { %v1689_v43 = vor.u32 %v1688_v59, %v1685_v39  ;;  %547 = vst [vmem:[#allocation2 + $0x60] sm:$0x1] %v546_v35  ;;  %v1430_v23 = vld [vmem:[#allocation2 + $0x40] sm:$0xf]  ;;  %518 = vst [vmem:[#allocation2 + $0x64] sm:$0x1] %v517_v46  ;;  %v650_v24 = vmul.f32 %v7568_v22, %v5961_v3  ;;  %v651_v16 = vmul.f32 %v7568_v22, %v5962_v50  ;;  %v5966_v50 = vunpack.c.h.bf16 %v7707_v37 }
  0x88   : > { %v1513_v26 = vld [vmem:[#allocation2 + $0x40] sm:$0xf]  ;;  %1470 = vst [vmem:[#allocation3 + $0x9c] sm:$0xf] %v1430_v23  ;;  %v932_v0 = vshrl.u32 %v5874_v30, 16  ;;  %v935_v6 = vshll.u32 %v5874_v30, 16  ;;  %v688_v31 = vadd.f32 %v7598_v36, %v649_v13  ;;  %v652_v29 = vmul.f32 %v7568_v22, %v5965_v56 }
  0x89   : > { %v2086_v48 = vld [vmem:[#allocation2 + $0x40] sm:$0xf]  ;;  %v1690_v52 = vrot.slane %v1689_v43, 4  ;;  %v1692_v54 = vshll.u32 %v1513_v26, 16  ;;  %v1696_v20 = vshrl.u32 %v1513_v26, 16  ;;  %v689_v32 = vadd.f32 %v7598_v36, %v650_v24  ;;  %v6096_v5 = vld [vmem:[%s7204_s25 + $0x50] sm:$0xff]  }
  0x8a   : > { %v2214_v55 = vrot.slane %v2086_v48, 5  ;;  %v1514_v63 = vld [vmem:[#allocation2 + $0x44] sm:$0xf]  ;;  %v6780_v51 = vld [vmem:[#allocation3 + $0x38] ss:$12 sps:$4 sm:$0xff]   ;;  %v934_v21 = vrot.slane %v932_v0, 7  ;;  %7000 = vtanh.f32 %v688_v31  ;;  %v690_v35 = vadd.f32 %v7598_v36, %v651_v16 }
  0x8b   : > { %v1431_v7 = vld [vmem:[#allocation2 + $0x44] sm:$0xf]  ;;  %v1694_v42 = vrot.slane %v1692_v54, 5  ;;  %v1698_v53 = vrot.slane %v1696_v20, 4  ;;  %v1702_v15 = vshll.u32 %v1514_v63, 16  ;;  %v1706_v17 = vshrl.u32 %v1514_v63, 16 }
  0x8c   : > { %1471 = vst [vmem:[#allocation3 + $0xa8] sm:$0xf] %v1431_v7  ;;  %v6771_v18 = vld [vmem:[#allocation3 + $0x19c] ss:$12 sps:$4 sm:$0xff]   ;;  %v6775_v19 = vld [vmem:[#allocation3 + $0x198] ss:$12 sps:$4 sm:$0xff]   ;;  %v2215_v58 = vsel %vm7558_vm14, %v5501_v34, %v2214_v55  ;;  %v937_v61 = vor.u32 %v935_v6, %v934_v21  ;;  %v691_v33 = vadd.f32 %v7598_v36, %v652_v29  ;;  %7002 = vtanh.f32 %v689_v32 }
  0x8d   : > { %v1695_v11 = vsel %vm7387_vm11, %v1690_v52, %v1694_v42  ;;  %v1699_v25 = vor.u32 %v1698_v53, %v1694_v42  ;;  %v1704_v27 = vrot.slane %v1702_v15, 5  ;;  %v1182_v28 = vld [vmem:[#allocation2 + $0x4c] sm:$0x1]  ;;  %v1708_v40 = vrot.slane %v1706_v17, 4  ;;  %2355 = vst [vmem:[#allocation3 + $0x98] sm:$0xf] %v2215_v58  ;;  %3161 = vmatprep.mubr.bf16.mxu1 %v6771_v18 }
  0x8e   : > { %2042 = vst [vmem:[#allocation3 + $0x94] sm:$0xf] %v1695_v11  ;;  %v939_v49 = vrot.slane %v934_v21, 4  ;;  %v2216_v8 = vrot.slane %v2214_v55, 4  ;;  %3162 = vmatmul.mubr.bf16.gmra.mxu1 %v6775_v19  ;;  %v2087_v10 = vld [vmem:[#allocation2 + $0x44] sm:$0xf]  ;;  %v938_v59 = vsel %vm7335_vm8, %v930_v14, %v937_v61  ;;  %v6995_v26 = vpop.eup %6994  ;;  %7004 = vtanh.f32 %v690_v35 }
  0x8f   : > { %v1700_v38 = vrot.slane %v1699_v25, 4  ;;  %v1709_v47 = vor.u32 %v1708_v40, %v1704_v27  ;;  %v548_v39 = vld [vmem:[#allocation2 + $0x74] sm:$0x1]  ;;  %6543 = vmatprep.mubr.bf16.mxu1 %v6780_v51  ;;  %v2217_v57 = vrot.slane %v2087_v10, 5  ;;  %v519_v62 = vld [vmem:[#allocation2 + $0x78] sm:$0x1]  ;;  %v5969_v54 = vunpack.c.l.bf16 %v6096_v5  ;;  %v6997_v20 = vpop.eup %6996 }
  0x90   : > { %v1183_v1 = vsel %vm7214_vm2, %v939_v49, %v1182_v28  ;;  %1181 = vst [vmem:[#allocation2 + $0x48] sm:$0xf] %v938_v59  ;;  %v7740_v4 = vld [vmem:[%s7204_s25 + $0x58] sm:$0xff]   ;;  %v551_v14 = vld [vmem:[#allocation2 + $0x88] sm:$0x1]  ;;  %v549_v23 = vsel %vm7257_vm4, 0, %v548_v39  ;;  %v5875_v55 = vpack.c.bf16 %v6995_v26, %v6995_v26  ;;  %7006 = vtanh.f32 %v691_v33 }
  0x91   : > { %v1705_v34 = vsel %vm7387_vm11, %v1700_v38, %v1704_v27  ;;  %1184 = vst [vmem:[#allocation2 + $0x4c] sm:$0x1] %v1183_v1  ;;  %v6844_v43 = vld [vmem:[%s8851_s3 + $0x1f8] sm:$0xff]   ;;  %v7745_v45 = vrot.slane %v1709_v47, 4  ;;  %v2218_v46 = vsel %vm7558_vm14, %v2216_v8, %v2217_v57  ;;  %550 = vst [vmem:[#allocation2 + $0x74] sm:$0x1] %v549_v23  ;;  %v5970_v63 = vunpack.c.h.bf16 %v6096_v5  ;;  %v6999_v0 = vpop.eup %6998 }
  0x92   : > { %2043 = vst [vmem:[#allocation3 + $0xa0] sm:$0xf] %v1705_v34  ;;  %v6783_v30 = vld [vmem:[#allocation3 + $0x50] ss:$12 sps:$4 sm:$0xff]   ;;  %v6788_v3 = vld [vmem:[#allocation3 + $0x68] ss:$12 sps:$4 sm:$0xff]   ;;  %6391 = vmatprep.subr.bf16.mxu0 %v6844_v43  ;;  %v5973_v51 = vunpack.c.l.bf16 %v7740_v4  ;;  %v5876_v6 = vpack.c.bf16 %v6997_v20, %v6997_v20  ;;  %v653_v7 = vmul.f32 %v7568_v22, %v5966_v50  ;;  %v654_v13 = vmul.f32 %v7568_v22, %v5969_v54 }
  0x93   : > { %v6784_v48 = vld [vmem:[%s8851_s3 + $0x38] sm:$0xff]   ;;  %2356 = vst [vmem:[#allocation3 + $0xa4] sm:$0xf] %v2218_v46  ;;  %v520_v52 = vsel %vm7214_vm2, 0, %v519_v62  ;;  %v6789_v37 = vld [vmem:[%s8851_s3 + $0x70] sm:$0xff]   ;;  %v552_v56 = vsel %vm7257_vm4, 0, %v551_v14  ;;  %v655_v18 = vmul.f32 %v7568_v22, %v5970_v63  ;;  %v5877_v19 = vpack.c.bf16 %v6999_v0, %v6999_v0 }
  0x94   : > { %521 = vst [vmem:[#allocation2 + $0x78] sm:$0x1] %v520_v52  ;;  %v6792_v42 = vld [vmem:[%s8851_s3 + $0x30] sm:$0xff]   ;;  %v941_v53 = vshrl.u32 %v5875_v55, 16  ;;  %v944_v15 = vshll.u32 %v5875_v55, 16  ;;  %v7771_v17 = vrot.slane %v2217_v57, 4  ;;  %v692_v24 = vadd.f32 %v7598_v36, %v653_v7 }
  0x95   : > { %553 = vst [vmem:[#allocation2 + $0x88] sm:$0x1] %v552_v56  ;;  %v949_v21 = vshrl.u32 %v5876_v6, 16  ;;  %v952_v58 = vshll.u32 %v5876_v6, 16  ;;  %v6796_v31 = vld [vmem:[%s8851_s3 + $0x68] sm:$0xff]   ;;  %v7780_v28 = vmul.f32 %v7568_v22, %v5973_v51  ;;  %v693_v47 = vadd.f32 %v7598_v36, %v654_v13  ;;  %v6804_v52 = vld [vmem:[%s8851_s3 + $0x60] sm:$0xff]  }
  0x96   : > { %6544 = vmatmul.mubr.bf16.vlgmr.msra.gmra.mxu1 %v6783_v30  ;;  %v6782_v61 = vld [vmem:[#allocation3 + $0x90] ss:$12 sps:$4 sm:$0xff]   ;;  %v6791_v8 = vld [vmem:[#allocation3 + $0x80] ss:$12 sps:$4 sm:$0xff]   ;;  %v1185_v38 = vld [vmem:[#allocation2 + $0x50] sm:$0xf]  ;;  %v7784_v10 = vadd.f32 %v7598_v36, %v655_v18  ;;  %v5974_v16 = vunpack.c.h.bf16 %v7740_v4  ;;  %7008 = vtanh.f32 %v692_v24 }
  0x97   : > { %6256 = vmatpush3.bf16.msra.mxu1 %v6784_v48  ;;  %v1432_v11 = vld [vmem:[#allocation2 + $0x48] sm:$0xf]  ;;  %6547 = vmatprep.mubr.bf16.mxu1 %v6788_v3  ;;  %v943_v59 = vrot.slane %v941_v53, 7  ;;  %v951_v1 = vrot.slane %v949_v21, 7  ;;  %v7001_v57 = vpop.eup %7000  ;;  %v958_v62 = vshrl.u32 %v5877_v19, 16  ;;  %v961_v5 = vshll.u32 %v5877_v19, 16 }
  0x98   : > { %v1515_v25 = vld [vmem:[#allocation2 + $0x48] sm:$0xf]  ;;  %v1516_v27 = vld [vmem:[#allocation2 + $0x4c] sm:$0x1]  ;;  %1472 = vst [vmem:[#allocation3 + $0xb4] sm:$0xf] %v1432_v11  ;;  %6257 = vmatprep.subr.bf16.mxu1 %v6789_v37  ;;  %v5878_v6 = vpack.c.bf16 %v7001_v57, %v7001_v57  ;;  %7010 = vtanh.f32 %v693_v47 }
  0x99   : > { %v6778_v40 = vld [vmem:[#allocation3 + $0x94] ss:$12 sps:$4 sm:$0xff]   ;;  %v1712_v49 = vshll.u32 %v1515_v25, 16  ;;  %v1716_v29 = vshrl.u32 %v1515_v25, 16  ;;  %v1722_v39 = vshll.u32 %v1516_v27, 16  ;;  %v946_v14 = vor.u32 %v944_v15, %v943_v59  ;;  %v7003_v51 = vpop.eup %7002  ;;  %v7817_v13 = vld [vmem:[%s7795_s17] sm:$0xff]  }
  0x9a   : > { %3073 = vmatprep.mubr.bf16.mxu0 %v6778_v40  ;;  %v6795_v34 = vld [vmem:[#allocation3 + $0x98] ss:$12 sps:$4 sm:$0xff]   ;;  %v947_v43 = vrot.slane %v943_v59, 4  ;;  %v2088_v46 = vld [vmem:[#allocation2 + $0x48] sm:$0xf]  ;;  %v954_v30 = vor.u32 %v952_v58, %v951_v1  ;;  %v956_v48 = vrot.slane %v951_v1, 4  ;;  %v5879_v18 = vpack.c.bf16 %v7003_v51, %v7003_v51 }
  0x9b   : > { %v1714_v32 = vrot.slane %v1712_v49, 5  ;;  %3074 = vmatmul.mubr.bf16.gmra.mxu0 %v6782_v61  ;;  %v1718_v35 = vrot.slane %v1716_v29, 4  ;;  %v1724_v33 = vrot.slane %v1722_v39, 5  ;;  %6258 = vmatpush3.bf16.msra.mxu1 %v6792_v42  ;;  %v6799_v23 = vld [vmem:[%s8851_s3 + $0x28] sm:$0xff]   ;;  %v7800_v3 = vrot.slane %v958_v62, 7  ;;  %v6812_v7 = vld [vmem:[%s8851_s3 + $0x58] sm:$0xff]   ;;  %v7005_v56 = vpop.eup %7004 }
  0x9c   : > { %6259 = vmatprep.subr.bf16.mxu1 %v6796_v31  ;;  %v2089_v50 = vld [vmem:[#allocation2 + $0x4c] sm:$0x1]  ;;  %v1186_v20 = vsel %vm7329_vm7, %v946_v14, %v1185_v38  ;;  %v2220_v55 = vrot.slane %v2088_v46, 5  ;;  %v955_v0 = vsel %vm7335_vm8, %v947_v43, %v954_v30  ;;  %v967_v58 = vshrl.u32 %v5878_v6, 16  ;;  %v6814_v40 = vld [vmem:[%s8851_s3 + $0x18] sm:$0xff]   ;;  %v6818_v47 = vld [vmem:[%s8851_s3 + $0x50] sm:$0xff]  }
  0x9d   : > { %v1715_v26 = vsel %vm7387_vm11, %v7745_v45, %v1714_v32  ;;  %v1719_v54 = vor.u32 %v1718_v35, %v1714_v32  ;;  %v2223_v63 = vrot.slane %v2089_v50, 5  ;;  %v6807_v45 = vld [vmem:[%s8851_s3 + $0x20] sm:$0xff]   ;;  %v963_v37 = vor.u32 %v961_v5, %v7800_v3  ;;  %1187 = vst [vmem:[#allocation2 + $0x50] sm:$0xf] %v1186_v20  ;;  %1188 = vst [vmem:[#allocation2 + $0x54] sm:$0xf] %v955_v0  ;;  %v7007_v19 = vpop.eup %7006 }
  0x9e   : > { %2044 = vst [vmem:[#allocation3 + $0xac] sm:$0xf] %v1715_v26  ;;  %6548 = vmatmul.mubr.bf16.gmra.mxu1 %v6791_v8  ;;  %v2221_v53 = vsel %vm7558_vm14, %v7771_v17, %v2220_v55  ;;  %v2222_v15 = vrot.slane %v2220_v55, 4  ;;  %v970_v31 = vshll.u32 %v5878_v6, 16  ;;  %v7824_v24 = vpack.c.bf16 %v7005_v56, %v7005_v56  ;;  %v1191_v29 = vld [vmem:[#allocation2 + $0x60] sm:$0x1] }
  0x9f   : > { %v1720_v42 = vrot.slane %v1719_v54, 4  ;;  %6551 = vmatprep.mubr.bf16.mxu1 %v6795_v34  ;;  %6260 = vmatpush3.bf16.msra.mxu1 %v6799_v23  ;;  %v964_v21 = vsel %vm7335_vm8, %v956_v48, %v963_v37  ;;  %2357 = vst [vmem:[#allocation3 + $0xb0] sm:$0xf] %v2221_v53  ;;  %v7830_v25 = vpack.c.bf16 %v7007_v19, %v7007_v19  ;;  %v976_v27 = vshrl.u32 %v5879_v18, 16  ;;  %v7847_v32 = vld [vmem:[%s7795_s17 + $0x8] sm:$0xff]   ;;  %v6821_v30 = vld [vmem:[%s8851_s3 + $0x10] sm:$0xff]  }
  0xa0   : > { %6261 = vmatprep.subr.bf16.mxu1 %v6804_v52  ;;  %1189 = vst [vmem:[#allocation2 + $0x58] sm:$0xf] %v964_v21  ;;  %v2224_v17 = vsel %vm7558_vm14, %v2222_v15, %v2223_v63  ;;  %v965_v61 = vrot.slane %v7800_v3, 4  ;;  %v969_v49 = vrot.slane %v967_v58, 7  ;;  %v979_v8 = vshll.u32 %v5879_v18, 16  ;;  %s5862_s17 = sadd.s32 8, %s7162_s14 }
  0xa1   : > { %v1725_v11 = vsel %vm7387_vm11, %v1720_v42, %v1724_v33  ;;  %2358 = vst [vmem:[#allocation3 + $0xbc] sm:$0xf] %v2224_v17  ;;  %v984_v38 = vshrl.u32 %v7824_v24, 16  ;;  %v7840_v39 = vrot.slane %v976_v27, 7  ;;  %v695_v59 = vadd.f32 %v7598_v36, %v7780_v28  ;;  %v1194_v33 = vld [vmem:[#allocation2 + $0x64] sm:$0xf] }
  0xa2   : > { %2045 = vst [vmem:[#allocation3 + $0xb8] sm:$0xf] %v1725_v11  ;;  %v5993_v1 = vunpack.c.l.bf16 %v7817_v13  ;;  %v5994_v57 = vunpack.c.h.bf16 %v7817_v13  ;;  %v972_v62 = vor.u32 %v970_v31, %v969_v49  ;;  %v974_v5 = vrot.slane %v969_v49, 4  ;;  %v6790_v53 = vld [vmem:[#allocation3 + $0xa8] ss:$12 sps:$4 sm:$0xff]   ;;  %v6834_v17 = vld [vmem:[%s8851_s3 + $0x40] sm:$0xff]  }
  0xa3   : > { %6262 = vmatpush3.bf16.msra.mxu1 %v6807_v45  ;;  %v987_v34 = vshll.u32 %v7824_v24, 16  ;;  %v993_v35 = vshrl.u32 %v7830_v25, 16  ;;  %v981_v46 = vor.u32 %v979_v8, %v7840_v39  ;;  %v7852_v23 = vrot.slane %v984_v38, 7  ;;  %v7009_v4 = vpop.eup %7008  ;;  %p8133_p10 = scmp.lt.s32.totalorder %s5862_s17, 31 }
  0xa4   : > { %6263 = vmatprep.subr.bf16.mxu1 %v6812_v7  ;;  %v1433_v14 = vld [vmem:[#allocation2 + $0x50] sm:$0xf]  ;;  %v996_v28 = vshll.u32 %v7830_v25, 16  ;;  %v657_v26 = vmul.f32 %v7568_v22, %v5974_v16  ;;  %v1434_v48 = vld [vmem:[#allocation2 + $0x54] sm:$0xf]  ;;  %v973_v54 = vsel %vm7335_vm8, %v965_v61, %v972_v62  ;;  %v1192_v20 = vsel %vm7214_vm2, %v974_v5, %v1191_v29  ;;  %v6826_v22 = vld [vmem:[%s8851_s3 + $0x48] sm:$0xff]  }
  0xa5   : > { %v1517_v43 = vld [vmem:[#allocation2 + $0x50] sm:$0xf]  ;;  %1473 = vst [vmem:[#allocation3 + $0xc0] sm:$0xf] %v1433_v14  ;;  %v1518_v3 = vld [vmem:[#allocation2 + $0x54] sm:$0xf]  ;;  %v1195_v51 = vsel %vm7329_vm7, %v981_v46, %v1194_v33  ;;  %7012 = vtanh.f32 %v7784_v10  ;;  %v5997_v56 = vunpack.c.l.bf16 %v7847_v32  ;;  %v989_v18 = vor.u32 %v987_v34, %v7852_v23  ;;  %v7011_v27 = vpop.eup %7010 }
  0xa6   : > { %v1727_v50 = vshrl.u32 %v1517_v43, 16  ;;  %v1730_v52 = vshll.u32 %v1517_v43, 16  ;;  %v2090_v55 = vld [vmem:[#allocation2 + $0x50] sm:$0xe]  ;;  %1474 = vst [vmem:[#allocation3 + $0xcc] sm:$0xf] %v1434_v48  ;;  %7014 = vtanh.f32 %v695_v59  ;;  %v696_v19 = vadd.f32 %v7598_v36, %v657_v26 }
  0xa7   : > { %v1736_v16 = vshll.u32 %v1518_v3, 16  ;;  %v1740_v63 = vshrl.u32 %v1518_v3, 16  ;;  %1190 = vst [vmem:[#allocation2 + $0x5c] sm:$0xf] %v973_v54  ;;  %1193 = vst [vmem:[#allocation2 + $0x60] sm:$0x1] %v1192_v20  ;;  %6264 = vmatpush3.bf16.msra.mxu1 %v6814_v40  ;;  %v5998_v21 = vunpack.c.h.bf16 %v7847_v32  ;;  %v7881_v8 = vpack.c.bf16 %v7009_v4, %v7009_v4 }
  0xa8   : > { %v2091_v45 = vld [vmem:[#allocation2 + $0x54] sm:$0xf]  ;;  %v1519_v0 = vld [vmem:[#allocation2 + $0x58] sm:$0xf]  ;;  %v1729_v37 = vrot.slane %v1727_v50, 4  ;;  %v1732_v6 = vrot.slane %v1730_v52, 5  ;;  %6265 = vmatprep.subr.bf16.mxu1 %v6818_v47  ;;  %7016 = vtanh.f32 %v696_v19 }
  0xa9   : > { %v1435_v7 = vld [vmem:[#allocation2 + $0x58] sm:$0xf]  ;;  %1196 = vst [vmem:[#allocation2 + $0x64] sm:$0xf] %v1195_v51  ;;  %v6786_v42 = vld [vmem:[#allocation3 + $0xac] ss:$12 sps:$4 sm:$0xff]  }
  0xaa   : > { %v1738_v15 = vrot.slane %v1736_v16, 5  ;;  %1475 = vst [vmem:[#allocation3 + $0xd8] sm:$0xf] %v1435_v7  ;;  %v6829_v10 = vld [vmem:[%s8851_s3 + $0x8] sm:$0xff]   ;;  %v1733_v58 = vor.u32 %v1732_v6, %v1729_v37  ;;  %v1742_v31 = vrot.slane %v1740_v63, 4  ;;  %v1746_v24 = vshll.u32 %v1519_v0, 16  ;;  %3081 = vmatprep.mubr.bf16.mxu0 %v6786_v42 }
  0xab   : > { %v1750_v11 = vshrl.u32 %v1519_v0, 16  ;;  %v6798_v40 = vld [vmem:[#allocation3 + $0xb0] ss:$12 sps:$4 sm:$0xff]   ;;  %v5502_v49 = vrot.slane %v2090_v55, 9  ;;  %v2227_v36 = vrot.slane %v2091_v45, 5  ;;  %6266 = vmatpush3.bf16.msra.mxu1 %v6821_v30  ;;  %3082 = vmatmul.mubr.bf16.gmra.mxu0 %v6790_v53  ;;  %v982_v33 = vrot.slane %v7840_v39, 4 }
  0xac   : > { %v2092_v61 = vld [vmem:[#allocation2 + $0x58] sm:$0xf]  ;;  %v1734_v38 = vrot.slane %v1733_v58, 4  ;;  %v1743_v47 = vor.u32 %v1742_v31, %v1738_v15  ;;  %v1748_v29 = vrot.slane %v1746_v24, 5  ;;  %6267 = vmatprep.subr.bf16.mxu1 %v6826_v22  ;;  %6552 = vmatmul.mubr.bf16.gmra.mxu1 %v6798_v40  ;;  %v6837_v14 = vld [vmem:[%s8851_s3] sm:$0xff]   ;;  %v991_v50 = vrot.slane %v7852_v23, 4 }
  0xad   : > { %v1752_v59 = vrot.slane %v1750_v11, 4  ;;  %v2228_v62 = vsel %vm7558_vm14, %v5502_v49, %v2227_v36  ;;  %v2229_v5 = vrot.slane %v2227_v36, 4  ;;  %v2230_v34 = vrot.slane %v2092_v61, 5  ;;  %v7892_v43 = vld [vmem:[%s8853_s5] ss:$0 sm:$0xff]  ;;  %v6842_v51 = vld [vmem:[%s8851_s3 + $0x238] sm:$0xff]  }
  0xae   : > { %v1739_v46 = vsel %vm7387_vm11, %v1734_v38, %v1738_v15  ;;  %v1744_v26 = vrot.slane %v1743_v47, 4  ;;  %v1436_v30 = vld [vmem:[#allocation2 + $0x5c] sm:$0xf]  ;;  %2359 = vst [vmem:[#allocation3 + $0xc8] sm:$0xf] %v2228_v62  ;;  %v990_v22 = vsel %vm7335_vm8, %v982_v33, %v989_v18  ;;  %v7908_v15 = vrot.slane %v993_v35, 7 }
  0xaf   : > { %v1520_v48 = vld [vmem:[#allocation2 + $0x5c] sm:$0xf]  ;;  %v1753_v3 = vor.u32 %v1752_v59, %v1748_v29  ;;  %2046 = vst [vmem:[#allocation3 + $0xc4] sm:$0xf] %v1739_v46  ;;  %1476 = vst [vmem:[#allocation3 + $0xe4] sm:$0xf] %v1436_v30  ;;  %v2231_v20 = vsel %vm7558_vm14, %v2229_v5, %v2230_v34  ;;  %6268 = vmatpush3.bf16.msra.mxu1 %v6829_v10  ;;  %v7912_v10 = vpack.c.bf16 %v7011_v27, %v7011_v27 }
  0xb0   : > { %v1521_v39 = vld [vmem:[#allocation2 + $0x60] sm:$0x1]  ;;  %v1756_v52 = vshll.u32 %v1520_v48, 16  ;;  %v1760_v54 = vshrl.u32 %v1520_v48, 16  ;;  %v2093_v55 = vld [vmem:[#allocation2 + $0x5c] sm:$0xf]  ;;  %v1749_v4 = vsel %vm7387_vm11, %v1744_v26, %v1748_v29  ;;  %6269 = vmatprep.subr.bf16.mxu1 %v6834_v17  ;;  %v1245_v58 = vmul.f32 %v5993_v1, %v7892_v43 }
  0xb1   : > { %v1754_v16 = vrot.slane %v1753_v3, 4  ;;  %v1766_v63 = vshll.u32 %v1521_v39, 16  ;;  %2360 = vst [vmem:[#allocation3 + $0xd4] sm:$0xf] %v2231_v20  ;;  %v2094_v23 = vld [vmem:[#allocation2 + $0x60] sm:$0x1]  ;;  %v998_v27 = vor.u32 %v996_v28, %v7908_v15  ;;  %v1246_v26 = vmul.f32 %v5994_v57, %v7892_v43 }
  0xb2   : > { %v2232_v45 = vrot.slane %v2230_v34, 4  ;;  %1197 = vst [vmem:[#allocation2 + $0x68] sm:$0xf] %v990_v22  ;;  %2047 = vst [vmem:[#allocation3 + $0xd0] sm:$0xf] %v1749_v4  ;;  %v1758_v0 = vrot.slane %v1756_v52, 5  ;;  %v7013_v35 = vpop.eup %7012  ;;  %v7954_v22 = vmul.f32 %v5998_v21, %v7892_v43 }
  0xb3   : > { %v1762_v37 = vrot.slane %v1760_v54, 4  ;;  %v2233_v6 = vrot.slane %v2093_v55, 5  ;;  %v2236_v7 = vrot.slane %v2094_v23, 5  ;;  %v1437_v42 = vld [vmem:[#allocation2 + $0x64] sm:$0xf]  ;;  %v1768_v53 = vrot.slane %v1766_v63, 5  ;;  %6270 = vmatpush3.bf16.msra.mxu1 %v6837_v14  ;;  %v7015_v36 = vpop.eup %7014 }
  0xb4   : > { %1477 = vst [vmem:[#allocation3 + $0xf0] sm:$0xf] %v1437_v42  ;;  %v1522_v18 = vld [vmem:[#allocation2 + $0x64] sm:$0xf]  ;;  %v1759_v31 = vsel %vm7387_vm11, %v1754_v16, %v1758_v0  ;;  %v7928_v49 = vld [vmem:[%s8854_s6] ss:$0 sm:$0xff]  ;;  %6623 = vmatprep.subr.bf16.mxu1 %v6842_v51  ;;  %v999_v28 = vsel %vm7335_vm8, %v991_v50, %v998_v27  ;;  %v7939_v46 = vpack.c.bf16 %v7013_v35, %v7013_v35 }
  0xb5   : > { %v7910_v19 = vld [vmem:[#allocation2 + $0x64] sm:$0xe]  ;;  %v1763_v24 = vor.u32 %v1762_v37, %v1758_v0  ;;  %v2234_v11 = vsel %vm7558_vm14, %v2232_v45, %v2233_v6  ;;  %v2235_v17 = vrot.slane %v2233_v6, 4  ;;  %2048 = vst [vmem:[#allocation3 + $0xdc] sm:$0xf] %v1759_v31  ;;  %v1771_v40 = vshrl.u32 %v1522_v18, 16  ;;  %v7017_v30 = vpop.eup %7016 }
  0xb6   : > { %2361 = vst [vmem:[#allocation3 + $0xe0] sm:$0xf] %v2234_v11  ;;  %v1774_v61 = vshll.u32 %v1522_v18, 16  ;;  %v5503_v1 = vrot.slane %v7910_v19, 9  ;;  %v1000_v29 = vrot.slane %v7908_v15, 4  ;;  %v1002_v25 = vshrl.u32 %v7881_v8, 16 }
  0xb7   : > { %v1764_v38 = vrot.slane %v1763_v24, 4  ;;  %v2237_v47 = vsel %vm7558_vm14, %v2235_v17, %v2236_v7  ;;  %v1773_v59 = vrot.slane %v1771_v40, 4  ;;  %v1005_v5 = vshll.u32 %v7881_v8, 16  ;;  %1198 = vst [vmem:[#allocation2 + $0x6c] sm:$0xf] %v999_v28  ;;  %s8917_s17 = smov (!%p8133_p10, %s5862_s17), 31 }
  0xb8   : > { %2362 = vst [vmem:[#allocation3 + $0xec] sm:$0xf] %v2237_v47  ;;  %v1776_v62 = vrot.slane %v1774_v61, 5  ;;  %v6803_v33 = vld [vmem:[#allocation3 + $0xc8] ss:$12 sps:$4 sm:$0xff]   ;;  %v1004_v39 = vrot.slane %v1002_v25, 7  ;;  %v7944_v52 = vpack.c.bf16 %v7015_v36, %v7015_v36  ;;  %v1247_v54 = vmul.f32 %v5997_v56, %v7892_v43 }
  0xb9   : > { %v1769_v34 = vsel %vm7387_vm11, %v1764_v38, %v1768_v53  ;;  %v1438_v14 = vld [vmem:[#allocation2 + $0x68] sm:$0xf]  ;;  %v6793_v48 = vld [vmem:[#allocation3 + $0xc4] ss:$12 sps:$4 sm:$0xff]   ;;  %v1200_v8 = vld [vmem:[#allocation2 + $0x74] sm:$0x1]  ;;  %6555 = vmatprep.mubr.bf16.mxu1 %v6803_v33  ;;  %v1256_v4 = vadd.f32 %v7928_v49, %v1245_v58  ;;  %v1257_v17 = vadd.f32 %v7928_v49, %v1246_v26  ;;  %v7974_v36 = vpack.c.bf16 %v7017_v30, %v7017_v30 }
  0xba   : > { %v6797_v3 = vld [vmem:[#allocation3 + $0xc0] ss:$12 sps:$4 sm:$0xff]   ;;  %2049 = vst [vmem:[#allocation3 + $0xe8] sm:$0xf] %v1769_v34  ;;  %1478 = vst [vmem:[#allocation3 + $0xfc] sm:$0xf] %v1438_v14  ;;  %v1777_v50 = vor.u32 %v1776_v62, %v1773_v59  ;;  %3089 = vmatprep.mubr.bf16.mxu0 %v6793_v48  ;;  %v1007_v56 = vor.u32 %v1005_v5, %v1004_v39  ;;  %v1258_v35 = vadd.f32 %v7928_v49, %v1247_v54 }
  0xbb   : > { %v1523_v20 = vld [vmem:[#allocation2 + $0x68] sm:$0xf]  ;;  %v1011_v13 = vshrl.u32 %v7912_v10, 16  ;;  %v1014_v57 = vshll.u32 %v7912_v10, 16  ;;  %3090 = vmatmul.mubr.bf16.gmra.mxu0 %v6797_v3  ;;  %v1009_v51 = vrot.slane %v1004_v39, 4  ;;  %v1019_v37 = vshrl.u32 %v7939_v46, 16 }
  0xbc   : > { %v2096_v55 = vld [vmem:[#allocation2 + $0x68] sm:$0xf]  ;;  %v1778_v16 = vrot.slane %v1777_v50, 4  ;;  %v1780_v63 = vshll.u32 %v1523_v20, 16  ;;  %v1784_v23 = vshrl.u32 %v1523_v20, 16  ;;  %v1008_v53 = vsel %vm7335_vm8, %v1000_v29, %v1007_v56  ;;  %s8919_s17 = smov (!%p8133_p10, %s8917_s17), 31 }
  0xbd   : > { %v2240_v45 = vrot.slane %v2096_v55, 5  ;;  %v7957_v0 = vrot.slane %v1011_v13, 7  ;;  %v1203_v43 = vld [vmem:[#allocation2 + $0x78] sm:$0xf]  ;;  %v1201_v15 = vsel %vm7214_vm2, %v1009_v51, %v1200_v8  ;;  %1199 = vst [vmem:[#allocation2 + $0x70] sm:$0xf] %v1008_v53  ;;  %7018 = vtanh.f32 %v1256_v4 }
  0xbe   : > { %v1782_v6 = vrot.slane %v1780_v63, 5  ;;  %v1786_v7 = vrot.slane %v1784_v23, 4  ;;  %v1524_v10 = vld [vmem:[#allocation2 + $0x6c] sm:$0xf]  ;;  %1202 = vst [vmem:[#allocation2 + $0x74] sm:$0x1] %v1201_v15  ;;  %v1259_v63 = vadd.f32 %v7928_v49, %v7954_v22  ;;  %7020 = vtanh.f32 %v1257_v17 }
  0xbf   : > { %v2241_v32 = vsel %vm7558_vm14, %v5503_v1, %v2240_v45  ;;  %v2242_v21 = vrot.slane %v2240_v45, 4  ;;  %v6806_v42 = vld [vmem:[#allocation3 + $0xe0] ss:$12 sps:$4 sm:$0xff]   ;;  %v1016_v18 = vor.u32 %v1014_v57, %v7957_v0  ;;  %v1017_v19 = vrot.slane %v7957_v0, 4  ;;  %v2097_v24 = vld [vmem:[#allocation2 + $0x6c] sm:$0xf] }
  0xc0   : > { %2363 = vst [vmem:[#allocation3 + $0xf8] sm:$0xf] %v2241_v32  ;;  %v1783_v58 = vsel %vm7387_vm11, %v1778_v16, %v1782_v6  ;;  %v1787_v31 = vor.u32 %v1786_v7, %v1782_v6  ;;  %v1439_v11 = vld [vmem:[#allocation2 + $0x6c] sm:$0xf]  ;;  %6556 = vmatmul.mubr.bf16.gmra.mxu1 %v6806_v42  ;;  %v1790_v61 = vshll.u32 %v1524_v10, 16  ;;  %v1794_v25 = vshrl.u32 %v1524_v10, 16 }
  0xc1   : > { %v6801_v27 = vld [vmem:[#allocation3 + $0xdc] ss:$12 sps:$4 sm:$0xff]   ;;  %v6805_v40 = vld [vmem:[#allocation3 + $0xd8] ss:$12 sps:$4 sm:$0xff]   ;;  %2050 = vst [vmem:[#allocation3 + $0xf4] sm:$0xf] %v1783_v58  ;;  %v1204_v1 = vsel %vm7329_vm7, %v1016_v18, %v1203_v43  ;;  %7022 = vtanh.f32 %v1258_v35 }
  0xc2   : > { %1479 = vst [vmem:[#allocation3 + $0x108] sm:$0xf] %v1439_v11  ;;  %v2105_v38 = vld [vmem:[#allocation2 + $0x8c] sm:$0xe]  ;;  %v7976_v47 = vld [vmem:[#allocation2 + $0x90] sm:$0xf]  ;;  %3097 = vmatprep.mubr.bf16.mxu0 %v6801_v27  ;;  %7024 = vtanh.f32 %v1259_v63 }
  0xc3   : > { %v1788_v29 = vrot.slane %v1787_v31, 4  ;;  %v2243_v28 = vrot.slane %v2097_v24, 5  ;;  %v1021_v59 = vrot.slane %v1019_v37, 7  ;;  %1205 = vst [vmem:[#allocation2 + $0x78] sm:$0xf] %v1204_v1  ;;  %v1792_v62 = vrot.slane %v1790_v61, 5  ;;  %3098 = vmatmul.mubr.bf16.gmra.mxu0 %v6805_v40 }
  0xc4   : > { %v1022_v5 = vshll.u32 %v7939_v46, 16  ;;  %v1028_v34 = vshrl.u32 %v7944_v52, 16  ;;  %v1031_v33 = vshll.u32 %v7944_v52, 16  ;;  %v1796_v30 = vrot.slane %v1794_v25, 4  ;;  %v2098_v55 = vld [vmem:[#allocation2 + $0x70] sm:$0xf] }
  0xc5   : > { %v2244_v14 = vsel %vm7558_vm14, %v2242_v21, %v2243_v28  ;;  %v2245_v26 = vrot.slane %v2243_v28, 4  ;;  %v1026_v48 = vrot.slane %v1021_v59, 4  ;;  %v1793_v3 = vsel %vm7387_vm11, %v1788_v29, %v1792_v62  ;;  %v2099_v13 = vld [vmem:[#allocation2 + $0x74] sm:$0x1]  ;;  %v1440_v57 = vld [vmem:[#allocation2 + $0x70] sm:$0xf] }
  0xc6   : > { %2364 = vst [vmem:[#allocation3 + $0x104] sm:$0xf] %v2244_v14  ;;  %v1024_v50 = vor.u32 %v1022_v5, %v1021_v59  ;;  %v7985_v39 = vrot.slane %v1028_v34, 7  ;;  %v1037_v46 = vshrl.u32 %v7974_v36, 16  ;;  %2051 = vst [vmem:[#allocation3 + $0x100] sm:$0xf] %v1793_v3  ;;  %v1797_v8 = vor.u32 %v1796_v30, %v1792_v62 }
  0xc7   : > { %v1040_v52 = vshll.u32 %v7974_v36, 16  ;;  %v5505_v54 = vrot.slane %v2105_v38, 9  ;;  %v2266_v20 = vrot.slane %v7976_v47, 5  ;;  %v2246_v23 = vrot.slane %v2098_v55, 5  ;;  %1480 = vst [vmem:[#allocation3 + $0x114] sm:$0xf] %v1440_v57 }
  0xc8   : > { %v1025_v4 = vsel %vm7335_vm8, %v1017_v19, %v1024_v50  ;;  %v1033_v16 = vor.u32 %v1031_v33, %v7985_v39  ;;  %v2249_v45 = vrot.slane %v2099_v13, 5  ;;  %v1525_v56 = vld [vmem:[#allocation2 + $0x70] sm:$0xf]  ;;  %v1798_v51 = vrot.slane %v1797_v8, 4  ;;  %v2528_v37 = vld [vmem:[#allocation3 + $0xf0] sm:$0xff]  ;;  %s5445_s21 = sshll.u32 %s8919_s17, 2 }
  0xc9   : > { %1206 = vst [vmem:[#allocation2 + $0x7c] sm:$0xf] %v1025_v4  ;;  %v2267_v0 = vsel %vm7558_vm14, %v5505_v54, %v2266_v20  ;;  %v1526_v6 = vld [vmem:[#allocation2 + $0x74] sm:$0x1]  ;;  %v1800_v7 = vshll.u32 %v1525_v56, 16  ;;  %v1804_v32 = vshrl.u32 %v1525_v56, 16  ;;  %v2247_v49 = vsel %vm7558_vm14, %v2245_v26, %v2246_v23  ;;  %s469_s17 = sadd.s32 %s5445_s21, %s7181_s24 }
  0xca   : > { %v1034_v21 = vsel %vm7335_vm8, %v1026_v48, %v1033_v16  ;;  %v8000_v43 = vld [vmem:[#allocation2 + $0x78] sm:$0xe]  ;;  %2371 = vst [vmem:[#allocation3 + $0x158] sm:$0xf] %v2267_v0  ;;  %v2248_v22 = vrot.slane %v2246_v23, 4  ;;  %v1810_v42 = vshll.u32 %v1526_v6, 16  ;;  %v8016_v25 = vpop.eup %7018 }
  0xcb   : > { %1207 = vst [vmem:[#allocation2 + $0x80] sm:$0xf] %v1034_v21  ;;  %v5504_v53 = vrot.slane %v8000_v43, 9  ;;  %v1209_v15 = vld [vmem:[#allocation2 + $0x88] sm:$0x1]  ;;  %v1802_v10 = vrot.slane %v1800_v7, 5  ;;  %v8031_v7 = vpop.eup %7020 }
  0xcc   : > { %v1441_v18 = vld [vmem:[#allocation2 + $0x78] sm:$0xf]  ;;  %v8005_v19 = vld [vmem:[#allocation2 + $0x94] sm:$0xf]  ;;  %2365 = vst [vmem:[#allocation3 + $0x110] sm:$0xf] %v2247_v49  ;;  %v2250_v35 = vsel %vm7558_vm14, %v2248_v22, %v2249_v45 }
  0xcd   : > { %v1806_v58 = vrot.slane %v1804_v32, 4  ;;  %v1035_v31 = vrot.slane %v7985_v39, 4  ;;  %v1039_v24 = vrot.slane %v1037_v46, 7  ;;  %1481 = vst [vmem:[#allocation3 + $0x120] sm:$0xf] %v1441_v18  ;;  %v1812_v27 = vrot.slane %v1810_v42, 5 }
  0xce   : > { %v1527_v11 = vld [vmem:[#allocation2 + $0x78] sm:$0xf]  ;;  %v6811_v17 = vld [vmem:[#allocation3 + $0xf8] ss:$12 sps:$4 sm:$0xff]   ;;  %v2530_v61 = vld [vmem:[#allocation3 + $0xfc] sm:$0xff]  ;;  %v1803_v36 = vsel %vm7387_vm11, %v1798_v51, %v1802_v10  ;;  %v2268_v5 = vrot.slane %v2266_v20, 4  ;;  %v8035_v18 = vpop.eup %7022 }
  0xcf   : > { %v1815_v40 = vshrl.u32 %v1527_v11, 16  ;;  %v6809_v1 = vld [vmem:[#allocation3 + $0xf4] ss:$12 sps:$4 sm:$0xff]   ;;  %2366 = vst [vmem:[#allocation3 + $0x11c] sm:$0xf] %v2250_v35  ;;  %v1807_v38 = vor.u32 %v1806_v58, %v1802_v10  ;;  %v1042_v47 = vor.u32 %v1040_v52, %v1039_v24  ;;  %v1044_v29 = vrot.slane %v1039_v24, 4  ;;  %6559 = vmatprep.mubr.bf16.mxu1 %v6811_v17 }
  0xd0   : > { %v5580_v28 = vcombine.low %v2528_v37, %v2530_v61  ;;  %2052 = vst [vmem:[#allocation3 + $0x10c] sm:$0xf] %v1803_v36  ;;  %v1818_v62 = vshll.u32 %v1527_v11, 16  ;;  %3105 = vmatprep.mubr.bf16.mxu0 %v6809_v1  ;;  %v2101_v33 = vld [vmem:[#allocation2 + $0x7c] sm:$0xf]  ;;  %v2269_v48 = vrot.slane %v8005_v19, 5 }
  0xd1   : > { %v1817_v59 = vrot.slane %v1815_v40, 4  ;;  %v1808_v34 = vrot.slane %v1807_v38, 4  ;;  %v1043_v14 = vsel %vm7335_vm8, %v1035_v31, %v1042_v47  ;;  %v1210_v26 = vsel %vm7214_vm2, %v1044_v29, %v1209_v15  ;;  %v1442_v30 = vld [vmem:[#allocation2 + $0x7c] sm:$0xf]  ;;  %v2108_v46 = vld [vmem:[#allocation2 + $0x98] sm:$0xf] }
  0xd2   : > { %3106 = vmatmul.mubr.bf16.gmra.mxu0 %v5580_v28  ;;  %v2253_v3 = vrot.slane %v2101_v33, 5  ;;  %1208 = vst [vmem:[#allocation2 + $0x84] sm:$0xf] %v1043_v14  ;;  %1211 = vst [vmem:[#allocation2 + $0x88] sm:$0x1] %v1210_v26  ;;  %v1820_v39 = vrot.slane %v1818_v62, 5  ;;  %v2270_v13 = vsel %vm7558_vm14, %v2268_v5, %v2269_v48 }
  0xd3   : > { %1482 = vst [vmem:[#allocation3 + $0x12c] sm:$0xf] %v1442_v30  ;;  %v1528_v50 = vld [vmem:[#allocation2 + $0x7c] sm:$0xf]  ;;  %v1813_v8 = vsel %vm7387_vm11, %v1808_v34, %v1812_v27  ;;  %v2102_v52 = vld [vmem:[#allocation2 + $0x80] sm:$0xf] }
  0xd4   : > { %v1529_v54 = vld [vmem:[#allocation2 + $0x80] sm:$0xf]  ;;  %v1824_v20 = vshll.u32 %v1528_v50, 16  ;;  %v1828_v55 = vshrl.u32 %v1528_v50, 16  ;;  %v2109_v57 = vld [vmem:[#allocation2 + $0x9c] sm:$0x1]  ;;  %v2254_v16 = vsel %vm7558_vm14, %v5504_v53, %v2253_v3  ;;  %v1821_v45 = vor.u32 %v1820_v39, %v1817_v59  ;;  %v7025_v59 = vpop.eup %7024 }
  0xd5   : > { %v8027_v4 = vld [vmem:[#allocation2 + $0xa0] sm:$0xe]  ;;  %2053 = vst [vmem:[#allocation3 + $0x118] sm:$0xf] %v1813_v8  ;;  %v2255_v63 = vrot.slane %v2253_v3, 4  ;;  %v2256_v23 = vrot.slane %v2102_v52, 5  ;;  %v1264_v52 = vpack.c.bf16 %v8031_v7, %v8016_v25 }
  0xd6   : > { %2372 = vst [vmem:[#allocation3 + $0x164] sm:$0xf] %v2270_v13  ;;  %v1443_v56 = vld [vmem:[#allocation2 + $0x80] sm:$0xf]  ;;  %2367 = vst [vmem:[#allocation3 + $0x128] sm:$0xf] %v2254_v16 }
  0xd7   : > { %v1826_v51 = vrot.slane %v1824_v20, 5  ;;  %v1830_v0 = vrot.slane %v1828_v55, 4  ;;  %v1834_v37 = vshll.u32 %v1529_v54, 16  ;;  %v1838_v6 = vshrl.u32 %v1529_v54, 16  ;;  %1483 = vst [vmem:[#allocation3 + $0x138] sm:$0xf] %v1443_v56 }
  0xd8   : > { %v6813_v32 = vld [vmem:[#allocation3 + $0x110] ss:$12 sps:$4 sm:$0xff]   ;;  %v2257_v21 = vsel %vm7558_vm14, %v2255_v63, %v2256_v23  ;;  %v2258_v43 = vrot.slane %v2256_v23, 4  ;;  %v1822_v49 = vrot.slane %v1821_v45, 4  ;;  %v2271_v53 = vrot.slane %v2269_v48, 4  ;;  %s5447_s24 = sshll.u32 %s469_s17, 2 }
  0xd9   : > { %2368 = vst [vmem:[#allocation3 + $0x134] sm:$0xf] %v2257_v21  ;;  %v1831_v22 = vor.u32 %v1830_v0, %v1826_v51  ;;  %v1836_v42 = vrot.slane %v1834_v37, 5  ;;  %v2272_v15 = vrot.slane %v2108_v46, 5  ;;  %6560 = vmatmul.mubr.bf16.gmra.mxu1 %v6813_v32  ;;  %v2275_v10 = vrot.slane %v2109_v57, 5  ;;  %s471_s14 = scalar_lea.vmem %s8850_s2, %s5447_s24  ;;  %s8685_s24 = scalar_lea.vmem %s8855_s7, %s5430_s19 }
  0xda   : > { %v1827_v19 = vsel %vm7387_vm11, %v1822_v49, %v1826_v51  ;;  %v1840_v58 = vrot.slane %v1838_v6, 4  ;;  %v5506_v31 = vrot.slane %v8027_v4, 9  ;;  %v2103_v24 = vld [vmem:[#allocation2 + $0x84] sm:$0xf]  ;;  %v2104_v11 = vld [vmem:[#allocation2 + $0x88] sm:$0x1]  ;;  %v1289_v54 = vstv %s8014_s22  ;;  %s492_s19 = sadd.s32 %s5452_s16, %s8921_s27 }
  0xdb   : > { %v1832_v17 = vrot.slane %v1831_v22, 4  ;;  %2054 = vst [vmem:[#allocation3 + $0x124] sm:$0xf] %v1827_v19  ;;  %v2273_v35 = vsel %vm7558_vm14, %v2271_v53, %v2272_v15  ;;  %v2274_v27 = vrot.slane %v2272_v15, 4  ;;  %v2111_v40 = vld [vmem:[#allocation2 + $0xa4] sm:$0xf]  ;;  %v1265_v4 = vpack.c.bf16 %v7025_v59, %v8035_v18 }
  0xdc   : > { %v2259_v61 = vrot.slane %v2103_v24, 5  ;;  %v2262_v1 = vrot.slane %v2104_v11, 5  ;;  %2373 = vst [vmem:[#allocation3 + $0x170] sm:$0xf] %v2273_v35  ;;  %v1444_v36 = vld [vmem:[#allocation2 + $0x84] sm:$0xf]  ;;  %v1841_v47 = vor.u32 %v1840_v58, %v1836_v42 }
  0xdd   : > { %v1530_v38 = vld [vmem:[#allocation2 + $0x84] sm:$0xf]  ;;  %v2112_v29 = vld [vmem:[#allocation2 + $0xa8] sm:$0xf]  ;;  %v2113_v28 = vld [vmem:[#allocation2 + $0xac] sm:$0xf]  ;;  %v1837_v34 = vsel %vm7387_vm11, %v1832_v17, %v1836_v42  ;;  %v2276_v33 = vsel %vm7558_vm14, %v2274_v27, %v2275_v10 }
  0xde   : > { %v6815_v62 = vld [vmem:[#allocation3 + $0x10c] ss:$12 sps:$4 sm:$0xff]   ;;  %v6819_v5 = vld [vmem:[#allocation3 + $0x108] ss:$12 sps:$4 sm:$0xff]   ;;  %1484 = vst [vmem:[#allocation3 + $0x144] sm:$0xf] %v1444_v36  ;;  %v2260_v30 = vsel %vm7558_vm14, %v2258_v43, %v2259_v61 }
  0xdf   : > { %v1844_v14 = vshll.u32 %v1530_v38, 16  ;;  %v2114_v26 = vld [vmem:[#allocation2 + $0xb0] sm:$0x1]  ;;  %v2261_v48 = vrot.slane %v2259_v61, 4  ;;  %2055 = vst [vmem:[#allocation3 + $0x130] sm:$0xf] %v1837_v34  ;;  %3113 = vmatprep.mubr.bf16.mxu0 %v6815_v62 }
  0xe0   : > { %2374 = vst [vmem:[#allocation3 + $0x17c] sm:$0xf] %v2276_v33  ;;  %v1842_v3 = vrot.slane %v1841_v47, 4  ;;  %2369 = vst [vmem:[#allocation3 + $0x140] sm:$0xf] %v2260_v30  ;;  %v1848_v46 = vshrl.u32 %v1530_v38, 16  ;;  %3114 = vmatmul.mubr.bf16.gmra.mxu0 %v6819_v5 }
  0xe1   : > { %v1531_v50 = vld [vmem:[#allocation2 + $0x88] sm:$0x1]  ;;  %v1846_v39 = vrot.slane %v1844_v14, 5  ;;  %v501_v8 = vld [vmem:[#allocation2] sm:$0x1]  ;;  %v2263_v55 = vsel %vm7558_vm14, %v2261_v48, %v2262_v1  ;;  %v2279_v57 = vrot.slane %v2111_v40, 5 }
  0xe2   : > { %v6817_v20 = vld [vmem:[#allocation3 + $0x128] ss:$12 sps:$4 sm:$0xff]   ;;  %v1854_v13 = vshll.u32 %v1531_v50, 16  ;;  %2370 = vst [vmem:[#allocation3 + $0x14c] sm:$0xf] %v2263_v55  ;;  %v1850_v63 = vrot.slane %v1848_v46, 4 }
  0xe3   : > { %v1847_v16 = vsel %vm7387_vm11, %v1842_v3, %v1846_v39  ;;  %v2282_v23 = vrot.slane %v2112_v29, 5  ;;  %v2285_v45 = vrot.slane %v2113_v28, 5  ;;  %v533_v56 = vld [vmem:[#allocation2 + $0x10] sm:$0x1]  ;;  %6563 = vmatprep.mubr.bf16.mxu1 %v6817_v20  ;;  %v2280_v51 = vsel %vm7558_vm14, %v5506_v31, %v2279_v57  ;;  %v6827_v42 = vld [vmem:[#allocation3 + $0x120] ss:$12 sps:$4 sm:$0xff]  }
  0xe4   : > { %v1856_v25 = vrot.slane %v1854_v13, 5  ;;  %2056 = vst [vmem:[#allocation3 + $0x13c] sm:$0xf] %v1847_v16  ;;  %v2281_v0 = vrot.slane %v2279_v57, 4  ;;  %v2288_v37 = vrot.slane %v2114_v26, 5  ;;  %v1851_v6 = vor.u32 %v1850_v63, %v1846_v39  ;;  %s5453_s18 = sshll.u32 %s492_s19, 1 }
  0xe5   : > { %2375 = vst [vmem:[#allocation3 + $0x188] sm:$0xf] %v2280_v51  ;;  %v2284_v7 = vrot.slane %v2282_v23, 4  ;;  %v2287_v32 = vrot.slane %v2285_v45, 4  ;;  %v502_v21 = vsel %vm7214_vm2, 0, %v501_v8  ;;  %vm1290_vm15 = vcmp.eq.s32.totalorder %v1289_v54, 1  ;;  %s494_s13 = scalar_lea.vmem %s8856_s8, %s5453_s18 }
  0xe6   : > { %v2283_v43 = vsel %vm7558_vm14, %v2281_v0, %v2282_v23  ;;  %503 = vst [vmem:[#allocation2] sm:$0x1] %v502_v21  ;;  %v534_v49 = vsel %vm7257_vm4, 0, %v533_v56  ;;  %v6823_v22 = vld [vmem:[#allocation3 + $0x124] ss:$12 sps:$4 sm:$0xff]   ;;  %v1852_v53 = vrot.slane %v1851_v6, 4 }
  0xe7   : > { %2376 = vst [vmem:[#allocation3 + $0x194] sm:$0xf] %v2283_v43  ;;  %v2286_v15 = vsel %vm7558_vm14, %v2284_v7, %v2285_v45  ;;  %v2289_v18 = vsel %vm7558_vm14, %v2287_v32, %v2288_v37  ;;  %535 = vst [vmem:[#allocation2 + $0x10] sm:$0x1] %v534_v49  ;;  %3121 = vmatprep.mubr.bf16.mxu0 %v6823_v22  ;;  %v6825_v19 = vld [vmem:[#allocation3 + $0x158] ss:$12 sps:$4 sm:$0xff]  }
  0xe8   : > { %2377 = vst [vmem:[#allocation3 + $0x1a0] sm:$0xf] %v2286_v15  ;;  %2378 = vst [vmem:[#allocation3 + $0x1ac] sm:$0xf] %v2289_v18  ;;  %v1857_v10 = vsel %vm7387_vm11, %v1852_v53, %v1856_v25  ;;  %v1291_v58 = vsel %vm1290_vm15, 0, %v1264_v52  ;;  %v1292_v31 = vsel %vm1290_vm15, 0, %v1265_v4  ;;  %3122 = vmatmul.mubr.bf16.gmra.mxu0 %v6827_v42 }
  0xe9   : > { %v6820_v24 = vld [vmem:[#allocation3 + $0x140] ss:$12 sps:$4 sm:$0xff]   ;;  %2057 = vst [vmem:[#allocation3 + $0x148] sm:$0xf] %v1857_v10  ;;  %v5490_v11 = vcombine.low %v1291_v58, %v1291_v58  ;;  %v5491_v17 = vcombine.high %v1291_v58, %v1291_v58  ;;  %v5492_v35 = vcombine.low %v1292_v31, %v1292_v31  ;;  %v5493_v27 = vcombine.high %v1292_v31, %v1292_v31  ;;  %v6828_v29 = vld [vmem:[#allocation3 + $0x170] ss:$12 sps:$4 sm:$0xff]  }
  0xea   : > { %6564 = vmatmul.mubr.bf16.gmra.mxu1 %v6820_v24  ;;  %v6835_v50 = vld [vmem:[#allocation3 + $0x138] ss:$12 sps:$4 sm:$0xff]  }
  0xeb   : > { %v1304_v40 = vshrl.u32 %v5490_v11, 16  ;;  %v1307_v61 = vshll.u32 %v5490_v11, 16  ;;  %v1312_v1 = vshrl.u32 %v5491_v17, 16  ;;  %v1315_v36 = vshll.u32 %v5491_v17, 16  ;;  %6567 = vmatprep.mubr.bf16.mxu1 %v6825_v19 }
  0xec   : > { %v1321_v38 = vshrl.u32 %v5492_v35, 16  ;;  %v1324_v47 = vshll.u32 %v5492_v35, 16  ;;  %v1330_v62 = vshrl.u32 %v5493_v27, 16  ;;  %v1333_v5 = vshll.u32 %v5493_v27, 16 }
  0xed   : > { %v1306_v28 = vrot.slane %v1304_v40, 7  ;;  %v1314_v59 = vrot.slane %v1312_v1, 7  ;;  %v1343_v34 = vld [vmem:[#allocation2] sm:$0xf] }
  0xee   : > { %v6833_v33 = vld [vmem:[#allocation3 + $0x188] ss:$12 sps:$4 sm:$0xff]   ;;  %v1323_v39 = vrot.slane %v1321_v38, 7  ;;  %v1332_v8 = vrot.slane %v1330_v62, 7 }
  0xef   : > { %v1309_v14 = vor.u32 %v1307_v61, %v1306_v28  ;;  %v1310_v26 = vrot.slane %v1306_v28, 4  ;;  %v1317_v30 = vor.u32 %v1315_v36, %v1314_v59  ;;  %v1319_v48 = vrot.slane %v1314_v59, 4  ;;  %v1349_v55 = vld [vmem:[#allocation2 + $0x10] sm:$0x1]  ;;  %v6836_v23 = vld [vmem:[#allocation3 + $0x1a0] ss:$12 sps:$4 sm:$0xff]  }
  0xf0   : > { %v6831_v3 = vld [vmem:[#allocation3 + $0x13c] ss:$12 sps:$4 sm:$0xff]   ;;  %v1326_v54 = vor.u32 %v1324_v47, %v1323_v39  ;;  %v1328_v20 = vrot.slane %v1323_v39, 4  ;;  %v1335_v13 = vor.u32 %v1333_v5, %v1332_v8  ;;  %v1337_v57 = vrot.slane %v1332_v8, 4 }
  0xf1   : > { %v1318_v46 = vsel %vm7335_vm8, %v1310_v26, %v1317_v30  ;;  %v1344_v52 = vsel %vm7329_vm7, %v1309_v14, %v1343_v34  ;;  %3129 = vmatprep.mubr.bf16.mxu0 %v6831_v3  ;;  %v7039_v44 = vld [vmem:[#allocation3 + $0x13c] ss:$12 sps:$4 sm:$0xff]  }
  0xf2   : > { %1345 = vst [vmem:[#allocation2] sm:$0xf] %v1344_v52  ;;  %1346 = vst [vmem:[#allocation2 + $0x4] sm:$0xf] %v1318_v46  ;;  %6568 = vmatmul.mubr.bf16.gmra.mxu1 %v6828_v29  ;;  %3130 = vmatmul.mubr.bf16.gmra.mxu0 %v6835_v50  ;;  %v1327_v4 = vsel %vm7335_vm8, %v1319_v48, %v1326_v54  ;;  %v1336_v16 = vsel %vm7335_vm8, %v1328_v20, %v1335_v13 }
  0xf3   : > { %6571 = vmatprep.mubr.bf16.mxu1 %v6833_v33  ;;  %1347 = vst [vmem:[#allocation2 + $0x8] sm:$0xf] %v1327_v4  ;;  %v1350_v63 = vsel %vm7214_vm2, %v1337_v57, %v1349_v55  ;;  %1348 = vst [vmem:[#allocation2 + $0xc] sm:$0xf] %v1336_v16  ;;  %v6845_v16 = vld [vmem:[%s8851_s3 + $0x1b8] sm:$0xff]  }
  0xf4   : > { %1351 = vst [vmem:[#allocation2 + $0x10] sm:$0x1] %v1350_v63 }
  0xf9   : > { %v1417_v45 = vld [vmem:[#allocation2] sm:$0xf]  ;;  %v1418_v56 = vld [vmem:[#allocation2 + $0x4] sm:$0xf] }
  0xfa   : > { %v1497_v25 = vld [vmem:[#allocation2] sm:$0xf]  ;;  %1457 = vst [vmem:[#allocation3] sm:$0xf] %v1417_v45  ;;  %1458 = vst [vmem:[#allocation3 + $0xc] sm:$0xf] %v1418_v56  ;;  %6572 = vmatmul.mubr.bf16.gmra.mxu1 %v6836_v23 }
  0xfb   : > { %v1498_v51 = vld [vmem:[#allocation2 + $0x4] sm:$0xf]  ;;  %v1551_v0 = vshrl.u32 %v1497_v25, 16  ;;  %v1554_v37 = vshll.u32 %v1497_v25, 16  ;;  %v2070_v6 = vld [vmem:[#allocation2] sm:$0xe] }
  0xfc   : > { %v1560_v7 = vshll.u32 %v1498_v51, 16  ;;  %v1564_v32 = vshrl.u32 %v1498_v51, 16  ;;  %v2071_v21 = vld [vmem:[#allocation2 + $0x4] sm:$0xf]  ;;  %v5498_v43 = vrot.slane %v2070_v6, 9  ;;  %v6851_v56 = vld [vmem:[%s8851_s3 + $0x1f0] sm:$0xff]  }
  0xfd   : > { %v1499_v49 = vld [vmem:[#allocation2 + $0x8] sm:$0xf]  ;;  %v1553_v22 = vrot.slane %v1551_v0, 4  ;;  %v1556_v42 = vrot.slane %v1554_v37, 5  ;;  %v2073_v58 = vld [vmem:[#allocation2 + $0xc] sm:$0xf] }
  0xfe   : > { %v2072_v53 = vld [vmem:[#allocation2 + $0x8] sm:$0xf]  ;;  %v1562_v15 = vrot.slane %v1560_v7, 5  ;;  %v1566_v18 = vrot.slane %v1564_v32, 4  ;;  %v1570_v19 = vshll.u32 %v1499_v49, 16  ;;  %v1574_v10 = vshrl.u32 %v1499_v49, 16 }
  0xff   : > { %v1557_v31 = vor.u32 %v1556_v42, %v1553_v22  ;;  %v2175_v24 = vrot.slane %v2071_v21, 5  ;;  %v2178_v11 = vrot.slane %v2072_v53, 5  ;;  %v2074_v17 = vld [vmem:[#allocation2 + $0x10] sm:$0x1]  ;;  %v2181_v35 = vrot.slane %v2073_v58, 5  ;;  %v7036_v6 = vld [vmem:[%s8851_s3 + $0x238] sm:$0xff]  }
 0x100   : > { %v1567_v27 = vor.u32 %v1566_v18, %v1562_v15  ;;  %v1572_v40 = vrot.slane %v1570_v19, 5  ;;  %v2184_v61 = vrot.slane %v2074_v17, 5  ;;  %v1419_v1 = vld [vmem:[#allocation2 + $0x8] sm:$0xf]  ;;  %v1420_v36 = vld [vmem:[#allocation2 + $0xc] sm:$0xf] }
 0x101   : > { %v1558_v38 = vrot.slane %v1557_v31, 4  ;;  %v2176_v47 = vsel %vm7558_vm14, %v5498_v43, %v2175_v24  ;;  %v2177_v29 = vrot.slane %v2175_v24, 4  ;;  %v2180_v28 = vrot.slane %v2178_v11, 4  ;;  %1459 = vst [vmem:[#allocation3 + $0x18] sm:$0xf] %v1419_v1  ;;  %v6856_v0 = vld [vmem:[%s8851_s3 + $0x230] sm:$0xff]  }
 0x102   : > { %1460 = vst [vmem:[#allocation3 + $0x24] sm:$0xf] %v1420_v36  ;;  %v1500_v59 = vld [vmem:[#allocation2 + $0xc] sm:$0xf]  ;;  %v1568_v62 = vrot.slane %v1567_v27, 4  ;;  %v2183_v5 = vrot.slane %v2181_v35, 4 }
 0x103   : > { %2343 = vst [vmem:[#allocation3 + $0x8] sm:$0xf] %v2176_v47  ;;  %v1501_v34 = vld [vmem:[#allocation2 + $0x10] sm:$0x1]  ;;  %v1576_v33 = vrot.slane %v1574_v10, 4  ;;  %v1580_v14 = vshll.u32 %v1500_v59, 16  ;;  %v1563_v26 = vsel %vm7387_vm11, %v1558_v38, %v1562_v15  ;;  %v2179_v30 = vsel %vm7558_vm14, %v2177_v29, %v2178_v11 }
 0x104   : > { %v2182_v48 = vsel %vm7558_vm14, %v2180_v28, %v2181_v35  ;;  %v1584_v3 = vshrl.u32 %v1500_v59, 16  ;;  %v1573_v50 = vsel %vm7387_vm11, %v1568_v62, %v1572_v40  ;;  %2030 = vst [vmem:[#allocation3 + $0x4] sm:$0xf] %v1563_v26  ;;  %2344 = vst [vmem:[#allocation3 + $0x14] sm:$0xf] %v2179_v30  ;;  %v2185_v39 = vsel %vm7558_vm14, %v2183_v5, %v2184_v61  ;;  %v6852_v7 = vld [vmem:[%s8851_s3 + $0x1b0] sm:$0xff]  }
 0x105   : > { %2345 = vst [vmem:[#allocation3 + $0x20] sm:$0xf] %v2182_v48  ;;  %v1577_v46 = vor.u32 %v1576_v33, %v1572_v40  ;;  %v1582_v8 = vrot.slane %v1580_v14, 5  ;;  %2031 = vst [vmem:[#allocation3 + $0x10] sm:$0xf] %v1573_v50  ;;  %v1590_v54 = vshll.u32 %v1501_v34, 16 }
 0x106   : > { %2346 = vst [vmem:[#allocation3 + $0x2c] sm:$0xf] %v2185_v39  ;;  %v1586_v52 = vrot.slane %v1584_v3, 4  ;;  %v6848_v45 = vld [vmem:[#allocation3 + $0x38] ss:$12 sps:$4 sm:$0xff]   ;;  %v6874_v58 = vld [vmem:[%s8851_s3 + $0x1d8] sm:$0xff]  }
 0x107   : > { %v1578_v20 = vrot.slane %v1577_v46, 4  ;;  %v1592_v13 = vrot.slane %v1590_v54, 5  ;;  %v6838_v25 = vld [vmem:[#allocation3] ss:$12 sps:$4 sm:$0xff]   ;;  %v6850_v32 = vld [vmem:[#allocation3 + $0x50] ss:$12 sps:$4 sm:$0xff]  }
 0x108   : > { %v1587_v55 = vor.u32 %v1586_v52, %v1582_v8  ;;  %v6859_v21 = vld [vmem:[%s8851_s3 + $0x1e8] sm:$0xff]   ;;  %v6855_v53 = vld [vmem:[#allocation3 + $0x68] ss:$12 sps:$4 sm:$0xff]   ;;  %v6866_v18 = vld [vmem:[%s8851_s3 + $0x1e0] sm:$0xff]  }
 0x109   : > { %v1583_v57 = vsel %vm7387_vm11, %v1578_v20, %v1582_v8  ;;  %v6853_v43 = vld [vmem:[#allocation3 + $0x34] ss:$12 sps:$4 sm:$0xff]   ;;  %v6849_v42 = vld [vmem:[#allocation3 + $0x18] ss:$12 sps:$4 sm:$0xff]   ;;  %v6857_v31 = vld [vmem:[#allocation3 + $0x30] ss:$12 sps:$4 sm:$0xff]  }
 0x10a   : > { %v1588_v4 = vrot.slane %v1587_v55, 4  ;;  %2032 = vst [vmem:[#allocation3 + $0x1c] sm:$0xf] %v1583_v57  ;;  %v6871_v49 = vld [vmem:[%s8851_s3 + $0x228] sm:$0xff]   ;;  %v6886_v19 = vld [vmem:[%s8851_s3 + $0x220] sm:$0xff]   ;;  %v6900_v11 = vld [vmem:[%s8851_s3 + $0x218] sm:$0xff]  }
 0x10b   : > { %v6841_v63 = vld [vmem:[#allocation3 + $0x8] ss:$12 sps:$4 sm:$0xff]   ;;  %v6860_v15 = vld [vmem:[%s8851_s3 + $0x1a8] sm:$0xff]   ;;  %v6867_v10 = vld [vmem:[%s8851_s3 + $0x1a0] sm:$0xff]  }
 0x10c   : > { %v1593_v23 = vsel %vm7387_vm11, %v1588_v4, %v1592_v13  ;;  %v6840_v51 = vld [vmem:[#allocation3 + $0x4] ss:$12 sps:$4 sm:$0xff]   ;;  %6591 = vmatprep.mubr.bf16.mxu0 %v6841_v63  ;;  %v6858_v24 = vld [vmem:[#allocation3 + $0x80] ss:$12 sps:$4 sm:$0xff]   ;;  %v6864_v36 = vld [vmem:[#allocation3 + $0x48] ss:$12 sps:$4 sm:$0xff]  }
 0x10d   : > { %2033 = vst [vmem:[#allocation3 + $0x28] sm:$0xf] %v1593_v23  ;;  %v6843_v37 = vld [vmem:[#allocation3 + $0x20] ss:$12 sps:$4 sm:$0xff]   ;;  %3763 = vmatprep.mubr.bf16.mxu1 %v6840_v51  ;;  %v6863_v35 = vld [vmem:[#allocation3 + $0x98] ss:$12 sps:$4 sm:$0xff]  }
 0x10e   : > { %3764 = vmatmul.mubr.bf16.vlgmr.msra.gmra.mxu1 %v6838_v25  ;;  %6592 = vmatmul.mubr.bf16.vlgmr.msra.gmra.mxu0 %v6843_v37  ;;  %v6861_v17 = vld [vmem:[#allocation3 + $0x4c] ss:$12 sps:$4 sm:$0xff]   ;;  %v6875_v27 = vld [vmem:[%s8851_s3 + $0x198] sm:$0xff]   ;;  %v6889_v47 = vld [vmem:[%s8851_s3 + $0x1c8] sm:$0xff]  }
 0x10f   : > { %6624 = vmatpush3.bf16.msra.mxu1 %v7036_v6  ;;  %6392 = vmatpush3.bf16.msra.mxu0 %v6845_v16  ;;  %v6881_v40 = vld [vmem:[%s8851_s3 + $0x1d0] sm:$0xff]   ;;  %v6865_v38 = vld [vmem:[#allocation3 + $0xb0] ss:$12 sps:$4 sm:$0xff]   ;;  %v6914_v29 = vld [vmem:[%s8851_s3 + $0x208] sm:$0xff]  }
 0x110   : > { %6595 = vmatprep.mubr.bf16.mxu0 %v6848_v45  ;;  %6393 = vmatprep.subr.bf16.mxu0 %v6851_v56  ;;  %v6907_v61 = vld [vmem:[%s8851_s3 + $0x210] sm:$0xff]   ;;  %v8162_v59 = vld [vmem:[#allocation3 + $0x64] ss:$12 sps:$4 sm:$0xff]   ;;  %v6896_v33 = vld [vmem:[%s8851_s3 + $0x1c0] sm:$0xff]  }
 0x111   : > { %6625 = vmatprep.subr.bf16.mxu1 %v6856_v0  ;;  %v6882_v1 = vld [vmem:[%s8851_s3 + $0x190] sm:$0xff]   ;;  %v6890_v5 = vld [vmem:[%s8851_s3 + $0x188] sm:$0xff]   ;;  %v6918_v30 = vld [vmem:[%s8851_s3 + $0x200] sm:$0xff]  }
 0x112   : > { %v6135_v28 = vpop.f32.mrf.mxu0  ;;  %v6870_v62 = vld [vmem:[#allocation3 + $0xc8] ss:$12 sps:$4 sm:$0xff]   ;;  %v8179_v3 = vld [vmem:[#allocation3 + $0x60] ss:$12 sps:$4 sm:$0xff]   ;;  %v6897_v50 = vld [vmem:[%s8851_s3 + $0x180] sm:$0xff]  }
 0x113   : > { %6394 = vmatpush3.bf16.msra.mxu0 %v6852_v7  ;;  %6626 = vmatpush3.bf16.msra.mxu1 %v6856_v0  ;;  %v6873_v8 = vld [vmem:[#allocation3 + $0xe0] ss:$12 sps:$4 sm:$0xff]   ;;  %v8188_v54 = vld [vmem:[#allocation3 + $0x7c] ss:$12 sps:$4 sm:$0xff]   ;;  %v6878_v20 = vld [vmem:[#allocation3 + $0xf8] ss:$12 sps:$4 sm:$0xff]  }
 0x114   : > { %v6846_v22 = vld [vmem:[#allocation3 + $0x1c] ss:$12 sps:$4 sm:$0xff]   ;;  %6395 = vmatprep.subr.bf16.mxu0 %v6859_v21  ;;  %6627 = vmatprep.subr.bf16.mxu1 %v6871_v49  ;;  %v6136_v34 = vpop.f32.mrf.mxu0  ;;  %v528_v63 = vld [vmem:[#allocation2 + $0xb4] sm:$0x1]  ;;  %v6103_v51 = vld [vmem:[%s471_s14 + $0x8] sm:$0xff]  }
 0x115   : > { %3771 = vmatprep.mubr.bf16.mxu1 %v6846_v22  ;;  %v8170_v14 = vadd.f32 %v6136_v34, %v6135_v28  ;;  %v6000_v23 = vld [vmem:[%s471_s14] sm:$0xff]   ;;  %v529_v45 = vsel %vm7214_vm2, 0, %v528_v63  ;;  %v6005_v0 = vunpack.c.l.bf16 %v6103_v51  ;;  %v6006_v37 = vunpack.c.h.bf16 %v6103_v51  ;;  %v8236_v34 = vld [vmem:[#allocation3 + $0xa8] ss:$12 sps:$4 sm:$0xff]  }
 0x116   : > { %3772 = vmatmul.mubr.bf16.gmra.mxu1 %v6849_v42  ;;  %6596 = vmatmul.mubr.bf16.gmra.mxu0 %v6850_v32  ;;  %v8172_v26 = vpop.f32.mrf.mxu0  ;;  %v6207_v48 = vpop.f32.mrf.mxu1  ;;  %v6001_v56 = vunpack.c.l.bf16 %v6000_v23  ;;  %v6002_v25 = vunpack.c.h.bf16 %v6000_v23  ;;  %530 = vst [vmem:[#allocation2 + $0xb4] sm:$0x1] %v529_v45  ;;  %v560_v6 = vld [vmem:[#allocation2 + $0xc4] sm:$0x1]  ;;  %v8203_v7 = vld [vmem:[#allocation3 + $0x78] ss:$12 sps:$4 sm:$0xff]  }
 0x117   : > { %3779 = vmatprep.mubr.bf16.mxu1 %v6853_v43  ;;  %6599 = vmatprep.mubr.bf16.mxu0 %v6855_v53  ;;  %v6880_v32 = vld [vmem:[#allocation3 + $0x110] ss:$12 sps:$4 sm:$0xff]   ;;  %v7037_v21 = vld [vmem:[%s8853_s5] ss:$0 sm:$0xff]  ;;  %v561_v22 = vsel %vm7257_vm4, 0, %v560_v6 }
 0x118   : > { %6396 = vmatpush3.bf16.msra.mxu0 %v6860_v15  ;;  %6628 = vmatpush3.bf16.msra.mxu1 %v6871_v49  ;;  %v6208_v39 = vpop.f32.mrf.mxu1  ;;  %v8184_v46 = vpop.f32.mrf.mxu0  ;;  %v1274_v43 = vmul.f32 %v7037_v21, %v6001_v56  ;;  %v1275_v49 = vmul.f32 %v7037_v21, %v6002_v25  ;;  %v8210_v42 = vld [vmem:[#allocation3 + $0x94] ss:$12 sps:$4 sm:$0xff]   ;;  %562 = vst [vmem:[#allocation2 + $0xc4] sm:$0x1] %v561_v22 }
 0x119   : > { %6397 = vmatprep.subr.bf16.mxu0 %v6866_v18  ;;  %6629 = vmatprep.subr.bf16.mxu1 %v6886_v19  ;;  %v8186_v52 = vadd.f32 %v6208_v39, %v6207_v48  ;;  %v6885_v53 = vld [vmem:[#allocation3 + $0x128] ss:$12 sps:$4 sm:$0xff]   ;;  %v8238_v48 = vld [vmem:[#allocation3 + $0xc4] ss:$12 sps:$4 sm:$0xff]  }
 0x11a   : > { %v8190_v55 = vpop.f32.mrf.mxu1 }
 0x11c   : > { %6398 = vmatpush3.bf16.msra.mxu0 %v6867_v10  ;;  %6630 = vmatpush3.bf16.msra.mxu1 %v6886_v19  ;;  %v8197_v4 = vpop.f32.mrf.mxu1  ;;  %v1276_v19 = vmul.f32 %v7037_v21, %v6005_v0  ;;  %v1277_v10 = vmul.f32 %v7037_v21, %v6006_v37 }
 0x11d   : > { %6399 = vmatprep.subr.bf16.mxu0 %v6874_v58  ;;  %6631 = vmatprep.subr.bf16.mxu1 %v6900_v11  ;;  %v7038_v58 = vld [vmem:[%s8854_s6] ss:$0 sm:$0xff] }
 0x11e   : > { %3780 = vmatmul.mubr.bf16.gmra.mxu1 %v6857_v31  ;;  %6600 = vmatmul.mubr.bf16.gmra.mxu0 %v6858_v24  ;;  %v6141_v13 = vpop.f32.mrf.mxu0  ;;  %v1278_v31 = vadd.f32 %v7038_v58, %v1274_v43  ;;  %v1279_v24 = vadd.f32 %v7038_v58, %v1275_v49  ;;  %v1281_v41 = vadd.f32 %v7038_v58, %v1277_v10 }
 0x11f   : > { %3787 = vmatprep.mubr.bf16.mxu1 %v6861_v17  ;;  %6603 = vmatprep.mubr.bf16.mxu0 %v6863_v35  ;;  %v1280_v17 = vadd.f32 %v7038_v58, %v1276_v19 }
 0x120   : > { %6400 = vmatpush3.bf16.msra.mxu0 %v6875_v27  ;;  %6632 = vmatpush3.bf16.msra.mxu1 %v6900_v11  ;;  %v6142_v57 = vpop.f32.mrf.mxu0  ;;  %7026 = vtanh.f32 %v1278_v31 }
 0x121   : > { %6401 = vmatprep.subr.bf16.mxu0 %v6881_v40  ;;  %6633 = vmatprep.subr.bf16.mxu1 %v6907_v61  ;;  %v8199_v16 = vadd.f32 %v6142_v57, %v6141_v13  ;;  %7028 = vtanh.f32 %v1279_v24  ;;  %v8224_v40 = vld [vmem:[#allocation3 + $0x90] ss:$12 sps:$4 sm:$0xff]  }
 0x122   : > { %v8212_v18 = vpop.f32.mrf.mxu0  ;;  %7030 = vtanh.f32 %v1280_v17  ;;  %v1408_v17 = vld [vmem:[#allocation2 + $0xb4] sm:$0xf] }
 0x123   : > { %7032 = vtanh.f32 %v1281_v41 }
 0x124   : > { %6402 = vmatpush3.bf16.msra.mxu0 %v6882_v1  ;;  %6634 = vmatpush3.bf16.msra.mxu1 %v6907_v61  ;;  %v8221_v27 = vpop.f32.mrf.mxu0  ;;  %v6888_v61 = vld [vmem:[#allocation3 + $0x140] ss:$12 sps:$4 sm:$0xff]  }
 0x125   : > { %6403 = vmatprep.subr.bf16.mxu0 %v6889_v47  ;;  %6635 = vmatprep.subr.bf16.mxu1 %v6914_v29  ;;  %v8226_v1 = vld [vmem:[#allocation3 + $0xac] ss:$12 sps:$4 sm:$0xff]  }
 0x126   : > { %3788 = vmatmul.mubr.bf16.gmra.mxu1 %v6864_v36  ;;  %6604 = vmatmul.mubr.bf16.gmra.mxu0 %v6865_v38  ;;  %v6893_v36 = vld [vmem:[#allocation3 + $0x158] ss:$12 sps:$4 sm:$0xff]  }
 0x127   : > { %3795 = vmatprep.mubr.bf16.mxu1 %v8162_v59  ;;  %6607 = vmatprep.mubr.bf16.mxu0 %v6870_v62  ;;  %v6213_v15 = vpop.f32.mrf.mxu1 }
 0x128   : > { %6404 = vmatpush3.bf16.msra.mxu0 %v6890_v5  ;;  %6636 = vmatpush3.bf16.msra.mxu1 %v6914_v29  ;;  %v1353_v5 = vstv %s1352_s26 }
 0x129   : > { %6405 = vmatprep.subr.bf16.mxu0 %v6896_v33  ;;  %6637 = vmatprep.subr.bf16.mxu1 %v6918_v30  ;;  %v6214_v11 = vpop.f32.mrf.mxu1  ;;  %v6895_v33 = vld [vmem:[#allocation3 + $0x170] ss:$12 sps:$4 sm:$0xff]   ;;  %vm8240_vm0 = vcmp.eq.s32.totalorder %v1353_v5, 1 }
 0x12a   : > { %v8218_v35 = vadd.f32 %v6214_v11, %v6213_v15 }
 0x12b   : > { %v8228_v47 = vpop.f32.mrf.mxu1 }
 0x12c   : > { %6406 = vmatpush3.bf16.msra.mxu0 %v6897_v50  ;;  %6638 = vmatpush3.bf16.msra.mxu1 %v6918_v30 }
 0x12d   : > { %v8234_v62 = vpop.f32.mrf.mxu1  ;;  %v7027_v30 = vpop.eup %7026 }
 0x12e   : > { %3796 = vmatmul.mubr.bf16.gmra.mxu1 %v8179_v3  ;;  %6608 = vmatmul.mubr.bf16.gmra.mxu0 %v6873_v8  ;;  %v7029_v50 = vpop.eup %7028 }
 0x12f   : > { %3803 = vmatprep.mubr.bf16.mxu1 %v8188_v54  ;;  %6611 = vmatprep.mubr.bf16.mxu0 %v6878_v20  ;;  %v6147_v38 = vpop.f32.mrf.mxu0  ;;  %v7031_v20 = vpop.eup %7030  ;;  %v1286_v57 = vpack.c.bf16 %v7029_v50, %v7027_v30 }
 0x130   : > { %v7033_v63 = vpop.eup %7032 }
 0x131   : > { %v6148_v29 = vpop.f32.mrf.mxu0  ;;  %v1287_v56 = vpack.c.bf16 %v7033_v63, %v7031_v20  ;;  %v1355_v25 = vsel %vm8240_vm0, 0, %v1286_v57 }
 0x132   : > { %v8231_v28 = vadd.f32 %v6148_v29, %v6147_v38  ;;  %v5494_v51 = vcombine.low %v1355_v25, %v1355_v25  ;;  %v5495_v0 = vcombine.high %v1355_v25, %v1355_v25  ;;  %v8275_v25 = vld [vmem:[#allocation3 + $0xd8] ss:$12 sps:$4 sm:$0xff]  }
 0x133   : > { %v8244_v13 = vpop.f32.mrf.mxu0  ;;  %v1356_v6 = vsel %vm8240_vm0, 0, %v1287_v56 }
 0x134   : > { %v5496_v21 = vcombine.low %v1356_v6, %v1356_v6  ;;  %v1368_v43 = vshrl.u32 %v5494_v51, 16  ;;  %v1371_v49 = vshll.u32 %v5494_v51, 16  ;;  %v1376_v22 = vshrl.u32 %v5495_v0, 16  ;;  %v8277_v51 = vld [vmem:[#allocation3 + $0xf4] ss:$12 sps:$4 sm:$0xff]  }
 0x135   : > { %v8253_v37 = vpop.f32.mrf.mxu0  ;;  %v5497_v15 = vcombine.high %v1356_v6, %v1356_v6 }
 0x136   : > { %3804 = vmatmul.mubr.bf16.gmra.mxu1 %v8203_v7  ;;  %6612 = vmatmul.mubr.bf16.gmra.mxu0 %v6880_v32  ;;  %v8257_v32 = vld [vmem:[#allocation3 + $0xc0] ss:$12 sps:$4 sm:$0xff]   ;;  %v1370_v19 = vrot.slane %v1368_v43, 7  ;;  %v1378_v10 = vrot.slane %v1376_v22, 7  ;;  %v1385_v58 = vshrl.u32 %v5496_v21, 16  ;;  %v1388_v11 = vshll.u32 %v5496_v21, 16 }
 0x137   : > { %3811 = vmatprep.mubr.bf16.mxu1 %v8210_v42  ;;  %6615 = vmatprep.mubr.bf16.mxu0 %v6885_v53  ;;  %v1379_v53 = vshll.u32 %v5495_v0, 16  ;;  %v1394_v41 = vshrl.u32 %v5497_v15, 16 }
 0x138   : > { %v1374_v38 = vrot.slane %v1370_v19, 4  ;;  %v1387_v30 = vrot.slane %v1385_v58, 7 }
 0x139   : > { %v1381_v29 = vor.u32 %v1379_v53, %v1378_v10  ;;  %v1396_v50 = vrot.slane %v1394_v41, 7 }
 0x13a   : > { %v1390_v63 = vor.u32 %v1388_v11, %v1387_v30 }
 0x13b   : > { %v6219_v39 = vpop.f32.mrf.mxu1  ;;  %v1382_v8 = vsel %vm7335_vm8, %v1374_v38, %v1381_v29  ;;  %v1401_v56 = vrot.slane %v1396_v50, 4 }
 0x13c   : > { %1411 = vst [vmem:[#allocation2 + $0xb8] sm:$0xf] %v1382_v8 }
 0x13d   : > { %v6220_v23 = vpop.f32.mrf.mxu1 }
 0x13e   : > { %3812 = vmatmul.mubr.bf16.gmra.mxu1 %v8224_v40  ;;  %6616 = vmatmul.mubr.bf16.gmra.mxu0 %v6888_v61  ;;  %v8249_v45 = vadd.f32 %v6220_v23, %v6219_v39  ;;  %v1397_v61 = vshll.u32 %v5497_v15, 16  ;;  %v1392_v23 = vrot.slane %v1387_v30, 4 }
 0x13f   : > { %3819 = vmatprep.mubr.bf16.mxu1 %v8226_v1  ;;  %6619 = vmatprep.mubr.bf16.mxu0 %v6893_v36  ;;  %v8261_v31 = vpop.f32.mrf.mxu1  ;;  %v1373_v36 = vor.u32 %v1371_v49, %v1370_v19  ;;  %v8289_v49 = vld [vmem:[#allocation3 + $0xf0] ss:$12 sps:$4 sm:$0xff]  }
 0x141   : > { %v1409_v20 = vsel %vm7329_vm7, %v1373_v36, %v1408_v17  ;;  %v8273_v57 = vpop.f32.mrf.mxu1 }
 0x142   : > { %1410 = vst [vmem:[#allocation2 + $0xb4] sm:$0xf] %v1409_v20 }
 0x143   : > { %v1454_v12 = vld [vmem:[#allocation2 + $0xb8] sm:$0xf] }
 0x144   : > { %1494 = vst [vmem:[#allocation3 + $0x1bc] sm:$0xf] %v1454_v12  ;;  %v1543_v19 = vld [vmem:[#allocation2 + $0xb8] sm:$0xf] }
 0x145   : > { %v6153_v24 = vpop.f32.mrf.mxu0  ;;  %v1960_v17 = vshrl.u32 %v1543_v19, 16  ;;  %v2116_v41 = vld [vmem:[#allocation2 + $0xb8] sm:$0xf] }
 0x146   : > { %3820 = vmatmul.mubr.bf16.gmra.mxu1 %v8236_v34  ;;  %6620 = vmatmul.mubr.bf16.gmra.mxu0 %v6895_v33  ;;  %v1383_v33 = vrot.slane %v1378_v10, 4 }
 0x147   : > { %3827 = vmatprep.mubr.bf16.mxu1 %v8238_v48  ;;  %4599 = vmatprep.mubr.bf16.mxu0 %v8162_v59  ;;  %v8259_v59 = vld [vmem:[#allocation3 + $0xdc] ss:$12 sps:$4 sm:$0xff]   ;;  %v6154_v5 = vpop.f32.mrf.mxu0  ;;  %v1962_v30 = vrot.slane %v1960_v17, 4 }
 0x148   : > { %v8267_v39 = vadd.f32 %v6154_v5, %v6153_v24  ;;  %v1391_v0 = vsel %vm7335_vm8, %v1383_v33, %v1390_v63  ;;  %v8295_v24 = vld [vmem:[#allocation3 + $0x10c] ss:$12 sps:$4 sm:$0xff]  }
 0x149   : > { %1412 = vst [vmem:[#allocation2 + $0xbc] sm:$0xf] %v1391_v0  ;;  %v1453_v22 = vld [vmem:[#allocation2 + $0xb4] sm:$0xf]  ;;  %v8297_v11 = vpop.f32.mrf.mxu0 }
 0x14a   : > { %v1542_v53 = vld [vmem:[#allocation2 + $0xb4] sm:$0xf]  ;;  %1493 = vst [vmem:[#allocation3 + $0x1b0] sm:$0xf] %v1453_v22 }
 0x14b   : > { %v1947_v10 = vshrl.u32 %v1542_v53, 16  ;;  %v1950_v58 = vshll.u32 %v1542_v53, 16 }
 0x14d   : > { %v1949_v38 = vrot.slane %v1947_v10, 4  ;;  %v1952_v29 = vrot.slane %v1950_v58, 5 }
 0x14e   : > { %3828 = vmatmul.mubr.bf16.gmra.mxu1 %v8257_v32  ;;  %4600 = vmatmul.mubr.bf16.vlgmr.msra.gmra.mxu0 %v8179_v3  ;;  %v1414_v3 = vld [vmem:[#allocation2 + $0xc4] sm:$0x1]  ;;  %v6225_v21 = vpop.f32.mrf.mxu1 }
 0x14f   : > { %3835 = vmatprep.mubr.bf16.mxu1 %v8259_v59  ;;  %4607 = vmatprep.mubr.bf16.mxu0 %v8188_v54  ;;  %v1399_v54 = vor.u32 %v1397_v61, %v1396_v50  ;;  %v1415_v6 = vsel %vm7214_vm2, %v1401_v56, %v1414_v3  ;;  %v6146_v3 = vadd.f32 %v8221_v27, %v8212_v18 }
 0x150   : > { %1416 = vst [vmem:[#allocation2 + $0xc4] sm:$0x1] %v1415_v6  ;;  %v6226_v43 = vpop.f32.mrf.mxu1  ;;  %v1544_v36 = vld [vmem:[#allocation2 + $0xbc] sm:$0xf]  ;;  %v6157_v6 = vpop.f32.mrf.mxu0 }
 0x151   : > { %v1400_v60 = vsel %vm7335_vm8, %v1392_v23, %v1399_v54  ;;  %v8291_v2 = vadd.f32 %v6226_v43, %v6225_v21  ;;  %v1455_v5 = vld [vmem:[#allocation2 + $0xbc] sm:$0xf]  ;;  %v1966_v50 = vshll.u32 %v1544_v36, 16  ;;  %v1953_v23 = vor.u32 %v1952_v29, %v1949_v38 }
 0x152   : > { %1413 = vst [vmem:[#allocation2 + $0xc0] sm:$0xf] %v1400_v60  ;;  %v8293_v15 = vpop.f32.mrf.mxu1  ;;  %1495 = vst [vmem:[#allocation3 + $0x1c8] sm:$0xf] %v1455_v5  ;;  %v1970_v54 = vshrl.u32 %v1544_v36, 16  ;;  %v2292_v60 = vrot.slane %v2116_v41, 5 }
 0x153   : > { %v1968_v22 = vrot.slane %v1966_v50, 5  ;;  %v1954_v27 = vrot.slane %v1953_v23, 4  ;;  %v2117_v58 = vld [vmem:[#allocation2 + $0xbc] sm:$0xf]  ;;  %v8323_v23 = vld [vmem:[#allocation3 + $0x124] ss:$12 sps:$4 sm:$0xff]  }
 0x154   : > { %v8299_v61 = vpop.f32.mrf.mxu1  ;;  %v1972_v53 = vrot.slane %v1970_v54, 4 }
 0x156   : > { %3836 = vmatmul.mubr.bf16.gmra.mxu1 %v8275_v25  ;;  %4608 = vmatmul.mubr.bf16.gmra.mxu0 %v8203_v7  ;;  %v2115_v7 = vld [vmem:[#allocation2 + $0xb4] sm:$0xe]  ;;  %v6545_v63 = vpop.f32.mrf.mxu1  ;;  %v1973_v38 = vor.u32 %v1972_v53, %v1968_v22 }
 0x157   : > { %3843 = vmatprep.mubr.bf16.mxu1 %v8277_v51  ;;  %4615 = vmatprep.mubr.bf16.mxu0 %v8210_v42  ;;  %v1956_v42 = vshll.u32 %v1543_v19, 16  ;;  %v5507_v20 = vrot.slane %v2115_v7, 9  ;;  %v1546_v0 = vld [vmem:[#allocation2 + $0xc4] sm:$0x1]  ;;  %v8306_v21 = vadd.f32 %v6545_v63, %v8199_v16  ;;  %v2295_v63 = vrot.slane %v2117_v58, 5 }
 0x158   : > { %v3204_v18 = vpop.f32.mrf.mxu1  ;;  %v1986_v10 = vshll.u32 %v1546_v0, 16  ;;  %v2119_v41 = vld [vmem:[#allocation2 + $0xc4] sm:$0x1] }
 0x159   : > { %v1958_v33 = vrot.slane %v1956_v42, 5  ;;  %v1456_v8 = vld [vmem:[#allocation2 + $0xc0] sm:$0xf]  ;;  %v8311_v7 = vadd.f32 %v8170_v14, %v3204_v18  ;;  %v2293_v16 = vsel %vm7558_vm14, %v5507_v20, %v2292_v60  ;;  %v2294_v20 = vrot.slane %v2292_v60, 4 }
 0x15a   : > { %1496 = vst [vmem:[#allocation3 + $0x1d4] sm:$0xf] %v1456_v8  ;;  %v1545_v56 = vld [vmem:[#allocation2 + $0xc0] sm:$0xf]  ;;  %v6546_v36 = vpop.f32.mrf.mxu1  ;;  %v1988_v5 = vrot.slane %v1986_v10, 5  ;;  %v2297_v18 = vrot.slane %v2295_v63, 4 }
 0x15b   : > { %v1963_v43 = vor.u32 %v1962_v30, %v1958_v33  ;;  %v1976_v12 = vshll.u32 %v1545_v56, 16  ;;  %v1980_v19 = vshrl.u32 %v1545_v56, 16  ;;  %v2118_v17 = vld [vmem:[#allocation2 + $0xc0] sm:$0xf]  ;;  %2379 = vst [vmem:[#allocation3 + $0x1b8] sm:$0xf] %v2293_v16  ;;  %v6159_v50 = vpop.f32.mrf.mxu0  ;;  %v8319_v14 = vadd.f32 %v6546_v36, %v6146_v3 }
 0x15c   : > { %v8317_v30 = vld [vmem:[#allocation3 + $0x108] ss:$12 sps:$4 sm:$0xff]   ;;  %v8325_v54 = vpop.f32.mrf.mxu1  ;;  %v2298_v0 = vrot.slane %v2118_v17, 5  ;;  %v2296_v3 = vsel %vm7558_vm14, %v2294_v20, %v2295_v63 }
 0x15d   : > { %v1978_v42 = vrot.slane %v1976_v12, 5  ;;  %v1982_v29 = vrot.slane %v1980_v19, 4  ;;  %v6160_v12 = vpop.f32.mrf.mxu0  ;;  %2380 = vst [vmem:[#allocation3 + $0x1c4] sm:$0xf] %v2296_v3  ;;  %v6923_v3 = vld [vmem:[#allocation3 + $0x68] ss:$12 sps:$4 sm:$0xff]  }
 0x15e   : > { %3844 = vmatmul.mubr.bf16.gmra.mxu1 %v8289_v49  ;;  %4616 = vmatmul.mubr.bf16.gmra.mxu0 %v8224_v40  ;;  %v1964_v40 = vrot.slane %v1963_v43, 4  ;;  %v2301_v43 = vrot.slane %v2119_v41, 5  ;;  %v6549_v53 = vpop.f32.mrf.mxu1  ;;  %v2300_v19 = vrot.slane %v2298_v0, 4  ;;  %v2299_v58 = vsel %vm7558_vm14, %v2297_v18, %v2298_v0  ;;  %v6915_v41 = vld [vmem:[#allocation3 + $0x120] ss:$12 sps:$4 sm:$0xff]  }
 0x15f   : > { %3851 = vmatprep.mubr.bf16.mxu1 %v8295_v24  ;;  %4623 = vmatprep.mubr.bf16.mxu0 %v8226_v1  ;;  %v1959_v1 = vsel %vm7387_vm11, %v1954_v27, %v1958_v33  ;;  %v1974_v33 = vrot.slane %v1973_v38, 4  ;;  %v1983_v56 = vor.u32 %v1982_v29, %v1978_v42  ;;  %v6161_v27 = vadd.f32 %v6160_v12, %v6159_v50  ;;  %v7040_v29 = vld [vmem:[#allocation3 + $0x138] ss:$12 sps:$4 sm:$0xff]  }
 0x160   : > { %v1969_v8 = vsel %vm7387_vm11, %v1964_v40, %v1968_v22  ;;  %2066 = vst [vmem:[#allocation3 + $0x1b4] sm:$0xf] %v1959_v1  ;;  %v8334_v10 = vadd.f32 %v6549_v53, %v8267_v39  ;;  %v3220_v40 = vpop.f32.mrf.mxu1  ;;  %v2302_v16 = vsel %vm7558_vm14, %v2300_v19, %v2301_v43  ;;  %2381 = vst [vmem:[#allocation3 + $0x1d0] sm:$0xf] %v2299_v58  ;;  %v6920_v0 = vld [vmem:[#allocation3 + $0x16c] ss:$12 sps:$4 sm:$0xff]  }
 0x161   : > { %2067 = vst [vmem:[#allocation3 + $0x1c0] sm:$0xf] %v1969_v8  ;;  %v1979_v60 = vsel %vm7387_vm11, %v1974_v33, %v1978_v42  ;;  %v1984_v22 = vrot.slane %v1983_v56, 4  ;;  %v8346_v39 = vadd.f32 %v8231_v28, %v3220_v40  ;;  %2382 = vst [vmem:[#allocation3 + $0x1dc] sm:$0xf] %v2302_v16 }
 0x162   : > { %2068 = vst [vmem:[#allocation3 + $0x1cc] sm:$0xf] %v1979_v60  ;;  %v6550_v17 = vpop.f32.mrf.mxu1  ;;  %v8358_v28 = vld [vmem:[#allocation3 + $0x154] ss:$12 sps:$4 sm:$0xff]   ;;  %v6919_v33 = vld [vmem:[#allocation3 + $0x150] ss:$12 sps:$4 sm:$0xff]  }
 0x163   : > { %v1989_v42 = vsel %vm7387_vm11, %v1984_v22, %v1988_v5  ;;  %v6924_v58 = vld [vmem:[#allocation3 + $0x80] ss:$12 sps:$4 sm:$0xff]   ;;  %v6927_v16 = vld [vmem:[#allocation3 + $0x13c] ss:$12 sps:$4 sm:$0xff]  }
 0x164   : > { %2069 = vst [vmem:[#allocation3 + $0x1d8] sm:$0xf] %v1989_v42 }
 0x166   : > { %3852 = vmatmul.mubr.bf16.gmra.mxu1 %v8317_v30  ;;  %4624 = vmatmul.mubr.bf16.gmra.mxu0 %v8236_v34  ;;  %v6158_v34 = vadd.f32 %v6157_v6, %v8297_v11  ;;  %v8356_v11 = vpop.f32.mrf.mxu1 }
 0x167   : > { %3859 = vmatprep.mubr.bf16.mxu1 %v8323_v23  ;;  %4631 = vmatprep.mubr.bf16.mxu0 %v8238_v48  ;;  %v8350_v48 = vpop.f32.mrf.mxu0 }
 0x168   : > { %v8348_v36 = vadd.f32 %v6550_v17, %v6158_v34  ;;  %v6928_v34 = vld [vmem:[#allocation3 + $0x98] ss:$12 sps:$4 sm:$0xff]  }
 0x169   : > { %v8354_v9 = vpop.f32.mrf.mxu0 }
 0x16b   : > { %v6165_v6 = vpop.f32.mrf.mxu0 }
 0x16c   : > { %v6553_v1 = vpop.f32.mrf.mxu1 }
 0x16d   : > { %v6166_v38 = vpop.f32.mrf.mxu0 }
 0x16e   : > { %3860 = vmatmul.mubr.bf16.gmra.mxu1 %v6915_v41  ;;  %4632 = vmatmul.mubr.bf16.gmra.mxu0 %v8257_v32  ;;  %v6167_v5 = vadd.f32 %v6166_v38, %v6165_v6  ;;  %v3236_v50 = vpop.f32.mrf.mxu1 }
 0x16f   : > { %3867 = vmatprep.mubr.bf16.mxu1 %v7039_v44  ;;  %4639 = vmatprep.mubr.bf16.mxu0 %v8259_v59  ;;  %v6168_v32 = vpop.f32.mrf.mxu0  ;;  %v8363_v59 = vadd.f32 %v6161_v27, %v3236_v50  ;;  %v6929_v50 = vld [vmem:[#allocation3 + $0xb0] ss:$12 sps:$4 sm:$0xff]  }
 0x170   : > { %v8365_v8 = vadd.f32 %v6553_v1, %v6167_v5  ;;  %v6554_v63 = vpop.f32.mrf.mxu1  ;;  %v6925_v5 = vld [vmem:[#allocation3 + $0x138] ss:$12 sps:$4 sm:$0xff]  }
 0x171   : > { %v6169_v20 = vpop.f32.mrf.mxu0 }
 0x172   : > { %v6170_v56 = vadd.f32 %v6169_v20, %v6168_v32  ;;  %v8373_v12 = vpop.f32.mrf.mxu1  ;;  %v6930_v32 = vld [vmem:[#allocation3 + $0xc8] ss:$12 sps:$4 sm:$0xff]  }
 0x174   : > { %v8367_v43 = vadd.f32 %v6554_v63, %v6170_v56 }
 0x176   : > { %3868 = vmatmul.mubr.bf16.gmra.mxu1 %v7040_v29  ;;  %4640 = vmatmul.mubr.bf16.gmra.mxu0 %v8275_v25  ;;  %v8371_v25 = vld [vmem:[#allocation3 + $0x168] ss:$12 sps:$4 sm:$0xff]  }
 0x177   : > { %3875 = vmatprep.mubr.bf16.mxu1 %v8358_v28  ;;  %4647 = vmatprep.mubr.bf16.mxu0 %v8277_v51 }
 0x17b   : > { %v6171_v51 = vpop.f32.mrf.mxu0 }
 0x17d   : > { %v6172_v18 = vpop.f32.mrf.mxu0 }
 0x17e   : > { %3876 = vmatmul.mubr.bf16.gmra.mxu1 %v6919_v33  ;;  %4648 = vmatmul.mubr.bf16.gmra.mxu0 %v8289_v49  ;;  %v6173_v27 = vadd.f32 %v6172_v18, %v6171_v51  ;;  %v6932_v18 = vld [vmem:[#allocation3 + $0xf8] ss:$12 sps:$4 sm:$0xff]  }
 0x17f   : > { %3883 = vmatprep.mubr.bf16.mxu1 %v6920_v0  ;;  %4655 = vmatprep.mubr.bf16.mxu0 %v8295_v24  ;;  %v6174_v53 = vpop.f32.mrf.mxu0 }
 0x180   : > { %v6557_v60 = vpop.f32.mrf.mxu1 }
 0x181   : > { %v6175_v49 = vpop.f32.mrf.mxu0 }
 0x182   : > { %v3252_v22 = vpop.f32.mrf.mxu1  ;;  %v6176_v24 = vadd.f32 %v6175_v49, %v6174_v53 }
 0x183   : > { %v8378_v19 = vadd.f32 %v6173_v27, %v3252_v22  ;;  %v6177_v40 = vpop.f32.mrf.mxu0 }
 0x184   : > { %v6558_v42 = vpop.f32.mrf.mxu1 }
 0x185   : > { %v6178_v17 = vpop.f32.mrf.mxu0 }
 0x186   : > { %3884 = vmatmul.mubr.bf16.gmra.mxu1 %v8371_v25  ;;  %4656 = vmatmul.mubr.bf16.gmra.mxu0 %v8317_v30  ;;  %v3255_v44 = vpop.f32.mrf.mxu1  ;;  %v6179_v6 = vadd.f32 %v6178_v17, %v6177_v40 }
 0x187   : > { %4663 = vmatprep.mubr.bf16.mxu0 %v8323_v23  ;;  %6639 = vmatprep.mubr.bf16.mxu1 %v6923_v3  ;;  %v8380_v1 = vadd.f32 %v6176_v24, %v3255_v44  ;;  %v6180_v30 = vpop.f32.mrf.mxu0  ;;  %v6931_v3 = vld [vmem:[#allocation3 + $0xe0] ss:$12 sps:$4 sm:$0xff]  }
 0x188   : > { %v8382_v23 = vadd.f32 %v6557_v60, %v6179_v6 }
 0x189   : > { %v6181_v38 = vpop.f32.mrf.mxu0 }
 0x18a   : > { %v6182_v29 = vadd.f32 %v6181_v38, %v6180_v30 }
 0x18c   : > { %v8384_v20 = vadd.f32 %v6558_v42, %v6182_v29  ;;  %v6934_v29 = vld [vmem:[#allocation3 + $0x180] ss:$12 sps:$4 sm:$0xff]  }
 0x18e   : > { %4664 = vmatmul.mubr.bf16.gmra.mxu0 %v6915_v41  ;;  %6640 = vmatmul.mubr.bf16.vlgmr.msra.gmra.mxu1 %v6924_v58 }
 0x18f   : > { %4671 = vmatprep.mubr.bf16.mxu0 %v6927_v16  ;;  %6643 = vmatprep.mubr.bf16.mxu1 %v6928_v34  ;;  %v6936_v16 = vld [vmem:[#allocation3 + $0x184] ss:$12 sps:$4 sm:$0xff]   ;;  %v6937_v34 = vld [vmem:[#allocation3 + $0x128] ss:$12 sps:$4 sm:$0xff]  }
 0x192   : > { %v6183_v63 = vpop.f32.mrf.mxu0 }
 0x194   : > { %v6184_v41 = vpop.f32.mrf.mxu0 }
 0x195   : > { %v6185_v56 = vadd.f32 %v6184_v41, %v6183_v63  ;;  %v6942_v63 = vld [vmem:[#allocation3 + $0x158] ss:$12 sps:$4 sm:$0xff]  }
 0x196   : > { %4672 = vmatmul.mubr.bf16.gmra.mxu0 %v6925_v5  ;;  %6644 = vmatmul.mubr.bf16.gmra.mxu1 %v6929_v50  ;;  %v6186_v51 = vpop.f32.mrf.mxu0  ;;  %v6938_v5 = vld [vmem:[#allocation3 + $0x140] ss:$12 sps:$4 sm:$0xff]  }
 0x197   : > { %4679 = vmatprep.mubr.bf16.mxu0 %v8358_v28  ;;  %6647 = vmatprep.mubr.bf16.mxu1 %v6930_v32  ;;  %v6933_v28 = vld [vmem:[#allocation3 + $0x110] ss:$12 sps:$4 sm:$0xff]  }
 0x198   : > { %v6187_v53 = vpop.f32.mrf.mxu0  ;;  %v6941_v32 = vld [vmem:[#allocation3 + $0x19c] ss:$12 sps:$4 sm:$0xff]  }
 0x199   : > { %v6561_v27 = vpop.f32.mrf.mxu1  ;;  %v6188_v60 = vadd.f32 %v6187_v53, %v6186_v51 }
 0x19b   : > { %v3268_v49 = vpop.f32.mrf.mxu1 }
 0x19c   : > { %v8387_v22 = vadd.f32 %v6185_v56, %v3268_v49 }
 0x19d   : > { %v6562_v24 = vpop.f32.mrf.mxu1 }
 0x19e   : > { %4680 = vmatmul.mubr.bf16.gmra.mxu0 %v6919_v33  ;;  %6648 = vmatmul.mubr.bf16.gmra.mxu1 %v6931_v3 }
 0x19f   : > { %4687 = vmatprep.mubr.bf16.mxu0 %v6920_v0  ;;  %6651 = vmatprep.mubr.bf16.mxu1 %v6932_v18  ;;  %v3271_v58 = vpop.f32.mrf.mxu1 }
 0x1a0   : > { %v6189_v40 = vpop.f32.mrf.mxu0  ;;  %v8389_v42 = vadd.f32 %v6188_v60, %v3271_v58  ;;  %v6939_v58 = vld [vmem:[#allocation3 + $0x198] ss:$12 sps:$4 sm:$0xff]  }
 0x1a2   : > { %v6190_v17 = vpop.f32.mrf.mxu0 }
 0x1a3   : > { %v6191_v44 = vadd.f32 %v6190_v17, %v6189_v40 }
 0x1a4   : > { %v6192_v6 = vpop.f32.mrf.mxu0 }
 0x1a5   : > { %v8392_v33 = vadd.f32 %v6561_v27, %v6191_v44 }
 0x1a6   : > { %4688 = vmatmul.mubr.bf16.gmra.mxu0 %v8371_v25  ;;  %6652 = vmatmul.mubr.bf16.gmra.mxu1 %v6933_v28  ;;  %v6193_v0 = vpop.f32.mrf.mxu0  ;;  %v6946_v28 = vld [vmem:[#allocation3 + $0x1b4] ss:$12 sps:$4 sm:$0xff]  }
 0x1a7   : > { %4695 = vmatprep.mubr.bf16.mxu0 %v6936_v16  ;;  %6655 = vmatprep.mubr.bf16.mxu1 %v6937_v34  ;;  %v6194_v30 = vadd.f32 %v6193_v0, %v6192_v6  ;;  %v6947_v16 = vld [vmem:[#allocation3 + $0x188] ss:$12 sps:$4 sm:$0xff]  }
 0x1a8   : > { %v6195_v38 = vpop.f32.mrf.mxu0 }
 0x1a9   : > { %v8394_v50 = vadd.f32 %v6562_v24, %v6194_v30  ;;  %v6943_v24 = vld [vmem:[#allocation3 + $0x170] ss:$12 sps:$4 sm:$0xff]   ;;  %v6218_v30 = vadd.f32 %v8234_v62, %v8228_v47  ;;  %v6948_v62 = vld [vmem:[#allocation3 + $0x1a0] ss:$12 sps:$4 sm:$0xff]  }
 0x1aa   : > { %v6565_v41 = vpop.f32.mrf.mxu1  ;;  %v6196_v56 = vpop.f32.mrf.mxu0  ;;  %v6944_v47 = vld [vmem:[#allocation3 + $0x1b0] ss:$12 sps:$4 sm:$0xff]  }
 0x1ab   : > { %v6197_v51 = vadd.f32 %v6196_v56, %v6195_v38 }
 0x1ac   : > { %v3284_v3 = vpop.f32.mrf.mxu1  ;;  %v6198_v18 = vpop.f32.mrf.mxu0 }
 0x1ad   : > { %v8396_v25 = vadd.f32 %v6197_v51, %v3284_v3 }
 0x1ae   : > { %4696 = vmatmul.mubr.bf16.gmra.mxu0 %v6934_v29  ;;  %6656 = vmatmul.mubr.bf16.gmra.mxu1 %v6938_v5  ;;  %v6566_v27 = vpop.f32.mrf.mxu1  ;;  %v6199_v53 = vpop.f32.mrf.mxu0 }
 0x1af   : > { %4703 = vmatprep.mubr.bf16.mxu0 %v6941_v32  ;;  %6659 = vmatprep.mubr.bf16.mxu1 %v6942_v63  ;;  %v6200_v60 = vadd.f32 %v6199_v53, %v6198_v18  ;;  %v6212_v63 = vadd.f32 %v8197_v4, %v8190_v55  ;;  %v6951_v53 = vld [vmem:[#allocation3 + $0x1cc] ss:$12 sps:$4 sm:$0xff]   ;;  %v6230_v4 = vadd.f32 %v8299_v61, %v8293_v15 }
 0x1b0   : > { %v3287_v49 = vpop.f32.mrf.mxu1 }
 0x1b1   : > { %v8398_v40 = vadd.f32 %v6200_v60, %v3287_v49  ;;  %v6952_v60 = vld [vmem:[#allocation3 + $0x1b8] ss:$12 sps:$4 sm:$0xff]  }
 0x1b2   : > { %v6569_v34 = vpop.f32.mrf.mxu1  ;;  %v6201_v17 = vpop.f32.mrf.mxu0 }
 0x1b3   : > { %v8401_v44 = vadd.f32 %v6569_v34, %v8218_v35 }
 0x1b4   : > { %v3300_v6 = vpop.f32.mrf.mxu1  ;;  %v6202_v0 = vpop.f32.mrf.mxu0 }
 0x1b5   : > { %v8406_v38 = vadd.f32 %v8186_v52, %v3300_v6  ;;  %v6203_v29 = vadd.f32 %v6202_v0, %v6201_v17  ;;  %v6953_v17 = vld [vmem:[#allocation3 + $0x1d0] ss:$12 sps:$4 sm:$0xff]  }
 0x1b6   : > { %4704 = vmatmul.mubr.bf16.gmra.mxu0 %v6939_v58  ;;  %6660 = vmatmul.mubr.bf16.gmra.mxu1 %v6943_v24  ;;  %v6570_v5 = vpop.f32.mrf.mxu1  ;;  %v6204_v32 = vpop.f32.mrf.mxu0 }
 0x1b7   : > { %4711 = vmatprep.mubr.bf16.mxu0 %v6946_v28  ;;  %6663 = vmatprep.mubr.bf16.mxu1 %v6947_v16  ;;  %v8410_v35 = vadd.f32 %v6570_v5, %v6218_v30  ;;  %v8412_v56 = vadd.f32 %v6565_v41, %v6203_v29  ;;  %v6224_v16 = vadd.f32 %v8273_v57, %v8261_v31 }
 0x1b8   : > { %v3303_v51 = vpop.f32.mrf.mxu1  ;;  %v6205_v3 = vpop.f32.mrf.mxu0 }
 0x1b9   : > { %v8414_v18 = vadd.f32 %v6212_v63, %v3303_v51  ;;  %v6206_v52 = vadd.f32 %v6205_v3, %v6204_v32  ;;  %v6140_v32 = vadd.f32 %v8184_v46, %v8172_v26 }
 0x1ba   : > { %v6573_v49 = vpop.f32.mrf.mxu1 }
 0x1bb   : > { %v8417_v58 = vadd.f32 %v6573_v49, %v8291_v2  ;;  %v8419_v24 = vadd.f32 %v6566_v27, %v6206_v52  ;;  %v6949_v27 = vld [vmem:[#allocation3 + $0x1c8] ss:$12 sps:$4 sm:$0xff]   ;;  %v3208_v51 = vadd.f32 %v6140_v32, %v8325_v54 }
 0x1bc   : > { %v3316_v55 = vpop.f32.mrf.mxu1 }
 0x1bd   : > { %v8424_v41 = vadd.f32 %v8249_v45, %v3316_v55 }
 0x1be   : > { %4712 = vmatmul.mubr.bf16.gmra.mxu0 %v6944_v47  ;;  %6664 = vmatmul.mubr.bf16.gmra.mxu1 %v6948_v62  ;;  %v6574_v28 = vpop.f32.mrf.mxu1 }
 0x1bf   : > { %4719 = vmatprep.mubr.bf16.mxu0 %v6951_v53  ;;  %6667 = vmatprep.mubr.bf16.mxu1 %v6952_v60  ;;  %v8428_v34 = vadd.f32 %v6574_v28, %v6230_v4 }
 0x1c0   : > { %v3319_v2 = vpop.f32.mrf.mxu1 }
 0x1c1   : > { %v8430_v6 = vadd.f32 %v6224_v16, %v3319_v2 }
 0x1c6   : > { %4720 = vmatmul.mubr.bf16.gmra.mxu0 %v6949_v27  ;;  %6668 = vmatmul.mubr.bf16.gmra.mxu1 %v6953_v17 }
 0x1ce   : > { %v6271_v15 = vpop.f32.mrf.mxu1  ;;  %v6593_v61 = vpop.f32.mrf.mxu0 }
 0x1d0   : > { %v6272_v0 = vpop.f32.mrf.mxu1  ;;  %v3926_v45 = vpop.f32.mrf.mxu0 }
 0x1d1   : > { %v6273_v30 = vadd.f32 %v6272_v0, %v6271_v15 }
 0x1d2   : > { %v6274_v29 = vpop.f32.mrf.mxu1  ;;  %v6594_v5 = vpop.f32.mrf.mxu0 }
 0x1d3   : > { %v3766_v31 = vadd.f32 %v6273_v30, %v8311_v7 }
 0x1d4   : > { %v6275_v57 = vpop.f32.mrf.mxu1  ;;  %v3929_v63 = vpop.f32.mrf.mxu0 }
 0x1d5   : > { %v8436_v3 = vadd.f32 %v3926_v45, %v3766_v31  ;;  %v6276_v47 = vadd.f32 %v6275_v57, %v6274_v29  ;;  %v6152_v57 = vadd.f32 %v8253_v37, %v8244_v13 }
 0x1d6   : > { %v6277_v62 = vpop.f32.mrf.mxu1  ;;  %v6597_v52 = vpop.f32.mrf.mxu0 }
 0x1d7   : > { %v3769_v53 = vadd.f32 %v6276_v47, %v3208_v51 }
 0x1d8   : > { %v6278_v60 = vpop.f32.mrf.mxu1  ;;  %v3942_v49 = vpop.f32.mrf.mxu0 }
 0x1d9   : > { %v8438_v55 = vadd.f32 %v3929_v63, %v3769_v53  ;;  %v6279_v4 = vadd.f32 %v6278_v60, %v6277_v62 }
 0x1da   : > { %v6280_v28 = vpop.f32.mrf.mxu1  ;;  %v6598_v16 = vpop.f32.mrf.mxu0 }
 0x1db   : > { %v3774_v26 = vadd.f32 %v6279_v4, %v8306_v21 }
 0x1dc   : > { %v6281_v46 = vpop.f32.mrf.mxu1  ;;  %v3945_v7 = vpop.f32.mrf.mxu0 }
 0x1dd   : > { %v6282_v2 = vadd.f32 %v6281_v46, %v6280_v28  ;;  %v8441_v27 = vadd.f32 %v6593_v61, %v3774_v26  ;;  %v3224_v61 = vadd.f32 %v6152_v57, %v8356_v11 }
 0x1de   : > { %v6283_v54 = vpop.f32.mrf.mxu1  ;;  %v6601_v17 = vpop.f32.mrf.mxu0 }
 0x1df   : > { %v3777_v15 = vadd.f32 %v6282_v2, %v8319_v14 }
 0x1e0   : > { %v6284_v0 = vpop.f32.mrf.mxu1  ;;  %v3958_v45 = vpop.f32.mrf.mxu0 }
 0x1e1   : > { %v6285_v30 = vadd.f32 %v6284_v0, %v6283_v54  ;;  %v8444_v29 = vadd.f32 %v6594_v5, %v3777_v15 }
 0x1e2   : > { %v6286_v32 = vpop.f32.mrf.mxu1  ;;  %v6602_v31 = vpop.f32.mrf.mxu0 }
 0x1e3   : > { %v3782_v21 = vadd.f32 %v6285_v30, %v8346_v39 }
 0x1e4   : > { %v6287_v63 = vpop.f32.mrf.mxu1  ;;  %v3961_v51 = vpop.f32.mrf.mxu0 }
 0x1e5   : > { %v6288_v47 = vadd.f32 %v6287_v63, %v6286_v32  ;;  %v8450_v62 = vadd.f32 %v3942_v49, %v3782_v21 }
 0x1e6   : > { %v6289_v14 = vpop.f32.mrf.mxu1  ;;  %v8452_v53 = vpop.f32.mrf.mxu0 }
 0x1e7   : > { %v3785_v60 = vadd.f32 %v6288_v47, %v3224_v61 }
 0x1e8   : > { %v6290_v5 = vpop.f32.mrf.mxu1  ;;  %v3974_v4 = vpop.f32.mrf.mxu0 }
 0x1e9   : > { %v6291_v28 = vadd.f32 %v6290_v5, %v6289_v14  ;;  %v8454_v26 = vadd.f32 %v3945_v7, %v3785_v60 }
 0x1ea   : > { %v6292_v46 = vpop.f32.mrf.mxu1  ;;  %v8456_v13 = vpop.f32.mrf.mxu0 }
 0x1eb   : > { %v3790_v37 = vadd.f32 %v6291_v28, %v8334_v10  ;;  %v6164_v10 = vadd.f32 %v8354_v9, %v8350_v48 }
 0x1ec   : > { %v6293_v39 = vpop.f32.mrf.mxu1  ;;  %v3977_v2 = vpop.f32.mrf.mxu0 }
 0x1ed   : > { %v6294_v11 = vadd.f32 %v6293_v39, %v6292_v46  ;;  %v8459_v54 = vadd.f32 %v6597_v52, %v3790_v37  ;;  %v3240_v14 = vadd.f32 %v6164_v10, %v8373_v12 }
 0x1ee   : > { %v6295_v49 = vpop.f32.mrf.mxu1  ;;  %v8461_v15 = vpop.f32.mrf.mxu0 }
 0x1ef   : > { %v3793_v0 = vadd.f32 %v6294_v11, %v8348_v36 }
 0x1f0   : > { %v6296_v30 = vpop.f32.mrf.mxu1  ;;  %v8464_v32 = vpop.f32.mrf.mxu0 }
 0x1f1   : > { %v6297_v7 = vadd.f32 %v6296_v30, %v6295_v49  ;;  %v8466_v57 = vadd.f32 %v6598_v16, %v3793_v0 }
 0x1f2   : > { %v6298_v21 = vpop.f32.mrf.mxu1  ;;  %v8468_v63 = vpop.f32.mrf.mxu0 }
 0x1f3   : > { %v3798_v52 = vadd.f32 %v6297_v7, %v8363_v59 }
 0x1f4   : > { %v6299_v61 = vpop.f32.mrf.mxu1  ;;  %v8473_v47 = vpop.f32.mrf.mxu0 }
 0x1f5   : > { %v6300_v36 = vadd.f32 %v6299_v61, %v6298_v21  ;;  %v8476_v60 = vadd.f32 %v3958_v45, %v3798_v52 }
 0x1f6   : > { %v6301_v5 = vpop.f32.mrf.mxu1  ;;  %v8478_v28 = vpop.f32.mrf.mxu0 }
 0x1f7   : > { %v3801_v16 = vadd.f32 %v6300_v36, %v3240_v14 }
 0x1f8   : > { %v6302_v46 = vpop.f32.mrf.mxu1  ;;  %v8480_v37 = vpop.f32.mrf.mxu0 }
 0x1f9   : > { %v6303_v39 = vadd.f32 %v6302_v46, %v6301_v5  ;;  %v8482_v11 = vadd.f32 %v3961_v51, %v3801_v16 }
 0x1fa   : > { %v6304_v48 = vpop.f32.mrf.mxu1  ;;  %v8484_v9 = vpop.f32.mrf.mxu0 }
 0x1fb   : > { %v3806_v59 = vadd.f32 %v6303_v39, %v8365_v8 }
 0x1fc   : > { %v6305_v49 = vpop.f32.mrf.mxu1  ;;  %v8487_v12 = vpop.f32.mrf.mxu0 }
 0x1fd   : > { %v6306_v45 = vadd.f32 %v6305_v49, %v6304_v48  ;;  %v8489_v0 = vadd.f32 %v6601_v17, %v3806_v59 }
 0x1fe   : > { %v6307_v30 = vpop.f32.mrf.mxu1  ;;  %v8491_v7 = vpop.f32.mrf.mxu0 }
 0x1ff   : > { %v3809_v21 = vadd.f32 %v6306_v45, %v8367_v43 }
 0x200   : > { %v6308_v10 = vpop.f32.mrf.mxu1  ;;  %v8494_v52 = vpop.f32.mrf.mxu0 }
 0x201   : > { %v6309_v51 = vadd.f32 %v6308_v10, %v6307_v30  ;;  %v8496_v61 = vadd.f32 %v6602_v31, %v3809_v21 }
 0x202   : > { %v6310_v14 = vpop.f32.mrf.mxu1  ;;  %v8498_v36 = vpop.f32.mrf.mxu0 }
 0x203   : > { %v3814_v8 = vadd.f32 %v6309_v51, %v8378_v19 }
 0x204   : > { %v6311_v5 = vpop.f32.mrf.mxu1  ;;  %v8501_v16 = vpop.f32.mrf.mxu0 }
 0x205   : > { %v6312_v17 = vadd.f32 %v6311_v5, %v6310_v14  ;;  %v8503_v46 = vadd.f32 %v3974_v4, %v3814_v8 }
 0x206   : > { %v6313_v39 = vpop.f32.mrf.mxu1  ;;  %v8505_v48 = vpop.f32.mrf.mxu0 }
 0x207   : > { %8872 = vst [vmem:[#allocation4_spill] sm:$0xff] %v8505_v48  ;;  %v3817_v43 = vadd.f32 %v6312_v17, %v8380_v1 }
 0x208   : > { %v6314_v59 = vpop.f32.mrf.mxu1  ;;  %v8508_v49 = vpop.f32.mrf.mxu0 }
 0x209   : > { %v6315_v31 = vadd.f32 %v6314_v59, %v6313_v39  ;;  %v8510_v45 = vadd.f32 %v3977_v2, %v3817_v43 }
 0x20a   : > { %v6316_v30 = vpop.f32.mrf.mxu1  ;;  %v8512_v21 = vpop.f32.mrf.mxu0 }
 0x20b   : > { %8873 = vst [vmem:[#allocation5_spill] sm:$0xff] %v8512_v21  ;;  %v3822_v19 = vadd.f32 %v6315_v31, %v8382_v23 }
 0x20c   : > { %v6317_v10 = vpop.f32.mrf.mxu1  ;;  %v8515_v51 = vpop.f32.mrf.mxu0 }
 0x20d   : > { %v6318_v4 = vadd.f32 %v6317_v10, %v6316_v30  ;;  %v8518_v14 = vadd.f32 %v8452_v53, %v3822_v19 }
 0x20e   : > { %v6319_v8 = vpop.f32.mrf.mxu1  ;;  %v6407_v1 = vpop.f32.mrf.mxu0 }
 0x20f   : > { %v3825_v5 = vadd.f32 %v6318_v4, %v8384_v20 }
 0x210   : > { %v6320_v17 = vpop.f32.mrf.mxu1  ;;  %v6408_v39 = vpop.f32.mrf.mxu0 }
 0x211   : > { %v6321_v2 = vadd.f32 %v6320_v17, %v6319_v8  ;;  %v8521_v43 = vadd.f32 %v6408_v39, %v6407_v1  ;;  %v8524_v59 = vadd.f32 %v8456_v13, %v3825_v5 }
 0x212   : > { %v6322_v23 = vpop.f32.mrf.mxu1  ;;  %v8526_v31 = vpop.f32.mrf.mxu0 }
 0x213   : > { %v3830_v30 = vadd.f32 %v6321_v2, %v8387_v22 }
 0x214   : > { %v6323_v10 = vpop.f32.mrf.mxu1  ;;  %v8529_v53 = vpop.f32.mrf.mxu0 }
 0x215   : > { %v6324_v19 = vadd.f32 %v6323_v10, %v6322_v23  ;;  %v8532_v21 = vadd.f32 %v8464_v32, %v3830_v30 }
 0x216   : > { %v6325_v20 = vpop.f32.mrf.mxu1  ;;  %v8534_v4 = vpop.f32.mrf.mxu0 }
 0x217   : > { %v3833_v8 = vadd.f32 %v6324_v19, %v8389_v42 }
 0x218   : > { %v6326_v1 = vpop.f32.mrf.mxu1  ;;  %v8537_v13 = vpop.f32.mrf.mxu0 }
 0x219   : > { %v6327_v5 = vadd.f32 %v6326_v1, %v6325_v20  ;;  %v8540_v17 = vadd.f32 %v8473_v47, %v3833_v8 }
 0x21a   : > { %v6328_v22 = vpop.f32.mrf.mxu1  ;;  %v8542_v39 = vpop.f32.mrf.mxu0 }
 0x21b   : > { %8874 = vst [vmem:[#allocation6_spill] sm:$0xff] %v8540_v17  ;;  %v3838_v2 = vadd.f32 %v6327_v5, %v8392_v33 }
 0x21c   : > { %v6329_v23 = vpop.f32.mrf.mxu1  ;;  %v8545_v32 = vpop.f32.mrf.mxu0 }
 0x21d   : > { %v6330_v30 = vadd.f32 %v6329_v23, %v6328_v22  ;;  %v8548_v10 = vadd.f32 %v8461_v15, %v3838_v2 }
 0x21e   : > { %v6331_v42 = vpop.f32.mrf.mxu1  ;;  %v8550_v19 = vpop.f32.mrf.mxu0 }
 0x21f   : > { %v3841_v20 = vadd.f32 %v6330_v30, %v8394_v50 }
 0x220   : > { %v6332_v1 = vpop.f32.mrf.mxu1  ;;  %v8553_v47 = vpop.f32.mrf.mxu0 }
 0x221   : > { %v6333_v8 = vadd.f32 %v6332_v1, %v6331_v42  ;;  %v8556_v48 = vadd.f32 %v8468_v63, %v3841_v20 }
 0x222   : > { %v6334_v33 = vpop.f32.mrf.mxu1  ;;  %v8558_v5 = vpop.f32.mrf.mxu0 }
 0x223   : > { %8875 = vst [vmem:[#allocation7_spill] sm:$0xff] %v8556_v48  ;;  %v3846_v22 = vadd.f32 %v6333_v8, %v8396_v25 }
 0x224   : > { %v6335_v23 = vpop.f32.mrf.mxu1  ;;  %v8561_v15 = vpop.f32.mrf.mxu0 }
 0x225   : > { %v6336_v2 = vadd.f32 %v6335_v23, %v6334_v33  ;;  %v8564_v17 = vadd.f32 %v8480_v37, %v3846_v22 }
 0x226   : > { %v6337_v50 = vpop.f32.mrf.mxu1  ;;  %v8566_v30 = vpop.f32.mrf.mxu0 }
 0x227   : > { %8876 = vst [vmem:[#allocation8_spill] sm:$0xff] %v8564_v17  ;;  %v3849_v42 = vadd.f32 %v6336_v2, %v8398_v40 }
 0x228   : > { %v6338_v1 = vpop.f32.mrf.mxu1  ;;  %v8569_v63 = vpop.f32.mrf.mxu0 }
 0x229   : > { %v6339_v20 = vadd.f32 %v6338_v1, %v6337_v50  ;;  %v8572_v48 = vadd.f32 %v8487_v12, %v3849_v42 }
 0x22a   : > { %v6340_v25 = vpop.f32.mrf.mxu1  ;;  %v8574_v8 = vpop.f32.mrf.mxu0 }
 0x22b   : > { %8877 = vst [vmem:[#allocation9_spill] sm:$0xff] %v8572_v48  ;;  %v3854_v33 = vadd.f32 %v6339_v20, %v8412_v56 }
 0x22c   : > { %v6341_v23 = vpop.f32.mrf.mxu1  ;;  %v8577_v37 = vpop.f32.mrf.mxu0 }
 0x22d   : > { %v6342_v22 = vadd.f32 %v6341_v23, %v6340_v25  ;;  %v8580_v17 = vadd.f32 %v8478_v28, %v3854_v33 }
 0x22e   : > { %v6343_v40 = vpop.f32.mrf.mxu1  ;;  %v8582_v2 = vpop.f32.mrf.mxu0 }
 0x22f   : > { %8878 = vst [vmem:[#allocation10_spill] sm:$0xff] %v8580_v17  ;;  %v3857_v50 = vadd.f32 %v6342_v22, %v8419_v24 }
 0x230   : > { %v6344_v1 = vpop.f32.mrf.mxu1  ;;  %v8585_v12 = vpop.f32.mrf.mxu0 }
 0x231   : > { %v6345_v42 = vadd.f32 %v6344_v1, %v6343_v40  ;;  %v8588_v48 = vadd.f32 %v8484_v9, %v3857_v50 }
 0x232   : > { %v6346_v56 = vpop.f32.mrf.mxu1  ;;  %v8590_v20 = vpop.f32.mrf.mxu0 }
 0x233   : > { %8879 = vst [vmem:[#allocation11_spill] sm:$0xff] %v8588_v48  ;;  %v3862_v25 = vadd.f32 %v6345_v42, %v8406_v38 }
 0x234   : > { %v6347_v23 = vpop.f32.mrf.mxu1  ;;  %v8593_v28 = vpop.f32.mrf.mxu0 }
 0x235   : > { %v6348_v33 = vadd.f32 %v6347_v23, %v6346_v56  ;;  %v8596_v17 = vadd.f32 %v8494_v52, %v3862_v25 }
 0x236   : > { %v6349_v24 = vpop.f32.mrf.mxu1  ;;  %v8598_v22 = vpop.f32.mrf.mxu0 }
 0x237   : > { %8880 = vst [vmem:[#allocation12_spill] sm:$0xff] %v8596_v17  ;;  %v3865_v40 = vadd.f32 %v6348_v33, %v8414_v18 }
 0x238   : > { %v6350_v1 = vpop.f32.mrf.mxu1  ;;  %v8601_v9 = vpop.f32.mrf.mxu0 }
 0x239   : > { %v6351_v50 = vadd.f32 %v6350_v1, %v6349_v24  ;;  %v8604_v48 = vadd.f32 %v8501_v16, %v3865_v40 }
 0x23a   : > { %v6352_v38 = vpop.f32.mrf.mxu1  ;;  %v8606_v42 = vpop.f32.mrf.mxu0 }
 0x23b   : > { %8881 = vst [vmem:[#allocation13_spill] sm:$0xff] %v8604_v48  ;;  %v3870_v56 = vadd.f32 %v6351_v50, %v8401_v44 }
 0x23c   : > { %v6353_v23 = vpop.f32.mrf.mxu1  ;;  %v8609_v52 = vpop.f32.mrf.mxu0 }
 0x23d   : > { %v6354_v25 = vadd.f32 %v6353_v23, %v6352_v38  ;;  %v8612_v17 = vadd.f32 %v8491_v7, %v3870_v56 }
 0x23e   : > { %v6355_v18 = vpop.f32.mrf.mxu1  ;;  %v8614_v33 = vpop.f32.mrf.mxu0 }
 0x23f   : > { %8882 = vst [vmem:[#allocation14_spill] sm:$0xff] %v8612_v17  ;;  %v3873_v24 = vadd.f32 %v6354_v25, %v8410_v35 }
 0x240   : > { %v6356_v1 = vpop.f32.mrf.mxu1  ;;  %v8617_v16 = vpop.f32.mrf.mxu0 }
 0x241   : > { %v6357_v40 = vadd.f32 %v6356_v1, %v6355_v18  ;;  %v8620_v48 = vadd.f32 %v8498_v36, %v3873_v24 }
 0x242   : > { %v6358_v44 = vpop.f32.mrf.mxu1  ;;  %v8622_v50 = vpop.f32.mrf.mxu0 }
 0x243   : > { %8883 = vst [vmem:[#allocation15_spill] sm:$0xff] %v8620_v48  ;;  %v3878_v38 = vadd.f32 %v6357_v40, %v8424_v41 }
 0x244   : > { %v6359_v23 = vpop.f32.mrf.mxu1  ;;  %v8625_v7 = vpop.f32.mrf.mxu0 }
 0x245   : > { %v6360_v56 = vadd.f32 %v6359_v23, %v6358_v44  ;;  %v8628_v17 = vadd.f32 %v8508_v49, %v3878_v38  ;;  %v6415_v23 = vadd.f32 %v8537_v13, %v8534_v4 }
 0x246   : > { %v6361_v35 = vpop.f32.mrf.mxu1  ;;  %v8630_v25 = vpop.f32.mrf.mxu0 }
 0x247   : > { %8884 = vst [vmem:[#allocation16_spill] sm:$0xff] %v8628_v17  ;;  %v3881_v18 = vadd.f32 %v6360_v56, %v8430_v6 }
 0x248   : > { %v6362_v1 = vpop.f32.mrf.mxu1  ;;  %v8633_v36 = vpop.f32.mrf.mxu0 }
 0x249   : > { %v6363_v24 = vadd.f32 %v6362_v1, %v6361_v35  ;;  %v8636_v48 = vadd.f32 %v8515_v51, %v3881_v18 }
 0x24a   : > { %v6364_v41 = vpop.f32.mrf.mxu1  ;;  %v8638_v40 = vpop.f32.mrf.mxu0 }
 0x24b   : > { %8885 = vst [vmem:[#allocation17_spill] sm:$0xff] %v8636_v48  ;;  %v8641_v44 = vadd.f32 %v6363_v24, %v8417_v58  ;;  %v6418_v58 = vadd.f32 %v8545_v32, %v8542_v39  ;;  %v6427_v32 = vadd.f32 %v8569_v63, %v8566_v30 }
 0x24c   : > { %v6365_v49 = vpop.f32.mrf.mxu1  ;;  %v8643_v38 = vpop.f32.mrf.mxu0 }
 0x24d   : > { %8886 = vst [vmem:[#allocation18_spill] sm:$0xff] %v8641_v44  ;;  %v6366_v6 = vadd.f32 %v6365_v49, %v6364_v41 }
 0x24e   : > { %v8647_v56 = vpop.f32.mrf.mxu0  ;;  %v6641_v17 = vpop.f32.mrf.mxu1 }
 0x24f   : > { %v8650_v35 = vadd.f32 %v6366_v6, %v8428_v34  ;;  %v4771_v51 = vadd.f32 %v6641_v17, %v6415_v23  ;;  %v6412_v34 = vadd.f32 %v8529_v53, %v8526_v31  ;;  %v8666_v17 = vld [vmem:[%s8852_s4] ss:$0 sm:$0xff] }
 0x250   : > { %v8652_v18 = vpop.f32.mrf.mxu0  ;;  %v4762_v1 = vpop.f32.mrf.mxu1 }
 0x251   : > { %v4763_v24 = vadd.f32 %v8521_v43, %v4762_v1  ;;  %v4891_v4 = vadd.f32 %v4771_v51, %v8441_v27  ;;  %v6421_v51 = vadd.f32 %v8553_v47, %v8550_v19  ;;  %v6430_v1 = vadd.f32 %v8577_v37, %v8574_v8 }
 0x252   : > { %v8657_v48 = vpop.f32.mrf.mxu0  ;;  %v6642_v44 = vpop.f32.mrf.mxu1 }
 0x253   : > { %v4889_v13 = vadd.f32 %v4763_v24, %v8436_v3  ;;  %v4774_v41 = vadd.f32 %v6642_v44, %v6418_v58  ;;  %v4930_v23 = vadd.f32 %v8666_v17, %v4891_v4 }
 0x254   : > { %v8668_v39 = vpop.f32.mrf.mxu0  ;;  %v4765_v43 = vpop.f32.mrf.mxu1 }
 0x255   : > { %v4892_v27 = vadd.f32 %v4774_v41, %v8444_v29  ;;  %v4766_v49 = vadd.f32 %v6412_v34, %v4765_v43  ;;  %v4928_v31 = vadd.f32 %v8666_v17, %v4889_v13  ;;  %v6424_v13 = vadd.f32 %v8561_v15, %v8558_v5 }
 0x256   : > { %v8673_v3 = vpop.f32.mrf.mxu0  ;;  %v6645_v44 = vpop.f32.mrf.mxu1  ;;  %v5000_v15 = vmul.f32 %v4930_v23, %v4930_v23 }
 0x257   : > { %v4931_v53 = vadd.f32 %v8666_v17, %v4892_v27  ;;  %v4787_v6 = vadd.f32 %v6645_v44, %v6427_v32  ;;  %v4890_v29 = vadd.f32 %v4766_v49, %v8438_v55  ;;  %v4998_v41 = vmul.f32 %v4928_v31, %v4928_v31 }
 0x258   : > { %v8688_v30 = vpop.f32.mrf.mxu0  ;;  %v4778_v63 = vpop.f32.mrf.mxu1  ;;  %v6439_v44 = vadd.f32 %v8601_v9, %v8598_v22 }
 0x259   : > { %v6015_v58 = vpack.c.bf16 %v4931_v53, %v4930_v23  ;;  %v4929_v24 = vadd.f32 %v8666_v17, %v4890_v29  ;;  %v4779_v4 = vadd.f32 %v6421_v51, %v4778_v63  ;;  %v4895_v55 = vadd.f32 %v4787_v6, %v8459_v54 }
 0x25a   : > { %v8693_v19 = vpop.f32.mrf.mxu0  ;;  %v6646_v47 = vpop.f32.mrf.mxu1  ;;  %v5001_v22 = vmul.f32 %v4931_v53, %v4931_v53 }
 0x25b   : > { %6104 = vst [vmem:[%s8685_s24 + $0x8] sm:$0xff] %v6015_v58   ;;  %v4790_v34 = vadd.f32 %v6646_v47, %v6430_v1  ;;  %v4960_v43 = vadd.f32 %v4929_v24, %v4928_v31  ;;  %v4999_v32 = vmul.f32 %v4929_v24, %v4929_v24  ;;  %v6010_v27 = vpack.c.bf16 %v4929_v24, %v4928_v31 }
 0x25c   : > { %v4893_v8 = vadd.f32 %v4779_v4, %v8450_v62  ;;  %v8700_v37 = vpop.f32.mrf.mxu0  ;;  %v4781_v49 = vpop.f32.mrf.mxu1  ;;  %v4934_v62 = vadd.f32 %v8666_v17, %v4895_v55 }
 0x25d   : > { %v4896_v51 = vadd.f32 %v4790_v34, %v8466_v57  ;;  %v4782_v5 = vadd.f32 %v6424_v13, %v4781_v49  ;;  %v4961_v29 = vadd.f32 %v4960_v43, %v4930_v23  ;;  %v5030_v63 = vadd.f32 %v4999_v32, %v4998_v41  ;;  %6011 = vst [vmem:[%s8685_s24] sm:$0xff] %v6010_v27  }
 0x25e   : > { %v4932_v54 = vadd.f32 %v8666_v17, %v4893_v8  ;;  %v8707_v6 = vpop.f32.mrf.mxu0  ;;  %v6649_v31 = vpop.f32.mrf.mxu1  ;;  %v6433_v57 = vadd.f32 %v8585_v12, %v8582_v2  ;;  %v6436_v13 = vadd.f32 %v8593_v28, %v8590_v20  ;;  %v6442_v41 = vadd.f32 %v8609_v52, %v8606_v42 }
 0x25f   : > { %v4935_v1 = vadd.f32 %v8666_v17, %v4896_v51  ;;  %v4894_v58 = vadd.f32 %v4782_v5, %v8454_v26  ;;  %v4803_v24 = vadd.f32 %v6649_v31, %v6439_v44  ;;  %v5031_v9 = vadd.f32 %v5030_v63, %v5000_v15 }
 0x260   : > { %v4962_v23 = vadd.f32 %v4961_v29, %v4931_v53  ;;  %v8714_v4 = vpop.f32.mrf.mxu0  ;;  %v4794_v47 = vpop.f32.mrf.mxu1  ;;  %v5002_v43 = vmul.f32 %v4932_v54, %v4932_v54  ;;  %v6451_v5 = vadd.f32 %v8633_v36, %v8630_v25  ;;  %v5004_v63 = vmul.f32 %v4934_v62, %v4934_v62 }
 0x261   : > { %v6025_v55 = vpack.c.bf16 %v4935_v1, %v4934_v62  ;;  %v4933_v26 = vadd.f32 %v8666_v17, %v4894_v58  ;;  %v5032_v2 = vadd.f32 %v5031_v9, %v5001_v22  ;;  %v4795_v12 = vadd.f32 %v6433_v57, %v4794_v47 }
 0x262   : > { %v4963_v34 = vadd.f32 %v4962_v23, %v4932_v54  ;;  %v8721_v32 = vpop.f32.mrf.mxu0  ;;  %v6650_v53 = vpop.f32.mrf.mxu1  ;;  %v4899_v49 = vadd.f32 %v4803_v24, %v8489_v0  ;;  %v6445_v25 = vadd.f32 %v8617_v16, %v8614_v33 }
 0x263   : > { %6106 = vst [vmem:[%s8685_s24 + $0x18] sm:$0xff] %v6025_v55   ;;  %v5003_v27 = vmul.f32 %v4933_v26, %v4933_v26  ;;  %v6020_v8 = vpack.c.bf16 %v4933_v26, %v4932_v54  ;;  %v4806_v20 = vadd.f32 %v6650_v53, %v6442_v41  ;;  %v5033_v28 = vadd.f32 %v5032_v2, %v5002_v43 }
 0x264   : > { %v4964_v44 = vadd.f32 %v4963_v34, %v4933_v26  ;;  %v4897_v42 = vadd.f32 %v4795_v12, %v8476_v60  ;;  %v8726_v52 = vpop.f32.mrf.mxu0  ;;  %v4797_v51 = vpop.f32.mrf.mxu1  ;;  %v4938_v60 = vadd.f32 %v8666_v17, %v4899_v49  ;;  %v6454_v41 = vadd.f32 %v8643_v38, %v8638_v40 }
 0x265   : > { %6105 = vst [vmem:[%s8685_s24 + $0x10] sm:$0xff] %v6020_v8   ;;  %v4900_v15 = vadd.f32 %v4806_v20, %v8496_v61  ;;  %v4798_v29 = vadd.f32 %v6436_v13, %v4797_v51  ;;  %v5034_v54 = vadd.f32 %v5033_v28, %v5003_v27  ;;  %v5005_v61 = vmul.f32 %v4935_v1, %v4935_v1 }
 0x266   : > { %v4965_v31 = vadd.f32 %v4964_v44, %v4934_v62  ;;  %v4936_v0 = vadd.f32 %v8666_v17, %v4897_v42  ;;  %v8733_v58 = vpop.f32.mrf.mxu0  ;;  %v6653_v24 = vpop.f32.mrf.mxu1  ;;  %v6448_v13 = vadd.f32 %v8625_v7, %v8622_v50  ;;  %v6463_v49 = vadd.f32 %v8688_v30, %v8673_v3 }
 0x267   : > { %v4939_v57 = vadd.f32 %v8666_v17, %v4900_v15  ;;  %v4898_v22 = vadd.f32 %v4798_v29, %v8482_v11  ;;  %v4819_v9 = vadd.f32 %v6653_v24, %v6451_v5  ;;  %v5035_v36 = vadd.f32 %v5034_v54, %v5004_v63 }
 0x268   : > { %v4966_v62 = vadd.f32 %v4965_v31, %v4935_v1  ;;  %v6474_v23 = vpop.f32.mrf.mxu0  ;;  %v4810_v47 = vpop.f32.mrf.mxu1  ;;  %v5006_v34 = vmul.f32 %v4936_v0, %v4936_v0  ;;  %v5008_v44 = vmul.f32 %v4938_v60, %v4938_v60  ;;  %v6457_v3 = vadd.f32 %v8652_v18, %v8647_v56 }
 0x269   : > { %v6035_v55 = vpack.c.bf16 %v4939_v57, %v4938_v60  ;;  %v4937_v26 = vadd.f32 %v8666_v17, %v4898_v22  ;;  %v5036_v43 = vadd.f32 %v5035_v36, %v5005_v61  ;;  %v4811_v33 = vadd.f32 %v6445_v25, %v4810_v47 }
 0x26a   : > { %v4967_v11 = vadd.f32 %v4966_v62, %v4936_v0  ;;  %v8745_v16 = vpop.f32.mrf.mxu0  ;;  %v6654_v2 = vpop.f32.mrf.mxu1  ;;  %v4903_v53 = vadd.f32 %v4819_v9, %v8518_v14  ;;  %v6466_v22 = vadd.f32 %v8700_v37, %v8693_v19 }
 0x26b   : > { %6108 = vst [vmem:[%s8685_s24 + $0x28] sm:$0xff] %v6035_v55   ;;  %v5007_v1 = vmul.f32 %v4937_v26, %v4937_v26  ;;  %v6030_v12 = vpack.c.bf16 %v4937_v26, %v4936_v0  ;;  %v4822_v50 = vadd.f32 %v6654_v2, %v6454_v41  ;;  %v5037_v7 = vadd.f32 %v5036_v43, %v5006_v34 }
 0x26c   : > { %v4968_v27 = vadd.f32 %v4967_v11, %v4937_v26  ;;  %v4901_v40 = vadd.f32 %v4811_v33, %v8503_v46  ;;  %v8750_v38 = vpop.f32.mrf.mxu0  ;;  %v4813_v8 = vpop.f32.mrf.mxu1  ;;  %v4942_v46 = vadd.f32 %v8666_v17, %v4903_v53  ;;  %v6475_v26 = vadd.f32 %v6474_v23, %v8733_v58  ;;  %v8887_v11 = vld [vmem:[#allocation7_spill] sm:$0xff] }
 0x26d   : > { %6107 = vst [vmem:[%s8685_s24 + $0x20] sm:$0xff] %v6030_v12   ;;  %v4904_v20 = vadd.f32 %v4822_v50, %v8524_v59  ;;  %v4814_v28 = vadd.f32 %v6448_v13, %v4813_v8  ;;  %v5038_v51 = vadd.f32 %v5037_v7, %v5007_v1  ;;  %v5009_v59 = vmul.f32 %v4939_v57, %v4939_v57 }
 0x26e   : > { %v4969_v42 = vadd.f32 %v4968_v27, %v4938_v60  ;;  %v4940_v14 = vadd.f32 %v8666_v17, %v4901_v40  ;;  %v8757_v5 = vpop.f32.mrf.mxu0  ;;  %v6657_v15 = vpop.f32.mrf.mxu1  ;;  %v6460_v60 = vadd.f32 %v8668_v39, %v8657_v48  ;;  %v5012_v33 = vmul.f32 %v4942_v46, %v4942_v46 }
 0x26f   : > { %v4943_v29 = vadd.f32 %v8666_v17, %v4904_v20  ;;  %v4902_v63 = vadd.f32 %v4814_v28, %v8510_v45  ;;  %v4835_v31 = vadd.f32 %v6657_v15, %v6463_v49  ;;  %v5039_v30 = vadd.f32 %v5038_v51, %v5008_v44 }
 0x270   : > { %v4970_v54 = vadd.f32 %v4969_v42, %v4939_v57  ;;  %v8764_v0 = vpop.f32.mrf.mxu0  ;;  %v4826_v24 = vpop.f32.mrf.mxu1  ;;  %v5010_v61 = vmul.f32 %v4940_v14, %v4940_v14  ;;  %v6469_v58 = vadd.f32 %v8714_v4, %v8707_v6  ;;  %v6472_v44 = vadd.f32 %v8726_v52, %v8721_v32 }
 0x271   : > { %v6045_v9 = vpack.c.bf16 %v4943_v29, %v4942_v46  ;;  %v4941_v45 = vadd.f32 %v8666_v17, %v4902_v63  ;;  %v5040_v56 = vadd.f32 %v5039_v30, %v5009_v59  ;;  %v4827_v18 = vadd.f32 %v6457_v3, %v4826_v24  ;;  %v8889_v59 = vld [vmem:[#allocation10_spill] sm:$0xff]  ;;  %v8890_v24 = vld [vmem:[#allocation8_spill] sm:$0xff] }
 0x272   : > { %v4971_v25 = vadd.f32 %v4970_v54, %v4940_v14  ;;  %v8771_v36 = vpop.f32.mrf.mxu0  ;;  %v6658_v57 = vpop.f32.mrf.mxu1  ;;  %v4907_v13 = vadd.f32 %v4835_v31, %v8548_v10  ;;  %v5013_v23 = vmul.f32 %v4943_v29, %v4943_v29  ;;  %v6478_v42 = vadd.f32 %v8750_v38, %v8745_v16 }
 0x273   : > { %6110 = vst [vmem:[%s8685_s24 + $0x38] sm:$0xff] %v6045_v9   ;;  %v5011_v62 = vmul.f32 %v4941_v45, %v4941_v45  ;;  %v6040_v47 = vpack.c.bf16 %v4941_v45, %v4940_v14  ;;  %v4838_v48 = vadd.f32 %v6658_v57, %v6466_v22  ;;  %v5041_v39 = vadd.f32 %v5040_v56, %v5010_v61  ;;  %v8891_v9 = vld [vmem:[#allocation11_spill] sm:$0xff] }
 0x274   : > { %v4972_v41 = vadd.f32 %v4971_v25, %v4941_v45  ;;  %v4905_v19 = vadd.f32 %v4827_v18, %v8532_v21  ;;  %v6483_v37 = vpop.f32.mrf.mxu0  ;;  %v4829_v55 = vpop.f32.mrf.mxu1  ;;  %v4946_v50 = vadd.f32 %v8666_v17, %v4907_v13  ;;  %v8888_v21 = vld [vmem:[#allocation6_spill] sm:$0xff] }
 0x275   : > { %6109 = vst [vmem:[%s8685_s24 + $0x30] sm:$0xff] %v6040_v47   ;;  %v4908_v34 = vadd.f32 %v4838_v48, %v8887_v11  ;;  %v4830_v43 = vadd.f32 %v6460_v60, %v4829_v55  ;;  %v5042_v1 = vadd.f32 %v5041_v39, %v5011_v62  ;;  %v8892_v39 = vld [vmem:[#allocation9_spill] sm:$0xff]  ;;  %v6481_v55 = vadd.f32 %v8764_v0, %v8757_v5 }
 0x276   : > { %v4973_v2 = vadd.f32 %v4972_v41, %v4942_v46  ;;  %v4944_v12 = vadd.f32 %v8666_v17, %v4905_v19  ;;  %v6485_v53 = vpop.f32.mrf.mxu0  ;;  %v6661_v10 = vpop.f32.mrf.mxu1  ;;  %v5016_v61 = vmul.f32 %v4946_v50, %v4946_v50 }
 0x277   : > { %v4947_v7 = vadd.f32 %v8666_v17, %v4908_v34  ;;  %v4906_v27 = vadd.f32 %v4830_v43, %v8888_v21  ;;  %v4851_v40 = vadd.f32 %v6661_v10, %v6475_v26  ;;  %v5043_v8 = vadd.f32 %v5042_v1, %v5012_v33 }
 0x278   : > { %v4974_v49 = vadd.f32 %v4973_v2, %v4943_v29  ;;  %v6486_v20 = vpop.f32.mrf.mxu0  ;;  %v4842_v28 = vpop.f32.mrf.mxu1  ;;  %v5014_v46 = vmul.f32 %v4944_v12, %v4944_v12  ;;  %v6484_v2 = vadd.f32 %v6483_v37, %v8771_v36  ;;  %v8894_v36 = vld [vmem:[#allocation12_spill] sm:$0xff] }
 0x279   : > { %v6055_v51 = vpack.c.bf16 %v4947_v7, %v4946_v50  ;;  %v4945_v14 = vadd.f32 %v8666_v17, %v4906_v27  ;;  %v5044_v63 = vadd.f32 %v5043_v8, %v5013_v23  ;;  %v4843_v6 = vadd.f32 %v6469_v58, %v4842_v28  ;;  %v8893_v23 = vld [vmem:[#allocation14_spill] sm:$0xff] }
 0x27a   : > { %v4975_v15 = vadd.f32 %v4974_v49, %v4944_v12  ;;  %v6488_v4 = vpop.f32.mrf.mxu0  ;;  %v6662_v31 = vpop.f32.mrf.mxu1  ;;  %v4911_v30 = vadd.f32 %v4851_v40, %v8889_v59  ;;  %v6487_v22 = vadd.f32 %v6486_v20, %v6485_v53  ;;  %v5017_v26 = vmul.f32 %v4947_v7, %v4947_v7  ;;  %v8896_v59 = vld [vmem:[#allocation13_spill] sm:$0xff] }
 0x27b   : > { %6112 = vst [vmem:[%s8685_s24 + $0x48] sm:$0xff] %v6055_v51   ;;  %v5015_v29 = vmul.f32 %v4945_v14, %v4945_v14  ;;  %v6050_v3 = vpack.c.bf16 %v4945_v14, %v4944_v12  ;;  %v4854_v54 = vadd.f32 %v6662_v31, %v6478_v42  ;;  %v5045_v32 = vadd.f32 %v5044_v63, %v5014_v46  ;;  %v8895_v42 = vld [vmem:[#allocation15_spill] sm:$0xff] }
 0x27c   : > { %v4976_v52 = vadd.f32 %v4975_v15, %v4945_v14  ;;  %v4909_v16 = vadd.f32 %v4843_v6, %v8890_v24  ;;  %v6489_v38 = vpop.f32.mrf.mxu0  ;;  %v4845_v60 = vpop.f32.mrf.mxu1  ;;  %v4950_v13 = vadd.f32 %v8666_v17, %v4911_v30 }
 0x27d   : > { %6111 = vst [vmem:[%s8685_s24 + $0x40] sm:$0xff] %v6050_v3   ;;  %v4912_v45 = vadd.f32 %v4854_v54, %v8891_v9  ;;  %v4846_v25 = vadd.f32 %v6472_v44, %v4845_v60  ;;  %v5046_v18 = vadd.f32 %v5045_v32, %v5015_v29  ;;  %v6490_v12 = vadd.f32 %v6489_v38, %v6488_v4 }
 0x27e   : > { %v4977_v56 = vadd.f32 %v4976_v52, %v4946_v50  ;;  %v4948_v57 = vadd.f32 %v8666_v17, %v4909_v16  ;;  %v6491_v62 = vpop.f32.mrf.mxu0  ;;  %v6665_v47 = vpop.f32.mrf.mxu1  ;;  %v5020_v15 = vmul.f32 %v4950_v13, %v4950_v13 }
 0x27f   : > { %v4951_v48 = vadd.f32 %v8666_v17, %v4912_v45  ;;  %v4910_v41 = vadd.f32 %v4846_v25, %v8892_v39  ;;  %v4867_v19 = vadd.f32 %v6665_v47, %v6487_v22  ;;  %v5047_v11 = vadd.f32 %v5046_v18, %v5016_v61 }
 0x280   : > { %v4978_v34 = vadd.f32 %v4977_v56, %v4947_v7  ;;  %v6492_v43 = vpop.f32.mrf.mxu0  ;;  %v4858_v33 = vpop.f32.mrf.mxu1  ;;  %v5018_v50 = vmul.f32 %v4948_v57, %v4948_v57 }
 0x281   : > { %v6065_v1 = vpack.c.bf16 %v4951_v48, %v4950_v13  ;;  %v4949_v53 = vadd.f32 %v8666_v17, %v4910_v41  ;;  %v5048_v21 = vadd.f32 %v5047_v11, %v5017_v26  ;;  %v4859_v27 = vadd.f32 %v6481_v55, %v4858_v33  ;;  %v8899_v11 = vld [vmem:[#allocation16_spill] sm:$0xff] }
 0x282   : > { %v4979_v10 = vadd.f32 %v4978_v34, %v4948_v57  ;;  %v6494_v40 = vpop.f32.mrf.mxu0  ;;  %v6666_v58 = vpop.f32.mrf.mxu1  ;;  %v4915_v7 = vadd.f32 %v4867_v19, %v8893_v23  ;;  %v5021_v54 = vmul.f32 %v4951_v48, %v4951_v48  ;;  %v6493_v52 = vadd.f32 %v6492_v43, %v6491_v62  ;;  %v8897_v62 = vld [vmem:[#allocation18_spill] sm:$0xff] }
 0x283   : > { %6114 = vst [vmem:[%s8685_s24 + $0x58] sm:$0xff] %v6065_v1   ;;  %v5019_v5 = vmul.f32 %v4949_v53, %v4949_v53  ;;  %v6060_v0 = vpack.c.bf16 %v4949_v53, %v4948_v57  ;;  %v4870_v8 = vadd.f32 %v6666_v58, %v6490_v12  ;;  %v5049_v49 = vadd.f32 %v5048_v21, %v5018_v50 }
 0x284   : > { %v4980_v20 = vadd.f32 %v4979_v10, %v4949_v53  ;;  %v4913_v37 = vadd.f32 %v4859_v27, %v8894_v36  ;;  %v6495_v28 = vpop.f32.mrf.mxu0  ;;  %v4861_v44 = vpop.f32.mrf.mxu1  ;;  %v4954_v29 = vadd.f32 %v8666_v17, %v4915_v7  ;;  %v8900_v27 = vld [vmem:[#allocation5_spill] sm:$0xff] }
 0x285   : > { %6113 = vst [vmem:[%s8685_s24 + $0x50] sm:$0xff] %v6060_v0   ;;  %v4916_v51 = vadd.f32 %v4870_v8, %v8895_v42  ;;  %v4862_v14 = vadd.f32 %v6484_v2, %v4861_v44  ;;  %v5050_v63 = vadd.f32 %v5049_v49, %v5019_v5  ;;  %v6496_v47 = vadd.f32 %v6495_v28, %v6494_v40  ;;  %v8901_v5 = vld [vmem:[#allocation17_spill] sm:$0xff] }
 0x286   : > { %v4981_v46 = vadd.f32 %v4980_v20, %v4950_v13  ;;  %v4952_v6 = vadd.f32 %v8666_v17, %v4913_v37  ;;  %v6497_v4 = vpop.f32.mrf.mxu0  ;;  %v6669_v31 = vpop.f32.mrf.mxu1  ;;  %v5024_v2 = vmul.f32 %v4954_v29, %v4954_v29  ;;  %v4050_v40 = vadd.f32 %v8900_v27, %v8650_v35 }
 0x287   : > { %v4955_v3 = vadd.f32 %v8666_v17, %v4916_v51  ;;  %v4914_v30 = vadd.f32 %v4862_v14, %v8896_v59  ;;  %v5051_v32 = vadd.f32 %v5050_v63, %v5020_v15 }
 0x288   : > { %v4982_v24 = vadd.f32 %v4981_v46, %v4951_v48  ;;  %v6498_v16 = vpop.f32.mrf.mxu0  ;;  %v4874_v38 = vpop.f32.mrf.mxu1  ;;  %v5022_v25 = vmul.f32 %v4952_v6, %v4952_v6  ;;  %v8898_v48 = vld [vmem:[#allocation4_spill] sm:$0xff] }
 0x289   : > { %v6075_v60 = vpack.c.bf16 %v4955_v3, %v4954_v29  ;;  %v4953_v22 = vadd.f32 %v8666_v17, %v4914_v30  ;;  %v6499_v9 = vadd.f32 %v6498_v16, %v6497_v4  ;;  %v5052_v61 = vadd.f32 %v5051_v32, %v5021_v54 }
 0x28a   : > { %v4983_v45 = vadd.f32 %v4982_v24, %v4952_v6  ;;  %v4875_v56 = vadd.f32 %v6493_v52, %v4874_v38  ;;  %v6500_v18 = vpop.f32.mrf.mxu0  ;;  %v6670_v57 = vpop.f32.mrf.mxu1  ;;  %v4047_v19 = vadd.f32 %v8898_v48, %v8897_v62  ;;  %v5025_v23 = vmul.f32 %v4955_v3, %v4955_v3 }
 0x28b   : > { %6116 = vst [vmem:[%s8685_s24 + $0x68] sm:$0xff] %v6075_v60   ;;  %v5023_v13 = vmul.f32 %v4953_v22, %v4953_v22  ;;  %v6070_v39 = vpack.c.bf16 %v4953_v22, %v4952_v6  ;;  %v4883_v41 = vadd.f32 %v6669_v31, %v6499_v9  ;;  %v5053_v55 = vadd.f32 %v5052_v61, %v5022_v25 }
 0x28c   : > { %v4984_v26 = vadd.f32 %v4983_v45, %v4953_v22  ;;  %v4917_v34 = vadd.f32 %v4875_v56, %v8899_v11  ;;  %v6501_v43 = vpop.f32.mrf.mxu0  ;;  %v4877_v33 = vpop.f32.mrf.mxu1 }
 0x28d   : > { %6115 = vst [vmem:[%s8685_s24 + $0x60] sm:$0xff] %v6070_v39   ;;  %v6502_v1 = vadd.f32 %v6501_v43, %v6500_v18  ;;  %v4878_v12 = vadd.f32 %v6496_v47, %v4877_v33  ;;  %v5054_v10 = vadd.f32 %v5053_v55, %v5023_v13  ;;  %v4919_v50 = vadd.f32 %v4883_v41, %v4047_v19 }
 0x28e   : > { %v4985_v53 = vadd.f32 %v4984_v26, %v4954_v29  ;;  %v4956_v21 = vadd.f32 %v8666_v17, %v4917_v34 }
 0x28f   : > { %v4886_v58 = vadd.f32 %v6670_v57, %v6502_v1  ;;  %v4918_v0 = vadd.f32 %v4878_v12, %v8901_v5  ;;  %v5055_v7 = vadd.f32 %v5054_v10, %v5024_v2  ;;  %v4958_v36 = vadd.f32 %v8666_v17, %v4919_v50 }
 0x290   : > { %v4986_v8 = vadd.f32 %v4985_v53, %v4955_v3  ;;  %v5026_v28 = vmul.f32 %v4956_v21, %v4956_v21 }
 0x291   : > { %v4920_v49 = vadd.f32 %v4886_v58, %v4050_v40  ;;  %v4957_v20 = vadd.f32 %v8666_v17, %v4918_v0  ;;  %v5056_v44 = vadd.f32 %v5055_v7, %v5025_v23  ;;  %v5028_v63 = vmul.f32 %v4958_v36, %v4958_v36 }
 0x292   : > { %v4987_v37 = vadd.f32 %v4986_v8, %v4956_v21 }
 0x293   : > { %v4959_v35 = vadd.f32 %v8666_v17, %v4920_v49  ;;  %v5027_v42 = vmul.f32 %v4957_v20, %v4957_v20  ;;  %v6080_v51 = vpack.c.bf16 %v4957_v20, %v4956_v21  ;;  %v5057_v14 = vadd.f32 %v5056_v44, %v5026_v28 }
 0x294   : > { %v4988_v15 = vadd.f32 %v4987_v37, %v4957_v20 }
 0x295   : > { %v6085_v46 = vpack.c.bf16 %v4959_v35, %v4958_v36  ;;  %6117 = vst [vmem:[%s8685_s24 + $0x70] sm:$0xff] %v6080_v51   ;;  %v5058_v4 = vadd.f32 %v5057_v14, %v5027_v42  ;;  %v5029_v31 = vmul.f32 %v4959_v35, %v4959_v35 }
 0x296   : > { %v4989_v6 = vadd.f32 %v4988_v15, %v4958_v36 }
 0x297   : > { %6118 = vst [vmem:[%s8685_s24 + $0x78] sm:$0xff] %v6085_v46   ;;  %v5059_v3 = vadd.f32 %v5058_v4, %v5028_v63 }
 0x298   : > { %v4990_v29 = vadd.f32 %v4989_v6, %v4959_v35 }
 0x299   : > { %v5060_v30 = vadd.f32 %v5059_v3, %v5029_v31 }
 0x29a   : > { %v4991_v59 = vrot.slane %v4990_v29, 4 }
 0x29b   : > { %v5061_v54 = vrot.slane %v5060_v30, 4 }
 0x29c   : > { %v4992_v17 = vadd.f32 %v4991_v59, %v4990_v29 }
 0x29d   : > { %v5062_v52 = vadd.f32 %v5061_v54, %v5060_v30 }
 0x29e   : > { %v4993_v32 = vrot.slane %v4992_v17, 2 }
 0x29f   : > { %v5063_v16 = vrot.slane %v5062_v52, 2 }
 0x2a0   : > { %v4994_v24 = vadd.f32 %v4993_v32, %v4992_v17 }
 0x2a1   : > { %v5064_v60 = vadd.f32 %v5063_v16, %v5062_v52 }
 0x2a2   : > { %v4995_v38 = vrot.slane %v4994_v24, 1 }
 0x2a3   : > { %v5065_v9 = vrot.slane %v5064_v60, 1 }
 0x2a4   : > { %v4996_v22 = vadd.f32 %v4995_v38, %v4994_v24 }
 0x2a5   : > { %v5066_v45 = vadd.f32 %v5065_v9, %v5064_v60 }
 0x2a6   : > { %4997 = vst [vmem:[%s494_s13] sm:$0x1] %v4996_v22 }
 0x2a7   : > { %5067 = vst [vmem:[%s494_s13 + $0x1] sm:$0x1] %v5066_v45 }
 0x2a8 PF: > { %s19_s9 = sadd.s32 1, %s7079_s9   ;;  %s8902_s27 = smov %s7071_s29 }
 0x2a9   : > { %p16_p13 = scmp.ge.s32.totalorder %s19_s9, 10   ;;  %s8903_s28 = smov %s7075_s30 }
 0x2aa   : > { %s8904_s29 = smov %s8907_s10  ;;  %s8905_s30 = smov %s8911_s11 }
 0x2ab   :  { %18 = sbr.rel (!%p16_p13) target bundleno = 3 (0x3), region = 102 }

// kernel: _lambda_.5
= control target key start
LH: loop header
LB: loop body
LE: loop exit
PB: predicated region body
PF: predicated region fallthrough
CT: control target
= control target key end

     0   :  { %s9989_s30 = smov 0   ;;  %s9991_s10 = smov 0   ;;  %s12715_s0 = inlined_call_operand.vmem [shape: bf16[2,32,32,128], index: 0, kind: input, shape index: {}, may-alias: {0,1,2}]   ;;  %s12716_s1 = inlined_call_operand.vmem [shape: bf16[2,32,32,128], index: 1, kind: input, shape index: {}, may-alias: {0,1,2}]   ;;  %s12717_s2 = inlined_call_operand.vmem [shape: bf16[2,32,32,128], index: 2, kind: input, shape index: {}, may-alias: {0,1,2}]   ;;  %s12718_s3 = inlined_call_operand.vmem [shape: bf16[2,32,32,128], index: 3, kind: input, shape index: {}, may-alias: {3,4,5}]   ;;  %s12719_s4 = inlined_call_operand.vmem [shape: bf16[2,32,32,128], index: 4, kind: input, shape index: {}, may-alias: {3,4,5}]   ;;  %s12720_s5 = inlined_call_operand.vmem [shape: bf16[2,32,32,128], index: 5, kind: input, shape index: {}, may-alias: {3,4,5}]   ;;  %s12721_s6 = inlined_call_operand.vmem [shape: bf16[3,768,128], index: 6, kind: input, shape index: {}]   ;;  %s12722_s7 = inlined_call_operand.vmem [shape: f32[1,128], index: 7, kind: input, shape index: {}]   ;;  %s12723_s8 = inlined_call_operand.vmem [shape: bf16[2,32,32,128], index: 8, kind: output, shape index: {0}]   ;;  %s12724_s9 = inlined_call_operand.vmem [shape: f32[2,4,2,128], index: 9, kind: output, shape index: {1}]  }
   0x1   :  { %s9993_s11 = smov 0   ;;  %s9995_s12 = smov 0  }
   0x2   :  { %s9997_s13 = smov 0  }
   0x3 LB: > { %s29_s14 = sadd.s32 1, %s9929_s11  ;;  %s32_s15 = sadd.s32 1, %s9933_s12  ;;  %s9937_s13 = sphi %s9997_s13, %s20_s13   ;;  %s9933_s12 = sphi %s9995_s12, %s13195_s12   ;;  %s9929_s11 = sphi %s9993_s11, %s13194_s11   ;;  %s9925_s10 = sphi %s9991_s10, %s13193_s10   ;;  %s9921_s30 = sphi %s9989_s30, %s13192_s30  }
   0x4   : > { %p30_p0 = scmp.ge.s32.totalorder %s29_s14, 4  ;;  %p7753_p1 = scmp.ge.s32.totalorder %s9937_s13, 1 }
   0x5   : > { %p460_p2 = scmp.lt.s32.totalorder %s9937_s13, 9 }
   0x6   : > { %s13197_s14 = smov (%p30_p0, %s29_s14), 0  ;;  %s13199_s15 = smov (!%p30_p0, %s32_s15), %s9933_s12 }
   0x7   : > { %p461_p3 = pnand %p7753_p1, %p460_p2  ;;  %p34_p4 = scmp.ge.s32.totalorder %s13199_s15, 2 }
   0x9   : > { %s13201_s15 = smov (%p34_p4, %s13199_s15), 0  ;;  %464 = sbr.rel (%p461_p3) target bundleno = 895 (0x37f), region = 52 }
   0xe   : > { %v9678_v0 = vld [vmem:[%s12721_s6 + $0x1f8] sm:$0xff]   ;;  %s10025_s18 = sshll.u32 %s9921_s30, 3  ;;  %p577_p5 = scmp.lt.s32.totalorder %s9925_s10, 1  ;;  %v9680_v2 = vld [vmem:[%s12721_s6 + $0x1f0] sm:$0xff]   ;;  %v9682_v4 = vld [vmem:[%s12721_s6 + $0x1e8] sm:$0xff]   ;;  %vm688_vm0 = vcmask 1040384  }
   0xf   : > { %v9679_v1 = vld [vmem:[%s12721_s6 + $0x1b8] sm:$0xff]   ;;  %8614 = vmatprep.subr.bf16.mxu0 %v9678_v0  ;;  %9622 = vmatprep.subr.bf16.mxu1 %v9678_v0  ;;  %p579_p6 = scmp.lt.s32.totalorder %s10025_s18, 31  ;;  %v9681_v3 = vld [vmem:[%s12721_s6 + $0x1b0] sm:$0xff]   ;;  %v9683_v5 = vld [vmem:[%s12721_s6 + $0x1a8] sm:$0xff]   ;;  %vm691_vm1 = vcmask 1044484   ;;  %vm1115_vm2 = vcmask 1043456  }
  0x10   : > { %8615 = vmatpush3.bf16.msra.mxu0 %v9679_v1  ;;  %9630 = vmatpush3.bf16.msra.mxu1 %v9679_v1  ;;  %s13203_s10 = smov (!%p577_p5, %s9925_s10), 1  ;;  %v9684_v6 = vld [vmem:[%s12721_s6 + $0x1e0] sm:$0xff]   ;;  %v9686_v8 = vld [vmem:[%s12721_s6 + $0x1d8] sm:$0xff]   ;;  %v9688_v10 = vld [vmem:[%s12721_s6 + $0x1d0] sm:$0xff]   ;;  %vm689_vm3 = vsmask.f32 256 }
  0x11   : > { %8616 = vmatprep.subr.bf16.mxu0 %v9680_v2  ;;  %9623 = vmatprep.subr.bf16.mxu1 %v9680_v2  ;;  %s580_s27 = scalar_select %p579_p6, %s10025_s18, 31  ;;  %v9685_v7 = vld [vmem:[%s12721_s6 + $0x1a0] sm:$0xff]   ;;  %v9687_v9 = vld [vmem:[%s12721_s6 + $0x198] sm:$0xff]   ;;  %vm692_vm4 = vsmask.f32 4352  ;;  %v9689_v12 = vld [vmem:[%s12721_s6 + $0x190] sm:$0xff]  }
  0x12   : > { %s10044_s28 = sshll.u32 %s13203_s10, 7  ;;  %v698_v11 = vld [vmem:[#allocation2 + $0x28] sm:$0x11]  ;;  %vm10084_vm5 = vmand %vm688_vm0, %vm689_vm3  ;;  %v12855_v13 = vmov 0  ;;  %vm725_vm6 = vsmask.f32 7938 }
  0x13   : > { %s7755_s29 = sshll.u32 %s580_s27, 2  ;;  %v12856_v13 = vsel %vm10084_vm5, 4294967295, %v12855_v13  ;;  %vm727_vm7 = vsmask.f32 7954  ;;  %v9690_v15 = vld [vmem:[%s12721_s6 + $0x1c8] sm:$0xff]   ;;  %vm693_vm8 = vmand %vm691_vm1, %vm692_vm4  ;;  %v12858_v19 = vmov 0 }
  0x14   : > { %8617 = vmatpush3.bf16.msra.mxu0 %v9681_v3  ;;  %9631 = vmatpush3.bf16.msra.mxu1 %v9681_v3  ;;  %s583_s21 = sadd.s32 %s10044_s28, %s7755_s29  ;;  %12857 = vst [vmem:[#allocation4_spill] sm:$0xff] %v12856_v13  ;;  %vm792_vm9 = vsmask.f32 4368  ;;  %vm10096_vm10 = vmor %vm693_vm8, %vm10084_vm5  ;;  %v710_v28 = vld [vmem:[#allocation2 + $0xc8] sm:$0x11]  ;;  %v12861_v34 = vmov 0 }
  0x15   : > { %8618 = vmatprep.subr.bf16.mxu0 %v9682_v4  ;;  %9624 = vmatprep.subr.bf16.mxu1 %v9682_v4  ;;  %s10056_s24 = sshll.u32 %s583_s21, 2  ;;  %v12859_v19 = vsel %vm10096_vm10, 4294967295, %v12858_v19  ;;  %v699_v24 = vsel %vm10096_vm10, 0, %v698_v11  ;;  %vm726_vm11 = vmand %vm688_vm0, %vm725_vm6  ;;  %v711_v32 = vsel %vm10096_vm10, 0, %v710_v28  ;;  %v9691_v40 = vld [vmem:[%s12721_s6 + $0x188] sm:$0xff]   ;;  %v9692_v47 = vld [vmem:[%s12721_s6 + $0x1c0] sm:$0xff]  }
  0x16   : > { %s10068_s19 = scalar_lea.vmem %s12715_s0, %s10056_s24  ;;  %s10077_s25 = scalar_lea.vmem %s12718_s3, %s10056_s24  ;;  %12860 = vst [vmem:[#allocation5_spill] sm:$0xff] %v12859_v19  ;;  %700 = vst [vmem:[#allocation2 + $0x28] sm:$0x11] %v699_v24  ;;  %v9693_v53 = vld [vmem:[%s12721_s6 + $0x180] sm:$0xff]   ;;  %v12866_v58 = vmov 0  ;;  %v9700_v63 = vld [vmem:[%s12721_s6 + $0x278] sm:$0xff]  }
  0x17   : > { %v760_v14 = vld [vmem:[%s10068_s19] sm:$0xf]  ;;  %v761_v16 = vld [vmem:[%s10068_s19 + $0x4] sm:$0xf]  ;;  %vm728_vm12 = vmand %vm691_vm1, %vm727_vm7  ;;  %712 = vst [vmem:[#allocation2 + $0xc8] sm:$0x11] %v711_v32 }
  0x18   : > { %8619 = vmatpush3.bf16.msra.mxu0 %v9683_v5  ;;  %9632 = vmatpush3.bf16.msra.mxu1 %v9683_v5  ;;  %v795_v17 = vshrl.u32 %v760_v14, 16  ;;  %v798_v18 = vshll.u32 %v760_v14, 16  ;;  %v803_v20 = vshrl.u32 %v761_v16, 16  ;;  %v806_v21 = vshll.u32 %v761_v16, 16  ;;  %v1310_v22 = vld [vmem:[%s10077_s25] sm:$0xf]  ;;  %vm10113_vm13 = vmor %vm728_vm12, %vm726_vm11 }
  0x19   : > { %8620 = vmatprep.subr.bf16.mxu0 %v9684_v6  ;;  %9625 = vmatprep.subr.bf16.mxu1 %v9684_v6  ;;  %v1311_v23 = vld [vmem:[%s10077_s25 + $0x4] sm:$0xf]  ;;  %v1343_v26 = vshrl.u32 %v1310_v22, 16  ;;  %v1346_v27 = vshll.u32 %v1310_v22, 16  ;;  %v776_v33 = vld [vmem:[%s10068_s19 + $0x40] sm:$0xf]  ;;  %vm10123_vm14 = vmor %vm689_vm3, %vm792_vm9 }
  0x1a   : > { %v797_v25 = vrot.slane %v795_v17, 7  ;;  %v10108_v29 = vrot.slane %v803_v20, 7  ;;  %v1351_v30 = vshrl.u32 %v1311_v23, 16  ;;  %v1354_v31 = vshll.u32 %v1311_v23, 16  ;;  %v777_v38 = vld [vmem:[%s10068_s19 + $0x44] sm:$0xf]  ;;  %vm10145_vm15 = vmand %vm1115_vm2, %vm725_vm6 }
  0x1b   : > { %v12862_v34 = vsel %vm10113_vm13, 4294967295, %v12861_v34  ;;  %v1345_v37 = vrot.slane %v1343_v26, 7  ;;  %v935_v39 = vshrl.u32 %v776_v33, 16  ;;  %v938_v44 = vshll.u32 %v776_v33, 16  ;;  %v1326_v46 = vld [vmem:[%s10077_s25 + $0x40] sm:$0xf] }
  0x1c   : > { %8621 = vmatpush3.bf16.msra.mxu0 %v9685_v7  ;;  %9633 = vmatpush3.bf16.msra.mxu1 %v9685_v7  ;;  %12863 = vst [vmem:[#allocation6_spill] sm:$0xff] %v12862_v34  ;;  %v800_v35 = vor.u32 %v798_v18, %v797_v25  ;;  %v801_v36 = vrot.slane %v797_v25, 4  ;;  %v808_v42 = vor.u32 %v806_v21, %v10108_v29  ;;  %v10128_v43 = vrot.slane %v1351_v30, 7  ;;  %v1327_v52 = vld [vmem:[%s10077_s25 + $0x44] sm:$0xf]  ;;  %v9702_v7 = vld [vmem:[%s12721_s6 + $0x2f8] sm:$0xff]  }
  0x1d   : > { %8622 = vmatprep.subr.bf16.mxu0 %v9686_v8  ;;  %9626 = vmatprep.subr.bf16.mxu1 %v9686_v8  ;;  %v943_v45 = vshrl.u32 %v777_v38, 16  ;;  %v1348_v48 = vor.u32 %v1346_v27, %v1345_v37  ;;  %v1349_v49 = vrot.slane %v1345_v37, 4  ;;  %v937_v50 = vrot.slane %v935_v39, 7  ;;  %v1117_v4 = vld [vmem:[#allocation2 + $0x28] sm:$0xf]  ;;  %v9703_v39 = vld [vmem:[%s12721_s6 + $0x2b8] sm:$0xff]  }
  0x1e   : > { %v946_v51 = vshll.u32 %v777_v38, 16  ;;  %v809_v54 = vsel %vm10123_vm14, %v801_v36, %v808_v42  ;;  %v1356_v55 = vor.u32 %v1354_v31, %v10128_v43  ;;  %v1483_v57 = vshrl.u32 %v1326_v46, 16  ;;  %v1662_v5 = vld [vmem:[#allocation2 + $0x2c] sm:$0xf]  ;;  %v1153_v11 = vld [vmem:[#allocation2 + $0xc8] sm:$0xf] }
  0x1f   : > { %v10141_v56 = vrot.slane %v943_v45, 7  ;;  %v12867_v58 = vsel %vm10145_vm15, 4294967295, %v12866_v58  ;;  %1120 = vst [vmem:[#allocation2 + $0x30] sm:$0xf] %v809_v54  ;;  %v940_v59 = vor.u32 %v938_v44, %v937_v50  ;;  %v941_v60 = vrot.slane %v937_v50, 4  ;;  %s11004_s27 = sadd.s32 4294967295, %s10025_s18 }
  0x20   : > { %8623 = vmatpush3.bf16.msra.mxu0 %v9687_v9  ;;  %9634 = vmatpush3.bf16.msra.mxu1 %v9687_v9  ;;  %12868 = vst [vmem:[#allocation7_spill] sm:$0xff] %v12867_v58  ;;  %v1486_v61 = vshll.u32 %v1326_v46, 16  ;;  %v1491_v62 = vshrl.u32 %v1327_v52, 16  ;;  %v1357_v0 = vsel %vm10123_vm14, %v1349_v49, %v1356_v55  ;;  %v1485_v2 = vrot.slane %v1483_v57, 7  ;;  %v1698_v14 = vld [vmem:[#allocation2 + $0xcc] sm:$0xf] }
  0x21   : > { %8624 = vmatprep.subr.bf16.mxu0 %v9688_v10  ;;  %9627 = vmatprep.subr.bf16.mxu1 %v9688_v10  ;;  %v948_v1 = vor.u32 %v946_v51, %v10141_v56  ;;  %v1494_v3 = vshll.u32 %v1327_v52, 16  ;;  %1665 = vst [vmem:[#allocation2 + $0x34] sm:$0xf] %v1357_v0  ;;  %v1118_v8 = vsel %vm10145_vm15, %v800_v35, %v1117_v4  ;;  %v762_v20 = vld [vmem:[%s10068_s19 + $0x8] sm:$0xf]  ;;  %v810_v35 = vrot.slane %v10108_v29, 4 }
  0x22   : > { %v10155_v6 = vrot.slane %v1491_v62, 7  ;;  %v1663_v9 = vsel %vm10145_vm15, %v1348_v48, %v1662_v5  ;;  %1119 = vst [vmem:[#allocation2 + $0x28] sm:$0xf] %v1118_v8  ;;  %v1489_v16 = vrot.slane %v1485_v2, 4  ;;  %v763_v21 = vld [vmem:[%s10068_s19 + $0xc] sm:$0xf] }
  0x23   : > { %v949_v10 = vsel %vm10123_vm14, %v941_v60, %v948_v1  ;;  %1664 = vst [vmem:[#allocation2 + $0x2c] sm:$0xf] %v1663_v9  ;;  %v1312_v22 = vld [vmem:[%s10077_s25 + $0x8] sm:$0xf]  ;;  %v812_v24 = vshrl.u32 %v762_v20, 16  ;;  %v815_v25 = vshll.u32 %v762_v20, 16 }
  0x24   : > { %8625 = vmatpush3.bf16.msra.mxu0 %v9689_v12  ;;  %9635 = vmatpush3.bf16.msra.mxu1 %v9689_v12  ;;  %v1488_v12 = vor.u32 %v1486_v61, %v1485_v2  ;;  %1156 = vst [vmem:[#allocation2 + $0xd0] sm:$0xf] %v949_v10  ;;  %v1496_v17 = vor.u32 %v1494_v3, %v10155_v6  ;;  %v821_v26 = vshrl.u32 %v763_v21, 16  ;;  %v1313_v27 = vld [vmem:[%s10077_s25 + $0xc] sm:$0xf]  ;;  %v824_v28 = vshll.u32 %v763_v21, 16 }
  0x25   : > { %8626 = vmatprep.subr.bf16.mxu0 %v9690_v15  ;;  %9628 = vmatprep.subr.bf16.mxu1 %v9690_v15  ;;  %v1154_v15 = vsel %vm10145_vm15, %v940_v59, %v1153_v11  ;;  %v1360_v30 = vshrl.u32 %v1312_v22, 16  ;;  %v1363_v31 = vshll.u32 %v1312_v22, 16  ;;  %v1369_v32 = vshrl.u32 %v1313_v27, 16  ;;  %v778_v33 = vld [vmem:[%s10068_s19 + $0x48] sm:$0xf]  ;;  %v9710_v3 = vld [vmem:[%s12721_s6 + $0x270] sm:$0xff]  }
  0x26   : > { %1155 = vst [vmem:[#allocation2 + $0xc8] sm:$0xf] %v1154_v15  ;;  %v1699_v18 = vsel %vm10145_vm15, %v1488_v12, %v1698_v14  ;;  %v1497_v23 = vsel %vm10123_vm14, %v1489_v16, %v1496_v17  ;;  %v814_v36 = vrot.slane %v812_v24, 7  ;;  %v10179_v37 = vrot.slane %v821_v26, 7  ;;  %v779_v29 = vld [vmem:[%s10068_s19 + $0x4c] sm:$0xf] }
  0x27   : > { %1700 = vst [vmem:[#allocation2 + $0xcc] sm:$0xf] %v1699_v18  ;;  %1701 = vst [vmem:[#allocation2 + $0xd4] sm:$0xf] %v1497_v23  ;;  %v1372_v38 = vshll.u32 %v1313_v27, 16  ;;  %v1362_v42 = vrot.slane %v1360_v30, 7 }
  0x28   : > { %8627 = vmatpush3.bf16.msra.mxu0 %v9691_v40  ;;  %9636 = vmatpush3.bf16.msra.mxu1 %v9691_v40  ;;  %v1358_v40 = vrot.slane %v10128_v43, 4  ;;  %v10185_v44 = vrot.slane %v1369_v32, 7  ;;  %v952_v45 = vshrl.u32 %v778_v33, 16  ;;  %v817_v46 = vor.u32 %v815_v25, %v814_v36  ;;  %v1328_v50 = vld [vmem:[%s10077_s25 + $0x48] sm:$0xf]  ;;  %v9701_v43 = vld [vmem:[%s12721_s6 + $0x238] sm:$0xff]  }
  0x29   : > { %8628 = vmatprep.subr.bf16.mxu0 %v9692_v47  ;;  %9629 = vmatprep.subr.bf16.mxu1 %v9692_v47  ;;  %v819_v47 = vrot.slane %v814_v36, 4  ;;  %v826_v48 = vor.u32 %v824_v28, %v10179_v37  ;;  %v955_v49 = vshll.u32 %v778_v33, 16  ;;  %v9694_v51 = vld [vmem:[#allocation2 + $0x28] ss:$8 sps:$4 sm:$0xff]   ;;  %v1367_v54 = vrot.slane %v1362_v42, 4  ;;  %p589_p7 = scmp.gt.s32.totalorder %s11004_s27, 0 }
  0x2a   : > { %v9696_v52 = vld [vmem:[#allocation2 + $0x2c] ss:$8 sps:$4 sm:$0xff]   ;;  %v1374_v55 = vor.u32 %v1372_v38, %v10185_v44  ;;  %v818_v59 = vsel %vm10123_vm14, %v810_v35, %v817_v46  ;;  %v950_v61 = vrot.slane %v10141_v56, 4  ;;  %v954_v62 = vrot.slane %v952_v45, 7  ;;  %v764_v24 = vld [vmem:[%s10068_s19 + $0x10] sm:$0xf] }
  0x2b   : > { %v1329_v57 = vld [vmem:[%s10077_s25 + $0x4c] sm:$0xf]  ;;  %v827_v60 = vsel %vm10123_vm14, %v819_v47, %v826_v48  ;;  %4000 = vmatprep.mubr.bf16.mxu0 %v9696_v52  ;;  %1121 = vst [vmem:[#allocation2 + $0x38] sm:$0xf] %v818_v59  ;;  %v961_v1 = vshrl.u32 %v779_v29, 16  ;;  %v964_v2 = vshll.u32 %v779_v29, 16 }
  0x2c   : > { %8629 = vmatpush3.bf16.msra.mxu0 %v9693_v53  ;;  %9637 = vmatpush3.bf16.msra.mxu1 %v9693_v53  ;;  %v1365_v53 = vor.u32 %v1363_v31, %v1362_v42  ;;  %1122 = vst [vmem:[#allocation2 + $0x40] sm:$0xf] %v827_v60  ;;  %v1375_v0 = vsel %vm10123_vm14, %v1367_v54, %v1374_v55  ;;  %v9712_v56 = vld [vmem:[%s12721_s6 + $0x2f0] sm:$0xff]   ;;  %v959_v8 = vrot.slane %v954_v62, 4  ;;  %v1500_v10 = vshrl.u32 %v1328_v50, 16  ;;  %v9720_v36 = vld [vmem:[%s12721_s6 + $0x268] sm:$0xff]  }
  0x2d   : > { %8726 = vmatprep.subr.bf16.mxu1 %v9700_v63  ;;  %8838 = vmatprep.subr.bf16.mxu0 %v9702_v7  ;;  %v9699_v5 = vld [vmem:[#allocation2 + $0xc8] ss:$8 sps:$4 sm:$0xff]   ;;  %1667 = vst [vmem:[#allocation2 + $0x44] sm:$0xf] %v1375_v0  ;;  %v957_v7 = vor.u32 %v955_v49, %v954_v62  ;;  %v10210_v9 = vrot.slane %v961_v1, 7  ;;  %v1503_v11 = vshll.u32 %v1328_v50, 16 }
  0x2e   : > { %v1366_v63 = vsel %vm10123_vm14, %v1358_v40, %v1365_v53  ;;  %v9697_v4 = vld [vmem:[#allocation2 + $0xcc] ss:$8 sps:$4 sm:$0xff]   ;;  %v1509_v14 = vshrl.u32 %v1329_v57, 16  ;;  %v1512_v15 = vshll.u32 %v1329_v57, 16  ;;  %v1498_v18 = vrot.slane %v10155_v6, 4  ;;  %p7760_p8 = scmp.lt.s32.totalorder %s11004_s27, 31 }
  0x2f   : > { %4001 = vmatmul.mubr.bf16.vlgmr.msra.gmra.mxu0 %v9694_v51  ;;  %1666 = vst [vmem:[#allocation2 + $0x3c] sm:$0xf] %v1366_v63  ;;  %4064 = vmatprep.mubr.bf16.mxu1 %v9697_v4  ;;  %v958_v12 = vsel %vm10123_vm14, %v950_v61, %v957_v7  ;;  %v9711_v16 = vld [vmem:[%s12721_s6 + $0x230] sm:$0xff]   ;;  %v966_v17 = vor.u32 %v964_v2, %v10210_v9  ;;  %v1502_v20 = vrot.slane %v1500_v10, 7  ;;  %v830_v32 = vshrl.u32 %v764_v24, 16  ;;  %v9721_v49 = vld [vmem:[%s12721_s6 + $0x228] sm:$0xff]  }
  0x30   : > { %8839 = vmatpush3.bf16.msra.mxu0 %v9703_v39  ;;  %4065 = vmatmul.mubr.bf16.vlgmr.msra.gmra.mxu1 %v9699_v5  ;;  %1157 = vst [vmem:[#allocation2 + $0xd8] sm:$0xf] %v958_v12  ;;  %v10219_v21 = vrot.slane %v1509_v14, 7  ;;  %v9713_v22 = vld [vmem:[%s12721_s6 + $0x2b0] sm:$0xff]   ;;  %v833_v33 = vshll.u32 %v764_v24, 16  ;;  %v9722_v54 = vld [vmem:[%s12721_s6 + $0x2e8] sm:$0xff]  }
  0x31   : > { %8840 = vmatprep.subr.bf16.mxu0 %v9712_v56  ;;  %8727 = vmatpush3.bf16.msra.mxu1 %v9701_v43  ;;  %v701_v23 = vld [vmem:[#allocation2 + $0x50] sm:$0x11]  ;;  %v967_v25 = vsel %vm10123_vm14, %v959_v8, %v966_v17  ;;  %v1505_v26 = vor.u32 %v1503_v11, %v1502_v20  ;;  %v1507_v27 = vrot.slane %v1502_v20, 4  ;;  %v832_v47 = vrot.slane %v830_v32, 7  ;;  %v9723_v61 = vld [vmem:[%s12721_s6 + $0x2a8] sm:$0xff]   ;;  %v9731_v10 = vld [vmem:[%s12721_s6 + $0x220] sm:$0xff]  }
  0x32   : > { %8728 = vmatprep.subr.bf16.mxu1 %v9710_v3  ;;  %v702_v6 = vsel %vm10096_vm10, 0, %v701_v23  ;;  %v765_v28 = vld [vmem:[%s10068_s19 + $0x14] sm:$0xf]  ;;  %v1314_v30 = vld [vmem:[%s10077_s25 + $0x10] sm:$0xf]  ;;  %v1514_v31 = vor.u32 %v1512_v15, %v10219_v21  ;;  %v9730_v3 = vld [vmem:[%s12721_s6 + $0x260] sm:$0xff]  }
  0x33   : > { %1158 = vst [vmem:[#allocation2 + $0xe0] sm:$0xf] %v967_v25  ;;  %703 = vst [vmem:[#allocation2 + $0x50] sm:$0x11] %v702_v6  ;;  %v1315_v35 = vld [vmem:[%s10077_s25 + $0x14] sm:$0xf]  ;;  %v1506_v39 = vsel %vm10123_vm14, %v1498_v18, %v1505_v26  ;;  %v835_v55 = vor.u32 %v833_v33, %v832_v47 }
  0x34   : > { %8841 = vmatpush3.bf16.msra.mxu0 %v9713_v22  ;;  %v838_v40 = vshrl.u32 %v765_v28, 16  ;;  %v841_v42 = vshll.u32 %v765_v28, 16  ;;  %v1515_v45 = vsel %vm10123_vm14, %v1507_v27, %v1514_v31  ;;  %1702 = vst [vmem:[#allocation2 + $0xdc] sm:$0xf] %v1506_v39  ;;  %v9708_v46 = vld [vmem:[#allocation2 + $0x38] ss:$8 sps:$4 sm:$0xff]  }
  0x35   : > { %8729 = vmatpush3.bf16.msra.mxu1 %v9711_v16  ;;  %v1378_v48 = vshrl.u32 %v1314_v30, 16  ;;  %v1381_v29 = vshll.u32 %v1314_v30, 16  ;;  %1703 = vst [vmem:[#allocation2 + $0xe4] sm:$0xf] %v1515_v45  ;;  %v1386_v51 = vshrl.u32 %v1315_v35, 16  ;;  %v1389_v52 = vshll.u32 %v1315_v35, 16  ;;  %8842 = vmatprep.subr.bf16.mxu0 %v9722_v54 }
  0x36   : > { %v9704_v38 = vld [vmem:[#allocation2 + $0x3c] ss:$8 sps:$4 sm:$0xff]   ;;  %v10243_v50 = vrot.slane %v838_v40, 7  ;;  %v713_v53 = vld [vmem:[#allocation2 + $0xf0] sm:$0x11]  ;;  %8730 = vmatprep.subr.bf16.mxu1 %v9720_v36  ;;  %v836_v57 = vrot.slane %v832_v47, 4 }
  0x37   : > { %4008 = vmatprep.mubr.bf16.mxu0 %v9704_v38  ;;  %v1380_v43 = vrot.slane %v1378_v48, 7  ;;  %v714_v59 = vsel %vm10096_vm10, 0, %v713_v53  ;;  %v780_v60 = vld [vmem:[%s10068_s19 + $0x50] sm:$0xf]  ;;  %v10255_v63 = vrot.slane %v1386_v51, 7  ;;  %v9732_v28 = vld [vmem:[%s12721_s6 + $0x2e0] sm:$0xff]  }
  0x38   : > { %4009 = vmatmul.mubr.bf16.gmra.mxu0 %v9708_v46  ;;  %v843_v62 = vor.u32 %v841_v42, %v10243_v50  ;;  %715 = vst [vmem:[#allocation2 + $0xf0] sm:$0x11] %v714_v59  ;;  %v781_v0 = vld [vmem:[%s10068_s19 + $0x54] sm:$0xf]  ;;  %v970_v1 = vshrl.u32 %v780_v60, 16  ;;  %v973_v2 = vshll.u32 %v780_v60, 16 }
  0x39   : > { %v1383_v56 = vor.u32 %v1381_v29, %v1380_v43  ;;  %v1384_v4 = vrot.slane %v1380_v43, 4  ;;  %v978_v5 = vshrl.u32 %v781_v0, 16  ;;  %v981_v7 = vshll.u32 %v781_v0, 16  ;;  %v1330_v8 = vld [vmem:[%s10077_s25 + $0x50] sm:$0xf]  ;;  %8731 = vmatpush3.bf16.msra.mxu1 %v9721_v49  ;;  %8843 = vmatpush3.bf16.msra.mxu0 %v9723_v61  ;;  %s11103_s16 = scalar_select %p589_p7, %s11004_s27, 0 }
  0x3a   : > { %v844_v11 = vsel %vm10123_vm14, %v836_v57, %v843_v62  ;;  %v1126_v12 = vld [vmem:[#allocation2 + $0x50] sm:$0xf]  ;;  %v1391_v14 = vor.u32 %v1389_v52, %v10255_v63  ;;  %v1671_v15 = vld [vmem:[#allocation2 + $0x54] sm:$0xf]  ;;  %v972_v16 = vrot.slane %v970_v1, 7  ;;  %v1518_v17 = vshrl.u32 %v1330_v8, 16  ;;  %8732 = vmatprep.subr.bf16.mxu1 %v9730_v3  ;;  %8844 = vmatprep.subr.bf16.mxu0 %v9732_v28 }
  0x3b   : > { %v1127_v18 = vsel %vm10145_vm15, %v835_v55, %v1126_v12  ;;  %1129 = vst [vmem:[#allocation2 + $0x58] sm:$0xf] %v844_v11  ;;  %v1672_v20 = vsel %vm10145_vm15, %v1383_v56, %v1671_v15  ;;  %v10272_v22 = vrot.slane %v978_v5, 7  ;;  %v1331_v23 = vld [vmem:[%s10077_s25 + $0x54] sm:$0xf]  ;;  %v1521_v24 = vshll.u32 %v1330_v8, 16 }
  0x3c   : > { %1128 = vst [vmem:[#allocation2 + $0x50] sm:$0xf] %v1127_v18  ;;  %v1392_v25 = vsel %vm10123_vm14, %v1384_v4, %v1391_v14  ;;  %1673 = vst [vmem:[#allocation2 + $0x54] sm:$0xf] %v1672_v20  ;;  %v975_v26 = vor.u32 %v973_v2, %v972_v16  ;;  %v976_v27 = vrot.slane %v972_v16, 4  ;;  %v1520_v6 = vrot.slane %v1518_v17, 7 }
  0x3d   : > { %v9706_v30 = vld [vmem:[#allocation2 + $0xdc] ss:$8 sps:$4 sm:$0xff]   ;;  %v9709_v31 = vld [vmem:[#allocation2 + $0xd8] ss:$8 sps:$4 sm:$0xff]   ;;  %1674 = vst [vmem:[#allocation2 + $0x5c] sm:$0xf] %v1392_v25  ;;  %v983_v32 = vor.u32 %v981_v7, %v10272_v22  ;;  %8733 = vmatpush3.bf16.msra.mxu1 %v9731_v10 }
  0x3e   : > { %v1526_v33 = vshrl.u32 %v1331_v23, 16  ;;  %v1523_v35 = vor.u32 %v1521_v24, %v1520_v6  ;;  %v1529_v36 = vshll.u32 %v1331_v23, 16  ;;  %4072 = vmatprep.mubr.bf16.mxu1 %v9706_v30  ;;  %v1524_v40 = vrot.slane %v1520_v6, 4  ;;  %v766_v29 = vld [vmem:[%s10068_s19 + $0x18] sm:$0xf]  ;;  %v9733_v12 = vld [vmem:[%s12721_s6 + $0x2a0] sm:$0xff]  }
  0x3f   : > { %v984_v38 = vsel %vm10123_vm14, %v976_v27, %v983_v32  ;;  %v1162_v39 = vld [vmem:[#allocation2 + $0xf0] sm:$0xf]  ;;  %v1707_v45 = vld [vmem:[#allocation2 + $0xf4] sm:$0xf]  ;;  %4073 = vmatmul.mubr.bf16.gmra.mxu1 %v9709_v31  ;;  %v767_v49 = vld [vmem:[%s10068_s19 + $0x1c] sm:$0xf]  ;;  %8845 = vmatpush3.bf16.msra.mxu0 %v9733_v12 }
  0x40   : > { %v10283_v42 = vrot.slane %v1526_v33, 7  ;;  %v1163_v46 = vsel %vm10145_vm15, %v975_v26, %v1162_v39  ;;  %1165 = vst [vmem:[#allocation2 + $0xf8] sm:$0xf] %v984_v38  ;;  %v1708_v47 = vsel %vm10145_vm15, %v1523_v35, %v1707_v45  ;;  %v845_v51 = vrot.slane %v10243_v50, 4  ;;  %v1316_v55 = vld [vmem:[%s10077_s25 + $0x18] sm:$0xf] }
  0x41   : > { %1164 = vst [vmem:[#allocation2 + $0xf0] sm:$0xf] %v1163_v46  ;;  %1709 = vst [vmem:[#allocation2 + $0xf4] sm:$0xf] %v1708_v47  ;;  %v847_v52 = vshrl.u32 %v766_v29, 16  ;;  %v850_v53 = vshll.u32 %v766_v29, 16 }
  0x42   : > { %v1531_v48 = vor.u32 %v1529_v36, %v10283_v42  ;;  %v856_v54 = vshrl.u32 %v767_v49, 16  ;;  %v859_v43 = vshll.u32 %v767_v49, 16  ;;  %v1317_v59 = vld [vmem:[%s10077_s25 + $0x1c] sm:$0xf]  ;;  %v1395_v60 = vshrl.u32 %v1316_v55, 16  ;;  %s13205_s16 = smov (!%p7760_p8, %s11103_s16), 31 }
  0x43   : > { %v1398_v61 = vshll.u32 %v1316_v55, 16  ;;  %v9718_v0 = vld [vmem:[#allocation2 + $0x50] ss:$8 sps:$4 sm:$0xff]   ;;  %v849_v1 = vrot.slane %v847_v52, 7  ;;  %v1393_v50 = vrot.slane %v10255_v63, 4  ;;  %v1404_v56 = vshrl.u32 %v1317_v59, 16 }
  0x44   : > { %v1532_v57 = vsel %vm10123_vm14, %v1524_v40, %v1531_v48  ;;  %v9714_v62 = vld [vmem:[#allocation2 + $0x54] ss:$8 sps:$4 sm:$0xff]   ;;  %v10297_v2 = vrot.slane %v856_v54, 7  ;;  %v1397_v3 = vrot.slane %v1395_v60, 7  ;;  %v782_v4 = vld [vmem:[%s10068_s19 + $0x58] sm:$0xf] }
  0x45   : > { %1710 = vst [vmem:[#allocation2 + $0xfc] sm:$0xf] %v1532_v57  ;;  %4016 = vmatprep.mubr.bf16.mxu0 %v9714_v62  ;;  %v852_v5 = vor.u32 %v850_v53, %v849_v1  ;;  %v854_v7 = vrot.slane %v849_v1, 4  ;;  %v1407_v8 = vshll.u32 %v1317_v59, 16  ;;  %v783_v10 = vld [vmem:[%s10068_s19 + $0x5c] sm:$0xf] }
  0x46   : > { %v987_v11 = vshrl.u32 %v782_v4, 16  ;;  %4017 = vmatmul.mubr.bf16.gmra.mxu0 %v9718_v0  ;;  %v861_v14 = vor.u32 %v859_v43, %v10297_v2  ;;  %v1400_v15 = vor.u32 %v1398_v61, %v1397_v3  ;;  %v1402_v63 = vrot.slane %v1397_v3, 4  ;;  %v1332_v17 = vld [vmem:[%s10077_s25 + $0x58] sm:$0xf]  ;;  %v1333_v25 = vld [vmem:[%s10077_s25 + $0x5c] sm:$0xf] }
  0x47   : > { %v985_v16 = vrot.slane %v10272_v22, 4  ;;  %v853_v18 = vsel %vm10123_vm14, %v845_v51, %v852_v5  ;;  %v10310_v20 = vrot.slane %v1404_v56, 7  ;;  %v990_v24 = vshll.u32 %v782_v4, 16  ;;  %v9740_v29 = vld [vmem:[%s12721_s6 + $0x258] sm:$0xff]   ;;  %v768_v53 = vld [vmem:[%s10068_s19 + $0x20] sm:$0xf] }
  0x48   : > { %v989_v23 = vrot.slane %v987_v11, 7  ;;  %v862_v26 = vsel %vm10123_vm14, %v854_v7, %v861_v14  ;;  %1130 = vst [vmem:[#allocation2 + $0x60] sm:$0xf] %v853_v18  ;;  %v1401_v27 = vsel %vm10123_vm14, %v1393_v50, %v1400_v15  ;;  %v996_v6 = vshrl.u32 %v783_v10, 16  ;;  %v9719_v33 = vld [vmem:[#allocation2 + $0xf0] ss:$8 sps:$4 sm:$0xff]   ;;  %8734 = vmatprep.subr.bf16.mxu1 %v9740_v29 }
  0x49   : > { %v999_v28 = vshll.u32 %v783_v10, 16  ;;  %1131 = vst [vmem:[#allocation2 + $0x68] sm:$0xf] %v862_v26  ;;  %v1409_v22 = vor.u32 %v1407_v8, %v10310_v20  ;;  %1675 = vst [vmem:[#allocation2 + $0x64] sm:$0xf] %v1401_v27  ;;  %v1535_v40 = vshrl.u32 %v1332_v17, 16 }
  0x4a   : > { %v992_v30 = vor.u32 %v990_v24, %v989_v23  ;;  %v994_v31 = vrot.slane %v989_v23, 4  ;;  %v10318_v35 = vrot.slane %v996_v6, 7  ;;  %v1533_v46 = vrot.slane %v10283_v42, 4  ;;  %v704_v52 = vld [vmem:[#allocation2 + $0x78] sm:$0x11]  ;;  %s7765_s27 = sshll.u32 %s13205_s16, 2 }
  0x4b   : > { %v1410_v38 = vsel %vm10123_vm14, %v1402_v63, %v1409_v22  ;;  %v1538_v47 = vshll.u32 %v1332_v17, 16  ;;  %v1544_v48 = vshrl.u32 %v1333_v25, 16  ;;  %v1537_v49 = vrot.slane %v1535_v40, 7  ;;  %v769_v57 = vld [vmem:[%s10068_s19 + $0x24] sm:$0xf]  ;;  %v9741_v59 = vld [vmem:[%s12721_s6 + $0x218] sm:$0xff]   ;;  %s11268_s20 = sadd.s32 %s7765_s27, %s10044_s28 }
  0x4c   : > { %v9716_v32 = vld [vmem:[#allocation2 + $0xf4] ss:$8 sps:$4 sm:$0xff]   ;;  %v993_v39 = vsel %vm10123_vm14, %v985_v16, %v992_v30  ;;  %1676 = vst [vmem:[#allocation2 + $0x6c] sm:$0xf] %v1410_v38  ;;  %v1001_v45 = vor.u32 %v999_v28, %v10318_v35  ;;  %v1547_v51 = vshll.u32 %v1333_v25, 16  ;;  %v705_v42 = vsel %vm10096_vm10, 0, %v704_v52  ;;  %8735 = vmatpush3.bf16.msra.mxu1 %v9741_v59 }
  0x4d   : > { %4080 = vmatprep.mubr.bf16.mxu1 %v9716_v32  ;;  %1166 = vst [vmem:[#allocation2 + $0x100] sm:$0xf] %v993_v39  ;;  %v10333_v55 = vrot.slane %v1544_v48, 7  ;;  %v865_v43 = vshrl.u32 %v768_v53, 16  ;;  %v1540_v60 = vor.u32 %v1538_v47, %v1537_v49  ;;  %v1542_v61 = vrot.slane %v1537_v49, 4  ;;  %v9742_v50 = vld [vmem:[%s12721_s6 + $0x2d8] sm:$0xff]  }
  0x4e   : > { %4081 = vmatmul.mubr.bf16.gmra.mxu1 %v9719_v33  ;;  %v1002_v54 = vsel %vm10123_vm14, %v994_v31, %v1001_v45  ;;  %706 = vst [vmem:[#allocation2 + $0x78] sm:$0x11] %v705_v42  ;;  %v868_v62 = vshll.u32 %v768_v53, 16  ;;  %v873_v0 = vshrl.u32 %v769_v57, 16  ;;  %v1318_v1 = vld [vmem:[%s10077_s25 + $0x20] sm:$0xf]  ;;  %8846 = vmatprep.subr.bf16.mxu0 %v9742_v50 }
  0x4f   : > { %1167 = vst [vmem:[#allocation2 + $0x108] sm:$0xf] %v1002_v54  ;;  %v1549_v56 = vor.u32 %v1547_v51, %v10333_v55  ;;  %v867_v4 = vrot.slane %v865_v43, 7  ;;  %v876_v5 = vshll.u32 %v769_v57, 16  ;;  %v1319_v7 = vld [vmem:[%s10077_s25 + $0x24] sm:$0xf]  ;;  %v1541_v8 = vsel %vm10123_vm14, %v1533_v46, %v1540_v60 }
  0x50   : > { %v10350_v10 = vrot.slane %v873_v0, 7  ;;  %v1413_v11 = vshrl.u32 %v1318_v1, 16  ;;  %v1416_v12 = vshll.u32 %v1318_v1, 16  ;;  %v716_v14 = vld [vmem:[#allocation2 + $0x118] sm:$0x11]  ;;  %v1421_v17 = vshrl.u32 %v1319_v7, 16 }
  0x51   : > { %v9743_v15 = vld [vmem:[%s12721_s6 + $0x298] sm:$0xff]   ;;  %v1550_v63 = vsel %vm10123_vm14, %v1542_v61, %v1549_v56  ;;  %1711 = vst [vmem:[#allocation2 + $0x104] sm:$0xf] %v1541_v8  ;;  %v871_v16 = vrot.slane %v867_v4, 4  ;;  %v784_v18 = vld [vmem:[%s10068_s19 + $0x60] sm:$0xf]  ;;  %v870_v26 = vor.u32 %v868_v62, %v867_v4 }
  0x52   : > { %v785_v23 = vld [vmem:[%s10068_s19 + $0x64] sm:$0xf]  ;;  %1712 = vst [vmem:[#allocation2 + $0x10c] sm:$0xf] %v1550_v63  ;;  %v9728_v25 = vld [vmem:[#allocation2 + $0x60] ss:$8 sps:$4 sm:$0xff]   ;;  %v878_v27 = vor.u32 %v876_v5, %v10350_v10  ;;  %8847 = vmatpush3.bf16.msra.mxu0 %v9743_v15 }
  0x53   : > { %v9724_v24 = vld [vmem:[#allocation2 + $0x64] ss:$8 sps:$4 sm:$0xff]   ;;  %v1415_v6 = vrot.slane %v1413_v11, 7  ;;  %v10360_v28 = vrot.slane %v1421_v17, 7  ;;  %v1424_v22 = vshll.u32 %v1319_v7, 16  ;;  %v717_v30 = vsel %vm10096_vm10, 0, %v716_v14 }
  0x54   : > { %v1005_v31 = vshrl.u32 %v784_v18, 16  ;;  %v1334_v32 = vld [vmem:[%s10077_s25 + $0x60] sm:$0xf]  ;;  %4024 = vmatprep.mubr.bf16.mxu0 %v9724_v24  ;;  %v879_v33 = vsel %vm10123_vm14, %v871_v16, %v878_v27  ;;  %718 = vst [vmem:[#allocation2 + $0x118] sm:$0x11] %v717_v30  ;;  %v1008_v40 = vshll.u32 %v784_v18, 16 }
  0x55   : > { %v1418_v38 = vor.u32 %v1416_v12, %v1415_v6  ;;  %v1419_v39 = vrot.slane %v1415_v6, 4  ;;  %v1335_v45 = vld [vmem:[%s10077_s25 + $0x64] sm:$0xf]  ;;  %4025 = vmatmul.mubr.bf16.gmra.mxu0 %v9728_v25  ;;  %v1135_v46 = vld [vmem:[#allocation2 + $0x78] sm:$0xf]  ;;  %v1426_v47 = vor.u32 %v1424_v22, %v10360_v28  ;;  %v1013_v49 = vshrl.u32 %v785_v23, 16 }
  0x56   : > { %1138 = vst [vmem:[#allocation2 + $0x80] sm:$0xf] %v879_v33  ;;  %v1680_v48 = vld [vmem:[#allocation2 + $0x7c] sm:$0xf]  ;;  %v1007_v29 = vrot.slane %v1005_v31, 7  ;;  %v1136_v51 = vsel %vm10145_vm15, %v870_v26, %v1135_v46  ;;  %v1016_v53 = vshll.u32 %v785_v23, 16 }
  0x57   : > { %v1681_v52 = vsel %vm10145_vm15, %v1418_v38, %v1680_v48  ;;  %v1553_v54 = vshrl.u32 %v1334_v32, 16  ;;  %1137 = vst [vmem:[#allocation2 + $0x78] sm:$0xf] %v1136_v51  ;;  %v1427_v42 = vsel %vm10123_vm14, %v1419_v39, %v1426_v47  ;;  %v10375_v59 = vrot.slane %v1013_v49, 7  ;;  %v9749_v1 = vld [vmem:[%s12721_s6 + $0x250] sm:$0xff]   ;;  %p686_p9 = scmp.eq.s32.totalorder %s9921_s30, 0 }
  0x58   : > { %1682 = vst [vmem:[#allocation2 + $0x7c] sm:$0xf] %v1681_v52  ;;  %v1010_v57 = vor.u32 %v1008_v40, %v1007_v29  ;;  %v1011_v43 = vrot.slane %v1007_v29, 4  ;;  %1683 = vst [vmem:[#allocation2 + $0x84] sm:$0xf] %v1427_v42  ;;  %v1556_v61 = vshll.u32 %v1334_v32, 16  ;;  %8736 = vmatprep.subr.bf16.mxu1 %v9749_v1 }
  0x59   : > { %v1555_v60 = vrot.slane %v1553_v54, 7  ;;  %v1561_v62 = vshrl.u32 %v1335_v45, 16  ;;  %v1564_v0 = vshll.u32 %v1335_v45, 16  ;;  %v9726_v56 = vld [vmem:[#allocation2 + $0x104] ss:$8 sps:$4 sm:$0xff]   ;;  %v1018_v5 = vor.u32 %v1016_v53, %v10375_v59  ;;  %v9750_v54 = vld [vmem:[%s12721_s6 + $0x210] sm:$0xff]  }
  0x5a   : > { %v9729_v4 = vld [vmem:[#allocation2 + $0x100] ss:$8 sps:$4 sm:$0xff]   ;;  %4088 = vmatprep.mubr.bf16.mxu1 %v9726_v56  ;;  %v771_v23 = vld [vmem:[%s10068_s19 + $0x2c] sm:$0xf]  ;;  %v880_v25 = vrot.slane %v10350_v10, 4  ;;  %v1428_v10 = vrot.slane %v10360_v28, 4  ;;  %8737 = vmatpush3.bf16.msra.mxu1 %v9750_v54 }
  0x5b   : > { %v1558_v7 = vor.u32 %v1556_v61, %v1555_v60  ;;  %v1559_v8 = vrot.slane %v1555_v60, 4  ;;  %v10382_v11 = vrot.slane %v1561_v62, 7  ;;  %v1019_v12 = vsel %vm10123_vm14, %v1011_v43, %v1018_v5  ;;  %v1171_v14 = vld [vmem:[#allocation2 + $0x118] sm:$0xf]  ;;  %v1716_v15 = vld [vmem:[#allocation2 + $0x11c] sm:$0xf]  ;;  %4089 = vmatmul.mubr.bf16.gmra.mxu1 %v9729_v4 }
  0x5c   : > { %v1172_v63 = vsel %vm10145_vm15, %v1010_v57, %v1171_v14  ;;  %1174 = vst [vmem:[#allocation2 + $0x120] sm:$0xf] %v1019_v12  ;;  %v770_v18 = vld [vmem:[%s10068_s19 + $0x28] sm:$0xf]  ;;  %v891_v6 = vshrl.u32 %v771_v23, 16  ;;  %v894_v31 = vshll.u32 %v771_v23, 16 }
  0x5d   : > { %v1566_v16 = vor.u32 %v1564_v0, %v10382_v11  ;;  %v1717_v17 = vsel %vm10145_vm15, %v1558_v7, %v1716_v15  ;;  %v1320_v24 = vld [vmem:[%s10077_s25 + $0x28] sm:$0xf]  ;;  %1173 = vst [vmem:[#allocation2 + $0x118] sm:$0xf] %v1172_v63  ;;  %v882_v26 = vshrl.u32 %v770_v18, 16  ;;  %v885_v27 = vshll.u32 %v770_v18, 16 }
  0x5e   : > { %1718 = vst [vmem:[#allocation2 + $0x11c] sm:$0xf] %v1717_v17  ;;  %v1321_v22 = vld [vmem:[%s10077_s25 + $0x2c] sm:$0xf]  ;;  %v1430_v32 = vshrl.u32 %v1320_v24, 16  ;;  %v1433_v33 = vshll.u32 %v1320_v24, 16 }
  0x5f   : > { %v1567_v30 = vsel %vm10123_vm14, %v1559_v8, %v1566_v16  ;;  %v786_v38 = vld [vmem:[%s10068_s19 + $0x68] sm:$0xf]  ;;  %v9734_v39 = vld [vmem:[#allocation2 + $0x7c] ss:$8 sps:$4 sm:$0xff]   ;;  %v9738_v40 = vld [vmem:[#allocation2 + $0x78] ss:$8 sps:$4 sm:$0xff]  }
  0x60   : > { %1719 = vst [vmem:[#allocation2 + $0x124] sm:$0xf] %v1567_v30  ;;  %v884_v45 = vrot.slane %v882_v26, 7  ;;  %v10399_v46 = vrot.slane %v891_v6, 7  ;;  %v1432_v47 = vrot.slane %v1430_v32, 7  ;;  %v1439_v48 = vshrl.u32 %v1321_v22, 16  ;;  %4032 = vmatprep.mubr.bf16.mxu0 %v9734_v39 }
  0x61   : > { %v1442_v51 = vshll.u32 %v1321_v22, 16  ;;  %v787_v52 = vld [vmem:[%s10068_s19 + $0x6c] sm:$0xf]  ;;  %v1022_v53 = vshrl.u32 %v786_v38, 16  ;;  %4033 = vmatmul.mubr.bf16.gmra.mxu0 %v9738_v40  ;;  %v1020_v28 = vrot.slane %v10375_v59, 4  ;;  %v1025_v1 = vshll.u32 %v786_v38, 16 }
  0x62   : > { %v887_v29 = vor.u32 %v885_v27, %v884_v45  ;;  %v889_v49 = vrot.slane %v884_v45, 4  ;;  %v896_v42 = vor.u32 %v894_v31, %v10399_v46  ;;  %v1435_v57 = vor.u32 %v1433_v33, %v1432_v47  ;;  %v1336_v60 = vld [vmem:[%s10077_s25 + $0x68] sm:$0xf]  ;;  %v1337_v56 = vld [vmem:[%s10077_s25 + $0x6c] sm:$0xf]  ;;  %v9751_v4 = vld [vmem:[%s12721_s6 + $0x2d0] sm:$0xff]  }
  0x63   : > { %v1437_v43 = vrot.slane %v1432_v47, 4  ;;  %v10411_v62 = vrot.slane %v1439_v48, 7  ;;  %v1024_v0 = vrot.slane %v1022_v53, 7  ;;  %v1031_v7 = vshrl.u32 %v787_v52, 16  ;;  %v9752_v12 = vld [vmem:[%s12721_s6 + $0x290] sm:$0xff]   ;;  %8848 = vmatprep.subr.bf16.mxu0 %v9751_v4  ;;  %v9758_v32 = vld [vmem:[%s12721_s6 + $0x248] sm:$0xff]  }
  0x64   : > { %v888_v61 = vsel %vm10123_vm14, %v880_v25, %v887_v29  ;;  %v897_v5 = vsel %vm10123_vm14, %v889_v49, %v896_v42  ;;  %v1436_v59 = vsel %vm10123_vm14, %v1428_v10, %v1435_v57  ;;  %v1034_v8 = vshll.u32 %v787_v52, 16  ;;  %v9739_v18 = vld [vmem:[#allocation2 + $0x118] ss:$8 sps:$4 sm:$0xff]   ;;  %8849 = vmatpush3.bf16.msra.mxu0 %v9752_v12  ;;  %v772_v40 = vld [vmem:[%s10068_s19 + $0x30] sm:$0xf]  ;;  %8738 = vmatprep.subr.bf16.mxu1 %v9758_v32  ;;  %v9759_v29 = vld [vmem:[%s12721_s6 + $0x208] sm:$0xff]  }
  0x65   : > { %1139 = vst [vmem:[#allocation2 + $0x88] sm:$0xf] %v888_v61  ;;  %1140 = vst [vmem:[#allocation2 + $0x90] sm:$0xf] %v897_v5  ;;  %v1444_v15 = vor.u32 %v1442_v51, %v10411_v62  ;;  %v1027_v63 = vor.u32 %v1025_v1, %v1024_v0  ;;  %v1029_v16 = vrot.slane %v1024_v0, 4  ;;  %v10426_v23 = vrot.slane %v1031_v7, 7  ;;  %8739 = vmatpush3.bf16.msra.mxu1 %v9759_v29 }
  0x66   : > { %1684 = vst [vmem:[#allocation2 + $0x8c] sm:$0xf] %v1436_v59  ;;  %v1570_v27 = vshrl.u32 %v1336_v60, 16  ;;  %v1568_v22 = vrot.slane %v10382_v11, 4  ;;  %v1573_v30 = vshll.u32 %v1336_v60, 16  ;;  %v1579_v31 = vshrl.u32 %v1337_v56, 16 }
  0x67   : > { %v9736_v17 = vld [vmem:[#allocation2 + $0x11c] ss:$8 sps:$4 sm:$0xff]   ;;  %v1445_v25 = vsel %vm10123_vm14, %v1437_v43, %v1444_v15  ;;  %v1028_v26 = vsel %vm10123_vm14, %v1020_v28, %v1027_v63  ;;  %v1036_v6 = vor.u32 %v1034_v8, %v10426_v23  ;;  %v1582_v38 = vshll.u32 %v1337_v56, 16  ;;  %v773_v47 = vld [vmem:[%s10068_s19 + $0x34] sm:$0xf]  ;;  %v9760_v42 = vld [vmem:[%s12721_s6 + $0x2c8] sm:$0xff]  }
  0x68   : > { %4096 = vmatprep.mubr.bf16.mxu1 %v9736_v17  ;;  %1685 = vst [vmem:[#allocation2 + $0x94] sm:$0xf] %v1445_v25  ;;  %1175 = vst [vmem:[#allocation2 + $0x128] sm:$0xf] %v1028_v26  ;;  %v1572_v33 = vrot.slane %v1570_v27, 7  ;;  %v10441_v10 = vrot.slane %v1579_v31, 7  ;;  %8850 = vmatprep.subr.bf16.mxu0 %v9760_v42 }
  0x69   : > { %4097 = vmatmul.mubr.bf16.gmra.mxu1 %v9739_v18  ;;  %v707_v39 = vld [vmem:[#allocation2 + $0xa0] sm:$0x11]  ;;  %v1037_v45 = vsel %vm10123_vm14, %v1029_v16, %v1036_v6  ;;  %v900_v48 = vshrl.u32 %v772_v40, 16  ;;  %v903_v52 = vshll.u32 %v772_v40, 16  ;;  %v908_v53 = vshrl.u32 %v773_v47, 16  ;;  %v9761_v7 = vld [vmem:[%s12721_s6 + $0x288] sm:$0xff]  }
  0x6a   : > { %v708_v11 = vsel %vm10096_vm10, 0, %v707_v39  ;;  %1176 = vst [vmem:[#allocation2 + $0x130] sm:$0xf] %v1037_v45  ;;  %v1575_v49 = vor.u32 %v1573_v30, %v1572_v33  ;;  %v1577_v51 = vrot.slane %v1572_v33, 4  ;;  %v1322_v54 = vld [vmem:[%s10077_s25 + $0x30] sm:$0xf]  ;;  %v1584_v28 = vor.u32 %v1582_v38, %v10441_v10  ;;  %8851 = vmatpush3.bf16.msra.mxu0 %v9761_v7 }
  0x6b   : > { %709 = vst [vmem:[#allocation2 + $0xa0] sm:$0x11] %v708_v11  ;;  %v902_v60 = vrot.slane %v900_v48, 7  ;;  %v911_v61 = vshll.u32 %v773_v47, 16  ;;  %v1323_v0 = vld [vmem:[%s10077_s25 + $0x34] sm:$0xf] }
  0x6c   : > { %v1576_v1 = vsel %vm10123_vm14, %v1568_v22, %v1575_v49  ;;  %v10460_v56 = vrot.slane %v908_v53, 7  ;;  %v1448_v4 = vshrl.u32 %v1322_v54, 16  ;;  %v1451_v5 = vshll.u32 %v1322_v54, 16  ;;  %v719_v59 = vld [vmem:[#allocation2 + $0x140] sm:$0x11]  ;;  %s7767_s21 = sshll.u32 %s11268_s20, 2 }
  0x6d   : > { %v10454_v43 = vld [vmem:[#allocation2 + $0x88] sm:$0xff]  ;;  %v1585_v8 = vsel %vm10123_vm14, %v1577_v51, %v1584_v28  ;;  %1720 = vst [vmem:[#allocation2 + $0x12c] sm:$0xf] %v1576_v1  ;;  %v905_v12 = vor.u32 %v903_v52, %v902_v60  ;;  %v906_v15 = vrot.slane %v902_v60, 4  ;;  %v1456_v63 = vshrl.u32 %v1323_v0, 16  ;;  %v9767_v7 = vld [vmem:[%s12721_s6 + $0x240] sm:$0xff]   ;;  %s11320_s23 = scalar_lea.vmem %s12716_s1, %s7767_s21  ;;  %s11325_s29 = scalar_lea.vmem %s12719_s4, %s7767_s21 }
  0x6e   : > { %v788_v16 = vld [vmem:[%s10068_s19 + $0x70] sm:$0xf]  ;;  %v789_v17 = vld [vmem:[%s10068_s19 + $0x74] sm:$0xf]  ;;  %1721 = vst [vmem:[#allocation2 + $0x134] sm:$0xf] %v1585_v8  ;;  %v913_v25 = vor.u32 %v911_v61, %v10460_v56  ;;  %8740 = vmatprep.subr.bf16.mxu1 %v9767_v7 }
  0x6f   : > { %v10469_v18 = vld [vmem:[#allocation2 + $0x90] sm:$0xff]  ;;  %v1450_v26 = vrot.slane %v1448_v4, 7  ;;  %v1459_v27 = vshll.u32 %v1323_v0, 16  ;;  %v720_v6 = vsel %vm10096_vm10, 0, %v719_v59  ;;  %v10483_v32 = vrot.slane %v1456_v63, 7  ;;  %v10631_v8 = vld [vmem:[#allocation2 + $0x58] sm:$0xff] }
  0x70   : > { %v1338_v22 = vld [vmem:[%s10077_s25 + $0x70] sm:$0xf]  ;;  %v10477_v30 = vcombine.high %v10454_v43, %v10469_v18  ;;  %v10481_v31 = vcombine.low %v10454_v43, %v10469_v18  ;;  %721 = vst [vmem:[#allocation2 + $0x140] sm:$0x11] %v720_v6  ;;  %v1040_v33 = vshrl.u32 %v788_v16, 16  ;;  %v914_v39 = vsel %vm10123_vm14, %v906_v15, %v913_v25  ;;  %s8482_s16 = sadd.s32 8, %s10025_s18 }
  0x71   : > { %v1339_v38 = vld [vmem:[%s10077_s25 + $0x74] sm:$0xf]  ;;  %v1453_v40 = vor.u32 %v1451_v5, %v1450_v26  ;;  %v1454_v45 = vrot.slane %v1450_v26, 4  ;;  %v1043_v11 = vshll.u32 %v788_v16, 16  ;;  %1147 = vst [vmem:[#allocation2 + $0xa8] sm:$0xf] %v914_v39  ;;  %v1461_v48 = vor.u32 %v1459_v27, %v10483_v32 }
  0x72   : > { %12869 = vst [vmem:[#allocation8_spill] sm:$0xff] %v10477_v30  ;;  %12870 = vst [vmem:[#allocation9_spill] sm:$0xff] %v10481_v31  ;;  %4040 = vmatprep.mubr.bf16.mxu0 %v10477_v30  ;;  %v1144_v47 = vld [vmem:[#allocation2 + $0xa0] sm:$0xf]  ;;  %v1689_v29 = vld [vmem:[#allocation2 + $0xa4] sm:$0xf] }
  0x73   : > { %v1042_v49 = vrot.slane %v1040_v33, 7  ;;  %v1048_v51 = vshrl.u32 %v789_v17, 16  ;;  %4041 = vmatmul.mubr.bf16.gmra.mxu0 %v10481_v31  ;;  %v1145_v52 = vsel %vm10145_vm15, %v905_v12, %v1144_v47  ;;  %v1690_v53 = vsel %vm10145_vm15, %v1453_v40, %v1689_v29  ;;  %v9748_v15 = vld [vmem:[#allocation2 + $0x128] ss:$8 sps:$4 sm:$0xff]   ;;  %v774_v33 = vld [vmem:[%s10068_s19 + $0x38] sm:$0xf] }
  0x74   : > { %v1051_v54 = vshll.u32 %v789_v17, 16  ;;  %v1588_v42 = vshrl.u32 %v1338_v22, 16  ;;  %1146 = vst [vmem:[#allocation2 + $0xa0] sm:$0xf] %v1145_v52  ;;  %v1462_v28 = vsel %vm10123_vm14, %v1454_v45, %v1461_v48  ;;  %1691 = vst [vmem:[#allocation2 + $0xa4] sm:$0xf] %v1690_v53 }
  0x75   : > { %v1045_v60 = vor.u32 %v1043_v11, %v1042_v49  ;;  %v1046_v61 = vrot.slane %v1042_v49, 4  ;;  %v10497_v0 = vrot.slane %v1048_v51, 7  ;;  %1692 = vst [vmem:[#allocation2 + $0xac] sm:$0xf] %v1462_v28  ;;  %v1591_v4 = vshll.u32 %v1338_v22, 16  ;;  %p11847_p10 = scmp.lt.s32.totalorder %s8482_s16, 31 }
  0x76   : > { %v1590_v1 = vrot.slane %v1588_v42, 7  ;;  %v1596_v5 = vshrl.u32 %v1339_v38, 16  ;;  %v1599_v59 = vshll.u32 %v1339_v38, 16  ;;  %v9745_v12 = vld [vmem:[#allocation2 + $0x12c] ss:$8 sps:$4 sm:$0xff]   ;;  %v917_v45 = vshrl.u32 %v774_v33, 16 }
  0x77   : > { %v1053_v63 = vor.u32 %v1051_v54, %v10497_v0  ;;  %v1180_v16 = vld [vmem:[#allocation2 + $0x140] sm:$0xf]  ;;  %v1725_v27 = vld [vmem:[#allocation2 + $0x144] sm:$0xf]  ;;  %4104 = vmatprep.mubr.bf16.mxu1 %v9745_v12  ;;  %v775_v38 = vld [vmem:[%s10068_s19 + $0x3c] sm:$0xf] }
  0x78   : > { %v1593_v17 = vor.u32 %v1591_v4, %v1590_v1  ;;  %v1594_v25 = vrot.slane %v1590_v1, 4  ;;  %v10504_v26 = vrot.slane %v1596_v5, 7  ;;  %v1181_v22 = vsel %vm10145_vm15, %v1045_v60, %v1180_v16  ;;  %4105 = vmatmul.mubr.bf16.gmra.mxu1 %v9748_v15  ;;  %v1324_v47 = vld [vmem:[%s10077_s25 + $0x38] sm:$0xf]  ;;  %v1325_v48 = vld [vmem:[%s10077_s25 + $0x3c] sm:$0xf] }
  0x79   : > { %v1054_v6 = vsel %vm10123_vm14, %v1046_v61, %v1053_v63  ;;  %1182 = vst [vmem:[#allocation2 + $0x140] sm:$0xf] %v1181_v22  ;;  %v920_v11 = vshll.u32 %v774_v33, 16  ;;  %v915_v29 = vrot.slane %v10460_v56, 4  ;;  %v926_v49 = vshrl.u32 %v775_v38, 16  ;;  %v9768_v12 = vld [vmem:[%s12721_s6 + $0x200] sm:$0xff]  }
  0x7a   : > { %1183 = vst [vmem:[#allocation2 + $0x148] sm:$0xf] %v1054_v6  ;;  %v1601_v39 = vor.u32 %v1599_v59, %v10504_v26  ;;  %v1726_v40 = vsel %vm10145_vm15, %v1593_v17, %v1725_v27  ;;  %v929_v51 = vshll.u32 %v775_v38, 16  ;;  %v1465_v52 = vshrl.u32 %v1324_v47, 16  ;;  %v790_v53 = vld [vmem:[%s10068_s19 + $0x78] sm:$0xf]  ;;  %8741 = vmatpush3.bf16.msra.mxu1 %v9768_v12 }
  0x7b   : > { %1727 = vst [vmem:[#allocation2 + $0x144] sm:$0xf] %v1726_v40  ;;  %v10519_v54 = vld [vmem:[#allocation2 + $0xa0] sm:$0xff]  ;;  %v919_v28 = vrot.slane %v917_v45, 7  ;;  %v1468_v60 = vshll.u32 %v1324_v47, 16  ;;  %v1474_v61 = vshrl.u32 %v1325_v48, 16 }
  0x7c   : > { %v1602_v42 = vsel %vm10123_vm14, %v1594_v25, %v1601_v39  ;;  %v791_v1 = vld [vmem:[%s10068_s19 + $0x7c] sm:$0xf]  ;;  %v10524_v4 = vld [vmem:[#allocation2 + $0xa8] sm:$0xff]  ;;  %v10526_v5 = vrot.slane %v926_v49, 7  ;;  %v1463_v56 = vrot.slane %v10483_v32, 4  ;;  %v1467_v59 = vrot.slane %v1465_v52, 7 }
  0x7d   : > { %1728 = vst [vmem:[#allocation2 + $0x14c] sm:$0xf] %v1602_v42  ;;  %v1477_v7 = vshll.u32 %v1325_v48, 16  ;;  %v10534_v15 = vcombine.high %v10519_v54, %v10524_v4  ;;  %v10538_v63 = vcombine.low %v10519_v54, %v10524_v4  ;;  %v922_v16 = vor.u32 %v920_v11, %v919_v28  ;;  %v1340_v25 = vld [vmem:[%s10077_s25 + $0x78] sm:$0xf]  ;;  %v9769_v32 = vld [vmem:[%s12721_s6 + $0x2c0] sm:$0xff]  }
  0x7e   : > { %v924_v17 = vrot.slane %v919_v28, 4  ;;  %v1341_v27 = vld [vmem:[%s10077_s25 + $0x7c] sm:$0xf]  ;;  %v931_v22 = vor.u32 %v929_v51, %v10526_v5  ;;  %v1470_v33 = vor.u32 %v1468_v60, %v1467_v59  ;;  %v1472_v38 = vrot.slane %v1467_v59, 4  ;;  %8852 = vmatprep.subr.bf16.mxu0 %v9769_v32  ;;  %v9770_v47 = vld [vmem:[%s12721_s6 + $0x280] sm:$0xff]   ;;  %v1938_v6 = vld [vmem:[#allocation2 + $0x50] sm:$0xff] }
  0x7f   : > { %12871 = vst [vmem:[#allocation10_spill] sm:$0xff] %v10534_v15  ;;  %12872 = vst [vmem:[#allocation11_spill] sm:$0xff] %v10538_v63  ;;  %4048 = vmatprep.mubr.bf16.mxu0 %v10534_v15  ;;  %v923_v39 = vsel %vm10123_vm14, %v915_v29, %v922_v16  ;;  %v10550_v40 = vrot.slane %v1474_v61, 7  ;;  %v1057_v45 = vshrl.u32 %v790_v53, 16  ;;  %v1060_v11 = vshll.u32 %v790_v53, 16  ;;  %8853 = vmatpush3.bf16.msra.mxu0 %v9770_v47  ;;  %s13207_s16 = smov (!%p11847_p10, %s8482_s16), 31 }
  0x80   : > { %4049 = vmatmul.mubr.bf16.gmra.mxu0 %v10538_v63  ;;  %v932_v48 = vsel %vm10123_vm14, %v924_v17, %v931_v22  ;;  %1148 = vst [vmem:[#allocation2 + $0xb0] sm:$0xf] %v923_v39  ;;  %v1471_v49 = vsel %vm10123_vm14, %v1463_v56, %v1470_v33  ;;  %v1066_v51 = vshrl.u32 %v791_v1, 16  ;;  %v1069_v29 = vshll.u32 %v791_v1, 16  ;;  %v1933_v39 = vld [vmem:[#allocation2 + $0x28] sm:$0xff]  ;;  %s13209_s16 = smov (!%p11847_p10, %s13207_s16), 31 }
  0x81   : > { %1149 = vst [vmem:[#allocation2 + $0xb8] sm:$0xf] %v932_v48  ;;  %v1479_v53 = vor.u32 %v1477_v7, %v10550_v40  ;;  %1693 = vst [vmem:[#allocation2 + $0xb4] sm:$0xf] %v1471_v49  ;;  %v1055_v42 = vrot.slane %v10497_v0, 4  ;;  %v1059_v28 = vrot.slane %v1057_v45, 7 }
  0x82   : > { %v10563_v60 = vrot.slane %v1066_v51, 7  ;;  %v1605_v61 = vshrl.u32 %v1340_v25, 16  ;;  %v1608_v59 = vshll.u32 %v1340_v25, 16  ;;  %v1614_v12 = vshrl.u32 %v1341_v27, 16  ;;  %v9757_v17 = vld [vmem:[#allocation2 + $0x140] ss:$8 sps:$4 sm:$0xff]  }
  0x83   : > { %v1480_v1 = vsel %vm10123_vm14, %v1472_v38, %v1479_v53  ;;  %v1062_v56 = vor.u32 %v1060_v11, %v1059_v28  ;;  %v1064_v32 = vrot.slane %v1059_v28, 4  ;;  %v1603_v22 = vrot.slane %v10504_v26, 4  ;;  %v1934_v48 = vld [vmem:[#allocation2 + $0x30] sm:$0xff]  ;;  %v10574_v38 = vld [vmem:[#allocation2 + $0x38] sm:$0xff]  ;;  %s11299_s19 = scalar_select %p686_p9, 1, 0 }
  0x84   : > { %v9754_v16 = vld [vmem:[#allocation2 + $0x144] ss:$8 sps:$4 sm:$0xff]   ;;  %1694 = vst [vmem:[#allocation2 + $0xbc] sm:$0xf] %v1480_v1  ;;  %v1071_v7 = vor.u32 %v1069_v29, %v10563_v60  ;;  %v1607_v0 = vrot.slane %v1605_v61, 7  ;;  %v10569_v33 = vrot.slane %v1614_v12, 7 }
  0x85   : > { %4112 = vmatprep.mubr.bf16.mxu1 %v9754_v16  ;;  %v1063_v25 = vsel %vm10123_vm14, %v1055_v42, %v1062_v56  ;;  %v1617_v47 = vshll.u32 %v1341_v27, 16  ;;  %v2026_v11 = vshrl.u32 %v1933_v39, 16  ;;  %vm1978_vm0 = vsmask.f32 3328  ;;  %v2506_v16 = vld [vmem:[#allocation2 + $0x28] sm:$0xee] }
  0x86   : > { %4113 = vmatmul.mubr.bf16.gmra.mxu1 %v9757_v17  ;;  %v1072_v49 = vsel %vm10123_vm14, %v1064_v32, %v1071_v7  ;;  %1184 = vst [vmem:[#allocation2 + $0x150] sm:$0xf] %v1063_v25  ;;  %v1610_v26 = vor.u32 %v1608_v59, %v1607_v0  ;;  %v1612_v51 = vrot.slane %v1607_v0, 4  ;;  %vm1979_vm1 = vsmask.f32 7440  ;;  %v9771_v59 = vld [vmem:[%s12721_s6 + $0x78] sm:$0xff]  }
  0x87   : > { %1185 = vst [vmem:[#allocation2 + $0x158] sm:$0xf] %v1072_v49  ;;  %v1619_v29 = vor.u32 %v1617_v47, %v10569_v33  ;;  %v2028_v53 = vrot.slane %v2026_v11, 4  ;;  %v2029_v28 = vshll.u32 %v1933_v39, 16  ;;  %v2035_v42 = vshll.u32 %v1934_v48, 16  ;;  %vm10592_vm3 = vmor %vm1978_vm0, %vm1979_vm1  ;;  %8950 = vmatprep.subr.bf16.mxu1 %v9771_v59  ;;  %v10618_v59 = vld [vmem:[#allocation2 + $0x40] sm:$0xff] }
  0x88   : > { %v1611_v27 = vsel %vm10123_vm14, %v1603_v22, %v1610_v26  ;;  %v2039_v61 = vshrl.u32 %v1934_v48, 16  ;;  %v2045_v12 = vshll.u32 %v10574_v38, 16  ;;  %v10586_v1 = vld [vmem:[#allocation2 + $0xb0] sm:$0xff]  ;;  %vm2601_vm2 = vcmask 1042432   ;;  %s7772_s18 = sshll.u32 %s13209_s16, 2  ;;  %p687_p11 = scmp.eq.s32.totalorder %s9921_s30, 3 }
  0x89   : > { %v1620_v56 = vsel %vm10123_vm14, %v1612_v51, %v1619_v29  ;;  %1729 = vst [vmem:[#allocation2 + $0x154] sm:$0xf] %v1611_v27  ;;  %v2031_v32 = vrot.slane %v2029_v28, 5  ;;  %v12873_v7 = vmov 0  ;;  %v2037_v22 = vrot.slane %v2035_v42, 5  ;;  %s614_s17 = sadd.s32 %s7772_s18, %s10044_s28  ;;  %p679_p12 = scmp.lt.s32.totalorder %s9921_s30, 3 }
  0x8a   : > { %1730 = vst [vmem:[#allocation2 + $0x15c] sm:$0xf] %v1620_v56  ;;  %v12874_v7 = vsel %vm10592_vm3, 4294967295, %v12873_v7  ;;  %v2041_v0 = vrot.slane %v2039_v61, 4  ;;  %v2049_v39 = vshrl.u32 %v10574_v38, 16  ;;  %vm2602_vm4 = vcmask 1046532  }
  0x8b   : > { %12875 = vst [vmem:[#allocation12_spill] sm:$0xff] %v12874_v7  ;;  %v10597_v25 = vld [vmem:[#allocation2 + $0xb8] sm:$0xff]  ;;  %v2032_v47 = vor.u32 %v2031_v32, %v2028_v53  ;;  %vm10599_vm6 = vmor %vm2601_vm2, %vm2602_vm4  ;;  %v12876_v11 = vmov 0  ;;  %v7803_v49 = vrot.slane %v2506_v16, 9  ;;  %v2619_v26 = vrot.slane %v1934_v48, 5  ;;  %s7774_s27 = sshll.u32 %s614_s17, 2 }
  0x8c   : > { %v12877_v11 = vsel %vm10599_vm6, 4294967295, %v12876_v11  ;;  %v2622_v51 = vrot.slane %v10574_v38, 5  ;;  %v10606_v29 = vcombine.high %v10586_v1, %v10597_v25  ;;  %v10610_v28 = vcombine.low %v10586_v1, %v10597_v25  ;;  %v9773_v53 = vld [vmem:[%s12721_s6 + $0xf8] sm:$0xff]   ;;  %s1253_s28 = scalar_select %p687_p11, 1, 0 }
  0x8d   : > { %12878 = vst [vmem:[#allocation13_spill] sm:$0xff] %v12877_v11  ;;  %v2042_v27 = vor.u32 %v2041_v0, %v2037_v22  ;;  %v2047_v42 = vrot.slane %v2045_v12, 5  ;;  %v2033_v16 = vrot.slane %v2032_v47, 4  ;;  %v2620_v48 = vsel %vm10599_vm6, %v7803_v49, %v2619_v26  ;;  %9062 = vmatprep.subr.bf16.mxu0 %v9773_v53  ;;  %v733_v0 = vld [vmem:[#allocation2 + $0x48] sm:$0x11]  ;;  %v9774_v32 = vld [vmem:[%s12721_s6 + $0xb8] sm:$0xff]  }
  0x8e   : > { %12879 = vst [vmem:[#allocation14_spill] sm:$0xff] %v10606_v29  ;;  %12880 = vst [vmem:[#allocation15_spill] sm:$0xff] %v10610_v28  ;;  %v2621_v38 = vrot.slane %v2619_v26, 4  ;;  %4056 = vmatprep.mubr.bf16.mxu0 %v10606_v29  ;;  %v2051_v17 = vrot.slane %v2049_v39, 4  ;;  %v734_v26 = vsel %vm10113_vm13, 0, %v733_v0  ;;  %v2055_v61 = vshll.u32 %v10618_v59, 16 }
  0x8f   : > { %v2043_v12 = vrot.slane %v2042_v27, 4  ;;  %4057 = vmatmul.mubr.bf16.gmra.mxu0 %v10610_v28  ;;  %v2038_v47 = vsel %vm10592_vm3, %v2033_v16, %v2037_v22  ;;  %v10633_v27 = vld [vmem:[#allocation2 + $0x60] sm:$0xff]  ;;  %735 = vst [vmem:[#allocation2 + $0x48] sm:$0x11] %v734_v26  ;;  %v2059_v22 = vshrl.u32 %v10618_v59, 16  ;;  %v2070_v56 = vshrl.u32 %v1938_v6, 16 }
  0x90   : > { %v2623_v49 = vsel %vm10599_vm6, %v2621_v38, %v2622_v51  ;;  %v9766_v14 = vld [vmem:[#allocation2 + $0x150] ss:$8 sps:$4 sm:$0xff]   ;;  %v2073_v45 = vshll.u32 %v1938_v6, 16  ;;  %v10649_v26 = vrot.slane %v2055_v61, 5  ;;  %v2079_v16 = vshll.u32 %v10631_v8, 16  ;;  %s13211_s30 = smov (!%p679_p12, %s9921_s30), 3 }
  0x91   : > { %v2048_v39 = vsel %vm10592_vm3, %v2043_v12, %v2047_v42  ;;  %v10637_v53 = vcombine.high %v2620_v48, %v2623_v49  ;;  %v9763_v38 = vld [vmem:[#allocation2 + $0x154] ss:$8 sps:$4 sm:$0xff]   ;;  %v10643_v50 = vcombine.low %v2620_v48, %v2623_v49  ;;  %v2052_v12 = vor.u32 %v2051_v17, %v2047_v42 }
  0x92   : > { %v10641_v0 = vcombine.high %v2038_v47, %v2048_v39  ;;  %4120 = vmatprep.mubr.bf16.mxu1 %v9763_v38  ;;  %v2083_v52 = vshrl.u32 %v10631_v8, 16  ;;  %v2089_v57 = vshll.u32 %v10633_v27, 16  ;;  %v2511_v48 = vld [vmem:[#allocation2 + $0x50] sm:$0xee]  ;;  %v2061_v49 = vrot.slane %v2059_v22, 4 }
  0x93   : > { %12881 = vst [vmem:[#allocation16_spill] sm:$0xff] %v10637_v53  ;;  %12883 = vst [vmem:[#allocation18_spill] sm:$0xff] %v10643_v50  ;;  %4322 = vmatprep.mubr.bf16.mxu0 %v10637_v53  ;;  %4121 = vmatmul.mubr.bf16.gmra.mxu1 %v9766_v14  ;;  %v2072_v24 = vrot.slane %v2070_v56, 4  ;;  %v2075_v3 = vrot.slane %v2073_v45, 5  ;;  %v2081_v36 = vrot.slane %v2079_v16, 5  ;;  %v9777_v6 = vld [vmem:[%s12721_s6 + $0xf0] sm:$0xff]   ;;  %v10660_v28 = vcombine.low %v2038_v47, %v2048_v39 }
  0x94   : > { %12882 = vst [vmem:[#allocation17_spill] sm:$0xff] %v10641_v0  ;;  %4161 = vmatprep.mubr.bf16.mxu1 %v10641_v0  ;;  %v2085_v17 = vrot.slane %v2083_v52, 4  ;;  %v2053_v42 = vrot.slane %v2052_v12, 4  ;;  %v2624_v61 = vrot.slane %v2622_v51, 4  ;;  %v2625_v38 = vrot.slane %v10618_v59, 5  ;;  %v9778_v52 = vld [vmem:[%s12721_s6 + $0xb0] sm:$0xff]  }
  0x95   : > { %v2632_v53 = vrot.slane %v10631_v8, 5  ;;  %12884 = vst [vmem:[#allocation19_spill] sm:$0xff] %v10660_v28  ;;  %v2076_v22 = vor.u32 %v2075_v3, %v2072_v24  ;;  %v10663_v16 = vrot.slane %v2089_v57, 5  ;;  %v12885_v51 = vrot.slane %v10179_v37, 4  ;;  %v736_v57 = vld [vmem:[#allocation2 + $0x70] sm:$0x11] }
  0x96   : > { %v1123_v14 = vld [vmem:[#allocation2 + $0x48] sm:$0x1]  ;;  %v1668_v56 = vld [vmem:[#allocation2 + $0x4c] sm:$0x1]  ;;  %v2086_v45 = vor.u32 %v2085_v17, %v2081_v36  ;;  %v12886_v59 = vrot.slane %v10185_v44, 4  ;;  %v2062_v3 = vor.u32 %v2061_v49, %v10649_v26  ;;  %v7804_v24 = vrot.slane %v2511_v48, 9 }
  0x97   : > { %4323 = vmatmul.mubr.bf16.vlgmr.msra.gmra.mxu0 %v10643_v50  ;;  %v1124_v8 = vsel %vm10084_vm5, %v12885_v51, %v1123_v14  ;;  %v10677_v39 = vld [vmem:[#allocation2 + $0x68] sm:$0xff]  ;;  %v2093_v37 = vshrl.u32 %v10633_v27, 16  ;;  %v2634_v12 = vrot.slane %v2632_v53, 4  ;;  %v2635_v44 = vrot.slane %v10633_v27, 5  ;;  %v9775_v17 = vld [vmem:[%s12721_s6 + $0x70] sm:$0xff]  }
  0x98   : > { %9063 = vmatpush3.bf16.msra.mxu0 %v9774_v32  ;;  %v1669_v47 = vsel %vm10084_vm5, %v12886_v59, %v1668_v56  ;;  %v9772_v32 = vld [vmem:[%s12721_s6 + $0x38] sm:$0xff]   ;;  %1125 = vst [vmem:[#allocation2 + $0x48] sm:$0x1] %v1124_v8  ;;  %v737_v48 = vsel %vm10113_vm13, 0, %v736_v57  ;;  %v2077_v49 = vrot.slane %v2076_v22, 4  ;;  %v2087_v14 = vrot.slane %v2086_v45, 4 }
  0x99   : > { %1670 = vst [vmem:[#allocation2 + $0x4c] sm:$0x1] %v1669_v47  ;;  %9064 = vmatprep.subr.bf16.mxu0 %v9777_v6  ;;  %738 = vst [vmem:[#allocation2 + $0x70] sm:$0x11] %v737_v48  ;;  %v2099_v56 = vshll.u32 %v10677_v39, 16  ;;  %v2103_v51 = vshrl.u32 %v10677_v39, 16  ;;  %v10699_v22 = vsel %vm10599_vm6, %v7804_v24, %v2632_v53  ;;  %v2636_v29 = vsel %vm10599_vm6, %v2634_v12, %v2635_v44 }
  0x9a   : > { %v1943_v8 = vld [vmem:[#allocation2 + $0x78] sm:$0xff]  ;;  %v10691_v59 = vld [vmem:[#allocation2 + $0x80] sm:$0xff]  ;;  %v9776_v27 = vld [vmem:[%s12721_s6 + $0x30] sm:$0xff]   ;;  %v2063_v6 = vrot.slane %v2062_v3, 4  ;;  %v2627_v47 = vrot.slane %v2625_v38, 4  ;;  %v2095_v45 = vrot.slane %v2093_v37, 4  ;;  %v10724_v37 = vsel %vm10592_vm3, %v2087_v14, %v10663_v16 }
  0x9b   : > { %4162 = vmatmul.mubr.bf16.vlgmr.msra.gmra.mxu1 %v10660_v28  ;;  %v10701_v57 = vrot.slane %v2635_v44, 4  ;;  %v2114_v48 = vshrl.u32 %v1943_v8, 16  ;;  %v2117_v50 = vshll.u32 %v1943_v8, 16  ;;  %v10705_v63 = vrot.slane %v2099_v56, 5  ;;  %v9779_v53 = vld [vmem:[%s12721_s6 + $0x68] sm:$0xff]  }
  0x9c   : > { %9065 = vmatpush3.bf16.msra.mxu0 %v9778_v52  ;;  %8951 = vmatpush3.bf16.msra.mxu1 %v9772_v32  ;;  %v2105_v15 = vrot.slane %v2103_v51, 4  ;;  %v2123_v3 = vshll.u32 %v10691_v59, 16  ;;  %v9781_v52 = vld [vmem:[%s12721_s6 + $0xe8] sm:$0xff]   ;;  %v10719_v32 = vsel %vm10592_vm3, %v2077_v49, %v2081_v36  ;;  %v2127_v44 = vshrl.u32 %v10691_v59, 16  ;;  %v11793_v7 = vld [vmem:[#allocation2 + $0x7c] ss:$8 sps:$4 sm:$0xff]  }
  0x9d   : > { %8952 = vmatprep.subr.bf16.mxu1 %v9775_v17  ;;  %v9782_v24 = vld [vmem:[%s12721_s6 + $0xa8] sm:$0xff]   ;;  %v2058_v51 = vsel %vm10592_vm3, %v2053_v42, %v10649_v26  ;;  %v2626_v49 = vsel %vm10599_vm6, %v2624_v61, %v2625_v38  ;;  %v2116_v8 = vrot.slane %v2114_v48, 4  ;;  %v2119_v14 = vrot.slane %v2117_v50, 5  ;;  %9066 = vmatprep.subr.bf16.mxu0 %v9781_v52  ;;  %v739_v48 = vld [vmem:[#allocation2 + $0x98] sm:$0x11] }
  0x9e   : > { %v9780_v17 = vld [vmem:[%s12721_s6 + $0x28] sm:$0xff]   ;;  %v10737_v30 = vcombine.high %v10699_v22, %v2636_v29  ;;  %v2096_v58 = vor.u32 %v2095_v45, %v10663_v16  ;;  %v10742_v26 = vcombine.high %v10719_v32, %v10724_v37  ;;  %v12889_v42 = vrot.slane %v10297_v2, 4 }
  0x9f   : > { %v12890_v61 = vrot.slane %v10310_v20, 4  ;;  %v2106_v2 = vor.u32 %v2105_v15, %v10705_v63  ;;  %v2129_v52 = vrot.slane %v2127_v44, 4  ;;  %v9783_v20 = vld [vmem:[%s12721_s6 + $0x60] sm:$0xff]   ;;  %v12893_v15 = vrot.slane %v10677_v39, 5 }
  0xa0   : > { %v1937_v56 = vld [vmem:[#allocation2 + $0x48] sm:$0x11]  ;;  %12887 = vst [vmem:[#allocation20_spill] sm:$0xff] %v10737_v30  ;;  %8953 = vmatpush3.bf16.msra.mxu1 %v9776_v27  ;;  %v1132_v28 = vld [vmem:[#allocation2 + $0x70] sm:$0x1]  ;;  %9067 = vmatpush3.bf16.msra.mxu0 %v9782_v24  ;;  %12888 = vst [vmem:[#allocation21_spill] sm:$0xff] %v10742_v26  ;;  %v2120_v44 = vor.u32 %v2119_v14, %v2116_v8 }
  0xa1   : > { %v2510_v36 = vld [vmem:[#allocation2 + $0x48] sm:$0x11]  ;;  %v2065_v31 = vshll.u32 %v1937_v56, 16  ;;  %v1677_v0 = vld [vmem:[#allocation2 + $0x74] sm:$0x1]  ;;  %v1133_v50 = vsel %vm10084_vm5, %v12889_v42, %v1132_v28  ;;  %v10752_v27 = vrot.slane %v2123_v3, 5  ;;  %8954 = vmatprep.subr.bf16.mxu1 %v9779_v53 }
  0xa2   : > { %v2628_v12 = vrot.slane %v2510_v36, 5  ;;  %v1678_v38 = vsel %vm10084_vm5, %v12890_v61, %v1677_v0  ;;  %1134 = vst [vmem:[#allocation2 + $0x70] sm:$0x1] %v1133_v50  ;;  %v2133_v3 = vshll.u32 %v10454_v43, 16  ;;  %v10766_v53 = vld [vmem:[#allocation2 + $0x78] sm:$0xee] }
  0xa3   : > { %v2067_v16 = vrot.slane %v2065_v31, 5  ;;  %1679 = vst [vmem:[#allocation2 + $0x74] sm:$0x1] %v1678_v38  ;;  %v2137_v31 = vshrl.u32 %v10454_v43, 16  ;;  %v2097_v24 = vrot.slane %v2096_v58, 4  ;;  %v9785_v56 = vld [vmem:[%s12721_s6 + $0xe0] sm:$0xff]   ;;  %v2130_v42 = vor.u32 %v2129_v52, %v10752_v27 }
  0xa4   : > { %v2629_v45 = vsel %vm10599_vm6, %v2627_v47, %v2628_v12  ;;  %v2640_v12 = vrot.slane %v12893_v15, 4  ;;  %8955 = vmatpush3.bf16.msra.mxu1 %v9780_v17  ;;  %v9786_v58 = vld [vmem:[%s12721_s6 + $0xa0] sm:$0xff]   ;;  %v10787_v17 = vcombine.low %v10699_v22, %v2636_v29  ;;  %v2107_v8 = vrot.slane %v2106_v2, 4  ;;  %9068 = vmatprep.subr.bf16.mxu0 %v9785_v56 }
  0xa5   : > { %v10760_v28 = vcombine.high %v2626_v49, %v2629_v45  ;;  %v10762_v0 = vcombine.low %v2626_v49, %v2629_v45  ;;  %v2068_v47 = vsel %vm10592_vm3, %v2063_v6, %v2067_v16  ;;  %v2645_v6 = vrot.slane %v10691_v59, 5  ;;  %8956 = vmatprep.subr.bf16.mxu1 %v9783_v20  ;;  %v9784_v59 = vld [vmem:[%s12721_s6 + $0x20] sm:$0xff]   ;;  %9069 = vmatpush3.bf16.msra.mxu0 %v9786_v58 }
  0xa6   : > { %v10775_v36 = vcombine.high %v2058_v51, %v2068_v47  ;;  %v10778_v49 = vcombine.low %v2058_v51, %v2068_v47  ;;  %12894 = vst [vmem:[#allocation24_spill] sm:$0xff] %v10787_v17  ;;  %v740_v14 = vsel %vm10113_vm13, 0, %v739_v48  ;;  %v10791_v51 = vld [vmem:[#allocation2 + $0x90] sm:$0xff]  ;;  %v10798_v50 = vrot.slane %v2133_v3, 5 }
  0xa7   : > { %12891 = vst [vmem:[#allocation22_spill] sm:$0xff] %v10760_v28  ;;  %12892 = vst [vmem:[#allocation23_spill] sm:$0xff] %v10762_v0  ;;  %4330 = vmatprep.mubr.bf16.mxu0 %v10760_v28  ;;  %v2139_v29 = vrot.slane %v2137_v31, 4  ;;  %v2143_v22 = vshll.u32 %v10469_v18, 16  ;;  %v2147_v61 = vshrl.u32 %v10469_v18, 16  ;;  %v2121_v38 = vrot.slane %v2120_v44, 4 }
  0xa8   : > { %4331 = vmatmul.mubr.bf16.gmra.mxu0 %v10762_v0  ;;  %4169 = vmatprep.mubr.bf16.mxu1 %v10775_v36  ;;  %741 = vst [vmem:[#allocation2 + $0x98] sm:$0x11] %v740_v14  ;;  %v7805_v48 = vrot.slane %v10766_v53, 9  ;;  %v2648_v16 = vrot.slane %v10454_v43, 5  ;;  %v2158_v45 = vshrl.u32 %v10519_v54, 16  ;;  %v10809_v2 = vcombine.low %v10719_v32, %v10724_v37  ;;  %v9787_v32 = vld [vmem:[%s12721_s6 + $0x58] sm:$0xff]  }
  0xa9   : > { %4338 = vmatprep.mubr.bf16.mxu0 %v10737_v30  ;;  %4170 = vmatmul.mubr.bf16.gmra.mxu1 %v10778_v49  ;;  %v12896_v18 = vmov %v12893_v15  ;;  %v2131_v31 = vrot.slane %v2130_v42, 4  ;;  %v2647_v53 = vrot.slane %v2645_v6, 4  ;;  %v2140_v44 = vor.u32 %v2139_v29, %v10798_v50  ;;  %v9788_v42 = vld [vmem:[%s12721_s6 + $0x18] sm:$0xff]   ;;  %v1953_v43 = vld [vmem:[#allocation2 + $0xc8] sm:$0xff]  ;;  %v11130_v28 = vld [vmem:[#allocation2 + $0x120] sm:$0xff] }
  0xaa   : > { %4177 = vmatprep.mubr.bf16.mxu1 %v10742_v26  ;;  %12895 = vst [vmem:[#allocation25_spill] sm:$0xff] %v10809_v2  ;;  %v1942_v52 = vld [vmem:[#allocation2 + $0x70] sm:$0x11]  ;;  %v2639_v3 = vsel %vm10599_vm6, %v10701_v57, %v12896_v18  ;;  %v2651_v56 = vrot.slane %v10791_v51, 5  ;;  %8957 = vmatpush3.bf16.msra.mxu1 %v9784_v59  ;;  %v2102_v39 = vsel %vm10592_vm3, %v2097_v24, %v10705_v63  ;;  %v2145_v37 = vrot.slane %v2143_v22, 5 }
  0xab   : > { %v2515_v20 = vld [vmem:[#allocation2 + $0x70] sm:$0x11]  ;;  %v2109_v47 = vshll.u32 %v1942_v52, 16  ;;  %v2149_v58 = vrot.slane %v2147_v61, 4  ;;  %v2160_v57 = vrot.slane %v2158_v45, 4  ;;  %v2141_v59 = vrot.slane %v2140_v44, 4  ;;  %8958 = vmatprep.subr.bf16.mxu1 %v9787_v32 }
  0xac   : > { %v2641_v15 = vrot.slane %v2515_v20, 5  ;;  %v2161_v52 = vshll.u32 %v10519_v54, 16  ;;  %v9789_v20 = vld [vmem:[%s12721_s6 + $0xd8] sm:$0xff]   ;;  %v2167_v24 = vshll.u32 %v10524_v4, 16  ;;  %v742_v22 = vld [vmem:[#allocation2 + $0xc0] sm:$0x11]  ;;  %v10852_v32 = vsel %vm10599_vm6, %v7805_v48, %v2645_v6 }
  0xad   : > { %v2111_v14 = vrot.slane %v2109_v47, 5  ;;  %v9790_v61 = vld [vmem:[%s12721_s6 + $0x98] sm:$0xff]   ;;  %v10844_v18 = vsel %vm10592_vm3, %v2141_v59, %v2145_v37  ;;  %v12900_v59 = vrot.slane %v10411_v62, 4  ;;  %9070 = vmatprep.subr.bf16.mxu0 %v9789_v20  ;;  %v2126_v62 = vsel %vm10592_vm3, %v2121_v38, %v10752_v27 }
  0xae   : > { %v2642_v29 = vsel %vm10599_vm6, %v2640_v12, %v2641_v15  ;;  %v2163_v47 = vrot.slane %v2161_v52, 5  ;;  %v2171_v15 = vshrl.u32 %v10524_v4, 16  ;;  %8959 = vmatpush3.bf16.msra.mxu1 %v9788_v42  ;;  %v2649_v42 = vsel %vm10599_vm6, %v2647_v53, %v2648_v16  ;;  %9071 = vmatpush3.bf16.msra.mxu0 %v9790_v61 }
  0xaf   : > { %v10833_v63 = vcombine.high %v2639_v3, %v2642_v29  ;;  %v2112_v12 = vsel %vm10592_vm3, %v2107_v8, %v2111_v14  ;;  %v1141_v54 = vld [vmem:[#allocation2 + $0x98] sm:$0x1]  ;;  %v1686_v45 = vld [vmem:[#allocation2 + $0x9c] sm:$0x1]  ;;  %v12899_v8 = vrot.slane %v10399_v46, 4  ;;  %v2169_v48 = vrot.slane %v2167_v24, 5 }
  0xb0   : > { %4339 = vmatmul.mubr.bf16.gmra.mxu0 %v10787_v17  ;;  %v10847_v44 = vcombine.high %v2102_v39, %v2112_v12  ;;  %v1687_v52 = vsel %vm10084_vm5, %v12900_v59, %v1686_v45  ;;  %v2164_v6 = vor.u32 %v2163_v47, %v2160_v57  ;;  %v2173_v46 = vrot.slane %v2171_v15, 4  ;;  %v10877_v47 = vld [vmem:[#allocation2 + $0xa0] sm:$0xee]  ;;  %v11008_v17 = vld [vmem:[#allocation2 + $0xf8] sm:$0xff] }
  0xb1   : > { %12897 = vst [vmem:[#allocation26_spill] sm:$0xff] %v10833_v63  ;;  %4346 = vmatprep.mubr.bf16.mxu0 %v10833_v63  ;;  %v1142_v14 = vsel %vm10084_vm5, %v12899_v8, %v1141_v54  ;;  %4178 = vmatmul.mubr.bf16.gmra.mxu1 %v10809_v2  ;;  %1688 = vst [vmem:[#allocation2 + $0x9c] sm:$0x1] %v1687_v52  ;;  %v2136_v54 = vsel %vm10592_vm3, %v2131_v31, %v10798_v50  ;;  %v2177_v8 = vshll.u32 %v10586_v1, 16  ;;  %v10911_v52 = vld [vmem:[#allocation2 + $0xd0] sm:$0xff] }
  0xb2   : > { %12898 = vst [vmem:[#allocation27_spill] sm:$0xff] %v10847_v44  ;;  %1143 = vst [vmem:[#allocation2 + $0x98] sm:$0x1] %v1142_v14  ;;  %4185 = vmatprep.mubr.bf16.mxu1 %v10847_v44  ;;  %v2150_v45 = vor.u32 %v2149_v58, %v2145_v37  ;;  %v10875_v53 = vcombine.low %v2639_v3, %v2642_v29  ;;  %v2165_v57 = vrot.slane %v2164_v6, 4  ;;  %v743_v20 = vsel %vm10113_vm13, 0, %v742_v22  ;;  %v9791_v3 = vld [vmem:[%s12721_s6 + $0x50] sm:$0xff]  }
  0xb3   : > { %v2174_v24 = vor.u32 %v2173_v46, %v2169_v48  ;;  %v10882_v15 = vcombine.high %v10852_v32, %v2649_v42  ;;  %v2650_v27 = vrot.slane %v2648_v16, 4  ;;  %v2653_v50 = vrot.slane %v2651_v56, 4  ;;  %744 = vst [vmem:[#allocation2 + $0xc0] sm:$0x11] %v743_v20  ;;  %v9792_v16 = vld [vmem:[%s12721_s6 + $0x10] sm:$0xff]   ;;  %8960 = vmatprep.subr.bf16.mxu1 %v9791_v3 }
  0xb4   : > { %12901 = vst [vmem:[#allocation28_spill] sm:$0xff] %v10875_v53  ;;  %v10888_v38 = vrot.slane %v2177_v8, 5  ;;  %v10893_v31 = vcombine.low %v2102_v39, %v2112_v12  ;;  %v2170_v37 = vsel %vm10592_vm3, %v2165_v57, %v2169_v48  ;;  %v2181_v29 = vshrl.u32 %v10586_v1, 16  ;;  %8961 = vmatpush3.bf16.msra.mxu1 %v9792_v16  ;;  %v9793_v6 = vld [vmem:[%s12721_s6 + $0xd0] sm:$0xff]  }
  0xb5   : > { %12902 = vst [vmem:[#allocation29_spill] sm:$0xff] %v10882_v15  ;;  %v2175_v58 = vrot.slane %v2174_v24, 4  ;;  %v10901_v22 = vcombine.high %v2126_v62, %v2136_v54  ;;  %v2151_v61 = vrot.slane %v2150_v45, 4  ;;  %v2187_v14 = vshll.u32 %v10597_v25, 16  ;;  %9072 = vmatprep.subr.bf16.mxu0 %v9793_v6  ;;  %v1958_v63 = vld [vmem:[#allocation2 + $0xf0] sm:$0xff] }
  0xb6   : > { %12903 = vst [vmem:[#allocation30_spill] sm:$0xff] %v10893_v31  ;;  %v10905_v39 = vcombine.low %v2126_v62, %v2136_v54  ;;  %v2191_v59 = vshrl.u32 %v10597_v25, 16  ;;  %v7806_v62 = vrot.slane %v10877_v47, 9  ;;  %v2658_v54 = vrot.slane %v10524_v4, 5 }
  0xb7   : > { %12904 = vst [vmem:[#allocation31_spill] sm:$0xff] %v10901_v22  ;;  %v2180_v12 = vsel %vm10592_vm3, %v2175_v58, %v10888_v38  ;;  %v2652_v24 = vsel %vm10599_vm6, %v2650_v27, %v2651_v56  ;;  %v2183_v3 = vrot.slane %v2181_v29, 4  ;;  %v9794_v58 = vld [vmem:[%s12721_s6 + $0x90] sm:$0xff]   ;;  %v2661_v4 = vrot.slane %v10586_v1, 5 }
  0xb8   : > { %4347 = vmatmul.mubr.bf16.gmra.mxu0 %v10875_v53  ;;  %12905 = vst [vmem:[#allocation32_spill] sm:$0xff] %v10905_v39  ;;  %v10917_v45 = vcombine.high %v2170_v37, %v2180_v12  ;;  %v10921_v8 = vcombine.low %v2170_v37, %v2180_v12  ;;  %v10933_v47 = vrot.slane %v2187_v14, 5  ;;  %v2202_v37 = vshrl.u32 %v1953_v43, 16 }
  0xb9   : > { %4354 = vmatprep.mubr.bf16.mxu0 %v10882_v15  ;;  %v1947_v48 = vld [vmem:[#allocation2 + $0x98] sm:$0x11]  ;;  %4186 = vmatmul.mubr.bf16.gmra.mxu1 %v10893_v31  ;;  %v2205_v16 = vshll.u32 %v1953_v43, 16  ;;  %v10936_v51 = vcombine.low %v10852_v32, %v2649_v42  ;;  %v2193_v6 = vrot.slane %v2191_v59, 4  ;;  %v12911_v43 = vrot.slane %v10550_v40, 4 }
  0xba   : > { %v2520_v46 = vld [vmem:[#allocation2 + $0x98] sm:$0x11]  ;;  %12906 = vst [vmem:[#allocation33_spill] sm:$0xff] %v10917_v45  ;;  %12907 = vst [vmem:[#allocation34_spill] sm:$0xff] %v10921_v8  ;;  %v2153_v57 = vshll.u32 %v1947_v48, 16  ;;  %4193 = vmatprep.mubr.bf16.mxu1 %v10901_v22  ;;  %9073 = vmatpush3.bf16.msra.mxu0 %v9794_v58  ;;  %v2211_v42 = vshll.u32 %v10911_v52, 16  ;;  %v2184_v59 = vor.u32 %v2183_v3, %v10888_v38 }
  0xbb   : > { %v2654_v20 = vrot.slane %v2520_v46, 5  ;;  %12908 = vst [vmem:[#allocation35_spill] sm:$0xff] %v10936_v51  ;;  %v1150_v27 = vld [vmem:[#allocation2 + $0xc0] sm:$0x1]  ;;  %v1695_v29 = vld [vmem:[#allocation2 + $0xc4] sm:$0x1] }
  0xbc   : > { %v2155_v12 = vrot.slane %v2153_v57, 5  ;;  %v12910_v46 = vrot.slane %v10526_v5, 4  ;;  %v1696_v32 = vsel %vm10084_vm5, %v12911_v43, %v1695_v29  ;;  %v2660_v14 = vrot.slane %v2658_v54, 4  ;;  %v745_v5 = vld [vmem:[#allocation2 + $0xe8] sm:$0x11]  ;;  %v10966_v3 = vld [vmem:[#allocation2 + $0xe0] sm:$0xff] }
  0xbd   : > { %v2655_v56 = vsel %vm10599_vm6, %v2653_v50, %v2654_v20  ;;  %1697 = vst [vmem:[#allocation2 + $0xc4] sm:$0x1] %v1696_v32  ;;  %v2204_v57 = vrot.slane %v2202_v37, 4  ;;  %v2207_v58 = vrot.slane %v2205_v16, 5  ;;  %v2664_v38 = vrot.slane %v10597_v25, 5  ;;  %v9795_v37 = vld [vmem:[%s12721_s6 + $0x48] sm:$0xff]  }
  0xbe   : > { %v10940_v48 = vcombine.high %v2652_v24, %v2655_v56  ;;  %v1151_v1 = vsel %vm10084_vm5, %v12910_v46, %v1150_v27  ;;  %v2156_v50 = vsel %vm10592_vm3, %v2151_v61, %v2155_v12  ;;  %v2215_v27 = vshrl.u32 %v10911_v52, 16  ;;  %v10973_v16 = vld [vmem:[#allocation2 + $0xd8] sm:$0xff]  ;;  %8962 = vmatprep.subr.bf16.mxu1 %v9795_v37 }
  0xbf   : > { %1152 = vst [vmem:[#allocation2 + $0xc0] sm:$0x1] %v1151_v1  ;;  %v10955_v20 = vcombine.high %v10844_v18, %v2156_v50  ;;  %v10958_v40 = vcombine.low %v10844_v18, %v2156_v50  ;;  %v2659_v61 = vsel %vm10599_vm6, %v7806_v62, %v2658_v54  ;;  %v2194_v18 = vor.u32 %v2193_v6, %v10933_v47  ;;  %v2526_v1 = vld [vmem:[#allocation2 + $0xc8] sm:$0xee] }
  0xc0   : > { %12909 = vst [vmem:[#allocation36_spill] sm:$0xff] %v10940_v48  ;;  %4355 = vmatmul.mubr.bf16.gmra.mxu0 %v10936_v51  ;;  %v10975_v12 = vrot.slane %v2211_v42, 5  ;;  %v2217_v46 = vrot.slane %v2215_v27, 4  ;;  %v746_v62 = vsel %vm10113_vm13, 0, %v745_v5  ;;  %v2662_v25 = vsel %vm10599_vm6, %v2660_v14, %v2661_v4  ;;  %v9796_v6 = vld [vmem:[%s12721_s6 + $0x8] sm:$0xff]  }
  0xc1   : > { %12912 = vst [vmem:[#allocation37_spill] sm:$0xff] %v10955_v20  ;;  %12913 = vst [vmem:[#allocation38_spill] sm:$0xff] %v10958_v40  ;;  %4362 = vmatprep.mubr.bf16.mxu0 %v10940_v48  ;;  %4194 = vmatmul.mubr.bf16.gmra.mxu1 %v10905_v39  ;;  %v2185_v54 = vrot.slane %v2184_v59, 4  ;;  %v2663_v43 = vrot.slane %v2661_v4, 4  ;;  %v2225_v32 = vshrl.u32 %v10973_v16, 16  ;;  %v9797_v42 = vld [vmem:[%s12721_s6 + $0xc8] sm:$0xff]   ;;  %v2208_v50 = vor.u32 %v2207_v58, %v2204_v57 }
  0xc2   : > { %747 = vst [vmem:[#allocation2 + $0xe8] sm:$0x11] %v746_v62  ;;  %4201 = vmatprep.mubr.bf16.mxu1 %v10955_v20  ;;  %v2231_v5 = vshll.u32 %v10966_v3, 16  ;;  %v2235_v14 = vshrl.u32 %v10966_v3, 16  ;;  %v10992_v4 = vcombine.low %v2652_v24, %v2655_v56  ;;  %v2221_v59 = vshll.u32 %v10973_v16, 16  ;;  %8963 = vmatpush3.bf16.msra.mxu1 %v9796_v6  ;;  %v9798_v56 = vld [vmem:[%s12721_s6 + $0x88] sm:$0xff]  }
  0xc3   : > { %v2671_v27 = vrot.slane %v10911_v52, 5  ;;  %9074 = vmatprep.subr.bf16.mxu0 %v9797_v42  ;;  %v10996_v37 = vcombine.high %v2659_v61, %v2662_v25  ;;  %v2195_v29 = vrot.slane %v2194_v18, 4  ;;  %v2666_v51 = vrot.slane %v2664_v38, 4  ;;  %v9799_v24 = vld [vmem:[%s12721_s6 + $0x40] sm:$0xff]  }
  0xc4   : > { %12914 = vst [vmem:[#allocation39_spill] sm:$0xff] %v10992_v4  ;;  %v2218_v57 = vor.u32 %v2217_v46, %v10975_v12  ;;  %v7807_v53 = vrot.slane %v2526_v1, 9  ;;  %v2209_v52 = vrot.slane %v2208_v50, 4  ;;  %v2227_v6 = vrot.slane %v2225_v32, 4  ;;  %9075 = vmatpush3.bf16.msra.mxu0 %v9798_v56  ;;  %8964 = vmatprep.subr.bf16.mxu1 %v9799_v24 }
  0xc5   : > { %12915 = vst [vmem:[#allocation40_spill] sm:$0xff] %v10996_v37  ;;  %v11006_v42 = vrot.slane %v2231_v5, 5  ;;  %v2237_v18 = vrot.slane %v2235_v14, 4  ;;  %v2223_v46 = vrot.slane %v2221_v59, 5  ;;  %v2673_v1 = vrot.slane %v2671_v27, 4 }
  0xc6   : > { %v1952_v62 = vld [vmem:[#allocation2 + $0xc0] sm:$0x11]  ;;  %v11017_v32 = vcombine.low %v2659_v61, %v2662_v25  ;;  %v11022_v50 = vsel %vm10592_vm3, %v2185_v54, %v10933_v47  ;;  %v11026_v5 = vsel %vm10599_vm6, %v2663_v43, %v2664_v38  ;;  %v2219_v14 = vrot.slane %v2218_v57, 4  ;;  %v748_v57 = vld [vmem:[#allocation2 + $0x110] sm:$0x11] }
  0xc7   : > { %v2525_v48 = vld [vmem:[#allocation2 + $0xc0] sm:$0x11]  ;;  %v2197_v58 = vshll.u32 %v1952_v62, 16  ;;  %v11038_v47 = vsel %vm10599_vm6, %v7807_v53, %v2671_v27  ;;  %v12917_v38 = vrot.slane %v10210_v9, 4  ;;  %v12918_v54 = vrot.slane %v10219_v21, 4 }
  0xc8   : > { %v2667_v15 = vrot.slane %v2525_v48, 5  ;;  %4363 = vmatmul.mubr.bf16.gmra.mxu0 %v10992_v4  ;;  %v11011_v62 = vld [vmem:[#allocation2 + $0x100] sm:$0xff]  ;;  %12916 = vst [vmem:[#allocation41_spill] sm:$0xff] %v11017_v32  ;;  %v2246_v9 = vshrl.u32 %v1958_v63, 16  ;;  %v2249_v21 = vshll.u32 %v1958_v63, 16  ;;  %v2255_v56 = vshll.u32 %v11008_v17, 16 }
  0xc9   : > { %v2199_v48 = vrot.slane %v2197_v58, 5  ;;  %4370 = vmatprep.mubr.bf16.mxu0 %v10996_v37  ;;  %v1159_v59 = vld [vmem:[#allocation2 + $0xe8] sm:$0x1]  ;;  %v1704_v58 = vld [vmem:[#allocation2 + $0xec] sm:$0x1]  ;;  %v9800_v4 = vld [vmem:[%s12721_s6] sm:$0xff]   ;;  %4202 = vmatmul.mubr.bf16.gmra.mxu1 %v10958_v40 }
  0xca   : > { %v11034_v61 = vsel %vm10599_vm6, %v2666_v51, %v2667_v15  ;;  %v1160_v25 = vsel %vm10084_vm5, %v12917_v38, %v1159_v59  ;;  %v1705_v43 = vsel %vm10084_vm5, %v12918_v54, %v1704_v58  ;;  %4209 = vmatprep.mubr.bf16.mxu1 %v10917_v45  ;;  %v2228_v15 = vor.u32 %v2227_v6, %v2223_v46  ;;  %v2531_v58 = vld [vmem:[#allocation2 + $0xf0] sm:$0xee]  ;;  %v9801_v6 = vld [vmem:[%s12721_s6 + $0xc0] sm:$0xff]  }
  0xcb   : > { %1161 = vst [vmem:[#allocation2 + $0xe8] sm:$0x1] %v1160_v25  ;;  %1706 = vst [vmem:[#allocation2 + $0xec] sm:$0x1] %v1705_v43  ;;  %v2238_v51 = vor.u32 %v2237_v18, %v11006_v42  ;;  %v2200_v27 = vsel %vm10592_vm3, %v2195_v29, %v2199_v48  ;;  %v2259_v59 = vshrl.u32 %v11008_v17, 16  ;;  %8965 = vmatpush3.bf16.msra.mxu1 %v9800_v4  ;;  %v9802_v18 = vld [vmem:[%s12721_s6 + $0x80] sm:$0xff]   ;;  %9076 = vmatprep.subr.bf16.mxu0 %v9801_v6 }
  0xcc   : > { %v11063_v24 = vcombine.high %v11026_v5, %v11034_v61  ;;  %v2248_v29 = vrot.slane %v2246_v9, 4  ;;  %v2265_v63 = vshll.u32 %v11011_v62, 16  ;;  %v2269_v48 = vshrl.u32 %v11011_v62, 16  ;;  %9077 = vmatpush3.bf16.msra.mxu0 %v9802_v18  ;;  %v1734_v45 = vld [vmem:[%s11325_s29] sm:$0xf] }
  0xcd   : > { %v2251_v38 = vrot.slane %v2249_v21, 5  ;;  %v11068_v4 = vrot.slane %v2255_v56, 5  ;;  %v2261_v25 = vrot.slane %v2259_v59, 4  ;;  %v2684_v54 = vrot.slane %v11008_v17, 5 }
  0xce   : > { %12919 = vst [vmem:[#allocation42_spill] sm:$0xff] %v11063_v24  ;;  %v11072_v43 = vcombine.high %v11022_v50, %v2200_v27  ;;  %v2214_v9 = vsel %vm10592_vm3, %v2209_v52, %v10975_v12  ;;  %v12921_v53 = vrot.slane %v10973_v16, 5  ;;  %v749_v21 = vsel %vm10113_vm13, 0, %v748_v57  ;;  %v9805_v57 = vld [vmem:[%s12721_s6 + $0x178] sm:$0xff]  }
  0xcf   : > { %v2224_v17 = vsel %vm10592_vm3, %v2219_v14, %v2223_v46  ;;  %v2229_v12 = vrot.slane %v2228_v15, 4  ;;  %v11088_v52 = vrot.slane %v2238_v51, 4  ;;  %750 = vst [vmem:[#allocation2 + $0x110] sm:$0x11] %v749_v21  ;;  %v12923_v46 = vrot.slane %v10966_v3, 5  ;;  %9174 = vmatprep.subr.bf16.mxu1 %v9805_v57 }
  0xd0   : > { %12920 = vst [vmem:[#allocation43_spill] sm:$0xff] %v11072_v43  ;;  %v2676_v37 = vrot.slane %v12921_v53, 4  ;;  %4371 = vmatmul.mubr.bf16.gmra.mxu0 %v11017_v32  ;;  %v12922_v56 = vmov %v12921_v53  ;;  %v11090_v53 = vld [vmem:[#allocation2 + $0x108] sm:$0xff]  ;;  %v2252_v16 = vor.u32 %v2251_v38, %v2248_v29  ;;  %v2262_v6 = vor.u32 %v2261_v25, %v11068_v4 }
  0xd1   : > { %v2675_v59 = vsel %vm10599_vm6, %v2673_v1, %v12922_v56  ;;  %4378 = vmatprep.mubr.bf16.mxu0 %v11063_v24  ;;  %v2679_v14 = vrot.slane %v12923_v46, 4  ;;  %v7808_v1 = vrot.slane %v2531_v58, 9  ;;  %4210 = vmatmul.mubr.bf16.gmra.mxu1 %v10921_v8  ;;  %v11106_v51 = vrot.slane %v2265_v63, 5  ;;  %v1963_v24 = vld [vmem:[#allocation2 + $0x118] sm:$0xff] }
  0xd2   : > { %v1957_v15 = vld [vmem:[#allocation2 + $0xe8] sm:$0x11]  ;;  %v2686_v18 = vrot.slane %v2684_v54, 4  ;;  %v2687_v21 = vrot.slane %v11011_v62, 5  ;;  %v11109_v56 = vrot.slane %v2269_v48, 4  ;;  %4217 = vmatprep.mubr.bf16.mxu1 %v11072_v43  ;;  %v11113_v29 = vcombine.high %v11038_v47, %v2675_v59 }
  0xd3   : > { %v2530_v58 = vld [vmem:[#allocation2 + $0xe8] sm:$0x11]  ;;  %v2275_v38 = vshll.u32 %v11090_v53, 16  ;;  %v2279_v25 = vshrl.u32 %v11090_v53, 16  ;;  %v11119_v63 = vcombine.low %v11026_v5, %v11034_v61  ;;  %v11122_v62 = vcombine.low %v11038_v47, %v2675_v59  ;;  %v9807_v47 = vld [vmem:[%s12721_s6 + $0x378] sm:$0xff]  }
  0xd4   : > { %12924 = vst [vmem:[#allocation44_spill] sm:$0xff] %v11113_v29  ;;  %v2241_v48 = vshll.u32 %v1957_v15, 16  ;;  %v11124_v46 = vrot.slane %v2687_v21, 4  ;;  %v11126_v57 = vcombine.high %v2214_v9, %v2224_v17  ;;  %v11128_v32 = vcombine.low %v2214_v9, %v2224_v17  ;;  %9286 = vmatprep.subr.bf16.mxu0 %v9807_v47 }
  0xd5   : > { %12925 = vst [vmem:[#allocation45_spill] sm:$0xff] %v11119_v63  ;;  %12926 = vst [vmem:[#allocation46_spill] sm:$0xff] %v11122_v62  ;;  %v2253_v30 = vrot.slane %v2252_v16, 4  ;;  %v2263_v0 = vrot.slane %v2262_v6, 4  ;;  %v11133_v43 = vcombine.low %v11022_v50, %v2200_v27  ;;  %v2680_v8 = vrot.slane %v2530_v58, 5 }
  0xd6   : > { %12927 = vst [vmem:[#allocation47_spill] sm:$0xff] %v11126_v57  ;;  %12928 = vst [vmem:[#allocation48_spill] sm:$0xff] %v11128_v32  ;;  %v2685_v5 = vsel %vm10599_vm6, %v7808_v1, %v2684_v54  ;;  %v2688_v61 = vsel %vm10599_vm6, %v2686_v18, %v2687_v21  ;;  %v11145_v9 = vsel %vm10592_vm3, %v2229_v12, %v11006_v42  ;;  %v12930_v17 = vrot.slane %v10966_v3, 5  ;;  %v1168_v27 = vld [vmem:[#allocation2 + $0x110] sm:$0x1]  ;;  %v1965_v21 = vld [vmem:[#allocation2 + $0x128] sm:$0xff] }
  0xd7   : > { %12929 = vst [vmem:[#allocation49_spill] sm:$0xff] %v11133_v43  ;;  %v1713_v54 = vld [vmem:[#allocation2 + $0x114] sm:$0x1]  ;;  %v11153_v59 = vrot.slane %v2275_v38, 5  ;;  %v2290_v16 = vshrl.u32 %v1963_v24, 16  ;;  %v2243_v6 = vrot.slane %v2241_v48, 5  ;;  %v11165_v15 = vcombine.high %v2685_v5, %v2688_v61 }
  0xd8   : > { %v11151_v50 = vsel %vm10599_vm6, %v2676_v37, %v12930_v17  ;;  %4379 = vmatmul.mubr.bf16.gmra.mxu0 %v11119_v63  ;;  %v12931_v1 = vrot.slane %v10318_v35, 4  ;;  %v12932_v12 = vrot.slane %v10333_v55, 4  ;;  %v2281_v37 = vrot.slane %v2279_v25, 4  ;;  %v751_v55 = vld [vmem:[#allocation2 + $0x138] sm:$0x11] }
  0xd9   : > { %4386 = vmatprep.mubr.bf16.mxu0 %v11113_v29  ;;  %12933 = vst [vmem:[#allocation50_spill] sm:$0xff] %v11165_v15  ;;  %v2272_v35 = vor.u32 %v11109_v56, %v11106_v51  ;;  %v2690_v18 = vrot.slane %v11090_v53, 5  ;;  %v2293_v58 = vshll.u32 %v1963_v24, 16  ;;  %4218 = vmatmul.mubr.bf16.gmra.mxu1 %v11133_v43  ;;  %v2681_v38 = vsel %vm10599_vm6, %v2679_v14, %v2680_v8  ;;  %v11188_v56 = vld [vmem:[#allocation2 + $0x130] sm:$0xff]  ;;  %v1190_v43 = vld [vmem:[%s11320_s23 + $0x4] sm:$0xf] }
  0xda   : > { %v1169_v42 = vsel %vm10084_vm5, %v12931_v1, %v1168_v27  ;;  %v1714_v3 = vsel %vm10084_vm5, %v12932_v12, %v1713_v54  ;;  %v2292_v25 = vrot.slane %v2290_v16, 4  ;;  %v2299_v48 = vshll.u32 %v11130_v28, 16  ;;  %v2536_v27 = vld [vmem:[#allocation2 + $0x118] sm:$0xee]  ;;  %4225 = vmatprep.mubr.bf16.mxu1 %v11126_v57 }
  0xdb   : > { %1170 = vst [vmem:[#allocation2 + $0x110] sm:$0x1] %v1169_v42  ;;  %1715 = vst [vmem:[#allocation2 + $0x114] sm:$0x1] %v1714_v3  ;;  %v2303_v17 = vshrl.u32 %v11130_v28, 16  ;;  %v2258_v24 = vsel %vm10592_vm3, %v2253_v30, %v11068_v4  ;;  %v2268_v53 = vsel %vm10592_vm3, %v2263_v0, %v11106_v51  ;;  %v2295_v8 = vrot.slane %v2293_v58, 5 }
  0xdc   : > { %v2697_v14 = vrot.slane %v11130_v28, 5  ;;  %v2244_v47 = vsel %vm10592_vm3, %v11088_v52, %v2243_v6  ;;  %v2282_v54 = vor.u32 %v2281_v37, %v11153_v59  ;;  %v2313_v16 = vshrl.u32 %v1965_v21, 16 }
  0xdd   : > { %v752_v30 = vsel %vm10113_vm13, 0, %v751_v55  ;;  %v11197_v4 = vcombine.high %v11151_v50, %v2681_v38  ;;  %v2309_v0 = vshll.u32 %v1965_v21, 16  ;;  %v7809_v51 = vrot.slane %v2536_v27, 9 }
  0xde   : > { %v2700_v1 = vrot.slane %v1965_v21, 5  ;;  %753 = vst [vmem:[#allocation2 + $0x138] sm:$0x11] %v752_v30  ;;  %v2296_v28 = vor.u32 %v2295_v8, %v2292_v25  ;;  %v2301_v42 = vrot.slane %v2299_v48, 5  ;;  %v2305_v12 = vrot.slane %v2303_v17, 4  ;;  %v1968_v17 = vld [vmem:[#allocation2 + $0x140] sm:$0xff] }
  0xdf   : > { %12934 = vst [vmem:[#allocation51_spill] sm:$0xff] %v11197_v4  ;;  %v2319_v3 = vshll.u32 %v11188_v56, 16  ;;  %v11202_v52 = vcombine.high %v11145_v9, %v2244_v47  ;;  %v11204_v6 = vcombine.low %v2685_v5, %v2688_v61  ;;  %v2699_v37 = vrot.slane %v2697_v14, 4 }
  0xe0   : > { %v2323_v58 = vshrl.u32 %v11188_v56, 16  ;;  %4387 = vmatmul.mubr.bf16.gmra.mxu0 %v11122_v62  ;;  %v2273_v27 = vrot.slane %v2272_v35, 4  ;;  %v11208_v21 = vrot.slane %v2282_v54, 4  ;;  %v2692_v25 = vrot.slane %v2690_v18, 4 }
  0xe1   : > { %12935 = vst [vmem:[#allocation52_spill] sm:$0xff] %v11202_v52  ;;  %12936 = vst [vmem:[#allocation53_spill] sm:$0xff] %v11204_v6  ;;  %v11210_v48 = vrot.slane %v2313_v16, 4  ;;  %4394 = vmatprep.mubr.bf16.mxu0 %v11197_v4  ;;  %v11213_v8 = vcombine.high %v2258_v24, %v2268_v53  ;;  %v11218_v5 = vsel %vm10599_vm6, %v11124_v46, %v2690_v18  ;;  %v11220_v61 = vrot.slane %v2309_v0, 5  ;;  %v11229_v4 = vld [vmem:[#allocation2 + $0x148] sm:$0xff] }
  0xe2   : > { %v1962_v55 = vld [vmem:[#allocation2 + $0x110] sm:$0x11]  ;;  %v11222_v62 = vrot.slane %v2700_v1, 4  ;;  %4226 = vmatmul.mubr.bf16.gmra.mxu1 %v11128_v32  ;;  %v11225_v35 = vcombine.low %v2258_v24, %v2268_v53  ;;  %v2297_v54 = vrot.slane %v2296_v28, 4  ;;  %v2306_v16 = vor.u32 %v2305_v12, %v2301_v42 }
  0xe3   : > { %12937 = vst [vmem:[#allocation54_spill] sm:$0xff] %v11213_v8  ;;  %v2535_v30 = vld [vmem:[#allocation2 + $0x110] sm:$0x11]  ;;  %v11227_v29 = vrot.slane %v2319_v3, 5  ;;  %4233 = vmatprep.mubr.bf16.mxu1 %v11202_v52  ;;  %v2285_v63 = vshll.u32 %v1962_v55, 16  ;;  %v2698_v46 = vsel %vm10599_vm6, %v7809_v51, %v2697_v14  ;;  %v2701_v18 = vsel %vm10599_vm6, %v2699_v37, %v2700_v1 }
  0xe4   : > { %12938 = vst [vmem:[#allocation55_spill] sm:$0xff] %v11225_v35  ;;  %v2325_v0 = vrot.slane %v2323_v58, 4  ;;  %v11237_v32 = vcombine.low %v11145_v9, %v2244_v47  ;;  %v11240_v24 = vcombine.low %v11151_v50, %v2681_v38  ;;  %v11245_v53 = vsel %vm10592_vm3, %v2273_v27, %v11153_v59  ;;  %v11249_v51 = vld [vmem:[#allocation2 + $0x150] sm:$0xff]  ;;  %v754_v3 = vld [vmem:[#allocation2 + $0x160] sm:$0x11] }
  0xe5   : > { %v1177_v28 = vld [vmem:[#allocation2 + $0x138] sm:$0x1]  ;;  %v1722_v12 = vld [vmem:[#allocation2 + $0x13c] sm:$0x1]  ;;  %v2316_v14 = vor.u32 %v11210_v48, %v11220_v61  ;;  %v12941_v1 = vrot.slane %v10426_v23, 4  ;;  %v12942_v50 = vrot.slane %v10441_v10, 4  ;;  %v11260_v55 = vcombine.high %v2698_v46, %v2701_v18 }
  0xe6   : > { %12939 = vst [vmem:[#allocation56_spill] sm:$0xff] %v11237_v32  ;;  %12940 = vst [vmem:[#allocation57_spill] sm:$0xff] %v11240_v24  ;;  %v2703_v38 = vrot.slane %v11188_v56, 5  ;;  %v2334_v47 = vshrl.u32 %v1968_v17, 16  ;;  %v2693_v37 = vrot.slane %v2535_v30, 5  ;;  %v2307_v58 = vrot.slane %v2306_v16, 4 }
  0xe7   : > { %v1178_v9 = vsel %vm10084_vm5, %v12941_v1, %v1177_v28  ;;  %v1723_v59 = vsel %vm10084_vm5, %v12942_v50, %v1722_v12  ;;  %12943 = vst [vmem:[#allocation58_spill] sm:$0xff] %v11260_v55  ;;  %v2337_v23 = vshll.u32 %v1968_v17, 16  ;;  %v2287_v27 = vrot.slane %v2285_v63, 5  ;;  %v2541_v16 = vld [vmem:[#allocation2 + $0x140] sm:$0xee]  ;;  %v11278_v12 = vld [vmem:[#allocation2 + $0x158] sm:$0xff] }
  0xe8   : > { %1179 = vst [vmem:[#allocation2 + $0x138] sm:$0x1] %v1178_v9  ;;  %1724 = vst [vmem:[#allocation2 + $0x13c] sm:$0x1] %v1723_v59  ;;  %v2336_v48 = vrot.slane %v2334_v47, 4  ;;  %v2343_v10 = vshll.u32 %v11229_v4, 16  ;;  %4395 = vmatmul.mubr.bf16.gmra.mxu0 %v11240_v24  ;;  %v11273_v56 = vsel %vm10592_vm3, %v2297_v54, %v2301_v42  ;;  %v11275_v30 = vcombine.low %v2698_v46, %v2701_v18 }
  0xe9   : > { %v2347_v28 = vshrl.u32 %v11229_v4, 16  ;;  %v2326_v17 = vor.u32 %v2325_v0, %v11227_v29  ;;  %v2339_v63 = vrot.slane %v2337_v23, 5  ;;  %4402 = vmatprep.mubr.bf16.mxu0 %v11165_v15  ;;  %v2353_v50 = vshll.u32 %v11249_v51, 16 }
  0xea   : > { %12944 = vst [vmem:[#allocation59_spill] sm:$0xff] %v11275_v30  ;;  %v11281_v1 = vrot.slane %v2343_v10, 5  ;;  %v2710_v42 = vrot.slane %v11229_v4, 5  ;;  %4234 = vmatmul.mubr.bf16.gmra.mxu1 %v11237_v32  ;;  %v2694_v54 = vsel %vm10599_vm6, %v2692_v25, %v2693_v37  ;;  %v2357_v18 = vshrl.u32 %v11249_v51, 16 }
  0xeb   : > { %v2349_v9 = vrot.slane %v2347_v28, 4  ;;  %v2340_v46 = vor.u32 %v2339_v63, %v2336_v48  ;;  %v755_v0 = vsel %vm10113_vm13, 0, %v754_v3  ;;  %4241 = vmatprep.mubr.bf16.mxu1 %v11213_v8  ;;  %v2288_v59 = vsel %vm10592_vm3, %v11208_v21, %v2287_v27 }
  0xec   : > { %v2317_v47 = vrot.slane %v2316_v14, 4  ;;  %v2705_v4 = vrot.slane %v2703_v38, 4  ;;  %756 = vst [vmem:[#allocation2 + $0x160] sm:$0x11] %v755_v0  ;;  %v11301_v25 = vrot.slane %v2326_v17, 4  ;;  %v7810_v37 = vrot.slane %v2541_v16, 9 }
  0xed   : > { %v2350_v23 = vor.u32 %v2349_v9, %v11281_v1  ;;  %v2713_v3 = vrot.slane %v11249_v51, 5  ;;  %v2363_v48 = vshll.u32 %v11278_v12, 16  ;;  %v11306_v28 = vcombine.high %v11218_v5, %v2694_v54  ;;  %v695_v51 = vld [vmem:[#allocation2] sm:$0x11] }
  0xee   : > { %v11311_v21 = vsel %vm10592_vm3, %v2307_v58, %v11220_v61  ;;  %v11315_v63 = vrot.slane %v2353_v50, 5  ;;  %v2712_v17 = vrot.slane %v2710_v42, 4  ;;  %v2341_v61 = vrot.slane %v2340_v46, 4 }
  0xef   : > { %v8630_v10 = vpop.f32.mrf.mxu0  ;;  %12945 = vst [vmem:[#allocation60_spill] sm:$0xff] %v11306_v28  ;;  %v11313_v14 = vld [vmem:[#allocation2 + $0x138] sm:$0x11]  ;;  %v11327_v58 = vrot.slane %v2357_v18, 4  ;;  %v2367_v16 = vshrl.u32 %v11278_v12, 16  ;;  %v11330_v9 = vrot.slane %v2713_v3, 4  ;;  %v11333_v0 = vcombine.high %v11245_v53, %v2288_v59 }
  0xf0   : > { %v2540_v27 = vld [vmem:[#allocation2 + $0x138] sm:$0x11]  ;;  %v2329_v15 = vshll.u32 %v11313_v14, 16  ;;  %v11339_v24 = vsel %vm10599_vm6, %v11222_v62, %v2703_v38  ;;  %v2351_v46 = vrot.slane %v2350_v23, 4  ;;  %v8678_v18 = vpop.f32.mrf.mxu1  ;;  %4403 = vmatmul.mubr.bf16.gmra.mxu0 %v11204_v6  ;;  %v11343_v8 = vcombine.low %v11218_v5, %v2694_v54  ;;  %v1189_v14 = vld [vmem:[%s11320_s23] sm:$0xf] }
  0xf1   : > { %v8631_v50 = vpop.f32.mrf.mxu0  ;;  %12946 = vst [vmem:[#allocation61_spill] sm:$0xff] %v11333_v0  ;;  %v11347_v32 = vcombine.high %v11273_v56, %v11311_v21  ;;  %v2706_v52 = vrot.slane %v2540_v27, 5  ;;  %v11349_v57 = vrot.slane %v2363_v48, 5  ;;  %v1735_v62 = vld [vmem:[%s11325_s29 + $0x4] sm:$0xf]  ;;  %4410 = vmatprep.mubr.bf16.mxu0 %v11306_v28  ;;  %v11359_v23 = vcombine.low %v11245_v53, %v2288_v59 }
  0xf2   : > { %12947 = vst [vmem:[#allocation62_spill] sm:$0xff] %v11343_v8  ;;  %v11364_v5 = vsel %vm10592_vm3, %v2317_v47, %v11227_v29  ;;  %v11368_v54 = vsel %vm10599_vm6, %v7810_v37, %v2710_v42  ;;  %v11372_v48 = vsel %vm10599_vm6, %v2712_v17, %v2713_v3  ;;  %v8679_v27 = vpop.f32.mrf.mxu1  ;;  %4242 = vmatmul.mubr.bf16.gmra.mxu1 %v11225_v35  ;;  %v11377_v59 = vrot.slane %v2367_v16, 4 }
  0xf3   : > { %12948 = vst [vmem:[#allocation63_spill] sm:$0xff] %v11347_v32  ;;  %v11355_v38 = vpop.f32.mrf.mxu0  ;;  %12949 = vst [vmem:[#allocation64_spill] sm:$0xff] %v11359_v23  ;;  %v1186_v28 = vld [vmem:[#allocation2 + $0x160] sm:$0x1]  ;;  %v1731_v6 = vld [vmem:[#allocation2 + $0x164] sm:$0x1]  ;;  %v1198_v42 = vstv %s11299_s19  ;;  %4249 = vmatprep.mubr.bf16.mxu1 %v11333_v0  ;;  %v11388_v37 = vsel %vm10592_vm3, %v2341_v61, %v11281_v1  ;;  %v11393_v3 = vsel %vm10592_vm3, %v2351_v46, %v11315_v63  ;;  %s11877_s19 = scalar_lea.vmem %s12717_s2, %s7774_s27 }
  0xf4   : > { %v696_v29 = vsel %vm10096_vm10, 0, %v695_v51  ;;  %v12950_v17 = vrot.slane %v10563_v60, 4  ;;  %v12951_v16 = vrot.slane %v10569_v33, 4  ;;  %v11405_v1 = vsel %vm10599_vm6, %v2705_v4, %v2706_v52  ;;  %v1191_v60 = vld [vmem:[%s11320_s23 + $0x8] sm:$0xf] }
  0xf5   : > { %v11382_v47 = vpop.f32.mrf.mxu0  ;;  %697 = vst [vmem:[#allocation2] sm:$0x11] %v696_v29  ;;  %vm11407_vm7 = vcmp.eq.s32.totalorder %v1198_v42, 1  ;;  %v11412_v46 = vadd.f32 %v8631_v50, %v8630_v10 }
  0xf6   : > { %v1187_v51 = vsel %vm10084_vm5, %v12950_v17, %v1186_v28  ;;  %v1732_v53 = vsel %vm10084_vm5, %v12951_v16, %v1731_v6  ;;  %v11414_v28 = vadd.f32 %v8679_v27, %v8678_v18  ;;  %v1200_v33 = vsel %vm11407_vm7, 0, %v1189_v14  ;;  %v11427_v16 = vpop.f32.mrf.mxu1 }
  0xf7   : > { %1188 = vst [vmem:[#allocation2 + $0x160] sm:$0x1] %v1187_v51  ;;  %1733 = vst [vmem:[#allocation2 + $0x164] sm:$0x1] %v1732_v53  ;;  %v1201_v6 = vsel %vm11407_vm7, 0, %v1190_v43  ;;  %v1742_v52 = vsel %vm11407_vm7, 0, %v1734_v45 }
  0xf8   : > { %12954 = vst [vmem:[#allocation65_spill] sm:$0xff] %v11414_v28  ;;  %v1743_v4 = vsel %vm11407_vm7, 0, %v1735_v62  ;;  %v1736_v53 = vld [vmem:[%s11325_s29 + $0x8] sm:$0xf]  ;;  %v1205_v29 = vshrl.u32 %v1200_v33, 16  ;;  %v1208_v42 = vshll.u32 %v1200_v33, 16  ;;  %v11425_v50 = vpop.f32.mrf.mxu0  ;;  %4411 = vmatmul.mubr.bf16.gmra.mxu0 %v11343_v8  ;;  %v11435_v33 = vcombine.high %v11339_v24, %v11405_v1  ;;  %v11444_v19 = vpop.f32.mrf.mxu1 }
  0xf9   : > { %v1213_v17 = vshrl.u32 %v1201_v6, 16  ;;  %v1216_v10 = vshll.u32 %v1201_v6, 16  ;;  %v1747_v18 = vshrl.u32 %v1742_v52, 16  ;;  %v1750_v27 = vshll.u32 %v1742_v52, 16  ;;  %12955 = vst [vmem:[#allocation66_spill] sm:$0xff] %v11427_v16  ;;  %4418 = vmatprep.mubr.bf16.mxu0 %v11260_v55 }
  0xfa   : > { %v1755_v51 = vshrl.u32 %v1743_v4, 16  ;;  %v1758_v14 = vshll.u32 %v1743_v4, 16  ;;  %v2331_v43 = vrot.slane %v2329_v15, 5  ;;  %v1207_v45 = vrot.slane %v1205_v29, 7  ;;  %12956 = vst [vmem:[#allocation67_spill] sm:$0xff] %v11435_v33  ;;  %4250 = vmatmul.mubr.bf16.gmra.mxu1 %v11359_v23  ;;  %v8637_v55 = vpop.f32.mrf.mxu0 }
  0xfb   : > { %v1215_v28 = vrot.slane %v1213_v17, 7  ;;  %v1202_v62 = vsel %vm11407_vm7, 0, %v1191_v60  ;;  %v1749_v6 = vrot.slane %v1747_v18, 7  ;;  %v1744_v60 = vsel %vm11407_vm7, 0, %v1736_v53  ;;  %4257 = vmatprep.mubr.bf16.mxu1 %v11347_v32  ;;  %v1192_v23 = vld [vmem:[%s11320_s23 + $0xc] sm:$0xf]  ;;  %s11882_s23 = scalar_lea.vmem %s12720_s5, %s7774_s27 }
  0xfc   : > { %v11437_v52 = vrot.slane %v1755_v51, 7  ;;  %v1222_v4 = vshrl.u32 %v1202_v62, 16  ;;  %v1210_v8 = vor.u32 %v1208_v42, %v1207_v45  ;;  %v1211_v15 = vrot.slane %v1207_v45, 4  ;;  %v1244_v17 = vld [vmem:[#allocation2] sm:$0xf] }
  0xfd   : > { %v1218_v29 = vor.u32 %v1216_v10, %v1215_v28  ;;  %v1786_v16 = vld [vmem:[#allocation2 + $0x4] sm:$0xf]  ;;  %v1752_v0 = vor.u32 %v1750_v27, %v1749_v6  ;;  %v1753_v35 = vrot.slane %v1749_v6, 4  ;;  %v1225_v51 = vshll.u32 %v1202_v62, 16 }
  0xfe   : > { %v1760_v18 = vor.u32 %v1758_v14, %v11437_v52  ;;  %v2332_v42 = vsel %vm10592_vm3, %v11301_v25, %v2331_v43  ;;  %v1220_v53 = vrot.slane %v1215_v28, 4  ;;  %v1245_v32 = vsel %vm10145_vm15, %v1210_v8, %v1244_v17  ;;  %v11454_v27 = vld [vmem:[#allocation2 + $0x160] sm:$0x11]  ;;  %v1737_v43 = vld [vmem:[%s11325_s29 + $0xc] sm:$0xf] }
  0xff   : > { %v1219_v10 = vsel %vm10123_vm14, %v1211_v15, %v1218_v29  ;;  %1246 = vst [vmem:[#allocation2] sm:$0xf] %v1245_v32  ;;  %v1787_v62 = vsel %vm10145_vm15, %v1752_v0, %v1786_v16  ;;  %v11460_v6 = vrot.slane %v1222_v4, 7  ;;  %v1764_v25 = vshrl.u32 %v1744_v60, 16  ;;  %v730_v15 = vld [vmem:[#allocation2 + $0x20] sm:$0x11]  ;;  %v11472_v29 = vpop.f32.mrf.mxu0  ;;  %v8684_v4 = vpop.f32.mrf.mxu1 }
 0x100   : > { %1247 = vst [vmem:[#allocation2 + $0x8] sm:$0xf] %v1219_v10  ;;  %v1761_v14 = vsel %vm10123_vm14, %v1753_v35, %v1760_v18  ;;  %v11465_v28 = vcombine.low %v11273_v56, %v11311_v21  ;;  %v11469_v8 = vcombine.high %v11368_v54, %v11372_v48  ;;  %v2716_v32 = vrot.slane %v11278_v12, 5  ;;  %1788 = vst [vmem:[#allocation2 + $0x4] sm:$0xf] %v1787_v62 }
 0x101   : > { %1789 = vst [vmem:[#allocation2 + $0xc] sm:$0xf] %v1761_v14  ;;  %v1767_v35 = vshll.u32 %v1744_v60, 16  ;;  %v11475_v0 = vcombine.high %v11364_v5, %v2332_v42  ;;  %v1762_v16 = vrot.slane %v11437_v52, 4  ;;  %v1227_v56 = vor.u32 %v1225_v51, %v11460_v6  ;;  %4419 = vmatmul.mubr.bf16.gmra.mxu0 %v11275_v30 }
 0x102   : > { %12958 = vst [vmem:[#allocation7_spill] sm:$0xff] %v11465_v28  ;;  %12959 = vst [vmem:[#allocation68_spill] sm:$0xff] %v11469_v8  ;;  %v11479_v21 = vrot.slane %v1764_v25, 7  ;;  %v11484_v12 = vcombine.high %v11388_v37, %v11393_v3  ;;  %v12962_v17 = vor.u32 %v11327_v58, %v11315_v63  ;;  %v11494_v52 = vsel %vm10599_vm6, %v11330_v9, %v2716_v32  ;;  %v2545_v63 = vld [vmem:[#allocation2 + $0x160] sm:$0x11]  ;;  %v8685_v9 = vpop.f32.mrf.mxu1 }
 0x103   : > { %12960 = vst [vmem:[#allocation69_spill] sm:$0xff] %v11475_v0  ;;  %v1203_v18 = vsel %vm11407_vm7, 0, %v1192_v23  ;;  %4426 = vmatprep.mubr.bf16.mxu0 %v11435_v33  ;;  %v11501_v51 = vcombine.low %v11339_v24, %v11405_v1  ;;  %v2370_v10 = vor.u32 %v11377_v59, %v11349_v57  ;;  %v1228_v58 = vsel %vm10123_vm14, %v1220_v53, %v1227_v56  ;;  %v11512_v1 = vpop.f32.mrf.mxu0 }
 0x104   : > { %12961 = vst [vmem:[#allocation70_spill] sm:$0xff] %v11484_v12  ;;  %v11489_v60 = vrot.slane %v12962_v17, 4  ;;  %v1769_v14 = vor.u32 %v1767_v35, %v11479_v21  ;;  %4258 = vmatmul.mubr.bf16.gmra.mxu1 %v11465_v28  ;;  %v2373_v23 = vshll.u32 %v11454_v27, 16  ;;  %v2718_v62 = vrot.slane %v2716_v32, 4  ;;  %1248 = vst [vmem:[#allocation2 + $0x10] sm:$0xf] %v1228_v58 }
 0x105   : > { %12963 = vst [vmem:[#allocation71_spill] sm:$0xff] %v11501_v51  ;;  %v1231_v25 = vshrl.u32 %v1203_v18, 16  ;;  %v1745_v24 = vsel %vm11407_vm7, 0, %v1737_v43  ;;  %4265 = vmatprep.mubr.bf16.mxu1 %v11475_v0  ;;  %v1234_v53 = vshll.u32 %v1203_v18, 16  ;;  %v731_v56 = vsel %vm10113_vm13, 0, %v730_v15 }
 0x106   : > { %v1770_v59 = vsel %vm10123_vm14, %v1762_v16, %v1769_v14  ;;  %v1773_v35 = vshrl.u32 %v1745_v24, 16  ;;  %v1776_v32 = vshll.u32 %v1745_v24, 16  ;;  %732 = vst [vmem:[#allocation2 + $0x20] sm:$0x11] %v731_v56  ;;  %v11520_v17 = vadd.f32 %v8637_v55, %v11425_v50  ;;  %v11532_v14 = vpop.f32.mrf.mxu1 }
 0x107   : > { %1790 = vst [vmem:[#allocation2 + $0x14] sm:$0xf] %v1770_v59  ;;  %v1233_v27 = vrot.slane %v1231_v25, 7  ;;  %v11522_v61 = vadd.f32 %v8685_v9, %v8684_v4  ;;  %v11525_v43 = vcombine.low %v11364_v5, %v2332_v42  ;;  %v2371_v58 = vrot.slane %v2370_v10, 4  ;;  %v11527_v33 = vld [vmem:[#allocation2] sm:$0xff]  ;;  %12965 = vst [vmem:[#allocation73_spill] sm:$0xff] %v11532_v14  ;;  %v8642_v4 = vpop.f32.mrf.mxu0 }
 0x108   : > { %v11529_v16 = vld [vmem:[#allocation2 + $0x8] sm:$0xff]  ;;  %v1229_v18 = vrot.slane %v11460_v6, 4  ;;  %v1775_v15 = vrot.slane %v1773_v35, 7  ;;  %v2719_v25 = vrot.slane %v2545_v63, 5  ;;  %v1982_v24 = vshrl.u32 %v11527_v33, 16  ;;  %v11543_v14 = vpop.f32.mrf.mxu1 }
 0x109   : > { %12964 = vst [vmem:[#allocation72_spill] sm:$0xff] %v11525_v43  ;;  %v1985_v55 = vshll.u32 %v11527_v33, 16  ;;  %v1771_v50 = vrot.slane %v11479_v21, 4  ;;  %v2375_v5 = vrot.slane %v2373_v23, 5  ;;  %v1991_v42 = vshll.u32 %v11529_v16, 16  ;;  %4427 = vmatmul.mubr.bf16.gmra.mxu0 %v11501_v51  ;;  %v8643_v63 = vpop.f32.mrf.mxu0 }
 0x10a   : > { %v1995_v10 = vshrl.u32 %v11529_v16, 16  ;;  %v1236_v9 = vor.u32 %v1234_v53, %v1233_v27  ;;  %v1984_v6 = vrot.slane %v1982_v24, 4  ;;  %v1238_v35 = vrot.slane %v1233_v27, 4  ;;  %4434 = vmatprep.mubr.bf16.mxu0 %v11469_v8 }
 0x10b   : > { %v1987_v59 = vrot.slane %v1985_v55, 5  ;;  %v1778_v56 = vor.u32 %v1776_v32, %v1775_v15  ;;  %v1993_v30 = vrot.slane %v1991_v42, 5  ;;  %v1780_v23 = vrot.slane %v1775_v15, 4 }
 0x10c   : > { %v1997_v34 = vrot.slane %v1995_v10, 4  ;;  %v1237_v21 = vsel %vm10123_vm14, %v1229_v18, %v1236_v9  ;;  %4266 = vmatmul.mubr.bf16.gmra.mxu1 %v11525_v43  ;;  %v2720_v53 = vsel %vm10599_vm6, %v2718_v62, %v2719_v25  ;;  %v11550_v32 = vadd.f32 %v8643_v63, %v8642_v4 }
 0x10d   : > { %v1988_v24 = vor.u32 %v1987_v59, %v1984_v6  ;;  %1249 = vst [vmem:[#allocation2 + $0x18] sm:$0xf] %v1237_v21  ;;  %v1779_v27 = vsel %vm10123_vm14, %v1771_v50, %v1778_v56  ;;  %4273 = vmatprep.mubr.bf16.mxu1 %v11484_v12  ;;  %v11555_v18 = vcombine.low %v11368_v54, %v11372_v48  ;;  %v1250_v25 = vld [vmem:[#allocation2 + $0x20] sm:$0x1]  ;;  %v1792_v42 = vld [vmem:[#allocation2 + $0x24] sm:$0x1]  ;;  %v11578_v59 = vpop.f32.mrf.mxu0 }
 0x10e   : > { %v2366_v15 = vsel %vm10592_vm3, %v11489_v60, %v11349_v57  ;;  %v11561_v55 = vld [vmem:[#allocation2 + $0x10] sm:$0xff]  ;;  %v1998_v62 = vor.u32 %v1997_v34, %v1993_v30  ;;  %1791 = vst [vmem:[#allocation2 + $0x1c] sm:$0xf] %v1779_v27  ;;  %v2376_v50 = vsel %vm10592_vm3, %v2371_v58, %v2375_v5  ;;  %v1251_v54 = vsel %vm10084_vm5, %v1238_v35, %v1250_v25  ;;  %v8690_v9 = vpop.f32.mrf.mxu1 }
 0x10f   : > { %12966 = vst [vmem:[#allocation74_spill] sm:$0xff] %v11555_v18  ;;  %v2001_v4 = vshll.u32 %v11561_v55, 16  ;;  %v2005_v10 = vshrl.u32 %v11561_v55, 16  ;;  %v11570_v48 = vcombine.high %v11494_v52, %v2720_v53  ;;  %v1989_v57 = vrot.slane %v1988_v24, 4  ;;  %1252 = vst [vmem:[#allocation2 + $0x20] sm:$0x1] %v1251_v54  ;;  %v11593_v27 = vpop.f32.mrf.mxu0 }
 0x110   : > { %v1999_v60 = vrot.slane %v1998_v62, 4  ;;  %v1793_v34 = vsel %vm10084_vm5, %v1780_v23, %v1792_v42  ;;  %v11576_v58 = vcombine.low %v11388_v37, %v11393_v3  ;;  %v11580_v35 = vcombine.high %v2366_v15, %v2376_v50  ;;  %v8691_v56 = vpop.f32.mrf.mxu1 }
 0x111   : > { %12967 = vst [vmem:[#allocation75_spill] sm:$0xff] %v11570_v48  ;;  %v2003_v5 = vrot.slane %v2001_v4, 5  ;;  %1794 = vst [vmem:[#allocation2 + $0x24] sm:$0x1] %v1793_v34  ;;  %v2007_v6 = vrot.slane %v2005_v10, 4  ;;  %4435 = vmatmul.mubr.bf16.gmra.mxu0 %v11555_v18  ;;  %v11583_v63 = vadd.f32 %v8691_v56, %v8690_v9  ;;  %v1994_v37 = vsel %vm10592_vm3, %v1989_v57, %v1993_v30 }
 0x112   : > { %12968 = vst [vmem:[#allocation76_spill] sm:$0xff] %v11576_v58  ;;  %12969 = vst [vmem:[#allocation77_spill] sm:$0xff] %v11580_v35  ;;  %4442 = vmatprep.mubr.bf16.mxu0 %v11570_v48  ;;  %v8693_v21 = vpop.f32.mrf.mxu1  ;;  %v11599_v4 = vcombine.low %v11494_v52, %v2720_v53  ;;  %v11603_v34 = vcombine.low %v2366_v15, %v2376_v50  ;;  %v8053_v56 = vcombine.high %v11527_v33, %v11529_v16 }
 0x113   : > { %v2004_v3 = vsel %vm10592_vm3, %v1999_v60, %v2003_v5  ;;  %v2008_v24 = vor.u32 %v2007_v6, %v2003_v5 }
 0x114   : > { %4274 = vmatmul.mubr.bf16.gmra.mxu1 %v11576_v58  ;;  %v8694_v42 = vpop.f32.mrf.mxu1  ;;  %12970 = vst [vmem:[#allocation78_spill] sm:$0xff] %v11599_v4  ;;  %v8055_v30 = vcombine.high %v1994_v37, %v2004_v3  ;;  %12971 = vst [vmem:[#allocation79_spill] sm:$0xff] %v11603_v34 }
 0x115   : > { %v11591_v23 = vld [vmem:[#allocation2 + $0x18] sm:$0xff]  ;;  %4281 = vmatprep.mubr.bf16.mxu1 %v11580_v35  ;;  %v11601_v10 = vadd.f32 %v8694_v42, %v8693_v21  ;;  %v2009_v9 = vrot.slane %v2008_v24, 4  ;;  %v8648_v6 = vpop.f32.mrf.mxu0  ;;  %v2606_v24 = vrot.slane %v11529_v16, 5  ;;  %v2501_v42 = vld [vmem:[#allocation2] sm:$0xee] }
 0x116   : > { %v2011_v62 = vshll.u32 %v11591_v23, 16  ;;  %v2015_v25 = vshrl.u32 %v11591_v23, 16 }
 0x117   : > { %v8649_v52 = vpop.f32.mrf.mxu0 }
 0x118   : > { %v1932_v54 = vld [vmem:[#allocation2 + $0x20] sm:$0x11]  ;;  %v2013_v57 = vrot.slane %v2011_v62, 5  ;;  %v2017_v60 = vrot.slane %v2015_v25, 4  ;;  %v11608_v21 = vadd.f32 %v8649_v52, %v8648_v6  ;;  %v9808_v62 = vld [vmem:[%s12721_s6 + $0x338] sm:$0xff]   ;;  %v2609_v52 = vrot.slane %v11561_v55, 5 }
 0x119   : > { %v2021_v5 = vshll.u32 %v1932_v54, 16  ;;  %4443 = vmatmul.mubr.bf16.gmra.mxu0 %v11599_v4  ;;  %v8651_v50 = vpop.f32.mrf.mxu0  ;;  %v7802_v54 = vrot.slane %v2501_v42, 9 }
 0x11a   : > { %v2018_v35 = vor.u32 %v2017_v60, %v2013_v57  ;;  %5412 = vmatprep.mubr.bf16.mxu0 %v8055_v30  ;;  %v2014_v15 = vsel %vm10592_vm3, %v2009_v9, %v2013_v57  ;;  %v2608_v60 = vrot.slane %v2606_v24, 4  ;;  %v9806_v57 = vld [vmem:[%s12721_s6 + $0x138] sm:$0xff]  }
 0x11b   : > { %v2023_v58 = vrot.slane %v2021_v5, 5  ;;  %v8652_v30 = vpop.f32.mrf.mxu0  ;;  %v9811_v5 = vld [vmem:[%s12721_s6 + $0x370] sm:$0xff]   ;;  %v8696_v6 = vpop.f32.mrf.mxu1 }
 0x11c   : > { %v2019_v53 = vrot.slane %v2018_v35, 4  ;;  %4282 = vmatmul.mubr.bf16.gmra.mxu1 %v11603_v34  ;;  %v8054_v35 = vcombine.low %v1994_v37, %v2004_v3  ;;  %v9809_v37 = vld [vmem:[%s12721_s6 + $0x170] sm:$0xff]   ;;  %v11635_v3 = vsel %vm10599_vm6, %v7802_v54, %v2606_v24 }
 0x11d   : > { %5251 = vmatprep.mubr.bf16.mxu1 %v8053_v56  ;;  %v11625_v56 = vadd.f32 %v8652_v30, %v8651_v50  ;;  %v9812_v50 = vld [vmem:[%s12721_s6 + $0x330] sm:$0xff]   ;;  %v8697_v42 = vpop.f32.mrf.mxu1  ;;  %v11644_v30 = vsel %vm10599_vm6, %v2608_v60, %v2609_v52  ;;  %v2612_v60 = vrot.slane %v11591_v23, 5 }
 0x11e   : > { %v2024_v25 = vsel %vm10592_vm3, %v2019_v53, %v2023_v58  ;;  %v8052_v58 = vcombine.low %v11527_v33, %v11529_v16  ;;  %v8059_v53 = vcombine.high %v11561_v55, %v11591_v23  ;;  %v11646_v33 = vadd.f32 %v8697_v42, %v8696_v6  ;;  %v9810_v54 = vld [vmem:[%s12721_s6 + $0x130] sm:$0xff]  }
 0x11f   : > { %v8061_v9 = vcombine.high %v2014_v15, %v2024_v25  ;;  %v8699_v34 = vpop.f32.mrf.mxu1  ;;  %v8060_v6 = vcombine.low %v2014_v15, %v2024_v25  ;;  %v2614_v24 = vrot.slane %v2612_v60, 4  ;;  %v9816_v15 = vld [vmem:[%s12721_s6 + $0x328] sm:$0xff]   ;;  %v8058_v25 = vcombine.low %v11561_v55, %v11591_v23 }
 0x120   : > { %v11779_v23 = vld [vmem:[#allocation2 + $0x64] ss:$8 sps:$4 sm:$0xff]  }
 0x121   : > { %5413 = vmatmul.mubr.bf16.vlgmr.msra.gmra.mxu0 %v8054_v35  ;;  %v9815_v35 = vld [vmem:[%s12721_s6 + $0x368] sm:$0xff]   ;;  %v8700_v42 = vpop.f32.mrf.mxu1  ;;  %v8654_v16 = vpop.f32.mrf.mxu0 }
 0x122   : > { %9287 = vmatpush3.bf16.msra.mxu0 %v9808_v62  ;;  %5420 = vmatprep.mubr.bf16.mxu0 %v8061_v9  ;;  %v2505_v62 = vld [vmem:[#allocation2 + $0x20] sm:$0x11]  ;;  %v11659_v9 = vadd.f32 %v8700_v42, %v8699_v34 }
 0x123   : > { %9288 = vmatprep.subr.bf16.mxu0 %v9811_v5  ;;  %v2611_v5 = vrot.slane %v2609_v52, 4  ;;  %v2615_v4 = vrot.slane %v2505_v62, 5  ;;  %v9819_v34 = vld [vmem:[%s12721_s6 + $0x360] sm:$0xff]  }
 0x124   : > { %5252 = vmatmul.mubr.bf16.vlgmr.msra.gmra.mxu1 %v8052_v58  ;;  %12972 = vst [vmem:[#allocation80_spill] sm:$0xff] %v11659_v9  ;;  %v9813_v58 = vld [vmem:[%s12721_s6 + $0x168] sm:$0xff]  }
 0x125   : > { %9175 = vmatpush3.bf16.msra.mxu1 %v9806_v57  ;;  %5259 = vmatprep.mubr.bf16.mxu1 %v8059_v53  ;;  %v9814_v57 = vld [vmem:[%s12721_s6 + $0x128] sm:$0xff]   ;;  %v8655_v53 = vpop.f32.mrf.mxu0  ;;  %v11686_v42 = vsel %vm10599_vm6, %v2614_v24, %v2615_v4 }
 0x126   : > { %9176 = vmatprep.subr.bf16.mxu1 %v9809_v37  ;;  %9289 = vmatpush3.bf16.msra.mxu0 %v9812_v50  ;;  %v11675_v52 = vadd.f32 %v8655_v53, %v8654_v16  ;;  %v9817_v37 = vld [vmem:[%s12721_s6 + $0x160] sm:$0xff]   ;;  %v11682_v50 = vsel %vm10599_vm6, %v2611_v5, %v2612_v60  ;;  %v12973_v16 = vld [vmem:[#allocation17_spill] sm:$0xff]  ;;  %v1195_v9 = vld [vmem:[%s11877_s19 + $0x8] sm:$0xf] }
 0x127   : > { %9290 = vmatprep.subr.bf16.mxu0 %v9815_v35  ;;  %v8657_v62 = vpop.f32.mrf.mxu0  ;;  %v9820_v60 = vld [vmem:[%s12721_s6 + $0x320] sm:$0xff]   ;;  %v9821_v53 = vld [vmem:[%s12721_s6 + $0x158] sm:$0xff]  }
 0x129   : > { %9177 = vmatpush3.bf16.msra.mxu1 %v9810_v54  ;;  %5421 = vmatmul.mubr.bf16.gmra.mxu0 %v8060_v6  ;;  %v8658_v35 = vpop.f32.mrf.mxu0  ;;  %v8702_v4 = vpop.f32.mrf.mxu1  ;;  %v9823_v54 = vld [vmem:[%s12721_s6 + $0x358] sm:$0xff]   ;;  %v9873_v6 = vld [vmem:[#allocation2 + $0x2c] ss:$8 sps:$4 sm:$0xff]  }
 0x12a   : > { %9178 = vmatprep.subr.bf16.mxu1 %v9813_v58  ;;  %5428 = vmatprep.mubr.bf16.mxu0 %v12973_v16  ;;  %v11696_v24 = vadd.f32 %v8658_v35, %v8657_v62  ;;  %v9818_v58 = vld [vmem:[%s12721_s6 + $0x120] sm:$0xff]   ;;  %v12975_v62 = vld [vmem:[#allocation19_spill] sm:$0xff]  ;;  %v9825_v35 = vld [vmem:[%s12721_s6 + $0x150] sm:$0xff]  }
 0x12b   : > { %9291 = vmatpush3.bf16.msra.mxu0 %v9816_v15  ;;  %v8703_v5 = vpop.f32.mrf.mxu1 }
 0x12c   : > { %5260 = vmatmul.mubr.bf16.gmra.mxu1 %v8058_v25  ;;  %9292 = vmatprep.subr.bf16.mxu0 %v9819_v34  ;;  %v11707_v15 = vadd.f32 %v8703_v5, %v8702_v4  ;;  %v9824_v34 = vld [vmem:[%s12721_s6 + $0x318] sm:$0xff]   ;;  %v9828_v4 = vld [vmem:[%s12721_s6 + $0x310] sm:$0xff]  }
 0x12d   : > { %5267 = vmatprep.mubr.bf16.mxu1 %v9873_v6  ;;  %9179 = vmatpush3.bf16.msra.mxu1 %v9814_v57  ;;  %v8705_v25 = vpop.f32.mrf.mxu1  ;;  %v9827_v57 = vld [vmem:[%s12721_s6 + $0x350] sm:$0xff]   ;;  %v9831_v6 = vld [vmem:[%s12721_s6 + $0x348] sm:$0xff]  }
 0x12e   : > { %9180 = vmatprep.subr.bf16.mxu1 %v9817_v37  ;;  %12974 = vst [vmem:[#allocation17_spill] sm:$0xff] %v11707_v15  ;;  %v9822_v37 = vld [vmem:[%s12721_s6 + $0x118] sm:$0xff]  }
 0x12f   : > { %9293 = vmatpush3.bf16.msra.mxu0 %v9820_v60  ;;  %v8706_v16 = vpop.f32.mrf.mxu1 }
 0x130   : > { %9294 = vmatprep.subr.bf16.mxu0 %v9823_v54  ;;  %v11723_v60 = vadd.f32 %v8706_v16, %v8705_v25  ;;  %v9874_v54 = vld [vmem:[#allocation2 + $0x28] ss:$8 sps:$4 sm:$0xff]  }
 0x131   : > { %9181 = vmatpush3.bf16.msra.mxu1 %v9818_v58  ;;  %5429 = vmatmul.mubr.bf16.gmra.mxu0 %v12975_v62  ;;  %v9875_v58 = vld [vmem:[#allocation2 + $0x3c] ss:$8 sps:$4 sm:$0xff]   ;;  %v9830_v62 = vld [vmem:[%s12721_s6 + $0x108] sm:$0xff]  }
 0x132   : > { %9182 = vmatprep.subr.bf16.mxu1 %v9821_v53  ;;  %5436 = vmatprep.mubr.bf16.mxu0 %v10775_v36  ;;  %12976 = vst [vmem:[#allocation19_spill] sm:$0xff] %v11723_v60  ;;  %v9826_v36 = vld [vmem:[%s12721_s6 + $0x110] sm:$0xff]   ;;  %v9829_v53 = vld [vmem:[%s12721_s6 + $0x148] sm:$0xff]   ;;  %v12990_v60 = vld [vmem:[#allocation14_spill] sm:$0xff] }
 0x133   : > { %9295 = vmatpush3.bf16.msra.mxu0 %v9824_v34  ;;  %v8660_v5 = vpop.f32.mrf.mxu0  ;;  %v9832_v34 = vld [vmem:[%s12721_s6 + $0x308] sm:$0xff]  }
 0x134   : > { %5268 = vmatmul.mubr.bf16.gmra.mxu1 %v9874_v54  ;;  %9296 = vmatprep.subr.bf16.mxu0 %v9827_v57  ;;  %v9835_v57 = vld [vmem:[%s12721_s6 + $0x340] sm:$0xff]  }
 0x135   : > { %5275 = vmatprep.mubr.bf16.mxu1 %v9875_v58  ;;  %9183 = vmatpush3.bf16.msra.mxu1 %v9822_v37  ;;  %v8661_v25 = vpop.f32.mrf.mxu0  ;;  %v9876_v54 = vld [vmem:[#allocation2 + $0x38] ss:$8 sps:$4 sm:$0xff]  }
 0x136   : > { %9184 = vmatprep.subr.bf16.mxu1 %v9825_v35  ;;  %v11743_v37 = vadd.f32 %v8661_v25, %v8660_v5  ;;  %v9833_v35 = vld [vmem:[%s12721_s6 + $0x140] sm:$0xff]   ;;  %v9837_v25 = vld [vmem:[%s12721_s6 + $0x3f8] sm:$0xff]  }
 0x137   : > { %9297 = vmatpush3.bf16.msra.mxu0 %v9828_v4  ;;  %v8663_v16 = vpop.f32.mrf.mxu0  ;;  %v9836_v4 = vld [vmem:[%s12721_s6 + $0x300] sm:$0xff]  }
 0x138   : > { %9298 = vmatprep.subr.bf16.mxu0 %v9831_v6  ;;  %v8708_v6 = vpop.f32.mrf.mxu1 }
 0x139   : > { %9185 = vmatpush3.bf16.msra.mxu1 %v9826_v36  ;;  %5437 = vmatmul.mubr.bf16.gmra.mxu0 %v10778_v49  ;;  %v8664_v58 = vpop.f32.mrf.mxu0  ;;  %v9839_v49 = vld [vmem:[%s12721_s6 + $0x478] sm:$0xff]  }
 0x13a   : > { %9186 = vmatprep.subr.bf16.mxu1 %v9829_v53  ;;  %5444 = vmatprep.mubr.bf16.mxu0 %v10742_v26  ;;  %v11759_v36 = vld [vmem:[#allocation2 + $0x54] ss:$8 sps:$4 sm:$0xff]   ;;  %v11762_v5 = vadd.f32 %v8664_v58, %v8663_v16  ;;  %v9834_v53 = vld [vmem:[%s12721_s6 + $0x100] sm:$0xff]  }
 0x13b   : > { %9299 = vmatpush3.bf16.msra.mxu0 %v9832_v34  ;;  %v8709_v34 = vpop.f32.mrf.mxu1 }
 0x13c   : > { %5276 = vmatmul.mubr.bf16.gmra.mxu1 %v9876_v54  ;;  %9300 = vmatprep.subr.bf16.mxu0 %v9835_v57  ;;  %v11770_v57 = vadd.f32 %v8709_v34, %v8708_v6 }
 0x13d   : > { %5283 = vmatprep.mubr.bf16.mxu1 %v11759_v36  ;;  %9187 = vmatpush3.bf16.msra.mxu1 %v9830_v62  ;;  %v8711_v54 = vpop.f32.mrf.mxu1 }
 0x13e   : > { %9188 = vmatprep.subr.bf16.mxu1 %v9833_v35  ;;  %12977 = vst [vmem:[#allocation81_spill] sm:$0xff] %v11770_v57  ;;  %v11776_v35 = vld [vmem:[#allocation2 + $0x50] ss:$8 sps:$4 sm:$0xff]  }
 0x13f   : > { %9301 = vmatpush3.bf16.msra.mxu0 %v9836_v4  ;;  %v8712_v16 = vpop.f32.mrf.mxu1 }
 0x140   : > { %9510 = vmatprep.subr.bf16.mxu0 %v9839_v49  ;;  %v11774_v62 = vadd.f32 %v8712_v16, %v8711_v54  ;;  %v8666_v58 = vpop.f32.mrf.mxu0  ;;  %v11788_v16 = vld [vmem:[#allocation2 + $0x60] ss:$8 sps:$4 sm:$0xff]  }
 0x141   : > { %9189 = vmatpush3.bf16.msra.mxu1 %v9834_v53  ;;  %5445 = vmatmul.mubr.bf16.gmra.mxu0 %v10809_v2 }
 0x142   : > { %9398 = vmatprep.subr.bf16.mxu1 %v9837_v25  ;;  %5452 = vmatprep.mubr.bf16.mxu0 %v10847_v44  ;;  %12978 = vst [vmem:[#allocation82_spill] sm:$0xff] %v11774_v62  ;;  %v8667_v4 = vpop.f32.mrf.mxu0  ;;  %v12984_v44 = vld [vmem:[#allocation9_spill] sm:$0xff] }
 0x143   : > { %v11782_v6 = vadd.f32 %v8667_v4, %v8666_v58 }
 0x144   : > { %5284 = vmatmul.mubr.bf16.gmra.mxu1 %v11776_v35  ;;  %v8669_v49 = vpop.f32.mrf.mxu0 }
 0x145   : > { %5291 = vmatprep.mubr.bf16.mxu1 %v11779_v23 }
 0x146   : > { %v8714_v53 = vpop.f32.mrf.mxu1  ;;  %v8670_v34 = vpop.f32.mrf.mxu0 }
 0x147   : > { %v11785_v25 = vadd.f32 %v8670_v34, %v8669_v49  ;;  %v11800_v34 = vld [vmem:[#allocation2 + $0x78] ss:$8 sps:$4 sm:$0xff]  }
 0x148   : > { %v8715_v54 = vpop.f32.mrf.mxu1 }
 0x149   : > { %5453 = vmatmul.mubr.bf16.gmra.mxu0 %v10893_v31  ;;  %v11791_v55 = vadd.f32 %v8715_v54, %v8714_v53  ;;  %v12981_v53 = vld [vmem:[#allocation8_spill] sm:$0xff]  ;;  %v12983_v31 = vld [vmem:[#allocation33_spill] sm:$0xff] }
 0x14a   : > { %5460 = vmatprep.mubr.bf16.mxu0 %v10901_v22  ;;  %v8717_v58 = vpop.f32.mrf.mxu1 }
 0x14b   : > { %12979 = vst [vmem:[#allocation83_spill] sm:$0xff] %v11791_v55  ;;  %v12988_v55 = vld [vmem:[#allocation43_spill] sm:$0xff] }
 0x14c   : > { %5292 = vmatmul.mubr.bf16.gmra.mxu1 %v11788_v16  ;;  %v8718_v4 = vpop.f32.mrf.mxu1 }
 0x14d   : > { %5299 = vmatprep.mubr.bf16.mxu1 %v11793_v7  ;;  %v11796_v11 = vadd.f32 %v8718_v4, %v8717_v58 }
 0x14f   : > { %12980 = vst [vmem:[#allocation84_spill] sm:$0xff] %v11796_v11  ;;  %v8672_v49 = vpop.f32.mrf.mxu0 }
 0x151   : > { %5461 = vmatmul.mubr.bf16.gmra.mxu0 %v10905_v39  ;;  %v8673_v48 = vpop.f32.mrf.mxu0 }
 0x152   : > { %5468 = vmatprep.mubr.bf16.mxu0 %v10955_v20  ;;  %v11804_v54 = vadd.f32 %v8673_v48, %v8672_v49  ;;  %v12985_v48 = vld [vmem:[#allocation10_spill] sm:$0xff] }
 0x153   : > { %v8675_v18 = vpop.f32.mrf.mxu0  ;;  %v8720_v12 = vpop.f32.mrf.mxu1 }
 0x154   : > { %5300 = vmatmul.mubr.bf16.gmra.mxu1 %v11800_v34 }
 0x155   : > { %5307 = vmatprep.mubr.bf16.mxu1 %v12981_v53  ;;  %v8676_v8 = vpop.f32.mrf.mxu0  ;;  %v8721_v22 = vpop.f32.mrf.mxu1 }
 0x156   : > { %v11806_v58 = vadd.f32 %v8676_v8, %v8675_v18  ;;  %v11809_v4 = vadd.f32 %v8721_v22, %v8720_v12  ;;  %v12987_v22 = vld [vmem:[#allocation34_spill] sm:$0xff] }
 0x157   : > { %v8854_v20 = vpop.f32.mrf.mxu0  ;;  %v8723_v39 = vpop.f32.mrf.mxu1 }
 0x158   : > { %12982 = vst [vmem:[#allocation8_spill] sm:$0xff] %v11809_v4 }
 0x159   : > { %5469 = vmatmul.mubr.bf16.gmra.mxu0 %v10958_v40  ;;  %v8855_v2 = vpop.f32.mrf.mxu0  ;;  %v8724_v26 = vpop.f32.mrf.mxu1 }
 0x15a   : > { %5476 = vmatprep.mubr.bf16.mxu0 %v12983_v31  ;;  %v8856_v49 = vadd.f32 %v8855_v2, %v8854_v20  ;;  %v11814_v51 = vadd.f32 %v8724_v26, %v8723_v39  ;;  %v12989_v31 = vld [vmem:[#allocation11_spill] sm:$0xff]  ;;  %v8635_v26 = vadd.f32 %v11382_v47, %v11355_v38 }
 0x15b   : > { %v8857_v13 = vpop.f32.mrf.mxu0  ;;  %v8742_v8 = vpop.f32.mrf.mxu1 }
 0x15c   : > { %5308 = vmatmul.mubr.bf16.gmra.mxu1 %v12984_v44  ;;  %12986 = vst [vmem:[#allocation9_spill] sm:$0xff] %v11814_v51  ;;  %v11830_v51 = vld [vmem:[#allocation2 + $0xcc] ss:$8 sps:$4 sm:$0xff]  }
 0x15d   : > { %5315 = vmatprep.mubr.bf16.mxu1 %v12985_v48  ;;  %v8858_v18 = vpop.f32.mrf.mxu0  ;;  %v8743_v11 = vpop.f32.mrf.mxu1  ;;  %12996 = vst [vmem:[#allocation85_spill] sm:$0xff] %v11830_v51 }
 0x15e   : > { %v8859_v40 = vadd.f32 %v8858_v18, %v8857_v13  ;;  %v8744_v12 = vadd.f32 %v8743_v11, %v8742_v8  ;;  %v12993_v8 = vld [vmem:[#allocation49_spill] sm:$0xff]  ;;  %v12994_v18 = vld [vmem:[#allocation47_spill] sm:$0xff] }
 0x15f   : > { %v8745_v4 = vpop.f32.mrf.mxu1 }
 0x160   : > { %v4164_v62 = vadd.f32 %v8744_v12, %v11412_v46 }
 0x161   : > { %5477 = vmatmul.mubr.bf16.gmra.mxu0 %v12987_v22  ;;  %v8746_v57 = vpop.f32.mrf.mxu1  ;;  %v12995_v22 = vld [vmem:[#allocation15_spill] sm:$0xff] }
 0x162   : > { %5484 = vmatprep.mubr.bf16.mxu0 %v12988_v55  ;;  %v11823_v2 = vadd.f32 %v8856_v49, %v4164_v62  ;;  %v8747_v39 = vadd.f32 %v8746_v57, %v8745_v4 }
 0x164   : > { %5316 = vmatmul.mubr.bf16.gmra.mxu1 %v12989_v31  ;;  %12991 = vst [vmem:[#allocation10_spill] sm:$0xff] %v11823_v2  ;;  %v4167_v13 = vadd.f32 %v8747_v39, %v8635_v26 }
 0x165   : > { %5323 = vmatprep.mubr.bf16.mxu1 %v12990_v60 }
 0x166   : > { %v11825_v20 = vadd.f32 %v8859_v40, %v4167_v13  ;;  %v12997_v13 = vld [vmem:[#allocation48_spill] sm:$0xff] }
 0x168   : > { %12992 = vst [vmem:[#allocation11_spill] sm:$0xff] %v11825_v20  ;;  %v8860_v11 = vpop.f32.mrf.mxu0 }
 0x169   : > { %5485 = vmatmul.mubr.bf16.gmra.mxu0 %v12993_v8  ;;  %v8748_v55 = vpop.f32.mrf.mxu1  ;;  %v12999_v8 = vld [vmem:[#allocation52_spill] sm:$0xff] }
 0x16a   : > { %5492 = vmatprep.mubr.bf16.mxu0 %v12994_v18  ;;  %v8861_v46 = vpop.f32.mrf.mxu0 }
 0x16b   : > { %v8862_v12 = vadd.f32 %v8861_v46, %v8860_v11  ;;  %v8749_v38 = vpop.f32.mrf.mxu1  ;;  %v8641_v11 = vadd.f32 %v11512_v1, %v11472_v29 }
 0x16c   : > { %5324 = vmatmul.mubr.bf16.gmra.mxu1 %v12995_v22  ;;  %v8863_v47 = vpop.f32.mrf.mxu0  ;;  %v8750_v57 = vadd.f32 %v8749_v38, %v8748_v55  ;;  %v11840_v55 = vld [vmem:[#allocation2 + $0xc8] ss:$8 sps:$4 sm:$0xff]  }
 0x16d   : > { %5331 = vmatprep.mubr.bf16.mxu1 %v11830_v51  ;;  %v8751_v62 = vpop.f32.mrf.mxu1  ;;  %13000 = vst [vmem:[#allocation87_spill] sm:$0xff] %v11840_v55 }
 0x16e   : > { %v8864_v40 = vpop.f32.mrf.mxu0  ;;  %v4172_v4 = vadd.f32 %v8750_v57, %v11520_v17  ;;  %v11843_v57 = vld [vmem:[#allocation2 + $0xdc] ss:$8 sps:$4 sm:$0xff]  }
 0x16f   : > { %v8865_v49 = vadd.f32 %v8864_v40, %v8863_v47  ;;  %v8752_v26 = vpop.f32.mrf.mxu1  ;;  %13001 = vst [vmem:[#allocation88_spill] sm:$0xff] %v11843_v57 }
 0x170   : > { %v8866_v39 = vpop.f32.mrf.mxu0  ;;  %v11837_v46 = vadd.f32 %v8862_v12, %v4172_v4  ;;  %v8753_v18 = vadd.f32 %v8752_v26, %v8751_v62 }
 0x171   : > { %5493 = vmatmul.mubr.bf16.gmra.mxu0 %v12997_v13  ;;  %v8754_v20 = vpop.f32.mrf.mxu1  ;;  %v11864_v13 = vld [vmem:[#allocation2 + $0xd8] ss:$8 sps:$4 sm:$0xff]  }
 0x172   : > { %12998 = vst [vmem:[#allocation86_spill] sm:$0xff] %v11837_v46  ;;  %5500 = vmatprep.mubr.bf16.mxu0 %v12999_v8  ;;  %v8867_v17 = vpop.f32.mrf.mxu0  ;;  %v4175_v38 = vadd.f32 %v8753_v18, %v8641_v11  ;;  %13007 = vst [vmem:[#allocation91_spill] sm:$0xff] %v11864_v13  ;;  %v13013_v46 = vld [vmem:[#allocation61_spill] sm:$0xff] }
 0x173   : > { %v8868_v47 = vadd.f32 %v8867_v17, %v8866_v39  ;;  %v8755_v40 = vpop.f32.mrf.mxu1  ;;  %v13004_v17 = vld [vmem:[#allocation56_spill] sm:$0xff] }
 0x174   : > { %5332 = vmatmul.mubr.bf16.gmra.mxu1 %v11840_v55  ;;  %v8869_v29 = vpop.f32.mrf.mxu0  ;;  %v11851_v1 = vadd.f32 %v8865_v49, %v4175_v38  ;;  %v8756_v12 = vadd.f32 %v8755_v40, %v8754_v20  ;;  %v8647_v49 = vadd.f32 %v11593_v27, %v11578_v59  ;;  %v13006_v40 = vld [vmem:[#allocation54_spill] sm:$0xff] }
 0x175   : > { %5339 = vmatprep.mubr.bf16.mxu1 %v11843_v57  ;;  %v8757_v62 = vpop.f32.mrf.mxu1 }
 0x176   : > { %13003 = vst [vmem:[#allocation89_spill] sm:$0xff] %v11851_v1  ;;  %v8870_v4 = vpop.f32.mrf.mxu0  ;;  %v4180_v18 = vadd.f32 %v8756_v12, %v11550_v32 }
 0x177   : > { %v8871_v26 = vadd.f32 %v8870_v4, %v8869_v29  ;;  %v8758_v39 = vpop.f32.mrf.mxu1  ;;  %v11868_v4 = vld [vmem:[#allocation2 + $0xf4] ss:$8 sps:$4 sm:$0xff]  }
 0x178   : > { %v8872_v11 = vpop.f32.mrf.mxu0  ;;  %v11861_v38 = vadd.f32 %v8868_v47, %v4180_v18  ;;  %v8759_v20 = vadd.f32 %v8758_v39, %v8757_v62  ;;  %13008 = vst [vmem:[#allocation92_spill] sm:$0xff] %v11868_v4  ;;  %v722_v47 = vld [vmem:[#allocation2 + $0x168] sm:$0x11]  ;;  %v1254_v39 = vstv %s1253_s28  ;;  %s12587_s28 = scalar_lea.vmem %s12723_s8, %s10056_s24  ;;  %s7800_s24 = sshll.u32 %s13203_s10, 2 }
 0x179   : > { %5501 = vmatmul.mubr.bf16.gmra.mxu0 %v13004_v17  ;;  %v8760_v8 = vpop.f32.mrf.mxu1  ;;  %vm11897_vm8 = vcmp.eq.s32.totalorder %v1254_v39, 1  ;;  %v11913_v39 = vld [vmem:[#allocation2 + $0x104] ss:$8 sps:$4 sm:$0xff]   ;;  %s682_s26 = sadd.s32 %s7800_s24, %s13211_s30 }
 0x17a   : > { %13005 = vst [vmem:[#allocation90_spill] sm:$0xff] %v11861_v38  ;;  %5508 = vmatprep.mubr.bf16.mxu0 %v13006_v40  ;;  %v8873_v32 = vpop.f32.mrf.mxu0  ;;  %v4183_v29 = vadd.f32 %v8759_v20, %v8647_v49  ;;  %v1739_v40 = vld [vmem:[%s11882_s23 + $0x4] sm:$0xf]  ;;  %v13011_v38 = vld [vmem:[#allocation55_spill] sm:$0xff]  ;;  %13017 = vst [vmem:[#allocation95_spill] sm:$0xff] %v11913_v39  ;;  %s7801_s16 = sshll.u32 %s682_s26, 1 }
 0x17b   : > { %v8874_v12 = vadd.f32 %v8873_v32, %v8872_v11  ;;  %v8761_v59 = vpop.f32.mrf.mxu1  ;;  %v723_v11 = vsel %vm10096_vm10, 0, %v722_v47  ;;  %s684_s17 = scalar_lea.vmem %s12724_s9, %s7801_s16 }
 0x17c   : > { %5340 = vmatmul.mubr.bf16.gmra.mxu1 %v11864_v13  ;;  %v8875_v27 = vpop.f32.mrf.mxu0  ;;  %v11872_v62 = vadd.f32 %v8871_v26, %v4183_v29  ;;  %v8762_v18 = vadd.f32 %v8761_v59, %v8760_v8  ;;  %724 = vst [vmem:[#allocation2 + $0x168] sm:$0x11] %v723_v11  ;;  %v1193_v8 = vld [vmem:[%s11877_s19] sm:$0xf]  ;;  %v1194_v29 = vld [vmem:[%s11877_s19 + $0x4] sm:$0xf] }
 0x17d   : > { %5347 = vmatprep.mubr.bf16.mxu1 %v11868_v4  ;;  %v8763_v26 = vpop.f32.mrf.mxu1  ;;  %v1738_v59 = vld [vmem:[%s11882_s23] sm:$0xf] }
 0x17e   : > { %13009 = vst [vmem:[#allocation93_spill] sm:$0xff] %v11872_v62  ;;  %v8876_v49 = vpop.f32.mrf.mxu0  ;;  %v4188_v20 = vadd.f32 %v8762_v18, %v11608_v21  ;;  %v11901_v21 = vld [vmem:[#allocation2 + $0xf0] ss:$8 sps:$4 sm:$0xff]   ;;  %v1256_v18 = vsel %vm11897_vm8, 0, %v1193_v8 }
 0x17f   : > { %v8877_v32 = vadd.f32 %v8876_v49, %v8875_v27  ;;  %v8764_v17 = vpop.f32.mrf.mxu1  ;;  %13016 = vst [vmem:[#allocation94_spill] sm:$0xff] %v11901_v21 }
 0x180   : > { %v8878_v62 = vpop.f32.mrf.mxu0  ;;  %v11894_v1 = vadd.f32 %v8874_v12, %v4188_v20  ;;  %v8765_v47 = vadd.f32 %v8764_v17, %v8763_v26  ;;  %v1257_v12 = vsel %vm11897_vm8, 0, %v1194_v29  ;;  %v1795_v17 = vsel %vm11897_vm8, 0, %v1738_v59 }
 0x181   : > { %5509 = vmatmul.mubr.bf16.gmra.mxu0 %v13011_v38  ;;  %v8766_v2 = vpop.f32.mrf.mxu1  ;;  %v1796_v26 = vsel %vm11897_vm8, 0, %v1739_v40  ;;  %v1264_v38 = vshll.u32 %v1256_v18, 16  ;;  %v1272_v4 = vshll.u32 %v1257_v12, 16  ;;  %v1800_v29 = vshrl.u32 %v1795_v17, 16 }
 0x182   : > { %13012 = vst [vmem:[#allocation5_spill] sm:$0xff] %v11894_v1  ;;  %5516 = vmatprep.mubr.bf16.mxu0 %v13013_v46  ;;  %v8879_v27 = vpop.f32.mrf.mxu0  ;;  %v4191_v49 = vadd.f32 %v8765_v47, %v11625_v56  ;;  %v1261_v46 = vshrl.u32 %v1256_v18, 16  ;;  %v1803_v13 = vshll.u32 %v1795_v17, 16  ;;  %v1811_v18 = vshll.u32 %v1796_v26, 16 }
 0x183   : > { %v8880_v20 = vadd.f32 %v8879_v27, %v8878_v62  ;;  %v8767_v1 = vpop.f32.mrf.mxu1  ;;  %v1301_v56 = vld [vmem:[#allocation2 + $0x168] sm:$0xf]  ;;  %v1808_v62 = vshrl.u32 %v1796_v26, 16  ;;  %v1839_v51 = vld [vmem:[#allocation2 + $0x16c] sm:$0xf] }
 0x184   : > { %5348 = vmatmul.mubr.bf16.gmra.mxu1 %v11901_v21  ;;  %v8881_v8 = vpop.f32.mrf.mxu0  ;;  %v1269_v21 = vshrl.u32 %v1257_v12, 16  ;;  %v11916_v59 = vadd.f32 %v8877_v32, %v4191_v49  ;;  %v8768_v40 = vadd.f32 %v8767_v1, %v8766_v2  ;;  %v1263_v57 = vrot.slane %v1261_v46, 7  ;;  %v1196_v32 = vld [vmem:[%s11877_s19 + $0xc] sm:$0xf]  ;;  %v13019_v2 = vld [vmem:[#allocation64_spill] sm:$0xff] }
 0x185   : > { %5355 = vmatprep.mubr.bf16.mxu1 %v11913_v39  ;;  %v8769_v47 = vpop.f32.mrf.mxu1  ;;  %v1802_v39 = vrot.slane %v1800_v29, 7 }
 0x186   : > { %13018 = vst [vmem:[#allocation96_spill] sm:$0xff] %v11916_v59  ;;  %v8882_v27 = vpop.f32.mrf.mxu0  ;;  %v11918_v55 = vrot.slane %v1269_v21, 7  ;;  %v4196_v22 = vadd.f32 %v8768_v40, %v11675_v52  ;;  %v1266_v15 = vor.u32 %v1264_v38, %v1263_v57  ;;  %v1267_v17 = vrot.slane %v1263_v57, 4  ;;  %v13020_v52 = vld [vmem:[#allocation63_spill] sm:$0xff] }
 0x187   : > { %v8883_v12 = vadd.f32 %v8882_v27, %v8881_v8  ;;  %v8770_v49 = vpop.f32.mrf.mxu1  ;;  %v1805_v1 = vor.u32 %v1803_v13, %v1802_v39  ;;  %v1806_v60 = vrot.slane %v1802_v39, 4  ;;  %v11925_v21 = vrot.slane %v1808_v62, 7  ;;  %v11934_v40 = vld [vmem:[#allocation2 + $0x100] ss:$8 sps:$4 sm:$0xff]   ;;  %v11946_v62 = vld [vmem:[#allocation2 + $0x11c] ss:$8 sps:$4 sm:$0xff]  }
 0x188   : > { %v8884_v59 = vpop.f32.mrf.mxu0  ;;  %v1274_v46 = vor.u32 %v1272_v4, %v11918_v55  ;;  %v11927_v26 = vadd.f32 %v8880_v20, %v4196_v22  ;;  %v8771_v29 = vadd.f32 %v8770_v49, %v8769_v47  ;;  %v1302_v57 = vsel %vm10145_vm15, %v1266_v15, %v1301_v56 }
 0x189   : > { %5517 = vmatmul.mubr.bf16.gmra.mxu0 %v13019_v2  ;;  %v1258_v38 = vsel %vm11897_vm8, 0, %v1195_v9  ;;  %v8772_v8 = vpop.f32.mrf.mxu1  ;;  %1303 = vst [vmem:[#allocation2 + $0x168] sm:$0xf] %v1302_v57  ;;  %v1813_v4 = vor.u32 %v1811_v18, %v11925_v21  ;;  %v1840_v20 = vsel %vm10145_vm15, %v1805_v1, %v1839_v51  ;;  %v1259_v15 = vsel %vm11897_vm8, 0, %v1196_v32  ;;  %v1740_v9 = vld [vmem:[%s11882_s23 + $0x8] sm:$0xf] }
 0x18a   : > { %5524 = vmatprep.mubr.bf16.mxu0 %v13020_v52  ;;  %v8885_v13 = vpop.f32.mrf.mxu0  ;;  %v1275_v22 = vsel %vm10123_vm14, %v1267_v17, %v1274_v46  ;;  %v4199_v39 = vadd.f32 %v8771_v29, %v11696_v24  ;;  %1841 = vst [vmem:[#allocation2 + $0x16c] sm:$0xf] %v1840_v20  ;;  %v1278_v47 = vshrl.u32 %v1258_v38, 16  ;;  %v1281_v27 = vshll.u32 %v1258_v38, 16  ;;  %v1741_v17 = vld [vmem:[%s11882_s23 + $0xc] sm:$0xf] }
 0x18b   : > { %v8886_v56 = vadd.f32 %v8885_v13, %v8884_v59  ;;  %1304 = vst [vmem:[#allocation2 + $0x170] sm:$0xf] %v1275_v22  ;;  %v8773_v18 = vpop.f32.mrf.mxu1  ;;  %v1814_v45 = vsel %vm10123_vm14, %v1806_v60, %v1813_v4  ;;  %v1276_v51 = vrot.slane %v11918_v55, 4  ;;  %v1287_v32 = vshrl.u32 %v1259_v15, 16 }
 0x18c   : > { %5356 = vmatmul.mubr.bf16.gmra.mxu1 %v11934_v40  ;;  %v8887_v49 = vpop.f32.mrf.mxu0  ;;  %v1290_v46 = vshll.u32 %v1259_v15, 16  ;;  %v11953_v24 = vadd.f32 %v8883_v12, %v4199_v39  ;;  %v8774_v59 = vadd.f32 %v8773_v18, %v8772_v8  ;;  %1842 = vst [vmem:[#allocation2 + $0x174] sm:$0xf] %v1814_v45  ;;  %v1280_v1 = vrot.slane %v1278_v47, 7 }
 0x18d   : > { %5363 = vmatprep.mubr.bf16.mxu1 %v11946_v62  ;;  %v1797_v29 = vsel %vm11897_vm8, 0, %v1740_v9  ;;  %v8775_v57 = vpop.f32.mrf.mxu1  ;;  %v11957_v13 = vrot.slane %v1287_v32, 7  ;;  %v1798_v22 = vsel %vm11897_vm8, 0, %v1741_v17  ;;  %v1815_v60 = vrot.slane %v11925_v21, 4  ;;  %v11970_v17 = vld [vmem:[#allocation2 + $0x118] ss:$8 sps:$4 sm:$0xff]  }
 0x18e   : > { %v8888_v38 = vpop.f32.mrf.mxu0  ;;  %v1817_v55 = vshrl.u32 %v1797_v29, 16  ;;  %v4204_v4 = vadd.f32 %v8774_v59, %v11743_v37  ;;  %v1283_v20 = vor.u32 %v1281_v27, %v1280_v1  ;;  %v1285_v8 = vrot.slane %v1280_v1, 4 }
 0x18f   : > { %v8889_v12 = vadd.f32 %v8888_v38, %v8887_v49  ;;  %v8776_v15 = vpop.f32.mrf.mxu1  ;;  %v1292_v9 = vor.u32 %v1290_v46, %v11957_v13  ;;  %v1820_v18 = vshll.u32 %v1797_v29, 16  ;;  %v1826_v45 = vshrl.u32 %v1798_v22, 16  ;;  %v11978_v38 = vld [vmem:[#allocation2 + $0x12c] ss:$8 sps:$4 sm:$0xff]  }
 0x190   : > { %v8890_v39 = vpop.f32.mrf.mxu0  ;;  %v1819_v47 = vrot.slane %v1817_v55, 7  ;;  %v11965_v32 = vadd.f32 %v8886_v56, %v4204_v4  ;;  %v8777_v11 = vadd.f32 %v8776_v15, %v8775_v57  ;;  %v1284_v37 = vsel %vm10123_vm14, %v1276_v51, %v1283_v20 }
 0x191   : > { %5525 = vmatmul.mubr.bf16.gmra.mxu0 %v11465_v28  ;;  %v1829_v21 = vshll.u32 %v1798_v22, 16  ;;  %v8778_v27 = vpop.f32.mrf.mxu1  ;;  %v1293_v46 = vsel %vm10123_vm14, %v1285_v8, %v1292_v9  ;;  %1305 = vst [vmem:[#allocation2 + $0x178] sm:$0xf] %v1284_v37  ;;  %v11975_v1 = vrot.slane %v1826_v45, 7  ;;  %v11993_v37 = vld [vmem:[#allocation2 + $0x128] ss:$8 sps:$4 sm:$0xff]  }
 0x192   : > { %5532 = vmatprep.mubr.bf16.mxu0 %v11475_v0  ;;  %v8891_v49 = vpop.f32.mrf.mxu0  ;;  %v1822_v59 = vor.u32 %v1820_v18, %v1819_v47  ;;  %v1824_v56 = vrot.slane %v1819_v47, 4  ;;  %v4207_v29 = vadd.f32 %v8777_v11, %v11762_v5  ;;  %1306 = vst [vmem:[#allocation2 + $0x180] sm:$0xf] %v1293_v46 }
 0x193   : > { %v8892_v57 = vadd.f32 %v8891_v49, %v8890_v39  ;;  %v8779_v51 = vpop.f32.mrf.mxu1  ;;  %v1831_v4 = vor.u32 %v1829_v21, %v11975_v1 }
 0x194   : > { %5364 = vmatmul.mubr.bf16.gmra.mxu1 %v11970_v17  ;;  %v8893_v22 = vpop.f32.mrf.mxu0  ;;  %v1823_v55 = vsel %vm10123_vm14, %v1815_v60, %v1822_v59  ;;  %v11984_v20 = vadd.f32 %v8889_v12, %v4207_v29  ;;  %v8780_v8 = vadd.f32 %v8779_v51, %v8778_v27  ;;  %v13021_v27 = vcombine.high %v11635_v3, %v11644_v30 }
 0x195   : > { %5371 = vmatprep.mubr.bf16.mxu1 %v11978_v38  ;;  %1843 = vst [vmem:[#allocation2 + $0x17c] sm:$0xf] %v1823_v55  ;;  %v8781_v15 = vpop.f32.mrf.mxu1  ;;  %v1832_v5 = vsel %vm10123_vm14, %v1824_v56, %v1831_v4  ;;  %v9838_v55 = vld [vmem:[%s12721_s6 + $0x3b8] sm:$0xff]  }
 0x196   : > { %v8894_v9 = vpop.f32.mrf.mxu0  ;;  %v4212_v39 = vadd.f32 %v8780_v8, %v11782_v6  ;;  %1844 = vst [vmem:[#allocation2 + $0x184] sm:$0xf] %v1832_v5 }
 0x197   : > { %v8895_v47 = vadd.f32 %v8894_v9, %v8893_v22  ;;  %v8782_v18 = vpop.f32.mrf.mxu1 }
 0x198   : > { %v8896_v45 = vpop.f32.mrf.mxu0  ;;  %v11990_v60 = vadd.f32 %v8892_v57, %v4212_v39  ;;  %v8783_v11 = vadd.f32 %v8782_v18, %v8781_v15  ;;  %v9841_v15 = vld [vmem:[%s12721_s6 + $0x3f0] sm:$0xff]   ;;  %v9847_v18 = vld [vmem:[%s12721_s6 + $0x468] sm:$0xff]  }
 0x199   : > { %5533 = vmatmul.mubr.bf16.gmra.mxu0 %v11525_v43  ;;  %v8784_v12 = vpop.f32.mrf.mxu1 }
 0x19a   : > { %6696 = vmatprep.mubr.bf16.mxu0 %v11759_v36  ;;  %v8897_v41 = vpop.f32.mrf.mxu0  ;;  %v4215_v21 = vadd.f32 %v8783_v11, %v11785_v25  ;;  %v9840_v36 = vld [vmem:[%s12721_s6 + $0x438] sm:$0xff]   ;;  %v9843_v25 = vld [vmem:[%s12721_s6 + $0x470] sm:$0xff]  }
 0x19b   : > { %v8898_v6 = vadd.f32 %v8897_v41, %v8896_v45  ;;  %v8785_v49 = vpop.f32.mrf.mxu1  ;;  %v9845_v41 = vld [vmem:[%s12721_s6 + $0x3e8] sm:$0xff]  }
 0x19c   : > { %5372 = vmatmul.mubr.bf16.gmra.mxu1 %v11993_v37  ;;  %v8899_v46 = vpop.f32.mrf.mxu0  ;;  %v12000_v59 = vadd.f32 %v8895_v47, %v4215_v21  ;;  %v8786_v56 = vadd.f32 %v8785_v49, %v8784_v12  ;;  %v13022_v47 = vcombine.low %v11635_v3, %v11644_v30  ;;  %v9842_v12 = vld [vmem:[%s12721_s6 + $0x3b0] sm:$0xff]  }
 0x19d   : > { %5573 = vmatprep.mubr.bf16.mxu1 %v13021_v27  ;;  %v8787_v29 = vpop.f32.mrf.mxu1 }
 0x19e   : > { %v8900_v57 = vpop.f32.mrf.mxu0  ;;  %v4220_v51 = vadd.f32 %v8786_v56, %v11804_v54  ;;  %v9844_v54 = vld [vmem:[%s12721_s6 + $0x430] sm:$0xff]   ;;  %v13024_v56 = vld [vmem:[#allocation65_spill] sm:$0xff] }
 0x19f   : > { %v8901_v22 = vadd.f32 %v8900_v57, %v8899_v46  ;;  %v8788_v4 = vpop.f32.mrf.mxu1  ;;  %v9851_v46 = vld [vmem:[%s12721_s6 + $0x460] sm:$0xff]   ;;  %v9846_v57 = vld [vmem:[%s12721_s6 + $0x3a8] sm:$0xff]  }
 0x1a0   : > { %v8902_v8 = vpop.f32.mrf.mxu0  ;;  %v12016_v9 = vadd.f32 %v8898_v6, %v4220_v51  ;;  %v8789_v5 = vadd.f32 %v8788_v4, %v8787_v29  ;;  %v9848_v6 = vld [vmem:[%s12721_s6 + $0x428] sm:$0xff]  }
 0x1a1   : > { %6697 = vmatmul.mubr.bf16.vlgmr.msra.gmra.mxu0 %v11776_v35 }
 0x1a2   : > { %9511 = vmatpush3.bf16.msra.mxu0 %v9840_v36  ;;  %6704 = vmatprep.mubr.bf16.mxu0 %v11779_v23  ;;  %v8790_v39 = vpop.f32.mrf.mxu1  ;;  %v8903_v35 = vpop.f32.mrf.mxu0  ;;  %v4223_v45 = vadd.f32 %v8789_v5, %v11806_v58  ;;  %v13023_v23 = vcombine.high %v11682_v50, %v11686_v42  ;;  %v9852_v5 = vld [vmem:[%s12721_s6 + $0x420] sm:$0xff]  }
 0x1a3   : > { %9512 = vmatprep.subr.bf16.mxu0 %v9843_v25  ;;  %v8904_v11 = vadd.f32 %v8903_v35, %v8902_v8 }
 0x1a4   : > { %5574 = vmatmul.mubr.bf16.vlgmr.msra.gmra.mxu1 %v13022_v47  ;;  %v8791_v3 = vpop.f32.mrf.mxu1  ;;  %v8905_v30 = vpop.f32.mrf.mxu0  ;;  %v12038_v21 = vadd.f32 %v8901_v22, %v4223_v45  ;;  %v9849_v22 = vld [vmem:[%s12721_s6 + $0x3e0] sm:$0xff]  }
 0x1a5   : > { %9399 = vmatpush3.bf16.msra.mxu1 %v9838_v55  ;;  %5581 = vmatprep.mubr.bf16.mxu1 %v13023_v23  ;;  %v8792_v58 = vadd.f32 %v8791_v3, %v8790_v39  ;;  %v13025_v55 = vld [vmem:[#allocation66_spill] sm:$0xff] }
 0x1a6   : > { %9400 = vmatprep.subr.bf16.mxu1 %v9841_v15  ;;  %9513 = vmatpush3.bf16.msra.mxu0 %v9844_v54  ;;  %v8793_v27 = vpop.f32.mrf.mxu1  ;;  %v8906_v49 = vpop.f32.mrf.mxu0  ;;  %v8683_v4 = vadd.f32 %v11444_v19, %v13025_v55  ;;  %v9855_v19 = vld [vmem:[%s12721_s6 + $0x458] sm:$0xff]   ;;  %v9863_v55 = vld [vmem:[%s12721_s6 + $0x448] sm:$0xff]  }
 0x1a7   : > { %9514 = vmatprep.subr.bf16.mxu0 %v9847_v18  ;;  %v4228_v36 = vadd.f32 %v8792_v58, %v13024_v56  ;;  %v8907_v29 = vadd.f32 %v8906_v49, %v8905_v30  ;;  %v13027_v18 = vld [vmem:[#allocation16_spill] sm:$0xff] }
 0x1a8   : > { %v8794_v25 = vpop.f32.mrf.mxu1  ;;  %v8908_v51 = vpop.f32.mrf.mxu0  ;;  %v9857_v56 = vld [vmem:[%s12721_s6 + $0x3d0] sm:$0xff]  }
 0x1a9   : > { %9401 = vmatpush3.bf16.msra.mxu1 %v9842_v12  ;;  %6705 = vmatmul.mubr.bf16.gmra.mxu0 %v11788_v16  ;;  %v12056_v8 = vadd.f32 %v8904_v11, %v4228_v36  ;;  %v8795_v15 = vadd.f32 %v8794_v25, %v8793_v27  ;;  %v13026_v16 = vcombine.low %v11682_v50, %v11686_v42  ;;  %v9853_v50 = vld [vmem:[%s12721_s6 + $0x3d8] sm:$0xff]   ;;  %v9860_v25 = vld [vmem:[%s12721_s6 + $0x410] sm:$0xff]  }
 0x1aa   : > { %9402 = vmatprep.subr.bf16.mxu1 %v9845_v41  ;;  %6712 = vmatprep.mubr.bf16.mxu0 %v11793_v7  ;;  %v8796_v54 = vpop.f32.mrf.mxu1  ;;  %v8909_v39 = vpop.f32.mrf.mxu0  ;;  %v9850_v7 = vld [vmem:[%s12721_s6 + $0x3a0] sm:$0xff]   ;;  %v9856_v12 = vld [vmem:[%s12721_s6 + $0x418] sm:$0xff]   ;;  %v9859_v41 = vld [vmem:[%s12721_s6 + $0x450] sm:$0xff]  }
 0x1ab   : > { %9515 = vmatpush3.bf16.msra.mxu0 %v9848_v6  ;;  %v4231_v47 = vadd.f32 %v8795_v15, %v8683_v4  ;;  %v8910_v35 = vadd.f32 %v8909_v39, %v8908_v51  ;;  %v9854_v27 = vld [vmem:[%s12721_s6 + $0x398] sm:$0xff]   ;;  %v13030_v15 = vld [vmem:[#allocation22_spill] sm:$0xff] }
 0x1ac   : > { %5582 = vmatmul.mubr.bf16.gmra.mxu1 %v13026_v16  ;;  %9516 = vmatprep.subr.bf16.mxu0 %v9851_v46  ;;  %v8797_v45 = vpop.f32.mrf.mxu1  ;;  %v8911_v11 = vpop.f32.mrf.mxu0  ;;  %v13028_v36 = vld [vmem:[#allocation73_spill] sm:$0xff]  ;;  %v9861_v16 = vld [vmem:[%s12721_s6 + $0x3c8] sm:$0xff]  }
 0x1ad   : > { %5589 = vmatprep.mubr.bf16.mxu1 %v13027_v18  ;;  %9403 = vmatpush3.bf16.msra.mxu1 %v9846_v57  ;;  %v12075_v42 = vadd.f32 %v8907_v29, %v4231_v47  ;;  %v8798_v23 = vadd.f32 %v8797_v45, %v8796_v54  ;;  %v8689_v29 = vadd.f32 %v11543_v14, %v13028_v36  ;;  %v9864_v47 = vld [vmem:[%s12721_s6 + $0x408] sm:$0xff]  }
 0x1ae   : > { %9404 = vmatprep.subr.bf16.mxu1 %v9849_v22  ;;  %v8799_v3 = vpop.f32.mrf.mxu1  ;;  %v8912_v30 = vpop.f32.mrf.mxu0 }
 0x1af   : > { %9517 = vmatpush3.bf16.msra.mxu0 %v9852_v5  ;;  %v4236_v58 = vadd.f32 %v8798_v23, %v11522_v61  ;;  %v8913_v6 = vadd.f32 %v8912_v30, %v8911_v11 }
 0x1b0   : > { %9518 = vmatprep.subr.bf16.mxu0 %v9855_v19  ;;  %v8800_v49 = vpop.f32.mrf.mxu1  ;;  %v8914_v46 = vpop.f32.mrf.mxu0 }
 0x1b1   : > { %9405 = vmatpush3.bf16.msra.mxu1 %v9850_v7  ;;  %6713 = vmatmul.mubr.bf16.gmra.mxu0 %v11800_v34  ;;  %v12093_v57 = vadd.f32 %v8910_v35, %v4236_v58  ;;  %v8801_v61 = vadd.f32 %v8800_v49, %v8799_v3  ;;  %v13029_v34 = vld [vmem:[#allocation18_spill] sm:$0xff] }
 0x1b2   : > { %9406 = vmatprep.subr.bf16.mxu1 %v9853_v50  ;;  %6720 = vmatprep.mubr.bf16.mxu0 %v12981_v53  ;;  %v8802_v51 = vpop.f32.mrf.mxu1  ;;  %v8915_v22 = vpop.f32.mrf.mxu0  ;;  %v9858_v53 = vld [vmem:[%s12721_s6 + $0x390] sm:$0xff]   ;;  %v9869_v7 = vld [vmem:[%s12721_s6 + $0x440] sm:$0xff]   ;;  %v9862_v50 = vld [vmem:[%s12721_s6 + $0x388] sm:$0xff]  }
 0x1b3   : > { %9519 = vmatpush3.bf16.msra.mxu0 %v9856_v12  ;;  %v4239_v14 = vadd.f32 %v8801_v61, %v8689_v29  ;;  %v8916_v4 = vadd.f32 %v8915_v22, %v8914_v46  ;;  %v9867_v3 = vld [vmem:[%s12721_s6 + $0x3c0] sm:$0xff]   ;;  %v13032_v46 = vld [vmem:[#allocation20_spill] sm:$0xff] }
 0x1b4   : > { %5590 = vmatmul.mubr.bf16.gmra.mxu1 %v13029_v34  ;;  %9520 = vmatprep.subr.bf16.mxu0 %v9859_v41  ;;  %v8803_v5 = vpop.f32.mrf.mxu1  ;;  %v8917_v54 = vpop.f32.mrf.mxu0 }
 0x1b5   : > { %5597 = vmatprep.mubr.bf16.mxu1 %v13030_v15  ;;  %9407 = vmatpush3.bf16.msra.mxu1 %v9854_v27  ;;  %v12110_v39 = vadd.f32 %v8913_v6, %v4239_v14  ;;  %v8804_v19 = vadd.f32 %v8803_v5, %v8802_v51  ;;  %v13031_v6 = vld [vmem:[#allocation23_spill] sm:$0xff]  ;;  %v13033_v15 = vld [vmem:[#allocation14_spill] sm:$0xff]  ;;  %v13034_v5 = vld [vmem:[#allocation24_spill] sm:$0xff] }
 0x1b6   : > { %9408 = vmatprep.subr.bf16.mxu1 %v9857_v56  ;;  %v8805_v35 = vpop.f32.mrf.mxu1  ;;  %v8918_v18 = vpop.f32.mrf.mxu0 }
 0x1b7   : > { %9521 = vmatpush3.bf16.msra.mxu0 %v9860_v25  ;;  %v4244_v45 = vadd.f32 %v8804_v19, %v11583_v63  ;;  %v8919_v11 = vadd.f32 %v8918_v18, %v8917_v54  ;;  %v9870_v63 = vld [vmem:[%s12721_s6 + $0x400] sm:$0xff]  }
 0x1b8   : > { %9522 = vmatprep.subr.bf16.mxu0 %v9863_v55  ;;  %v8806_v23 = vpop.f32.mrf.mxu1  ;;  %v8920_v12 = vpop.f32.mrf.mxu0 }
 0x1b9   : > { %9409 = vmatpush3.bf16.msra.mxu1 %v9858_v53  ;;  %6721 = vmatmul.mubr.bf16.gmra.mxu0 %v12984_v44  ;;  %v12126_v30 = vadd.f32 %v8916_v4, %v4244_v45  ;;  %v8807_v41 = vadd.f32 %v8806_v23, %v8805_v35  ;;  %v13036_v35 = vld [vmem:[#allocation26_spill] sm:$0xff] }
 0x1ba   : > { %9410 = vmatprep.subr.bf16.mxu1 %v9861_v16  ;;  %6728 = vmatprep.mubr.bf16.mxu0 %v12985_v48  ;;  %v8808_v58 = vpop.f32.mrf.mxu1  ;;  %v8921_v27 = vpop.f32.mrf.mxu0  ;;  %v9868_v48 = vld [vmem:[%s12721_s6 + $0x380] sm:$0xff]   ;;  %v13035_v16 = vld [vmem:[#allocation80_spill] sm:$0xff] }
 0x1bb   : > { %9523 = vmatpush3.bf16.msra.mxu0 %v9864_v47  ;;  %v4247_v44 = vadd.f32 %v8807_v41, %v11601_v10  ;;  %v8922_v49 = vadd.f32 %v8921_v27, %v8920_v12  ;;  %v13039_v27 = vld [vmem:[#allocation85_spill] sm:$0xff] }
 0x1bc   : > { %5598 = vmatmul.mubr.bf16.gmra.mxu1 %v13031_v6  ;;  %9524 = vmatprep.subr.bf16.mxu0 %v9869_v7  ;;  %v8809_v56 = vpop.f32.mrf.mxu1  ;;  %v8923_v36 = vpop.f32.mrf.mxu0 }
 0x1bd   : > { %5605 = vmatprep.mubr.bf16.mxu1 %v13032_v46  ;;  %9411 = vmatpush3.bf16.msra.mxu1 %v9862_v50  ;;  %v12138_v29 = vadd.f32 %v8919_v11, %v4247_v44  ;;  %v8810_v61 = vadd.f32 %v8809_v56, %v8808_v58  ;;  %v13037_v50 = vld [vmem:[#allocation17_spill] sm:$0xff]  ;;  %v13041_v56 = vld [vmem:[#allocation19_spill] sm:$0xff] }
 0x1be   : > { %9412 = vmatprep.subr.bf16.mxu1 %v9867_v3  ;;  %v8811_v25 = vpop.f32.mrf.mxu1  ;;  %v8924_v51 = vpop.f32.mrf.mxu0 }
 0x1bf   : > { %9525 = vmatpush3.bf16.msra.mxu0 %v9870_v63  ;;  %v4252_v34 = vadd.f32 %v8810_v61, %v11646_v33  ;;  %v8925_v10 = vadd.f32 %v8924_v51, %v8923_v36  ;;  %v13038_v63 = vld [vmem:[#allocation15_spill] sm:$0xff] }
 0x1c0   : > { %v8812_v22 = vpop.f32.mrf.mxu1 }
 0x1c1   : > { %9413 = vmatpush3.bf16.msra.mxu1 %v9868_v48  ;;  %v8926_v55 = vpop.f32.mrf.mxu0  ;;  %6729 = vmatmul.mubr.bf16.gmra.mxu0 %v12989_v31  ;;  %v12142_v14 = vadd.f32 %v8922_v49, %v4252_v34  ;;  %v8813_v4 = vadd.f32 %v8812_v22, %v8811_v25  ;;  %v13040_v49 = vld [vmem:[#allocation28_spill] sm:$0xff]  ;;  %v13042_v25 = vld [vmem:[#allocation29_spill] sm:$0xff] }
 0x1c2   : > { %6736 = vmatprep.mubr.bf16.mxu0 %v13033_v15  ;;  %v13043_v15 = vld [vmem:[#allocation81_spill] sm:$0xff] }
 0x1c3   : > { %v8927_v54 = vpop.f32.mrf.mxu0  ;;  %v4255_v19 = vadd.f32 %v8813_v4, %v13035_v16 }
 0x1c4   : > { %v8814_v53 = vpop.f32.mrf.mxu1  ;;  %5606 = vmatmul.mubr.bf16.gmra.mxu1 %v13034_v5  ;;  %v8928_v47 = vadd.f32 %v8927_v54, %v8926_v55 }
 0x1c5   : > { %5613 = vmatprep.mubr.bf16.mxu1 %v13036_v35  ;;  %v8929_v18 = vpop.f32.mrf.mxu0  ;;  %v12148_v7 = vadd.f32 %v8925_v10, %v4255_v19 }
 0x1c6   : > { %v8815_v33 = vpop.f32.mrf.mxu1 }
 0x1c7   : > { %v8816_v45 = vadd.f32 %v8815_v33, %v8814_v53  ;;  %v8930_v11 = vpop.f32.mrf.mxu0 }
 0x1c8   : > { %v8817_v31 = vpop.f32.mrf.mxu1  ;;  %v8931_v12 = vadd.f32 %v8930_v11, %v8929_v18  ;;  %v13046_v11 = vld [vmem:[#allocation35_spill] sm:$0xff] }
 0x1c9   : > { %v4260_v23 = vadd.f32 %v8816_v45, %v13037_v50  ;;  %v8932_v41 = vpop.f32.mrf.mxu0  ;;  %6737 = vmatmul.mubr.bf16.gmra.mxu0 %v13038_v63  ;;  %v13045_v45 = vld [vmem:[#allocation88_spill] sm:$0xff] }
 0x1ca   : > { %v8818_v3 = vpop.f32.mrf.mxu1  ;;  %6744 = vmatprep.mubr.bf16.mxu0 %v13039_v27 }
 0x1cb   : > { %v12152_v58 = vadd.f32 %v8928_v47, %v4260_v23  ;;  %v8819_v6 = vadd.f32 %v8818_v3, %v8817_v31  ;;  %v8933_v48 = vpop.f32.mrf.mxu0  ;;  %v13044_v47 = vld [vmem:[#allocation87_spill] sm:$0xff]  ;;  %v13047_v23 = vld [vmem:[#allocation82_spill] sm:$0xff] }
 0x1cc   : > { %v8820_v44 = vpop.f32.mrf.mxu1  ;;  %5614 = vmatmul.mubr.bf16.gmra.mxu1 %v13040_v49  ;;  %v8934_v61 = vadd.f32 %v8933_v48, %v8932_v41  ;;  %v13048_v41 = vld [vmem:[#allocation36_spill] sm:$0xff] }
 0x1cd   : > { %v4263_v36 = vadd.f32 %v8819_v6, %v13041_v56  ;;  %5621 = vmatprep.mubr.bf16.mxu1 %v13042_v25  ;;  %v8935_v34 = vpop.f32.mrf.mxu0 }
 0x1ce   : > { %v8821_v51 = vpop.f32.mrf.mxu1 }
 0x1cf   : > { %v12158_v10 = vadd.f32 %v8931_v12, %v4263_v36  ;;  %v8822_v22 = vadd.f32 %v8821_v51, %v8820_v44  ;;  %v8936_v4 = vpop.f32.mrf.mxu0  ;;  %v13049_v36 = vld [vmem:[#allocation83_spill] sm:$0xff] }
 0x1d0   : > { %v8823_v55 = vpop.f32.mrf.mxu1  ;;  %v8937_v54 = vadd.f32 %v8936_v4, %v8935_v34 }
 0x1d1   : > { %v4268_v53 = vadd.f32 %v8822_v22, %v13043_v15  ;;  %v8938_v19 = vpop.f32.mrf.mxu0  ;;  %6745 = vmatmul.mubr.bf16.gmra.mxu0 %v13044_v47  ;;  %v13053_v47 = vld [vmem:[#allocation84_spill] sm:$0xff] }
 0x1d2   : > { %v8824_v16 = vpop.f32.mrf.mxu1  ;;  %6752 = vmatprep.mubr.bf16.mxu0 %v13045_v45 }
 0x1d3   : > { %v12162_v33 = vadd.f32 %v8934_v61, %v4268_v53  ;;  %v8825_v18 = vadd.f32 %v8824_v16, %v8823_v55  ;;  %v8939_v50 = vpop.f32.mrf.mxu0  ;;  %v13050_v55 = vld [vmem:[#allocation91_spill] sm:$0xff]  ;;  %v13051_v53 = vld [vmem:[#allocation92_spill] sm:$0xff] }
 0x1d4   : > { %v8826_v31 = vpop.f32.mrf.mxu1  ;;  %5622 = vmatmul.mubr.bf16.gmra.mxu1 %v13046_v11  ;;  %v8940_v3 = vadd.f32 %v8939_v50, %v8938_v19  ;;  %v13052_v19 = vld [vmem:[#allocation39_spill] sm:$0xff] }
 0x1d5   : > { %v4271_v12 = vadd.f32 %v8825_v18, %v13047_v23  ;;  %5629 = vmatprep.mubr.bf16.mxu1 %v13048_v41  ;;  %v8941_v6 = vpop.f32.mrf.mxu0 }
 0x1d6   : > { %v8827_v63 = vpop.f32.mrf.mxu1 }
 0x1d7   : > { %v12168_v27 = vadd.f32 %v8937_v54, %v4271_v12  ;;  %v8828_v44 = vadd.f32 %v8827_v63, %v8826_v31  ;;  %v8942_v56 = vpop.f32.mrf.mxu0  ;;  %v13054_v31 = vld [vmem:[#allocation40_spill] sm:$0xff] }
 0x1d8   : > { %v8829_v48 = vpop.f32.mrf.mxu1  ;;  %v8943_v51 = vadd.f32 %v8942_v56, %v8941_v6 }
 0x1d9   : > { %v4276_v61 = vadd.f32 %v8828_v44, %v13049_v36  ;;  %v8944_v22 = vpop.f32.mrf.mxu0  ;;  %6753 = vmatmul.mubr.bf16.gmra.mxu0 %v13050_v55  ;;  %v13055_v44 = vld [vmem:[#allocation8_spill] sm:$0xff] }
 0x1da   : > { %v8830_v34 = vpop.f32.mrf.mxu1  ;;  %6760 = vmatprep.mubr.bf16.mxu0 %v13051_v53 }
 0x1db   : > { %v12172_v4 = vadd.f32 %v8940_v3, %v4276_v61  ;;  %v8831_v15 = vadd.f32 %v8830_v34, %v8829_v48  ;;  %v8945_v54 = vpop.f32.mrf.mxu0  ;;  %v13056_v34 = vld [vmem:[#allocation94_spill] sm:$0xff] }
 0x1dc   : > { %v8832_v16 = vpop.f32.mrf.mxu1  ;;  %5630 = vmatmul.mubr.bf16.gmra.mxu1 %v13052_v19  ;;  %v8946_v45 = vadd.f32 %v8945_v54, %v8944_v22  ;;  %v13057_v22 = vld [vmem:[#allocation95_spill] sm:$0xff]  ;;  %v13058_v54 = vld [vmem:[#allocation41_spill] sm:$0xff] }
 0x1dd   : > { %v4279_v18 = vadd.f32 %v8831_v15, %v13053_v47  ;;  %5637 = vmatprep.mubr.bf16.mxu1 %v13054_v31  ;;  %v8947_v23 = vpop.f32.mrf.mxu0  ;;  %v13059_v47 = vld [vmem:[#allocation9_spill] sm:$0xff] }
 0x1de   : > { %v8833_v50 = vpop.f32.mrf.mxu1 }
 0x1df   : > { %v12178_v12 = vadd.f32 %v8943_v51, %v4279_v18  ;;  %v8834_v63 = vadd.f32 %v8833_v50, %v8832_v16  ;;  %v8948_v3 = vpop.f32.mrf.mxu0  ;;  %v13060_v50 = vld [vmem:[#allocation42_spill] sm:$0xff] }
 0x1e0   : > { %v8835_v6 = vpop.f32.mrf.mxu1  ;;  %v8949_v56 = vadd.f32 %v8948_v3, %v8947_v23 }
 0x1e1   : > { %v4284_v48 = vadd.f32 %v8834_v63, %v13055_v44  ;;  %v9078_v61 = vpop.f32.mrf.mxu0  ;;  %6761 = vmatmul.mubr.bf16.gmra.mxu0 %v13056_v34 }
 0x1e2   : > { %v8836_v36 = vpop.f32.mrf.mxu1  ;;  %6768 = vmatprep.mubr.bf16.mxu0 %v13057_v22 }
 0x1e3   : > { %v12182_v55 = vadd.f32 %v8946_v45, %v4284_v48  ;;  %v8837_v15 = vadd.f32 %v8836_v36, %v8835_v6  ;;  %v9079_v51 = vpop.f32.mrf.mxu0  ;;  %v13062_v48 = vld [vmem:[#allocation10_spill] sm:$0xff] }
 0x1e4   : > { %v8966_v53 = vpop.f32.mrf.mxu1  ;;  %5638 = vmatmul.mubr.bf16.gmra.mxu1 %v13058_v54  ;;  %v9080_v18 = vadd.f32 %v9079_v51, %v9078_v61  ;;  %v13064_v51 = vld [vmem:[#allocation45_spill] sm:$0xff] }
 0x1e5   : > { %v4287_v16 = vadd.f32 %v8837_v15, %v13059_v47  ;;  %5645 = vmatprep.mubr.bf16.mxu1 %v13060_v50  ;;  %v9081_v23 = vpop.f32.mrf.mxu0  ;;  %v13065_v47 = vld [vmem:[#allocation11_spill] sm:$0xff] }
 0x1e6   : > { %v8967_v63 = vpop.f32.mrf.mxu1 }
 0x1e7   : > { %v12188_v3 = vadd.f32 %v8949_v56, %v4287_v16  ;;  %v8968_v44 = vadd.f32 %v8967_v63, %v8966_v53  ;;  %v9082_v45 = vpop.f32.mrf.mxu0  ;;  %v13066_v63 = vld [vmem:[#allocation44_spill] sm:$0xff] }
 0x1e8   : > { %v8969_v34 = vpop.f32.mrf.mxu1  ;;  %v9083_v36 = vadd.f32 %v9082_v45, %v9081_v23 }
 0x1e9   : > { %13061 = vst [vmem:[#allocation65_spill] sm:$0xff] %v12188_v3  ;;  %v5254_v6 = vadd.f32 %v8968_v44, %v13062_v48  ;;  %v9084_v43 = vpop.f32.mrf.mxu0  ;;  %6769 = vmatmul.mubr.bf16.gmra.mxu0 %v11934_v40 }
 0x1ea   : > { %v8970_v22 = vpop.f32.mrf.mxu1  ;;  %6776 = vmatprep.mubr.bf16.mxu0 %v11946_v62 }
 0x1eb   : > { %v12192_v0 = vadd.f32 %v9080_v18, %v5254_v6  ;;  %v8971_v15 = vadd.f32 %v8970_v22, %v8969_v34  ;;  %v9085_v56 = vpop.f32.mrf.mxu0  ;;  %v13068_v6 = vld [vmem:[#allocation86_spill] sm:$0xff] }
 0x1ec   : > { %v8972_v61 = vpop.f32.mrf.mxu1  ;;  %5646 = vmatmul.mubr.bf16.gmra.mxu1 %v13064_v51  ;;  %v9086_v16 = vadd.f32 %v9085_v56, %v9084_v43  ;;  %v13070_v56 = vld [vmem:[#allocation46_spill] sm:$0xff] }
 0x1ed   : > { %13063 = vst [vmem:[#allocation66_spill] sm:$0xff] %v12192_v0  ;;  %v5257_v53 = vadd.f32 %v8971_v15, %v13065_v47  ;;  %5653 = vmatprep.mubr.bf16.mxu1 %v13066_v63  ;;  %v9087_v23 = vpop.f32.mrf.mxu0  ;;  %v13071_v47 = vld [vmem:[#allocation89_spill] sm:$0xff]  ;;  %v9896_v0 = vld [vmem:[#allocation2 + $0x140] ss:$8 sps:$4 sm:$0xff]  }
 0x1ee   : > { %v8973_v44 = vpop.f32.mrf.mxu1 }
 0x1ef   : > { %v12198_v45 = vadd.f32 %v9083_v36, %v5257_v53  ;;  %v8974_v48 = vadd.f32 %v8973_v44, %v8972_v61  ;;  %v9088_v18 = vpop.f32.mrf.mxu0  ;;  %v13072_v44 = vld [vmem:[#allocation51_spill] sm:$0xff] }
 0x1f0   : > { %v8975_v40 = vpop.f32.mrf.mxu1  ;;  %v9089_v22 = vadd.f32 %v9088_v18, %v9087_v23 }
 0x1f1   : > { %13067 = vst [vmem:[#allocation16_spill] sm:$0xff] %v12198_v45  ;;  %v5262_v34 = vadd.f32 %v8974_v48, %v13068_v6  ;;  %v9090_v28 = vpop.f32.mrf.mxu0  ;;  %6777 = vmatmul.mubr.bf16.gmra.mxu0 %v11970_v17 }
 0x1f2   : > { %v8976_v62 = vpop.f32.mrf.mxu1  ;;  %6784 = vmatprep.mubr.bf16.mxu0 %v11978_v38 }
 0x1f3   : > { %v12202_v52 = vadd.f32 %v9086_v16, %v5262_v34  ;;  %v8977_v15 = vadd.f32 %v8976_v62, %v8975_v40  ;;  %v9091_v36 = vpop.f32.mrf.mxu0  ;;  %v13074_v34 = vld [vmem:[#allocation90_spill] sm:$0xff] }
 0x1f4   : > { %v8978_v43 = vpop.f32.mrf.mxu1  ;;  %5654 = vmatmul.mubr.bf16.gmra.mxu1 %v13070_v56  ;;  %v9092_v53 = vadd.f32 %v9091_v36, %v9090_v28  ;;  %v9895_v28 = vld [vmem:[#allocation2 + $0x144] ss:$8 sps:$4 sm:$0xff]  }
 0x1f5   : > { %13069 = vst [vmem:[#allocation73_spill] sm:$0xff] %v12202_v52  ;;  %v5265_v61 = vadd.f32 %v8977_v15, %v13071_v47  ;;  %5661 = vmatprep.mubr.bf16.mxu1 %v13072_v44  ;;  %v9093_v23 = vpop.f32.mrf.mxu0  ;;  %v13076_v47 = vld [vmem:[#allocation57_spill] sm:$0xff] }
 0x1f6   : > { %v8979_v48 = vpop.f32.mrf.mxu1 }
 0x1f7   : > { %v12208_v18 = vadd.f32 %v9089_v22, %v5265_v61  ;;  %v8980_v6 = vadd.f32 %v8979_v48, %v8978_v43  ;;  %v9094_v16 = vpop.f32.mrf.mxu0  ;;  %v13077_v61 = vld [vmem:[#allocation93_spill] sm:$0xff] }
 0x1f8   : > { %v8981_v17 = vpop.f32.mrf.mxu1  ;;  %v9095_v62 = vadd.f32 %v9094_v16, %v9093_v23 }
 0x1f9   : > { %13073 = vst [vmem:[#allocation18_spill] sm:$0xff] %v12208_v18  ;;  %v5270_v40 = vadd.f32 %v8980_v6, %v13074_v34  ;;  %v9096_v52 = vpop.f32.mrf.mxu0  ;;  %6785 = vmatmul.mubr.bf16.gmra.mxu0 %v11993_v37  ;;  %v13078_v18 = vld [vmem:[#allocation50_spill] sm:$0xff] }
 0x1fa   : > { %v8982_v38 = vpop.f32.mrf.mxu1  ;;  %6792 = vmatprep.mubr.bf16.mxu0 %v9895_v28  ;;  %v757_v28 = vld [vmem:[#allocation2 + $0x188] sm:$0x11] }
 0x1fb   : > { %v12212_v45 = vadd.f32 %v9092_v53, %v5270_v40  ;;  %v8983_v15 = vadd.f32 %v8982_v38, %v8981_v17  ;;  %v9097_v22 = vpop.f32.mrf.mxu0  ;;  %v13080_v40 = vld [vmem:[#allocation5_spill] sm:$0xff] }
 0x1fc   : > { %v8984_v36 = vpop.f32.mrf.mxu1  ;;  %5662 = vmatmul.mubr.bf16.gmra.mxu1 %v13076_v47  ;;  %v9098_v48 = vadd.f32 %v9097_v22, %v9096_v52  ;;  %v758_v52 = vsel %vm10113_vm13, 0, %v757_v28  ;;  %v1294_v28 = vrot.slane %v11957_v13, 4 }
 0x1fd   : > { %13075 = vst [vmem:[#allocation22_spill] sm:$0xff] %v12212_v45  ;;  %v5273_v43 = vadd.f32 %v8983_v15, %v13077_v61  ;;  %5669 = vmatprep.mubr.bf16.mxu1 %v13078_v18  ;;  %v9099_v23 = vpop.f32.mrf.mxu0  ;;  %v9897_v61 = vld [vmem:[#allocation2 + $0x154] ss:$8 sps:$4 sm:$0xff]   ;;  %759 = vst [vmem:[#allocation2 + $0x188] sm:$0x11] %v758_v52 }
 0x1fe   : > { %v8985_v6 = vpop.f32.mrf.mxu1 }
 0x1ff   : > { %v12217_v16 = vadd.f32 %v9095_v62, %v5273_v43  ;;  %v8986_v34 = vadd.f32 %v8985_v6, %v8984_v36  ;;  %v9100_v53 = vpop.f32.mrf.mxu0  ;;  %v13083_v36 = vld [vmem:[#allocation53_spill] sm:$0xff]  ;;  %v12225_v6 = vld [vmem:[#allocation2 + $0x168] sm:$0xff] }
 0x200   : > { %v8987_v37 = vpop.f32.mrf.mxu1  ;;  %v9101_v38 = vadd.f32 %v9100_v53, %v9099_v23  ;;  %v12227_v23 = vld [vmem:[#allocation2 + $0x170] sm:$0xff] }
 0x201   : > { %13079 = vst [vmem:[#allocation23_spill] sm:$0xff] %v12217_v16  ;;  %v5278_v17 = vadd.f32 %v8986_v34, %v13080_v40  ;;  %v9102_v2 = vpop.f32.mrf.mxu0  ;;  %6793 = vmatmul.mubr.bf16.gmra.mxu0 %v9896_v0  ;;  %13084 = vst [vmem:[#allocation14_spill] sm:$0xff] %v12227_v23  ;;  %v13085_v34 = vld [vmem:[#allocation96_spill] sm:$0xff] }
 0x202   : > { %v8988_v45 = vpop.f32.mrf.mxu1  ;;  %6800 = vmatprep.mubr.bf16.mxu0 %v9897_v61  ;;  %v13086_v40 = vld [vmem:[#allocation60_spill] sm:$0xff] }
 0x203   : > { %v12222_v15 = vadd.f32 %v9098_v48, %v5278_v17  ;;  %v8989_v22 = vadd.f32 %v8988_v45, %v8987_v37  ;;  %v9103_v43 = vpop.f32.mrf.mxu0  ;;  %v8377_v37 = vcombine.high %v12225_v6, %v12227_v23 }
 0x204   : > { %v8990_v62 = vpop.f32.mrf.mxu1  ;;  %5670 = vmatmul.mubr.bf16.gmra.mxu1 %v13083_v36  ;;  %v9104_v0 = vadd.f32 %v9103_v43, %v9102_v2  ;;  %v1845_v13 = vld [vmem:[#allocation2 + $0x18c] sm:$0x1]  ;;  %v13090_v36 = vld [vmem:[#allocation62_spill] sm:$0xff] }
 0x205   : > { %13082 = vst [vmem:[#allocation20_spill] sm:$0xff] %v12222_v15  ;;  %v5281_v53 = vadd.f32 %v8989_v22, %v13085_v34  ;;  %5677 = vmatprep.mubr.bf16.mxu1 %v13086_v40  ;;  %v9105_v48 = vpop.f32.mrf.mxu0  ;;  %v1833_v22 = vrot.slane %v11975_v1, 4  ;;  %v9898_v34 = vld [vmem:[#allocation2 + $0x150] ss:$8 sps:$4 sm:$0xff]   ;;  %v1307_v40 = vld [vmem:[#allocation2 + $0x188] sm:$0x1] }
 0x206   : > { %v8991_v3 = vpop.f32.mrf.mxu1  ;;  %v12245_v1 = vld [vmem:[#allocation2 + $0x180] sm:$0xff] }
 0x207   : > { %v12231_v17 = vadd.f32 %v9101_v38, %v5281_v53  ;;  %v8992_v45 = vadd.f32 %v8991_v3, %v8990_v62  ;;  %v9106_v61 = vpop.f32.mrf.mxu0  ;;  %v1308_v3 = vsel %vm10084_vm5, %v1294_v28, %v1307_v40  ;;  %v8376_v28 = vcombine.low %v12225_v6, %v12227_v23 }
 0x208   : > { %v8993_v52 = vpop.f32.mrf.mxu1  ;;  %v9107_v16 = vadd.f32 %v9106_v61, %v9105_v48  ;;  %v12243_v48 = vld [vmem:[#allocation2 + $0x178] sm:$0xff]  ;;  %1309 = vst [vmem:[#allocation2 + $0x188] sm:$0x1] %v1308_v3 }
 0x209   : > { %13087 = vst [vmem:[#allocation24_spill] sm:$0xff] %v12231_v17  ;;  %v5286_v15 = vadd.f32 %v8992_v45, %v11927_v26  ;;  %v9108_v43 = vpop.f32.mrf.mxu0  ;;  %6801 = vmatmul.mubr.bf16.gmra.mxu0 %v9898_v34  ;;  %v8383_v34 = vcombine.high %v12243_v48, %v12245_v1 }
 0x20a   : > { %v8994_v2 = vpop.f32.mrf.mxu1  ;;  %6808 = vmatprep.mubr.bf16.mxu0 %v8377_v37 }
 0x20b   : > { %v12238_v38 = vadd.f32 %v9104_v0, %v5286_v15  ;;  %v8995_v62 = vadd.f32 %v8994_v2, %v8993_v52  ;;  %v9109_v26 = vpop.f32.mrf.mxu0  ;;  %v13091_v15 = vld [vmem:[#allocation58_spill] sm:$0xff]  ;;  %v1846_v0 = vsel %vm10084_vm5, %v1833_v22, %v1845_v13 }
 0x20c   : > { %v8996_v17 = vpop.f32.mrf.mxu1  ;;  %5678 = vmatmul.mubr.bf16.gmra.mxu1 %v13090_v36  ;;  %v9110_v61 = vadd.f32 %v9109_v26, %v9108_v43  ;;  %1847 = vst [vmem:[#allocation2 + $0x18c] sm:$0x1] %v1846_v0  ;;  %v13093_v0 = vld [vmem:[#allocation59_spill] sm:$0xff] }
 0x20d   : > { %13088 = vst [vmem:[#allocation80_spill] sm:$0xff] %v12238_v38  ;;  %v5289_v45 = vadd.f32 %v8995_v62, %v11953_v24  ;;  %5685 = vmatprep.mubr.bf16.mxu1 %v13091_v15  ;;  %v9111_v40 = vpop.f32.mrf.mxu0 }
 0x20e   : > { %v8997_v37 = vpop.f32.mrf.mxu1 }
 0x20f   : > { %v12253_v52 = vadd.f32 %v9107_v16, %v5289_v45  ;;  %v8998_v2 = vadd.f32 %v8997_v37, %v8996_v17  ;;  %v9112_v24 = vpop.f32.mrf.mxu0  ;;  %v13094_v37 = vld [vmem:[#allocation67_spill] sm:$0xff] }
 0x210   : > { %v8999_v3 = vpop.f32.mrf.mxu1  ;;  %v9113_v62 = vadd.f32 %v9112_v24, %v9111_v40 }
 0x211   : > { %13092 = vst [vmem:[#allocation26_spill] sm:$0xff] %v12253_v52  ;;  %v5294_v43 = vadd.f32 %v8998_v2, %v11965_v32  ;;  %v9114_v53 = vpop.f32.mrf.mxu0  ;;  %6809 = vmatmul.mubr.bf16.gmra.mxu0 %v8376_v28  ;;  %v8382_v32 = vcombine.low %v12243_v48, %v12245_v1 }
 0x212   : > { %v9000_v26 = vpop.f32.mrf.mxu1  ;;  %6816 = vmatprep.mubr.bf16.mxu0 %v8383_v34 }
 0x213   : > { %v12258_v22 = vadd.f32 %v9110_v61, %v5294_v43  ;;  %v9001_v13 = vadd.f32 %v9000_v26, %v8999_v3  ;;  %v9115_v16 = vpop.f32.mrf.mxu0 }
 0x214   : > { %v9002_v38 = vpop.f32.mrf.mxu1  ;;  %5686 = vmatmul.mubr.bf16.gmra.mxu1 %v13093_v0  ;;  %v9116_v45 = vadd.f32 %v9115_v16, %v9114_v53 }
 0x215   : > { %v5297_v17 = vadd.f32 %v9001_v13, %v11984_v20  ;;  %5693 = vmatprep.mubr.bf16.mxu1 %v13094_v37  ;;  %v9117_v23 = vpop.f32.mrf.mxu0  ;;  %v13095_v13 = vld [vmem:[#allocation71_spill] sm:$0xff] }
 0x216   : > { %v9003_v52 = vpop.f32.mrf.mxu1 }
 0x217   : > { %v12265_v40 = vadd.f32 %v9113_v62, %v5297_v17  ;;  %v9004_v61 = vadd.f32 %v9003_v52, %v9002_v38  ;;  %v9118_v2 = vpop.f32.mrf.mxu0  ;;  %v13096_v52 = vld [vmem:[#allocation21_spill] sm:$0xff] }
 0x218   : > { %v9005_v28 = vpop.f32.mrf.mxu1  ;;  %v9119_v3 = vadd.f32 %v9118_v2, %v9117_v23 }
 0x219   : > { %v5302_v34 = vadd.f32 %v9004_v61, %v11990_v60  ;;  %v9120_v43 = vpop.f32.mrf.mxu0  ;;  %6817 = vmatmul.mubr.bf16.gmra.mxu0 %v8382_v32 }
 0x21a   : > { %v9006_v24 = vpop.f32.mrf.mxu1  ;;  %7018 = vmatprep.mubr.bf16.mxu0 %v13032_v46 }
 0x21b   : > { %v12268_v20 = vadd.f32 %v9116_v45, %v5302_v34  ;;  %v9007_v26 = vadd.f32 %v9006_v24, %v9005_v28  ;;  %v9121_v16 = vpop.f32.mrf.mxu0 }
 0x21c   : > { %v9008_v53 = vpop.f32.mrf.mxu1  ;;  %5694 = vmatmul.mubr.bf16.gmra.mxu1 %v13095_v13  ;;  %v9122_v38 = vadd.f32 %v9121_v16, %v9120_v43 }
 0x21d   : > { %v5305_v62 = vadd.f32 %v9007_v26, %v12000_v59  ;;  %6857 = vmatprep.mubr.bf16.mxu1 %v13096_v52  ;;  %v9123_v60 = vpop.f32.mrf.mxu0  ;;  %v13097_v26 = vld [vmem:[#allocation25_spill] sm:$0xff] }
 0x21e   : > { %v9009_v17 = vpop.f32.mrf.mxu1 }
 0x21f   : > { %v12274_v23 = vadd.f32 %v9119_v3, %v5305_v62  ;;  %v9010_v61 = vadd.f32 %v9009_v17, %v9008_v53  ;;  %v9124_v45 = vpop.f32.mrf.mxu0  ;;  %v13098_v62 = vld [vmem:[#allocation27_spill] sm:$0xff] }
 0x220   : > { %v9011_v32 = vpop.f32.mrf.mxu1  ;;  %v9125_v2 = vadd.f32 %v9124_v45, %v9123_v60 }
 0x221   : > { %v5310_v28 = vadd.f32 %v9010_v61, %v12016_v9  ;;  %v9126_v34 = vpop.f32.mrf.mxu0  ;;  %7019 = vmatmul.mubr.bf16.vlgmr.msra.gmra.mxu0 %v13034_v5 }
 0x222   : > { %v9012_v46 = vpop.f32.mrf.mxu1  ;;  %7026 = vmatprep.mubr.bf16.mxu0 %v13036_v35 }
 0x223   : > { %v12278_v24 = vadd.f32 %v9122_v38, %v5310_v28  ;;  %v9013_v59 = vadd.f32 %v9012_v46, %v9011_v32  ;;  %v9127_v3 = vpop.f32.mrf.mxu0 }
 0x224   : > { %v9014_v43 = vpop.f32.mrf.mxu1  ;;  %6858 = vmatmul.mubr.bf16.vlgmr.msra.gmra.mxu1 %v13097_v26  ;;  %v9128_v16 = vadd.f32 %v9127_v3, %v9126_v34  ;;  %v13099_v34 = vld [vmem:[#allocation30_spill] sm:$0xff]  ;;  %v13100_v26 = vld [vmem:[#allocation31_spill] sm:$0xff] }
 0x225   : > { %v5313_v53 = vadd.f32 %v9013_v59, %v12038_v21  ;;  %6865 = vmatprep.mubr.bf16.mxu1 %v13098_v62  ;;  %v9129_v52 = vpop.f32.mrf.mxu0 }
 0x226   : > { %v9015_v9 = vpop.f32.mrf.mxu1 }
 0x227   : > { %v12284_v17 = vadd.f32 %v9125_v2, %v5313_v53  ;;  %v9016_v60 = vadd.f32 %v9015_v9, %v9014_v43  ;;  %v9130_v38 = vpop.f32.mrf.mxu0 }
 0x228   : > { %v9017_v5 = vpop.f32.mrf.mxu1  ;;  %v9131_v32 = vadd.f32 %v9130_v38, %v9129_v52 }
 0x229   : > { %v5318_v61 = vadd.f32 %v9016_v60, %v12056_v8  ;;  %v9132_v45 = vpop.f32.mrf.mxu0  ;;  %7027 = vmatmul.mubr.bf16.gmra.mxu0 %v13040_v49 }
 0x22a   : > { %v9018_v35 = vpop.f32.mrf.mxu1  ;;  %7034 = vmatprep.mubr.bf16.mxu0 %v13042_v25 }
 0x22b   : > { %v12288_v28 = vadd.f32 %v9128_v16, %v5318_v61  ;;  %v9019_v21 = vadd.f32 %v9018_v35, %v9017_v5  ;;  %v9133_v2 = vpop.f32.mrf.mxu0  ;;  %v13101_v61 = vld [vmem:[#allocation32_spill] sm:$0xff] }
 0x22c   : > { %v9020_v46 = vpop.f32.mrf.mxu1  ;;  %6866 = vmatmul.mubr.bf16.gmra.mxu1 %v13099_v34  ;;  %v9134_v43 = vadd.f32 %v9133_v2, %v9132_v45 }
 0x22d   : > { %v5321_v59 = vadd.f32 %v9019_v21, %v12075_v42  ;;  %6873 = vmatprep.mubr.bf16.mxu1 %v13100_v26  ;;  %v9135_v3 = vpop.f32.mrf.mxu0  ;;  %v13102_v21 = vld [vmem:[#allocation37_spill] sm:$0xff] }
 0x22e   : > { %v9021_v8 = vpop.f32.mrf.mxu1 }
 0x22f   : > { %v12294_v53 = vadd.f32 %v9131_v32, %v5321_v59  ;;  %v9022_v62 = vadd.f32 %v9021_v8, %v9020_v46  ;;  %v9136_v16 = vpop.f32.mrf.mxu0 }
 0x230   : > { %v9023_v49 = vpop.f32.mrf.mxu1  ;;  %v9137_v52 = vadd.f32 %v9136_v16, %v9135_v3 }
 0x231   : > { %v5326_v9 = vadd.f32 %v9022_v62, %v12093_v57  ;;  %v9138_v60 = vpop.f32.mrf.mxu0  ;;  %7035 = vmatmul.mubr.bf16.gmra.mxu0 %v13046_v11 }
 0x232   : > { %v9024_v25 = vpop.f32.mrf.mxu1  ;;  %7042 = vmatprep.mubr.bf16.mxu0 %v13048_v41 }
 0x233   : > { %v12298_v5 = vadd.f32 %v9134_v43, %v5326_v9  ;;  %v9025_v42 = vadd.f32 %v9024_v25, %v9023_v49  ;;  %v9139_v32 = vpop.f32.mrf.mxu0  ;;  %v13103_v49 = vld [vmem:[#allocation38_spill] sm:$0xff]  ;;  %v13104_v25 = vld [vmem:[#allocation33_spill] sm:$0xff] }
 0x234   : > { %v9026_v38 = vpop.f32.mrf.mxu1  ;;  %6874 = vmatmul.mubr.bf16.gmra.mxu1 %v13101_v61  ;;  %v9140_v45 = vadd.f32 %v9139_v32, %v9138_v60 }
 0x235   : > { %v5329_v35 = vadd.f32 %v9025_v42, %v12110_v39  ;;  %6881 = vmatprep.mubr.bf16.mxu1 %v13102_v21  ;;  %v9141_v46 = vpop.f32.mrf.mxu0 }
 0x236   : > { %v9027_v57 = vpop.f32.mrf.mxu1 }
 0x237   : > { %v12304_v34 = vadd.f32 %v9137_v52, %v5329_v35  ;;  %v9028_v2 = vadd.f32 %v9027_v57, %v9026_v38  ;;  %v9142_v59 = vpop.f32.mrf.mxu0 }
 0x238   : > { %v9029_v11 = vpop.f32.mrf.mxu1  ;;  %v9143_v26 = vadd.f32 %v9142_v59, %v9141_v46  ;;  %v13105_v46 = vld [vmem:[#allocation34_spill] sm:$0xff] }
 0x239   : > { %v5334_v43 = vadd.f32 %v9028_v2, %v12126_v30  ;;  %v9144_v8 = vpop.f32.mrf.mxu0  ;;  %7043 = vmatmul.mubr.bf16.gmra.mxu0 %v13052_v19 }
 0x23a   : > { %v9030_v41 = vpop.f32.mrf.mxu1  ;;  %7050 = vmatprep.mubr.bf16.mxu0 %v13054_v31 }
 0x23b   : > { %v12308_v3 = vadd.f32 %v9140_v45, %v5334_v43  ;;  %v9031_v39 = vadd.f32 %v9030_v41, %v9029_v11  ;;  %v9145_v16 = vpop.f32.mrf.mxu0  ;;  %v13106_v43 = vld [vmem:[#allocation43_spill] sm:$0xff] }
 0x23c   : > { %v9032_v62 = vpop.f32.mrf.mxu1  ;;  %6882 = vmatmul.mubr.bf16.gmra.mxu1 %v13103_v49  ;;  %v9146_v52 = vadd.f32 %v9145_v16, %v9144_v8 }
 0x23d   : > { %v5337_v9 = vadd.f32 %v9031_v39, %v12138_v29  ;;  %6889 = vmatprep.mubr.bf16.mxu1 %v13104_v25  ;;  %v9147_v60 = vpop.f32.mrf.mxu0  ;;  %v13107_v25 = vld [vmem:[#allocation49_spill] sm:$0xff] }
 0x23e   : > { %v9033_v30 = vpop.f32.mrf.mxu1 }
 0x23f   : > { %v12314_v42 = vadd.f32 %v9143_v26, %v5337_v9  ;;  %v9034_v38 = vadd.f32 %v9033_v30, %v9032_v62  ;;  %v9148_v61 = vpop.f32.mrf.mxu0 }
 0x240   : > { %v9035_v19 = vpop.f32.mrf.mxu1  ;;  %v9149_v35 = vadd.f32 %v9148_v61, %v9147_v60 }
 0x241   : > { %v5342_v32 = vadd.f32 %v9034_v38, %v12142_v14  ;;  %v9150_v45 = vpop.f32.mrf.mxu0  ;;  %7051 = vmatmul.mubr.bf16.gmra.mxu0 %v13058_v54 }
 0x242   : > { %v9036_v31 = vpop.f32.mrf.mxu1  ;;  %7058 = vmatprep.mubr.bf16.mxu0 %v13060_v50 }
 0x243   : > { %v12318_v21 = vadd.f32 %v9146_v52, %v5342_v32  ;;  %v9037_v29 = vadd.f32 %v9036_v31, %v9035_v19  ;;  %v9151_v2 = vpop.f32.mrf.mxu0  ;;  %v13108_v19 = vld [vmem:[#allocation47_spill] sm:$0xff] }
 0x244   : > { %v9038_v57 = vpop.f32.mrf.mxu1  ;;  %6890 = vmatmul.mubr.bf16.gmra.mxu1 %v13105_v46  ;;  %v9152_v59 = vadd.f32 %v9151_v2, %v9150_v45 }
 0x245   : > { %v5345_v11 = vadd.f32 %v9037_v29, %v12148_v7  ;;  %6897 = vmatprep.mubr.bf16.mxu1 %v13106_v43  ;;  %v9153_v26 = vpop.f32.mrf.mxu0 }
 0x246   : > { %v9039_v14 = vpop.f32.mrf.mxu1 }
 0x247   : > { %v12324_v41 = vadd.f32 %v9149_v35, %v5345_v11  ;;  %v9040_v8 = vadd.f32 %v9039_v14, %v9038_v57  ;;  %v9154_v39 = vpop.f32.mrf.mxu0  ;;  %v13109_v11 = vld [vmem:[#allocation48_spill] sm:$0xff] }
 0x248   : > { %v9041_v54 = vpop.f32.mrf.mxu1  ;;  %v9155_v49 = vadd.f32 %v9154_v39, %v9153_v26  ;;  %v13110_v26 = vld [vmem:[#allocation52_spill] sm:$0xff] }
 0x249   : > { %v5350_v62 = vadd.f32 %v9040_v8, %v12152_v58  ;;  %v9156_v16 = vpop.f32.mrf.mxu0  ;;  %7059 = vmatmul.mubr.bf16.gmra.mxu0 %v13064_v51 }
 0x24a   : > { %v9042_v50 = vpop.f32.mrf.mxu1  ;;  %7066 = vmatprep.mubr.bf16.mxu0 %v13066_v63 }
 0x24b   : > { %v12328_v9 = vadd.f32 %v9152_v59, %v5350_v62  ;;  %v9043_v7 = vadd.f32 %v9042_v50, %v9041_v54  ;;  %v9157_v30 = vpop.f32.mrf.mxu0 }
 0x24c   : > { %v9044_v52 = vpop.f32.mrf.mxu1  ;;  %6898 = vmatmul.mubr.bf16.gmra.mxu1 %v13107_v25  ;;  %v9158_v38 = vadd.f32 %v9157_v30, %v9156_v16  ;;  %v13111_v25 = vld [vmem:[#allocation56_spill] sm:$0xff] }
 0x24d   : > { %v5353_v60 = vadd.f32 %v9043_v7, %v12158_v10  ;;  %6905 = vmatprep.mubr.bf16.mxu1 %v13108_v19  ;;  %v9159_v61 = vpop.f32.mrf.mxu0  ;;  %v13112_v19 = vld [vmem:[#allocation54_spill] sm:$0xff] }
 0x24e   : > { %v9045_v58 = vpop.f32.mrf.mxu1 }
 0x24f   : > { %v12334_v32 = vadd.f32 %v9155_v49, %v5353_v60  ;;  %v9046_v35 = vadd.f32 %v9045_v58, %v9044_v52  ;;  %v9160_v31 = vpop.f32.mrf.mxu0 }
 0x250   : > { %v9047_v51 = vpop.f32.mrf.mxu1  ;;  %v9161_v29 = vadd.f32 %v9160_v31, %v9159_v61 }
 0x251   : > { %v5358_v45 = vadd.f32 %v9046_v35, %v12162_v33  ;;  %v9162_v57 = vpop.f32.mrf.mxu0  ;;  %7067 = vmatmul.mubr.bf16.gmra.mxu0 %v13070_v56 }
 0x252   : > { %v9048_v63 = vpop.f32.mrf.mxu1  ;;  %7074 = vmatprep.mubr.bf16.mxu0 %v13072_v44 }
 0x253   : > { %v12338_v46 = vadd.f32 %v9158_v38, %v5358_v45  ;;  %v9049_v10 = vadd.f32 %v9048_v63, %v9047_v51  ;;  %v9163_v59 = vpop.f32.mrf.mxu0  ;;  %v13113_v63 = vld [vmem:[#allocation53_spill] sm:$0xff] }
 0x254   : > { %v9050_v2 = vpop.f32.mrf.mxu1  ;;  %6906 = vmatmul.mubr.bf16.gmra.mxu1 %v13109_v11  ;;  %v9164_v14 = vadd.f32 %v9163_v59, %v9162_v57  ;;  %v13115_v11 = vld [vmem:[#allocation55_spill] sm:$0xff] }
 0x255   : > { %v5361_v43 = vadd.f32 %v9049_v10, %v12168_v27  ;;  %6913 = vmatprep.mubr.bf16.mxu1 %v13110_v26  ;;  %v9165_v8 = vpop.f32.mrf.mxu0  ;;  %v13114_v10 = vld [vmem:[#allocation60_spill] sm:$0xff] }
 0x256   : > { %v9051_v33 = vpop.f32.mrf.mxu1 }
 0x257   : > { %v12344_v54 = vadd.f32 %v9161_v29, %v5361_v43  ;;  %v9052_v39 = vadd.f32 %v9051_v33, %v9050_v2  ;;  %v9166_v62 = vpop.f32.mrf.mxu0  ;;  %v13116_v43 = vld [vmem:[#allocation65_spill] sm:$0xff] }
 0x258   : > { %v9053_v56 = vpop.f32.mrf.mxu1  ;;  %v9167_v50 = vadd.f32 %v9166_v62, %v9165_v8  ;;  %v13117_v33 = vld [vmem:[#allocation61_spill] sm:$0xff] }
 0x259   : > { %v5366_v49 = vadd.f32 %v9052_v39, %v12172_v4  ;;  %v9168_v16 = vpop.f32.mrf.mxu0  ;;  %7075 = vmatmul.mubr.bf16.gmra.mxu0 %v13076_v47 }
 0x25a   : > { %v9054_v44 = vpop.f32.mrf.mxu1  ;;  %7082 = vmatprep.mubr.bf16.mxu0 %v13078_v18 }
 0x25b   : > { %v12348_v7 = vadd.f32 %v9164_v14, %v5366_v49  ;;  %v9055_v27 = vadd.f32 %v9054_v44, %v9053_v56  ;;  %v9169_v30 = vpop.f32.mrf.mxu0 }
 0x25c   : > { %v9056_v52 = vpop.f32.mrf.mxu1  ;;  %6914 = vmatmul.mubr.bf16.gmra.mxu1 %v13111_v25  ;;  %v9170_v38 = vadd.f32 %v9169_v30, %v9168_v16 }
 0x25d   : > { %v5369_v60 = vadd.f32 %v9055_v27, %v12178_v12  ;;  %6921 = vmatprep.mubr.bf16.mxu1 %v13112_v19  ;;  %v9171_v58 = vpop.f32.mrf.mxu0  ;;  %v13120_v19 = vld [vmem:[#allocation16_spill] sm:$0xff] }
 0x25e   : > { %v9057_v4 = vpop.f32.mrf.mxu1 }
 0x25f   : > { %v12354_v61 = vadd.f32 %v9167_v50, %v5369_v60  ;;  %v9058_v35 = vadd.f32 %v9057_v4, %v9056_v52  ;;  %v9172_v51 = vpop.f32.mrf.mxu0  ;;  %v13118_v50 = vld [vmem:[#allocation66_spill] sm:$0xff]  ;;  %v13119_v60 = vld [vmem:[#allocation64_spill] sm:$0xff] }
 0x260   : > { %v9059_v47 = vpop.f32.mrf.mxu1  ;;  %v9173_v45 = vadd.f32 %v9172_v51, %v9171_v58 }
 0x261   : > { %v5374_v31 = vadd.f32 %v9058_v35, %v12182_v55  ;;  %v9302_v29 = vpop.f32.mrf.mxu0  ;;  %7083 = vmatmul.mubr.bf16.gmra.mxu0 %v13113_v63  ;;  %v13121_v35 = vld [vmem:[#allocation63_spill] sm:$0xff] }
 0x262   : > { %v9060_v18 = vpop.f32.mrf.mxu1  ;;  %7090 = vmatprep.mubr.bf16.mxu0 %v13114_v10 }
 0x263   : > { %v12358_v57 = vadd.f32 %v9170_v38, %v5374_v31  ;;  %v9061_v12 = vadd.f32 %v9060_v18, %v9059_v47  ;;  %v9303_v59 = vpop.f32.mrf.mxu0 }
 0x264   : > { %v9190_v2 = vpop.f32.mrf.mxu1  ;;  %6922 = vmatmul.mubr.bf16.gmra.mxu1 %v13115_v11  ;;  %v12363_v26 = vadd.f32 %v9303_v59, %v9302_v29  ;;  %v13123_v11 = vld [vmem:[#allocation7_spill] sm:$0xff] }
 0x265   : > { %v5377_v14 = vadd.f32 %v9061_v12, %v13116_v43  ;;  %6929 = vmatprep.mubr.bf16.mxu1 %v13117_v33  ;;  %v9305_v8 = vpop.f32.mrf.mxu0  ;;  %v2378_v43 = vshrl.u32 %v12225_v6, 16  ;;  %v13124_v33 = vld [vmem:[#allocation18_spill] sm:$0xff] }
 0x266   : > { %v9191_v55 = vpop.f32.mrf.mxu1 }
 0x267   : > { %v12366_v39 = vadd.f32 %v9173_v45, %v5377_v14  ;;  %v9192_v56 = vadd.f32 %v9191_v55, %v9190_v2  ;;  %v9306_v49 = vpop.f32.mrf.mxu0  ;;  %v2381_v14 = vshll.u32 %v12225_v6, 16 }
 0x268   : > { %v9193_v62 = vpop.f32.mrf.mxu1  ;;  %v12371_v16 = vadd.f32 %v9306_v49, %v9305_v8 }
 0x269   : > { %v12369_v44 = vadd.f32 %v9192_v56, %v13118_v50  ;;  %v9308_v52 = vpop.f32.mrf.mxu0  ;;  %7091 = vmatmul.mubr.bf16.gmra.mxu0 %v13090_v36  ;;  %v13122_v36 = vld [vmem:[#allocation73_spill] sm:$0xff] }
 0x26a   : > { %v9194_v27 = vpop.f32.mrf.mxu1  ;;  %7098 = vmatprep.mubr.bf16.mxu0 %v13091_v15  ;;  %v13127_v56 = vld [vmem:[#allocation69_spill] sm:$0xff] }
 0x26b   : > { %v9195_v25 = vadd.f32 %v9194_v27, %v9193_v62  ;;  %v9309_v38 = vpop.f32.mrf.mxu0  ;;  %v13128_v62 = vld [vmem:[#allocation14_spill] sm:$0xff] }
 0x26c   : > { %v9196_v30 = vpop.f32.mrf.mxu1  ;;  %6930 = vmatmul.mubr.bf16.gmra.mxu1 %v13119_v60  ;;  %v12379_v58 = vadd.f32 %v9309_v38, %v9308_v52  ;;  %v2391_v49 = vshrl.u32 %v13128_v62, 16  ;;  %v2383_v60 = vrot.slane %v2381_v14, 5  ;;  %v13129_v38 = vld [vmem:[#allocation22_spill] sm:$0xff] }
 0x26d   : > { %v12377_v4 = vadd.f32 %v9195_v25, %v13120_v19  ;;  %6937 = vmatprep.mubr.bf16.mxu1 %v13121_v35  ;;  %v9311_v51 = vpop.f32.mrf.mxu0 }
 0x26e   : > { %v9197_v47 = vpop.f32.mrf.mxu1 }
 0x26f   : > { %v9198_v31 = vadd.f32 %v9197_v47, %v9196_v30  ;;  %v9312_v18 = vpop.f32.mrf.mxu0  ;;  %v2380_v30 = vrot.slane %v2378_v43, 4  ;;  %v2393_v47 = vrot.slane %v2391_v49, 4  ;;  %v13137_v43 = vld [vmem:[#allocation70_spill] sm:$0xff]  ;;  %v2397_v49 = vshll.u32 %v12243_v48, 16 }
 0x270   : > { %v9199_v45 = vpop.f32.mrf.mxu1  ;;  %v12385_v15 = vadd.f32 %v9312_v18, %v9311_v51  ;;  %v13132_v18 = vld [vmem:[#allocation68_spill] sm:$0xff] }
 0x271   : > { %v12383_v29 = vadd.f32 %v9198_v31, %v13122_v36  ;;  %v9314_v12 = vpop.f32.mrf.mxu0  ;;  %7099 = vmatmul.mubr.bf16.gmra.mxu0 %v13093_v0  ;;  %v2387_v0 = vshll.u32 %v13128_v62, 16  ;;  %v2384_v14 = vor.u32 %v2383_v60, %v2380_v30  ;;  %v13138_v30 = vld [vmem:[#allocation20_spill] sm:$0xff] }
 0x272   : > { %v9200_v63 = vpop.f32.mrf.mxu1  ;;  %7106 = vmatprep.mubr.bf16.mxu0 %v13094_v37 }
 0x273   : > { %v9201_v10 = vadd.f32 %v9200_v63, %v9199_v45  ;;  %v9315_v59 = vpop.f32.mrf.mxu0  ;;  %v2389_v35 = vrot.slane %v2387_v0, 5  ;;  %v13133_v63 = vld [vmem:[#allocation72_spill] sm:$0xff] }
 0x274   : > { %v9202_v2 = vpop.f32.mrf.mxu1  ;;  %6938 = vmatmul.mubr.bf16.gmra.mxu1 %v13123_v11  ;;  %v12395_v8 = vadd.f32 %v9315_v59, %v9314_v12 }
 0x275   : > { %v12393_v55 = vadd.f32 %v9201_v10, %v13124_v33  ;;  %6945 = vmatprep.mubr.bf16.mxu1 %v13127_v56  ;;  %v9317_v50 = vpop.f32.mrf.mxu0  ;;  %v2723_v10 = vrot.slane %v13128_v62, 5  ;;  %v2394_v33 = vor.u32 %v2393_v47, %v2389_v35  ;;  %v2546_v56 = vld [vmem:[#allocation2 + $0x168] sm:$0xee]  ;;  %v2411_v62 = vshrl.u32 %v12245_v1, 16 }
 0x276   : > { %13126 = vst [vmem:[#allocation15_spill] sm:$0xff] %v12395_v8  ;;  %v9203_v37 = vpop.f32.mrf.mxu1  ;;  %v13151_v8 = vld [vmem:[#allocation78_spill] sm:$0xff] }
 0x277   : > { %13125 = vst [vmem:[#allocation17_spill] sm:$0xff] %v12393_v55  ;;  %v9204_v27 = vadd.f32 %v9203_v37, %v9202_v2  ;;  %v9318_v25 = vpop.f32.mrf.mxu0  ;;  %v13134_v2 = vld [vmem:[#allocation23_spill] sm:$0xff]  ;;  %v2401_v37 = vshrl.u32 %v12243_v48, 16 }
 0x278   : > { %v9205_v52 = vpop.f32.mrf.mxu1  ;;  %v12403_v19 = vadd.f32 %v9318_v25, %v9317_v50  ;;  %v2407_v50 = vshll.u32 %v12245_v1, 16 }
 0x279   : > { %v12401_v6 = vadd.f32 %v9204_v27, %v13129_v38  ;;  %v9320_v31 = vpop.f32.mrf.mxu0  ;;  %7107 = vmatmul.mubr.bf16.gmra.mxu0 %v13095_v13  ;;  %v7811_v38 = vrot.slane %v2546_v56, 9  ;;  %v13142_v56 = vld [vmem:[#allocation75_spill] sm:$0xff] }
 0x27a   : > { %13131 = vst [vmem:[#allocation28_spill] sm:$0xff] %v12403_v19  ;;  %v9206_v51 = vpop.f32.mrf.mxu1  ;;  %7114 = vmatprep.mubr.bf16.mxu0 %v13132_v18  ;;  %v2395_v18 = vrot.slane %v2394_v33, 4  ;;  %v1977_v19 = vld [vmem:[#allocation2 + $0x188] sm:$0x11] }
 0x27b   : > { %13130 = vst [vmem:[#allocation85_spill] sm:$0xff] %v12401_v6  ;;  %v9207_v45 = vadd.f32 %v9206_v51, %v9205_v52  ;;  %v9321_v12 = vpop.f32.mrf.mxu0  ;;  %v2725_v51 = vrot.slane %v2723_v10, 4  ;;  %v13143_v6 = vld [vmem:[#allocation76_spill] sm:$0xff] }
 0x27c   : > { %v9208_v36 = vpop.f32.mrf.mxu1  ;;  %6946 = vmatmul.mubr.bf16.gmra.mxu1 %v13133_v63  ;;  %v12412_v59 = vadd.f32 %v9321_v12, %v9320_v31  ;;  %v2726_v31 = vrot.slane %v12243_v48, 5 }
 0x27d   : > { %v12410_v11 = vadd.f32 %v9207_v45, %v13134_v2  ;;  %6953 = vmatprep.mubr.bf16.mxu1 %v13137_v43  ;;  %v9323_v0 = vpop.f32.mrf.mxu0  ;;  %v2385_v45 = vrot.slane %v2384_v14, 4  ;;  %v13141_v2 = vld [vmem:[#allocation74_spill] sm:$0xff]  ;;  %v2399_v43 = vrot.slane %v2397_v49, 5  ;;  %v2724_v14 = vsel %vm10599_vm6, %v7811_v38, %v2723_v10  ;;  %v13145_v49 = vld [vmem:[#allocation24_spill] sm:$0xff] }
 0x27e   : > { %13136 = vst [vmem:[#allocation29_spill] sm:$0xff] %v12412_v59  ;;  %v9209_v13 = vpop.f32.mrf.mxu1  ;;  %v2403_v59 = vrot.slane %v2401_v37, 4  ;;  %v2727_v33 = vsel %vm10599_vm6, %v2725_v51, %v2726_v31 }
 0x27f   : > { %13135 = vst [vmem:[#allocation19_spill] sm:$0xff] %v12410_v11  ;;  %v9210_v27 = vadd.f32 %v9209_v13, %v9208_v36  ;;  %v9324_v25 = vpop.f32.mrf.mxu0  ;;  %v2409_v36 = vrot.slane %v2407_v50, 5  ;;  %v2413_v13 = vrot.slane %v2411_v62, 4  ;;  %v13148_v62 = vld [vmem:[#allocation77_spill] sm:$0xff]  ;;  %v2400_v10 = vsel %vm10592_vm3, %v2395_v18, %v2399_v43 }
 0x280   : > { %v9211_v52 = vpop.f32.mrf.mxu1  ;;  %v12423_v47 = vadd.f32 %v9324_v25, %v9323_v0  ;;  %v2729_v25 = vrot.slane %v12245_v1, 5  ;;  %v2404_v38 = vor.u32 %v2403_v59, %v2399_v43 }
 0x281   : > { %v12421_v60 = vadd.f32 %v9210_v27, %v13138_v30  ;;  %v9326_v12 = vpop.f32.mrf.mxu0  ;;  %7115 = vmatmul.mubr.bf16.gmra.mxu0 %v13141_v2  ;;  %v2390_v30 = vsel %vm10592_vm3, %v2385_v45, %v2389_v35  ;;  %v2414_v51 = vor.u32 %v2413_v13, %v2409_v36 }
 0x282   : > { %13140 = vst [vmem:[#allocation87_spill] sm:$0xff] %v12423_v47  ;;  %v9212_v63 = vpop.f32.mrf.mxu1  ;;  %7122 = vmatprep.mubr.bf16.mxu0 %v13142_v56  ;;  %v2417_v56 = vshll.u32 %v1977_v19, 16  ;;  %v8381_v47 = vcombine.high %v2724_v14, %v2727_v33  ;;  %v8379_v45 = vcombine.high %v2390_v30, %v2400_v10  ;;  %v2405_v59 = vrot.slane %v2404_v38, 4 }
 0x283   : > { %13139 = vst [vmem:[#allocation81_spill] sm:$0xff] %v12421_v60  ;;  %v9213_v11 = vadd.f32 %v9212_v63, %v9211_v52  ;;  %v9327_v27 = vpop.f32.mrf.mxu0  ;;  %v2415_v18 = vrot.slane %v2414_v51, 4 }
 0x284   : > { %v9214_v48 = vpop.f32.mrf.mxu1  ;;  %6954 = vmatmul.mubr.bf16.gmra.mxu1 %v13143_v6  ;;  %v12436_v50 = vadd.f32 %v9327_v27, %v9326_v12  ;;  %v2550_v6 = vld [vmem:[#allocation2 + $0x188] sm:$0x11]  ;;  %v2728_v12 = vrot.slane %v2726_v31, 4  ;;  %v2731_v27 = vrot.slane %v2729_v25, 4  ;;  %v2419_v19 = vrot.slane %v2417_v56, 5 }
 0x285   : > { %v12434_v37 = vadd.f32 %v9213_v11, %v13145_v49  ;;  %6961 = vmatprep.mubr.bf16.mxu1 %v13148_v62  ;;  %v9329_v2 = vpop.f32.mrf.mxu0  ;;  %v13150_v62 = vld [vmem:[#allocation80_spill] sm:$0xff] }
 0x286   : > { %13147 = vst [vmem:[#allocation35_spill] sm:$0xff] %v12436_v50  ;;  %v9215_v63 = vpop.f32.mrf.mxu1  ;;  %v2420_v51 = vsel %vm10592_vm3, %v2415_v18, %v2419_v19 }
 0x287   : > { %13146 = vst [vmem:[#allocation88_spill] sm:$0xff] %v12434_v37  ;;  %v9216_v1 = vadd.f32 %v9215_v63, %v9214_v48  ;;  %v9330_v49 = vpop.f32.mrf.mxu0  ;;  %v2732_v37 = vrot.slane %v2550_v6, 5  ;;  %v13152_v48 = vld [vmem:[#allocation79_spill] sm:$0xff]  ;;  %v2730_v6 = vsel %vm10599_vm6, %v2728_v12, %v2729_v25 }
 0x288   : > { %v9217_v11 = vpop.f32.mrf.mxu1  ;;  %v12446_v35 = vadd.f32 %v9330_v49, %v9329_v2  ;;  %v13153_v2 = vld [vmem:[#allocation26_spill] sm:$0xff] }
 0x289   : > { %v12444_v50 = vadd.f32 %v9216_v1, %v13150_v62  ;;  %v9332_v55 = vpop.f32.mrf.mxu0  ;;  %7123 = vmatmul.mubr.bf16.gmra.mxu0 %v13151_v8  ;;  %v2733_v63 = vsel %vm10599_vm6, %v2731_v27, %v2732_v37  ;;  %v8378_v37 = vcombine.low %v2390_v30, %v2400_v10 }
 0x28a   : > { %v9218_v60 = vpop.f32.mrf.mxu1  ;;  %7130 = vmatprep.mubr.bf16.mxu0 %v8381_v47  ;;  %v2410_v47 = vsel %vm10592_vm3, %v2405_v59, %v2409_v36  ;;  %v8387_v25 = vcombine.high %v2730_v6, %v2733_v63  ;;  %v8386_v10 = vcombine.low %v2730_v6, %v2733_v63 }
 0x28b   : > { %v9219_v43 = vadd.f32 %v9218_v60, %v9217_v11  ;;  %v9333_v31 = vpop.f32.mrf.mxu0  ;;  %v8380_v60 = vcombine.low %v2724_v14, %v2727_v33  ;;  %v8385_v27 = vcombine.high %v2410_v47, %v2420_v51 }
 0x28c   : > { %v9220_v13 = vpop.f32.mrf.mxu1  ;;  %6962 = vmatmul.mubr.bf16.gmra.mxu1 %v13152_v48  ;;  %v12457_v49 = vadd.f32 %v9333_v31, %v9332_v55 }
 0x28d   : > { %v12455_v1 = vadd.f32 %v9219_v43, %v13153_v2  ;;  %6969 = vmatprep.mubr.bf16.mxu1 %v8379_v45  ;;  %v9335_v38 = vpop.f32.mrf.mxu0 }
 0x28e   : > { %v9221_v8 = vpop.f32.mrf.mxu1 }
 0x28f   : > { %v9222_v56 = vadd.f32 %v9221_v8, %v9220_v13  ;;  %v9336_v0 = vpop.f32.mrf.mxu0  ;;  %v8384_v13 = vcombine.low %v2410_v47, %v2420_v51 }
 0x290   : > { %v9223_v11 = vpop.f32.mrf.mxu1  ;;  %v12466_v55 = vadd.f32 %v9336_v0, %v9335_v38 }
 0x291   : > { %v12464_v12 = vadd.f32 %v9222_v56, %v12258_v22  ;;  %v9338_v45 = vpop.f32.mrf.mxu0  ;;  %7131 = vmatmul.mubr.bf16.gmra.mxu0 %v8380_v60 }
 0x292   : > { %v9224_v62 = vpop.f32.mrf.mxu1  ;;  %7138 = vmatprep.mubr.bf16.mxu0 %v8387_v25 }
 0x293   : > { %v9225_v14 = vadd.f32 %v9224_v62, %v9223_v11  ;;  %v9339_v33 = vpop.f32.mrf.mxu0 }
 0x294   : > { %v9226_v36 = vpop.f32.mrf.mxu1  ;;  %6970 = vmatmul.mubr.bf16.gmra.mxu1 %v8378_v37  ;;  %v12471_v59 = vadd.f32 %v9339_v33, %v9338_v45 }
 0x295   : > { %v12469_v52 = vadd.f32 %v9225_v14, %v12265_v40  ;;  %6977 = vmatprep.mubr.bf16.mxu1 %v8385_v27  ;;  %v9341_v22 = vpop.f32.mrf.mxu0 }
 0x296   : > { %v9227_v30 = vpop.f32.mrf.mxu1 }
 0x297   : > { %v9228_v18 = vadd.f32 %v9227_v30, %v9226_v36  ;;  %v9342_v43 = vpop.f32.mrf.mxu0 }
 0x298   : > { %v9229_v19 = vpop.f32.mrf.mxu1  ;;  %v12476_v31 = vadd.f32 %v9342_v43, %v9341_v22 }
 0x299   : > { %v12474_v48 = vadd.f32 %v9228_v18, %v12268_v20  ;;  %v9344_v8 = vpop.f32.mrf.mxu0  ;;  %7139 = vmatmul.mubr.bf16.gmra.mxu0 %v8386_v10 }
 0x29a   : > { %v9230_v2 = vpop.f32.mrf.mxu1 }
 0x29b   : > { %v9231_v40 = vadd.f32 %v9230_v2, %v9229_v19  ;;  %v9345_v60 = vpop.f32.mrf.mxu0 }
 0x29c   : > { %v9232_v38 = vpop.f32.mrf.mxu1  ;;  %6978 = vmatmul.mubr.bf16.gmra.mxu1 %v8384_v13  ;;  %v12481_v6 = vadd.f32 %v9345_v60, %v9344_v8 }
 0x29d   : > { %v12479_v56 = vadd.f32 %v9231_v40, %v12274_v23  ;;  %v9347_v25 = vpop.f32.mrf.mxu0 }
 0x29e   : > { %v9233_v63 = vpop.f32.mrf.mxu1 }
 0x29f   : > { %v9234_v47 = vadd.f32 %v9233_v63, %v9232_v38  ;;  %v9348_v20 = vpop.f32.mrf.mxu0 }
 0x2a0   : > { %v9235_v51 = vpop.f32.mrf.mxu1  ;;  %v12486_v0 = vadd.f32 %v9348_v20, %v9347_v25 }
 0x2a1   : > { %v12484_v11 = vadd.f32 %v9234_v47, %v12278_v24  ;;  %v9350_v27 = vpop.f32.mrf.mxu0 }
 0x2a2   : > { %v9236_v37 = vpop.f32.mrf.mxu1 }
 0x2a3   : > { %v9237_v62 = vadd.f32 %v9236_v37, %v9235_v51  ;;  %v9351_v14 = vpop.f32.mrf.mxu0 }
 0x2a4   : > { %v9238_v45 = vpop.f32.mrf.mxu1  ;;  %v12491_v36 = vadd.f32 %v9351_v14, %v9350_v27 }
 0x2a5   : > { %v12489_v23 = vadd.f32 %v9237_v62, %v12284_v17  ;;  %v9353_v30 = vpop.f32.mrf.mxu0 }
 0x2a6   : > { %v9239_v33 = vpop.f32.mrf.mxu1 }
 0x2a7   : > { %v9240_v22 = vadd.f32 %v9239_v33, %v9238_v45  ;;  %v9354_v18 = vpop.f32.mrf.mxu0 }
 0x2a8   : > { %v9241_v10 = vpop.f32.mrf.mxu1  ;;  %v12496_v19 = vadd.f32 %v9354_v18, %v9353_v30 }
 0x2a9   : > { %v12494_v24 = vadd.f32 %v9240_v22, %v12288_v28  ;;  %v9356_v13 = vpop.f32.mrf.mxu0 }
 0x2aa   : > { %v9242_v43 = vpop.f32.mrf.mxu1 }
 0x2ab   : > { %v9243_v2 = vadd.f32 %v9242_v43, %v9241_v10  ;;  %v9357_v40 = vpop.f32.mrf.mxu0 }
 0x2ac   : > { %v9244_v8 = vpop.f32.mrf.mxu1  ;;  %v12501_v38 = vadd.f32 %v9357_v40, %v9356_v13 }
 0x2ad   : > { %v12499_v17 = vadd.f32 %v9243_v2, %v12294_v53  ;;  %v9359_v63 = vpop.f32.mrf.mxu0 }
 0x2ae   : > { %v9245_v60 = vpop.f32.mrf.mxu1 }
 0x2af   : > { %v9246_v25 = vadd.f32 %v9245_v60, %v9244_v8  ;;  %v9360_v51 = vpop.f32.mrf.mxu0 }
 0x2b0   : > { %v9247_v47 = vpop.f32.mrf.mxu1  ;;  %v12506_v20 = vadd.f32 %v9360_v51, %v9359_v63 }
 0x2b1   : > { %v12504_v28 = vadd.f32 %v9246_v25, %v12298_v5  ;;  %v9362_v27 = vpop.f32.mrf.mxu0 }
 0x2b2   : > { %v9248_v37 = vpop.f32.mrf.mxu1 }
 0x2b3   : > { %v9249_v62 = vadd.f32 %v9248_v37, %v9247_v47  ;;  %v9363_v14 = vpop.f32.mrf.mxu0 }
 0x2b4   : > { %v9250_v45 = vpop.f32.mrf.mxu1  ;;  %v12511_v33 = vadd.f32 %v9363_v14, %v9362_v27 }
 0x2b5   : > { %v12509_v53 = vadd.f32 %v9249_v62, %v12304_v34  ;;  %v9365_v22 = vpop.f32.mrf.mxu0 }
 0x2b6   : > { %v9251_v30 = vpop.f32.mrf.mxu1 }
 0x2b7   : > { %v9252_v10 = vadd.f32 %v9251_v30, %v9250_v45  ;;  %v9366_v43 = vpop.f32.mrf.mxu0 }
 0x2b8   : > { %v9253_v18 = vpop.f32.mrf.mxu1  ;;  %v12516_v13 = vadd.f32 %v9366_v43, %v9365_v22 }
 0x2b9   : > { %v12514_v5 = vadd.f32 %v9252_v10, %v12308_v3  ;;  %v9368_v8 = vpop.f32.mrf.mxu0 }
 0x2ba   : > { %v9254_v2 = vpop.f32.mrf.mxu1 }
 0x2bb   : > { %v9255_v40 = vadd.f32 %v9254_v2, %v9253_v18  ;;  %v9369_v63 = vpop.f32.mrf.mxu0 }
 0x2bc   : > { %v9256_v60 = vpop.f32.mrf.mxu1  ;;  %v12521_v25 = vadd.f32 %v9369_v63, %v9368_v8 }
 0x2bd   : > { %v12519_v34 = vadd.f32 %v9255_v40, %v12314_v42  ;;  %v9371_v51 = vpop.f32.mrf.mxu0 }
 0x2be   : > { %v9257_v47 = vpop.f32.mrf.mxu1 }
 0x2bf   : > { %v9258_v37 = vadd.f32 %v9257_v47, %v9256_v60  ;;  %v9372_v62 = vpop.f32.mrf.mxu0 }
 0x2c0   : > { %v9259_v27 = vpop.f32.mrf.mxu1  ;;  %v12526_v45 = vadd.f32 %v9372_v62, %v9371_v51 }
 0x2c1   : > { %v12524_v3 = vadd.f32 %v9258_v37, %v12318_v21  ;;  %v9374_v30 = vpop.f32.mrf.mxu0 }
 0x2c2   : > { %v9260_v14 = vpop.f32.mrf.mxu1 }
 0x2c3   : > { %v9261_v22 = vadd.f32 %v9260_v14, %v9259_v27  ;;  %v9375_v18 = vpop.f32.mrf.mxu0 }
 0x2c4   : > { %v9262_v10 = vpop.f32.mrf.mxu1  ;;  %v12531_v43 = vadd.f32 %v9375_v18, %v9374_v30 }
 0x2c5   : > { %v12529_v42 = vadd.f32 %v9261_v22, %v12324_v41  ;;  %v9377_v8 = vpop.f32.mrf.mxu0 }
 0x2c6   : > { %v9263_v2 = vpop.f32.mrf.mxu1 }
 0x2c7   : > { %13154 = vst [vmem:[#allocation82_spill] sm:$0xff] %v12529_v42  ;;  %v9264_v40 = vadd.f32 %v9263_v2, %v9262_v10  ;;  %v9378_v63 = vpop.f32.mrf.mxu0 }
 0x2c8   : > { %v9265_v60 = vpop.f32.mrf.mxu1  ;;  %v12536_v47 = vadd.f32 %v9378_v63, %v9377_v8 }
 0x2c9   : > { %v12534_v21 = vadd.f32 %v9264_v40, %v12328_v9  ;;  %v9380_v37 = vpop.f32.mrf.mxu0 }
 0x2ca   : > { %13155 = vst [vmem:[#allocation36_spill] sm:$0xff] %v12536_v47  ;;  %v9266_v51 = vpop.f32.mrf.mxu1 }
 0x2cb   : > { %v9267_v27 = vadd.f32 %v9266_v51, %v9265_v60  ;;  %v9381_v14 = vpop.f32.mrf.mxu0 }
 0x2cc   : > { %v9268_v62 = vpop.f32.mrf.mxu1  ;;  %v12541_v30 = vadd.f32 %v9381_v14, %v9380_v37 }
 0x2cd   : > { %v12539_v41 = vadd.f32 %v9267_v27, %v12334_v32  ;;  %v9383_v18 = vpop.f32.mrf.mxu0 }
 0x2ce   : > { %13156 = vst [vmem:[#allocation83_spill] sm:$0xff] %v12541_v30  ;;  %v9269_v22 = vpop.f32.mrf.mxu1 }
 0x2cf   : > { %v9270_v10 = vadd.f32 %v9269_v22, %v9268_v62  ;;  %v9384_v42 = vpop.f32.mrf.mxu0 }
 0x2d0   : > { %v9271_v2 = vpop.f32.mrf.mxu1  ;;  %v12546_v8 = vadd.f32 %v9384_v42, %v9383_v18 }
 0x2d1   : > { %v12544_v9 = vadd.f32 %v9270_v10, %v12338_v46  ;;  %v9386_v63 = vpop.f32.mrf.mxu0 }
 0x2d2   : > { %13158 = vst [vmem:[#allocation92_spill] sm:$0xff] %v12546_v8  ;;  %v9272_v40 = vpop.f32.mrf.mxu1 }
 0x2d3   : > { %13157 = vst [vmem:[#allocation91_spill] sm:$0xff] %v12544_v9  ;;  %v9273_v60 = vadd.f32 %v9272_v40, %v9271_v2  ;;  %v9387_v47 = vpop.f32.mrf.mxu0 }
 0x2d4   : > { %v9274_v51 = vpop.f32.mrf.mxu1  ;;  %v12551_v37 = vadd.f32 %v9387_v47, %v9386_v63 }
 0x2d5   : > { %v12549_v32 = vadd.f32 %v9273_v60, %v12344_v54  ;;  %v9389_v14 = vpop.f32.mrf.mxu0 }
 0x2d6   : > { %13160 = vst [vmem:[#allocation84_spill] sm:$0xff] %v12551_v37  ;;  %v9275_v27 = vpop.f32.mrf.mxu1  ;;  %v13168_v37 = vld [vmem:[#allocation15_spill] sm:$0xff] }
 0x2d7   : > { %13159 = vst [vmem:[#allocation39_spill] sm:$0xff] %v12549_v32  ;;  %v9276_v62 = vadd.f32 %v9275_v27, %v9274_v51  ;;  %v9390_v30 = vpop.f32.mrf.mxu0 }
 0x2d8   : > { %v9277_v22 = vpop.f32.mrf.mxu1  ;;  %v12556_v42 = vadd.f32 %v9390_v30, %v9389_v14 }
 0x2d9   : > { %v12554_v46 = vadd.f32 %v9276_v62, %v12348_v7  ;;  %v9392_v10 = vpop.f32.mrf.mxu0 }
 0x2da   : > { %13162 = vst [vmem:[#allocation8_spill] sm:$0xff] %v12556_v42  ;;  %v9278_v18 = vpop.f32.mrf.mxu1 }
 0x2db   : > { %13161 = vst [vmem:[#allocation40_spill] sm:$0xff] %v12554_v46  ;;  %v9279_v2 = vadd.f32 %v9278_v18, %v9277_v22  ;;  %v9393_v8 = vpop.f32.mrf.mxu0 }
 0x2dc   : > { %v9280_v40 = vpop.f32.mrf.mxu1  ;;  %v12561_v47 = vadd.f32 %v9393_v8, %v9392_v10 }
 0x2dd   : > { %v12559_v54 = vadd.f32 %v9279_v2, %v12354_v61  ;;  %v9395_v60 = vpop.f32.mrf.mxu0 }
 0x2de   : > { %13164 = vst [vmem:[#allocation95_spill] sm:$0xff] %v12561_v47  ;;  %v9281_v63 = vpop.f32.mrf.mxu1 }
 0x2df   : > { %13163 = vst [vmem:[#allocation94_spill] sm:$0xff] %v12559_v54  ;;  %v9282_v51 = vadd.f32 %v9281_v63, %v9280_v40  ;;  %v9396_v32 = vpop.f32.mrf.mxu0 }
 0x2e0   : > { %v9283_v27 = vpop.f32.mrf.mxu1  ;;  %v12566_v30 = vadd.f32 %v9396_v32, %v9395_v60 }
 0x2e1   : > { %v12564_v7 = vadd.f32 %v9282_v51, %v12358_v57  ;;  %v9526_v62 = vpop.f32.mrf.mxu0 }
 0x2e2   : > { %13166 = vst [vmem:[#allocation9_spill] sm:$0xff] %v12566_v30  ;;  %v9284_v14 = vpop.f32.mrf.mxu1 }
 0x2e3   : > { %13165 = vst [vmem:[#allocation41_spill] sm:$0xff] %v12564_v7  ;;  %v9285_v22 = vadd.f32 %v9284_v14, %v9283_v27  ;;  %v9527_v42 = vpop.f32.mrf.mxu0 }
 0x2e4   : > { %v9414_v18 = vpop.f32.mrf.mxu1  ;;  %v9528_v54 = vadd.f32 %v9527_v42, %v9526_v62 }
 0x2e5   : > { %v12569_v61 = vadd.f32 %v9285_v22, %v12366_v39  ;;  %v9529_v10 = vpop.f32.mrf.mxu0  ;;  %v12576_v39 = vld [vmem:[%s12722_s7] ss:$0 sm:$0xff] }
 0x2e6   : > { %v9415_v8 = vpop.f32.mrf.mxu1 }
 0x2e7   : > { %13167 = vst [vmem:[#allocation42_spill] sm:$0xff] %v12569_v61  ;;  %v9416_v2 = vadd.f32 %v9415_v8, %v9414_v18  ;;  %v9530_v40 = vpop.f32.mrf.mxu0 }
 0x2e8   : > { %v9417_v47 = vpop.f32.mrf.mxu1  ;;  %v9531_v22 = vadd.f32 %v9530_v40, %v9529_v10 }
 0x2e9   : > { %v6860_v63 = vadd.f32 %v9416_v2, %v12363_v26  ;;  %v9532_v51 = vpop.f32.mrf.mxu0 }
 0x2ea   : > { %v9418_v57 = vpop.f32.mrf.mxu1 }
 0x2eb   : > { %v7021_v32 = vadd.f32 %v9528_v54, %v6860_v63  ;;  %v9419_v60 = vadd.f32 %v9418_v57, %v9417_v47  ;;  %v9533_v7 = vpop.f32.mrf.mxu0 }
 0x2ec   : > { %v9420_v30 = vpop.f32.mrf.mxu1  ;;  %v9534_v63 = vadd.f32 %v9533_v7, %v9532_v51 }
 0x2ed   : > { %v7147_v27 = vadd.f32 %v7021_v32, %v12369_v44  ;;  %v6863_v14 = vadd.f32 %v9419_v60, %v12371_v16  ;;  %v9535_v26 = vpop.f32.mrf.mxu0 }
 0x2ee   : > { %v9421_v18 = vpop.f32.mrf.mxu1 }
 0x2ef   : > { %v7024_v42 = vadd.f32 %v9531_v22, %v6863_v14  ;;  %v9422_v62 = vadd.f32 %v9421_v18, %v9420_v30  ;;  %v7186_v54 = vadd.f32 %v12576_v39, %v7147_v27  ;;  %v9536_v8 = vpop.f32.mrf.mxu0 }
 0x2f0   : > { %v9423_v47 = vpop.f32.mrf.mxu1  ;;  %v9537_v51 = vadd.f32 %v9536_v8, %v9535_v26 }
 0x2f1   : > { %v7148_v2 = vadd.f32 %v7024_v42, %v12377_v4  ;;  %v6868_v44 = vadd.f32 %v9422_v62, %v12379_v58  ;;  %v9538_v32 = vpop.f32.mrf.mxu0  ;;  %v7256_v40 = vmul.f32 %v7186_v54, %v7186_v54 }
 0x2f2   : > { %v9424_v57 = vpop.f32.mrf.mxu1 }
 0x2f3   : > { %v7187_v61 = vadd.f32 %v12576_v39, %v7148_v2  ;;  %v7029_v16 = vadd.f32 %v9534_v63, %v6868_v44  ;;  %v9425_v10 = vadd.f32 %v9424_v57, %v9423_v47  ;;  %v9539_v60 = vpop.f32.mrf.mxu0 }
 0x2f4   : > { %v9426_v30 = vpop.f32.mrf.mxu1 }
 0x2f5   : > { %v7218_v27 = vadd.f32 %v7187_v61, %v7186_v54  ;;  %v7257_v4 = vmul.f32 %v7187_v61, %v7187_v61  ;;  %v8522_v14 = vpack.c.bf16 %v7187_v61, %v7186_v54  ;;  %v7149_v58 = vadd.f32 %v7029_v16, %v12383_v29  ;;  %v9541_v18 = vpop.f32.mrf.mxu0  ;;  %v13169_v54 = vld [vmem:[#allocation17_spill] sm:$0xff] }
 0x2f6   : > { %v6871_v7 = vadd.f32 %v9425_v10, %v12385_v15  ;;  %v9427_v22 = vpop.f32.mrf.mxu1  ;;  %v9540_v61 = vadd.f32 %v9539_v60, %v9538_v32 }
 0x2f7   : > { %v7288_v42 = vadd.f32 %v7257_v4, %v7256_v40  ;;  %8523 = vst [vmem:[%s12587_s28] sm:$0xff] %v8522_v14   ;;  %v7188_v62 = vadd.f32 %v12576_v39, %v7149_v58  ;;  %v9428_v47 = vadd.f32 %v9427_v22, %v9426_v30  ;;  %v9542_v63 = vpop.f32.mrf.mxu0  ;;  %v13170_v14 = vld [vmem:[#allocation85_spill] sm:$0xff] }
 0x2f8   : > { %v7032_v2 = vadd.f32 %v9537_v51, %v6871_v7  ;;  %v9429_v44 = vpop.f32.mrf.mxu1  ;;  %v13171_v7 = vld [vmem:[#allocation28_spill] sm:$0xff]  ;;  %v9543_v51 = vadd.f32 %v9542_v63, %v9541_v18 }
 0x2f9   : > { %v7219_v57 = vadd.f32 %v7218_v27, %v7188_v62  ;;  %v7258_v46 = vmul.f32 %v7188_v62, %v7188_v62  ;;  %v6876_v9 = vadd.f32 %v9428_v47, %v13168_v37  ;;  %v9544_v15 = vpop.f32.mrf.mxu0 }
 0x2fa   : > { %v7150_v29 = vadd.f32 %v7032_v2, %v13169_v54  ;;  %v9430_v16 = vpop.f32.mrf.mxu1 }
 0x2fb   : > { %v7289_v26 = vadd.f32 %v7288_v42, %v7258_v46  ;;  %v7037_v8 = vadd.f32 %v9540_v61, %v6876_v9  ;;  %v9431_v10 = vadd.f32 %v9430_v16, %v9429_v44  ;;  %v9545_v30 = vpop.f32.mrf.mxu0 }
 0x2fc   : > { %v7189_v40 = vadd.f32 %v12576_v39, %v7150_v29  ;;  %v9432_v4 = vpop.f32.mrf.mxu1  ;;  %v9546_v44 = vadd.f32 %v9545_v30, %v9544_v15 }
 0x2fd   : > { %v7151_v58 = vadd.f32 %v7037_v8, %v13170_v14  ;;  %v6879_v27 = vadd.f32 %v9431_v10, %v13171_v7  ;;  %v9547_v47 = vpop.f32.mrf.mxu0  ;;  %v13172_v8 = vld [vmem:[#allocation19_spill] sm:$0xff]  ;;  %v13173_v10 = vld [vmem:[#allocation29_spill] sm:$0xff] }
 0x2fe   : > { %v7220_v22 = vadd.f32 %v7219_v57, %v7189_v40  ;;  %v7259_v37 = vmul.f32 %v7189_v40, %v7189_v40  ;;  %v8527_v32 = vpack.c.bf16 %v7189_v40, %v7188_v62  ;;  %v9433_v60 = vpop.f32.mrf.mxu1 }
 0x2ff   : > { %v7190_v2 = vadd.f32 %v12576_v39, %v7151_v58  ;;  %v7040_v46 = vadd.f32 %v9543_v51, %v6879_v27  ;;  %v9434_v9 = vadd.f32 %v9433_v60, %v9432_v4  ;;  %v9548_v54 = vpop.f32.mrf.mxu0  ;;  %v13174_v51 = vld [vmem:[#allocation81_spill] sm:$0xff] }
 0x300   : > { %v7290_v42 = vadd.f32 %v7289_v26, %v7259_v37  ;;  %8599 = vst [vmem:[%s12587_s28 + $0x8] sm:$0xff] %v8527_v32   ;;  %v9435_v61 = vpop.f32.mrf.mxu1  ;;  %v13175_v37 = vld [vmem:[#allocation87_spill] sm:$0xff]  ;;  %v9549_v60 = vadd.f32 %v9548_v54, %v9547_v47 }
 0x301   : > { %v7221_v29 = vadd.f32 %v7220_v22, %v7190_v2  ;;  %v7260_v16 = vmul.f32 %v7190_v2, %v7190_v2  ;;  %v7152_v14 = vadd.f32 %v7040_v46, %v13172_v8  ;;  %v6884_v18 = vadd.f32 %v9434_v9, %v13173_v10  ;;  %v9550_v57 = vpop.f32.mrf.mxu0 }
 0x302   : > { %v9436_v63 = vpop.f32.mrf.mxu1 }
 0x303   : > { %v7291_v62 = vadd.f32 %v7290_v42, %v7260_v16  ;;  %v7191_v40 = vadd.f32 %v12576_v39, %v7152_v14  ;;  %v7045_v58 = vadd.f32 %v9546_v44, %v6884_v18  ;;  %v9437_v7 = vadd.f32 %v9436_v63, %v9435_v61  ;;  %v9551_v26 = vpop.f32.mrf.mxu0 }
 0x304   : > { %v9438_v4 = vpop.f32.mrf.mxu1 }
 0x305   : > { %v7222_v27 = vadd.f32 %v7221_v29, %v7191_v40  ;;  %v7261_v15 = vmul.f32 %v7191_v40, %v7191_v40  ;;  %v8532_v30 = vpack.c.bf16 %v7191_v40, %v7190_v2  ;;  %v7153_v22 = vadd.f32 %v7045_v58, %v13174_v51  ;;  %v9553_v9 = vpop.f32.mrf.mxu0  ;;  %v13176_v29 = vld [vmem:[#allocation35_spill] sm:$0xff]  ;;  %v13177_v40 = vld [vmem:[#allocation88_spill] sm:$0xff] }
 0x306   : > { %v6887_v32 = vadd.f32 %v9437_v7, %v13175_v37  ;;  %v9439_v46 = vpop.f32.mrf.mxu1  ;;  %v9552_v2 = vadd.f32 %v9551_v26, %v9550_v57 }
 0x307   : > { %v7292_v8 = vadd.f32 %v7291_v62, %v7261_v15  ;;  %8600 = vst [vmem:[%s12587_s28 + $0x10] sm:$0xff] %v8532_v30   ;;  %v7192_v42 = vadd.f32 %v12576_v39, %v7153_v22  ;;  %v9440_v16 = vadd.f32 %v9439_v46, %v9438_v4  ;;  %v9554_v61 = vpop.f32.mrf.mxu0 }
 0x308   : > { %v7048_v14 = vadd.f32 %v9549_v60, %v6887_v32  ;;  %v9441_v44 = vpop.f32.mrf.mxu1  ;;  %v9555_v22 = vadd.f32 %v9554_v61, %v9553_v9 }
 0x309   : > { %v7223_v10 = vadd.f32 %v7222_v27, %v7192_v42  ;;  %v7262_v18 = vmul.f32 %v7192_v42, %v7192_v42  ;;  %v6892_v63 = vadd.f32 %v9440_v16, %v13176_v29  ;;  %v9556_v7 = vpop.f32.mrf.mxu0 }
 0x30a   : > { %v7154_v58 = vadd.f32 %v7048_v14, %v13177_v40  ;;  %v9442_v51 = vpop.f32.mrf.mxu1 }
 0x30b   : > { %v7293_v47 = vadd.f32 %v7292_v8, %v7262_v18  ;;  %v7053_v54 = vadd.f32 %v9552_v2, %v6892_v63  ;;  %v9443_v37 = vadd.f32 %v9442_v51, %v9441_v44  ;;  %v9557_v4 = vpop.f32.mrf.mxu0 }
 0x30c   : > { %v7193_v62 = vadd.f32 %v12576_v39, %v7154_v58  ;;  %v9444_v15 = vpop.f32.mrf.mxu1  ;;  %v9558_v18 = vadd.f32 %v9557_v4, %v9556_v7 }
 0x30d   : > { %v7155_v30 = vadd.f32 %v7053_v54, %v12444_v50  ;;  %v6895_v27 = vadd.f32 %v9443_v37, %v12446_v35  ;;  %v9559_v46 = vpop.f32.mrf.mxu0 }
 0x30e   : > { %v7224_v32 = vadd.f32 %v7223_v10, %v7193_v62  ;;  %v7263_v60 = vmul.f32 %v7193_v62, %v7193_v62  ;;  %v8537_v57 = vpack.c.bf16 %v7193_v62, %v7192_v42  ;;  %v9445_v26 = vpop.f32.mrf.mxu1 }
 0x30f   : > { %v7194_v16 = vadd.f32 %v12576_v39, %v7155_v30  ;;  %v7056_v8 = vadd.f32 %v9555_v22, %v6895_v27  ;;  %v9446_v14 = vadd.f32 %v9445_v26, %v9444_v15  ;;  %v9560_v63 = vpop.f32.mrf.mxu0 }
 0x310   : > { %v7294_v44 = vadd.f32 %v7293_v47, %v7263_v60  ;;  %8601 = vst [vmem:[%s12587_s28 + $0x18] sm:$0xff] %v8537_v57   ;;  %v9447_v29 = vpop.f32.mrf.mxu1 }
 0x311   : > { %v7225_v2 = vadd.f32 %v7224_v32, %v7194_v16  ;;  %v7264_v40 = vmul.f32 %v7194_v16, %v7194_v16  ;;  %v7156_v50 = vadd.f32 %v7056_v8, %v12455_v1  ;;  %v6900_v35 = vadd.f32 %v9446_v14, %v12457_v49  ;;  %v9562_v61 = vpop.f32.mrf.mxu0 }
 0x312   : > { %v9448_v9 = vpop.f32.mrf.mxu1  ;;  %v9561_v1 = vadd.f32 %v9560_v63, %v9559_v46 }
 0x313   : > { %v7295_v42 = vadd.f32 %v7294_v44, %v7264_v40  ;;  %v7195_v10 = vadd.f32 %v12576_v39, %v7156_v50  ;;  %v7061_v58 = vadd.f32 %v9558_v18, %v6900_v35  ;;  %v9449_v51 = vadd.f32 %v9448_v9, %v9447_v29  ;;  %v9563_v47 = vpop.f32.mrf.mxu0 }
 0x314   : > { %v9450_v54 = vpop.f32.mrf.mxu1 }
 0x315   : > { %v7226_v37 = vadd.f32 %v7225_v2, %v7195_v10  ;;  %v7265_v7 = vmul.f32 %v7195_v10, %v7195_v10  ;;  %v8542_v62 = vpack.c.bf16 %v7195_v10, %v7194_v16  ;;  %v7157_v15 = vadd.f32 %v7061_v58, %v12464_v12  ;;  %v9565_v49 = vpop.f32.mrf.mxu0 }
 0x316   : > { %v6903_v4 = vadd.f32 %v9449_v51, %v12466_v55  ;;  %v9451_v30 = vpop.f32.mrf.mxu1  ;;  %v9564_v16 = vadd.f32 %v9563_v47, %v9562_v61 }
 0x317   : > { %v7296_v27 = vadd.f32 %v7295_v42, %v7265_v7  ;;  %8602 = vst [vmem:[%s12587_s28 + $0x20] sm:$0xff] %v8542_v62   ;;  %v7196_v22 = vadd.f32 %v12576_v39, %v7157_v15  ;;  %v9452_v32 = vadd.f32 %v9451_v30, %v9450_v54  ;;  %v9566_v26 = vpop.f32.mrf.mxu0 }
 0x318   : > { %v7064_v60 = vadd.f32 %v9561_v1, %v6903_v4  ;;  %v9453_v57 = vpop.f32.mrf.mxu1  ;;  %v9567_v42 = vadd.f32 %v9566_v26, %v9565_v49 }
 0x319   : > { %v7227_v8 = vadd.f32 %v7226_v37, %v7196_v22  ;;  %v7266_v14 = vmul.f32 %v7196_v22, %v7196_v22  ;;  %v6908_v44 = vadd.f32 %v9452_v32, %v12471_v59  ;;  %v9568_v55 = vpop.f32.mrf.mxu0 }
 0x31a   : > { %v7158_v12 = vadd.f32 %v7064_v60, %v12469_v52  ;;  %v9454_v18 = vpop.f32.mrf.mxu1 }
 0x31b   : > { %v7297_v46 = vadd.f32 %v7296_v27, %v7266_v14  ;;  %v7069_v29 = vadd.f32 %v9564_v16, %v6908_v44  ;;  %v9455_v63 = vadd.f32 %v9454_v18, %v9453_v57  ;;  %v9569_v50 = vpop.f32.mrf.mxu0 }
 0x31c   : > { %v7197_v2 = vadd.f32 %v12576_v39, %v7158_v12  ;;  %v9456_v40 = vpop.f32.mrf.mxu1  ;;  %v9570_v7 = vadd.f32 %v9569_v50, %v9568_v55 }
 0x31d   : > { %v7159_v35 = vadd.f32 %v7069_v29, %v12474_v48  ;;  %v6911_v9 = vadd.f32 %v9455_v63, %v12476_v31  ;;  %v9571_v52 = vpop.f32.mrf.mxu0 }
 0x31e   : > { %v7228_v10 = vadd.f32 %v7227_v8, %v7197_v2  ;;  %v7267_v59 = vmul.f32 %v7197_v2, %v7197_v2  ;;  %v8547_v61 = vpack.c.bf16 %v7197_v2, %v7196_v22  ;;  %v9457_v58 = vpop.f32.mrf.mxu1 }
 0x31f   : > { %v7198_v51 = vadd.f32 %v12576_v39, %v7159_v35  ;;  %v7072_v54 = vadd.f32 %v9567_v42, %v6911_v9  ;;  %v9458_v47 = vadd.f32 %v9457_v58, %v9456_v40  ;;  %v9572_v15 = vpop.f32.mrf.mxu0 }
 0x320   : > { %v7298_v37 = vadd.f32 %v7297_v46, %v7267_v59  ;;  %8603 = vst [vmem:[%s12587_s28 + $0x28] sm:$0xff] %v8547_v61   ;;  %v9459_v62 = vpop.f32.mrf.mxu1 }
 0x321   : > { %v7229_v4 = vadd.f32 %v7228_v10, %v7198_v51  ;;  %v7268_v1 = vmul.f32 %v7198_v51, %v7198_v51  ;;  %v7160_v48 = vadd.f32 %v7072_v54, %v12479_v56  ;;  %v6916_v31 = vadd.f32 %v9458_v47, %v12481_v6  ;;  %v9574_v49 = vpop.f32.mrf.mxu0 }
 0x322   : > { %v9460_v30 = vpop.f32.mrf.mxu1  ;;  %v9573_v56 = vadd.f32 %v9572_v15, %v9571_v52 }
 0x323   : > { %v7299_v27 = vadd.f32 %v7298_v37, %v7268_v1  ;;  %v7199_v22 = vadd.f32 %v12576_v39, %v7160_v48  ;;  %v7077_v32 = vadd.f32 %v9570_v7, %v6916_v31  ;;  %v9461_v60 = vadd.f32 %v9460_v30, %v9459_v62  ;;  %v9575_v26 = vpop.f32.mrf.mxu0 }
 0x324   : > { %v9462_v57 = vpop.f32.mrf.mxu1  ;;  %v9576_v42 = vadd.f32 %v9575_v26, %v9574_v49 }
 0x325   : > { %v7230_v8 = vadd.f32 %v7229_v4, %v7199_v22  ;;  %v7269_v14 = vmul.f32 %v7199_v22, %v7199_v22  ;;  %v8552_v44 = vpack.c.bf16 %v7199_v22, %v7198_v51  ;;  %v7161_v16 = vadd.f32 %v7077_v32, %v12484_v11  ;;  %v9577_v6 = vpop.f32.mrf.mxu0 }
 0x326   : > { %v6919_v12 = vadd.f32 %v9461_v60, %v12486_v0  ;;  %v9463_v18 = vpop.f32.mrf.mxu1 }
 0x327   : > { %v7300_v55 = vadd.f32 %v7299_v27, %v7269_v14  ;;  %8604 = vst [vmem:[%s12587_s28 + $0x30] sm:$0xff] %v8552_v44   ;;  %v7200_v46 = vadd.f32 %v12576_v39, %v7161_v16  ;;  %v9464_v29 = vadd.f32 %v9463_v18, %v9462_v57  ;;  %v9578_v40 = vpop.f32.mrf.mxu0 }
 0x328   : > { %v7080_v63 = vadd.f32 %v9573_v56, %v6919_v12  ;;  %v9465_v2 = vpop.f32.mrf.mxu1  ;;  %v9579_v7 = vadd.f32 %v9578_v40, %v9577_v6 }
 0x329   : > { %v7231_v50 = vadd.f32 %v7230_v8, %v7200_v46  ;;  %v7270_v35 = vmul.f32 %v7200_v46, %v7200_v46  ;;  %v6924_v9 = vadd.f32 %v9464_v29, %v12491_v36  ;;  %v9580_v0 = vpop.f32.mrf.mxu0 }
 0x32a   : > { %v7162_v11 = vadd.f32 %v7080_v63, %v12489_v23  ;;  %v9466_v10 = vpop.f32.mrf.mxu1 }
 0x32b   : > { %v7301_v59 = vadd.f32 %v7300_v55, %v7270_v35  ;;  %v7085_v61 = vadd.f32 %v9576_v42, %v6924_v9  ;;  %v9467_v58 = vadd.f32 %v9466_v10, %v9465_v2  ;;  %v9581_v54 = vpop.f32.mrf.mxu0 }
 0x32c   : > { %v7201_v52 = vadd.f32 %v12576_v39, %v7162_v11  ;;  %v9468_v51 = vpop.f32.mrf.mxu1  ;;  %v9582_v49 = vadd.f32 %v9581_v54, %v9580_v0 }
 0x32d   : > { %v7163_v47 = vadd.f32 %v7085_v61, %v12494_v24  ;;  %v6927_v37 = vadd.f32 %v9467_v58, %v12496_v19  ;;  %v9583_v23 = vpop.f32.mrf.mxu0 }
 0x32e   : > { %v7232_v62 = vadd.f32 %v7231_v50, %v7201_v52  ;;  %v7271_v36 = vmul.f32 %v7201_v52, %v7201_v52  ;;  %v8557_v15 = vpack.c.bf16 %v7201_v52, %v7200_v46  ;;  %v9469_v4 = vpop.f32.mrf.mxu1 }
 0x32f   : > { %v7202_v1 = vadd.f32 %v12576_v39, %v7163_v47  ;;  %v7088_v48 = vadd.f32 %v9579_v7, %v6927_v37  ;;  %v9470_v31 = vadd.f32 %v9469_v4, %v9468_v51  ;;  %v9584_v22 = vpop.f32.mrf.mxu0 }
 0x330   : > { %v7302_v30 = vadd.f32 %v7301_v59, %v7271_v36  ;;  %8605 = vst [vmem:[%s12587_s28 + $0x38] sm:$0xff] %v8557_v15   ;;  %v9471_v27 = vpop.f32.mrf.mxu1 }
 0x331   : > { %v7233_v32 = vadd.f32 %v7232_v62, %v7202_v1  ;;  %v7272_v60 = vmul.f32 %v7202_v1, %v7202_v1  ;;  %v7164_v24 = vadd.f32 %v7088_v48, %v12499_v17  ;;  %v6932_v19 = vadd.f32 %v9470_v31, %v12501_v38  ;;  %v9586_v26 = vpop.f32.mrf.mxu0 }
 0x332   : > { %v9472_v57 = vpop.f32.mrf.mxu1  ;;  %v9585_v17 = vadd.f32 %v9584_v22, %v9583_v23 }
 0x333   : > { %v7303_v8 = vadd.f32 %v7302_v30, %v7272_v60  ;;  %v7203_v14 = vadd.f32 %v12576_v39, %v7164_v24  ;;  %v7093_v44 = vadd.f32 %v9582_v49, %v6932_v19  ;;  %v9473_v16 = vadd.f32 %v9472_v57, %v9471_v27  ;;  %v9587_v56 = vpop.f32.mrf.mxu0 }
 0x334   : > { %v9474_v12 = vpop.f32.mrf.mxu1  ;;  %v9588_v59 = vadd.f32 %v9587_v56, %v9586_v26 }
 0x335   : > { %v7234_v18 = vadd.f32 %v7233_v32, %v7203_v14  ;;  %v7273_v6 = vmul.f32 %v7203_v14, %v7203_v14  ;;  %v8562_v55 = vpack.c.bf16 %v7203_v14, %v7202_v1  ;;  %v7165_v46 = vadd.f32 %v7093_v44, %v12504_v28  ;;  %v9589_v38 = vpop.f32.mrf.mxu0 }
 0x336   : > { %v6935_v29 = vadd.f32 %v9473_v16, %v12506_v20  ;;  %v9475_v63 = vpop.f32.mrf.mxu1 }
 0x337   : > { %v7304_v2 = vadd.f32 %v7303_v8, %v7273_v6  ;;  %8606 = vst [vmem:[%s12587_s28 + $0x40] sm:$0xff] %v8562_v55   ;;  %v7204_v40 = vadd.f32 %v12576_v39, %v7165_v46  ;;  %v9476_v50 = vadd.f32 %v9475_v63, %v9474_v12  ;;  %v9590_v42 = vpop.f32.mrf.mxu0 }
 0x338   : > { %v7096_v35 = vadd.f32 %v9585_v17, %v6935_v29  ;;  %v9477_v9 = vpop.f32.mrf.mxu1  ;;  %v9591_v36 = vadd.f32 %v9590_v42, %v9589_v38 }
 0x339   : > { %v7235_v11 = vadd.f32 %v7234_v18, %v7204_v40  ;;  %v7274_v10 = vmul.f32 %v7204_v40, %v7204_v40  ;;  %v6940_v0 = vadd.f32 %v9476_v50, %v12511_v33  ;;  %v9592_v20 = vpop.f32.mrf.mxu0 }
 0x33a   : > { %v7166_v28 = vadd.f32 %v7096_v35, %v12509_v53  ;;  %v9478_v61 = vpop.f32.mrf.mxu1 }
 0x33b   : > { %v7305_v58 = vadd.f32 %v7304_v2, %v7274_v10  ;;  %v7101_v52 = vadd.f32 %v9588_v59, %v6940_v0  ;;  %v9479_v51 = vadd.f32 %v9478_v61, %v9477_v9  ;;  %v9593_v37 = vpop.f32.mrf.mxu0 }
 0x33c   : > { %v7205_v54 = vadd.f32 %v12576_v39, %v7166_v28  ;;  %v9480_v47 = vpop.f32.mrf.mxu1  ;;  %v9594_v49 = vadd.f32 %v9593_v37, %v9592_v20 }
 0x33d   : > { %v7167_v7 = vadd.f32 %v7101_v52, %v12514_v5  ;;  %v6943_v62 = vadd.f32 %v9479_v51, %v12516_v13  ;;  %v9595_v53 = vpop.f32.mrf.mxu0  ;;  %v13179_v51 = vld [vmem:[#allocation36_spill] sm:$0xff] }
 0x33e   : > { %v7236_v15 = vadd.f32 %v7235_v11, %v7205_v54  ;;  %v7275_v33 = vmul.f32 %v7205_v54, %v7205_v54  ;;  %v8567_v4 = vpack.c.bf16 %v7205_v54, %v7204_v40  ;;  %v9481_v23 = vpop.f32.mrf.mxu1  ;;  %v13178_v11 = vld [vmem:[#allocation82_spill] sm:$0xff] }
 0x33f   : > { %v7206_v1 = vadd.f32 %v12576_v39, %v7167_v7  ;;  %v7104_v48 = vadd.f32 %v9591_v36, %v6943_v62  ;;  %v9482_v31 = vadd.f32 %v9481_v23, %v9480_v47  ;;  %v9596_v22 = vpop.f32.mrf.mxu0 }
 0x340   : > { %v7306_v30 = vadd.f32 %v7305_v58, %v7275_v33  ;;  %8607 = vst [vmem:[%s12587_s28 + $0x48] sm:$0xff] %v8567_v4   ;;  %v9483_v27 = vpop.f32.mrf.mxu1 }
 0x341   : > { %v7237_v32 = vadd.f32 %v7236_v15, %v7206_v1  ;;  %v7276_v60 = vmul.f32 %v7206_v1, %v7206_v1  ;;  %v7168_v5 = vadd.f32 %v7104_v48, %v12519_v34  ;;  %v6948_v13 = vadd.f32 %v9482_v31, %v12521_v25  ;;  %v9598_v19 = vpop.f32.mrf.mxu0 }
 0x342   : > { %v9484_v24 = vpop.f32.mrf.mxu1  ;;  %v9597_v34 = vadd.f32 %v9596_v22, %v9595_v53 }
 0x343   : > { %v7307_v57 = vadd.f32 %v7306_v30, %v7276_v60  ;;  %v7207_v26 = vadd.f32 %v12576_v39, %v7168_v5  ;;  %v7109_v8 = vadd.f32 %v9594_v49, %v6948_v13  ;;  %v9485_v14 = vadd.f32 %v9484_v24, %v9483_v27  ;;  %v9599_v16 = vpop.f32.mrf.mxu0  ;;  %v13180_v49 = vld [vmem:[#allocation83_spill] sm:$0xff] }
 0x344   : > { %v9486_v44 = vpop.f32.mrf.mxu1  ;;  %v9600_v42 = vadd.f32 %v9599_v16, %v9598_v19 }
 0x345   : > { %v7238_v12 = vadd.f32 %v7237_v32, %v7207_v26  ;;  %v7277_v56 = vmul.f32 %v7207_v26, %v7207_v26  ;;  %v8572_v18 = vpack.c.bf16 %v7207_v26, %v7206_v1  ;;  %v7169_v6 = vadd.f32 %v7109_v8, %v12524_v3  ;;  %v9601_v25 = vpop.f32.mrf.mxu0 }
 0x346   : > { %v6951_v55 = vadd.f32 %v9485_v14, %v12526_v45  ;;  %v9487_v46 = vpop.f32.mrf.mxu1 }
 0x347   : > { %v7308_v29 = vadd.f32 %v7307_v57, %v7277_v56  ;;  %8608 = vst [vmem:[%s12587_s28 + $0x50] sm:$0xff] %v8572_v18   ;;  %v7208_v17 = vadd.f32 %v12576_v39, %v7169_v6  ;;  %v9488_v63 = vadd.f32 %v9487_v46, %v9486_v44  ;;  %v9602_v40 = vpop.f32.mrf.mxu0  ;;  %v13181_v44 = vld [vmem:[#allocation91_spill] sm:$0xff] }
 0x348   : > { %v7112_v38 = vadd.f32 %v9597_v34, %v6951_v55  ;;  %v9489_v2 = vpop.f32.mrf.mxu1  ;;  %v9603_v47 = vadd.f32 %v9602_v40, %v9601_v25 }
 0x349   : > { %v7239_v50 = vadd.f32 %v7238_v12, %v7208_v17  ;;  %v7278_v35 = vmul.f32 %v7208_v17, %v7208_v17  ;;  %v6956_v9 = vadd.f32 %v9488_v63, %v12531_v43  ;;  %v9604_v45 = vpop.f32.mrf.mxu0  ;;  %v13182_v12 = vld [vmem:[#allocation92_spill] sm:$0xff] }
 0x34a   : > { %v7170_v3 = vadd.f32 %v7112_v38, %v13178_v11  ;;  %v9490_v10 = vpop.f32.mrf.mxu1 }
 0x34b   : > { %v7309_v0 = vadd.f32 %v7308_v29, %v7278_v35  ;;  %v7117_v59 = vadd.f32 %v9600_v42, %v6956_v9  ;;  %v9491_v28 = vadd.f32 %v9490_v10, %v9489_v2  ;;  %v9605_v58 = vpop.f32.mrf.mxu0  ;;  %v13183_v2 = vld [vmem:[#allocation84_spill] sm:$0xff]  ;;  %v13184_v35 = vld [vmem:[#allocation39_spill] sm:$0xff] }
 0x34c   : > { %v7209_v61 = vadd.f32 %v12576_v39, %v7170_v3  ;;  %v9492_v20 = vpop.f32.mrf.mxu1  ;;  %v9606_v53 = vadd.f32 %v9605_v58, %v9604_v45  ;;  %v13186_v58 = vld [vmem:[#allocation8_spill] sm:$0xff] }
 0x34d   : > { %v7171_v52 = vadd.f32 %v7117_v59, %v12534_v21  ;;  %v6959_v54 = vadd.f32 %v9491_v28, %v13179_v51  ;;  %v9607_v36 = vpop.f32.mrf.mxu0 }
 0x34e   : > { %v7240_v37 = vadd.f32 %v7239_v50, %v7209_v61  ;;  %v7279_v43 = vmul.f32 %v7209_v61, %v7209_v61  ;;  %v8577_v7 = vpack.c.bf16 %v7209_v61, %v7208_v17  ;;  %v9493_v62 = vpop.f32.mrf.mxu1  ;;  %v13185_v61 = vld [vmem:[#allocation40_spill] sm:$0xff] }
 0x34f   : > { %v7210_v15 = vadd.f32 %v12576_v39, %v7171_v52  ;;  %v7120_v33 = vadd.f32 %v9603_v47, %v6959_v54  ;;  %v9494_v4 = vadd.f32 %v9493_v62, %v9492_v20  ;;  %v9608_v48 = vpop.f32.mrf.mxu0 }
 0x350   : > { %v7310_v23 = vadd.f32 %v7309_v0, %v7279_v43  ;;  %8609 = vst [vmem:[%s12587_s28 + $0x58] sm:$0xff] %v8577_v7   ;;  %v9495_v1 = vpop.f32.mrf.mxu1 }
 0x351   : > { %v7241_v31 = vadd.f32 %v7240_v37, %v7210_v15  ;;  %v7280_v30 = vmul.f32 %v7210_v15, %v7210_v15  ;;  %v7172_v21 = vadd.f32 %v7120_v33, %v12539_v41  ;;  %v6964_v27 = vadd.f32 %v9494_v4, %v13180_v49  ;;  %v9610_v32 = vpop.f32.mrf.mxu0 }
 0x352   : > { %v9496_v22 = vpop.f32.mrf.mxu1  ;;  %v9609_v41 = vadd.f32 %v9608_v48, %v9607_v36  ;;  %v13187_v48 = vld [vmem:[#allocation94_spill] sm:$0xff] }
 0x353   : > { %v7311_v60 = vadd.f32 %v7310_v23, %v7280_v30  ;;  %v7211_v5 = vadd.f32 %v12576_v39, %v7172_v21  ;;  %v7125_v13 = vadd.f32 %v9606_v53, %v6964_v27  ;;  %v9497_v24 = vadd.f32 %v9496_v22, %v9495_v1  ;;  %v9611_v57 = vpop.f32.mrf.mxu0  ;;  %v13188_v30 = vld [vmem:[#allocation95_spill] sm:$0xff] }
 0x354   : > { %v9498_v19 = vpop.f32.mrf.mxu1  ;;  %v9612_v50 = vadd.f32 %v9611_v57, %v9610_v32  ;;  %v13189_v57 = vld [vmem:[#allocation41_spill] sm:$0xff] }
 0x355   : > { %v7242_v26 = vadd.f32 %v7241_v31, %v7211_v5  ;;  %v7281_v8 = vmul.f32 %v7211_v5, %v7211_v5  ;;  %v8582_v14 = vpack.c.bf16 %v7211_v5, %v7210_v15  ;;  %v7173_v16 = vadd.f32 %v7125_v13, %v13181_v44  ;;  %v9613_v6 = vpop.f32.mrf.mxu0 }
 0x356   : > { %v6967_v56 = vadd.f32 %v9497_v24, %v13182_v12  ;;  %v9499_v18 = vpop.f32.mrf.mxu1 }
 0x357   : > { %v7312_v55 = vadd.f32 %v7311_v60, %v7281_v8  ;;  %8610 = vst [vmem:[%s12587_s28 + $0x60] sm:$0xff] %v8582_v14   ;;  %v7212_v34 = vadd.f32 %v12576_v39, %v7173_v16  ;;  %v9500_v46 = vadd.f32 %v9499_v18, %v9498_v19  ;;  %v9614_v17 = vpop.f32.mrf.mxu0  ;;  %v13190_v8 = vld [vmem:[#allocation9_spill] sm:$0xff] }
 0x358   : > { %v7128_v25 = vadd.f32 %v9609_v41, %v6967_v56  ;;  %v9501_v29 = vpop.f32.mrf.mxu1  ;;  %v9615_v51 = vadd.f32 %v9614_v17, %v9613_v6  ;;  %v13191_v6 = vld [vmem:[#allocation42_spill] sm:$0xff] }
 0x359   : > { %v7243_v63 = vadd.f32 %v7242_v26, %v7212_v34  ;;  %v7282_v38 = vmul.f32 %v7212_v34, %v7212_v34  ;;  %v6972_v40 = vadd.f32 %v9500_v46, %v13183_v2  ;;  %v9616_v11 = vpop.f32.mrf.mxu0 }
 0x35a   : > { %v7174_v9 = vadd.f32 %v7128_v25, %v13184_v35  ;;  %v9502_v42 = vpop.f32.mrf.mxu1 }
 0x35b   : > { %v7313_v3 = vadd.f32 %v7312_v55, %v7282_v38  ;;  %v7133_v10 = vadd.f32 %v9612_v50, %v6972_v40  ;;  %v9503_v45 = vadd.f32 %v9502_v42, %v9501_v29  ;;  %v9617_v28 = vpop.f32.mrf.mxu0 }
 0x35c   : > { %v7213_v0 = vadd.f32 %v12576_v39, %v7174_v9  ;;  %v9504_v59 = vpop.f32.mrf.mxu1  ;;  %v9618_v4 = vadd.f32 %v9617_v28, %v9616_v11 }
 0x35d   : > { %v7175_v20 = vadd.f32 %v7133_v10, %v13185_v61  ;;  %v6975_v52 = vadd.f32 %v9503_v45, %v13186_v58  ;;  %v9619_v15 = vpop.f32.mrf.mxu0 }
 0x35e   : > { %v7244_v54 = vadd.f32 %v7243_v63, %v7213_v0  ;;  %v7283_v47 = vmul.f32 %v7213_v0, %v7213_v0  ;;  %v8587_v37 = vpack.c.bf16 %v7213_v0, %v7212_v34  ;;  %v9505_v43 = vpop.f32.mrf.mxu1 }
 0x35f   : > { %v7214_v7 = vadd.f32 %v12576_v39, %v7175_v20  ;;  %v7136_v62 = vadd.f32 %v9615_v51, %v6975_v52  ;;  %v9506_v36 = vadd.f32 %v9505_v43, %v9504_v59  ;;  %v9620_v5 = vpop.f32.mrf.mxu0 }
 0x360   : > { %v7314_v33 = vadd.f32 %v7313_v3, %v7283_v47  ;;  %8611 = vst [vmem:[%s12587_s28 + $0x68] sm:$0xff] %v8587_v37   ;;  %v9507_v23 = vpop.f32.mrf.mxu1  ;;  %v9621_v44 = vadd.f32 %v9620_v5, %v9619_v15 }
 0x361   : > { %v7245_v53 = vadd.f32 %v7244_v54, %v7214_v7  ;;  %v7284_v1 = vmul.f32 %v7214_v7, %v7214_v7  ;;  %v7176_v31 = vadd.f32 %v7136_v62, %v13187_v48  ;;  %v6980_v21 = vadd.f32 %v9506_v36, %v13188_v30 }
 0x362   : > { %v9508_v49 = vpop.f32.mrf.mxu1 }
 0x363   : > { %v7315_v27 = vadd.f32 %v7314_v33, %v7284_v1  ;;  %v7215_v22 = vadd.f32 %v12576_v39, %v7176_v31  ;;  %v7141_v32 = vadd.f32 %v9618_v4, %v6980_v21  ;;  %v9509_v60 = vadd.f32 %v9508_v49, %v9507_v23 }
 0x365   : > { %v7246_v13 = vadd.f32 %v7245_v53, %v7215_v22  ;;  %v7285_v24 = vmul.f32 %v7215_v22, %v7215_v22  ;;  %v8592_v19 = vpack.c.bf16 %v7215_v22, %v7214_v7  ;;  %v7177_v26 = vadd.f32 %v7141_v32, %v13189_v57 }
 0x366   : > { %v6983_v14 = vadd.f32 %v9509_v60, %v13190_v8 }
 0x367   : > { %v7316_v16 = vadd.f32 %v7315_v27, %v7285_v24  ;;  %8612 = vst [vmem:[%s12587_s28 + $0x70] sm:$0xff] %v8592_v19   ;;  %v7216_v12 = vadd.f32 %v12576_v39, %v7177_v26 }
 0x368   : > { %v7144_v56 = vadd.f32 %v9621_v44, %v6983_v14 }
 0x369   : > { %v7247_v41 = vadd.f32 %v7246_v13, %v7216_v12  ;;  %v7286_v18 = vmul.f32 %v7216_v12, %v7216_v12 }
 0x36a   : > { %v7178_v55 = vadd.f32 %v7144_v56, %v13191_v6 }
 0x36b   : > { %v7317_v34 = vadd.f32 %v7316_v16, %v7286_v18 }
 0x36c   : > { %v7217_v46 = vadd.f32 %v12576_v39, %v7178_v55 }
 0x36e   : > { %v7248_v25 = vadd.f32 %v7247_v41, %v7217_v46  ;;  %v7287_v29 = vmul.f32 %v7217_v46, %v7217_v46  ;;  %v8597_v17 = vpack.c.bf16 %v7217_v46, %v7216_v12 }
 0x370   : > { %v7249_v63 = vrot.slane %v7248_v25, 4  ;;  %v7318_v38 = vadd.f32 %v7317_v34, %v7287_v29  ;;  %8613 = vst [vmem:[%s12587_s28 + $0x78] sm:$0xff] %v8597_v17  }
 0x372   : > { %v7250_v2 = vadd.f32 %v7249_v63, %v7248_v25  ;;  %v7319_v40 = vrot.slane %v7318_v38, 4 }
 0x374   : > { %v7251_v50 = vrot.slane %v7250_v2, 2  ;;  %v7320_v35 = vadd.f32 %v7319_v40, %v7318_v38 }
 0x376   : > { %v7252_v9 = vadd.f32 %v7251_v50, %v7250_v2  ;;  %v7321_v42 = vrot.slane %v7320_v35, 2 }
 0x378   : > { %v7253_v11 = vrot.slane %v7252_v9, 1  ;;  %v7322_v3 = vadd.f32 %v7321_v42, %v7320_v35 }
 0x37a   : > { %v7254_v39 = vadd.f32 %v7253_v11, %v7252_v9  ;;  %v7323_v10 = vrot.slane %v7322_v3, 1 }
 0x37c   : > { %7255 = vst [vmem:[%s684_s17] sm:$0x1] %v7254_v39  ;;  %v7324_v45 = vadd.f32 %v7323_v10, %v7322_v3 }
 0x37e   : > { %7325 = vst [vmem:[%s684_s17 + $0x1] sm:$0x1] %v7324_v45 }
 0x37f PF: > { %s20_s13 = sadd.s32 1, %s9937_s13   ;;  %s13192_s30 = smov %s9929_s11 }
 0x380   : > { %p17_p13 = scmp.ge.s32.totalorder %s20_s13, 10   ;;  %s13193_s10 = smov %s9933_s12 }
 0x381   : > { %s13194_s11 = smov %s13197_s14  ;;  %s13195_s12 = smov %s13201_s15 }
 0x382   :  { %19 = sbr.rel (!%p17_p13) target bundleno = 3 (0x3), region = 115 }

</bundles_post_ra>
